<compile_context>
chip_gen: v6e
topology: v6e:2x2x1
jax: 0.10.0
libtpu: 0.0.40
codegen_flags: <defaults>
</compile_context>

<pallas_src>
import jax
import jax.numpy as jnp
from jax import lax
from jax.experimental import pallas as pl
from jax.experimental.pallas import tpu as pltpu


def _round_up(x, m):
    return ((x + m - 1) // m) * m


def _resblock_kernel(x_hbm, w1_ref, w2_ref, p_ref, out_ref, xbuf_ref, sem):
    # x_hbm:   (N, H+4, Wpad, Cp) zero-padded input, left in HBM (pl.ANY)
    # w1_ref:  (3, 3*Cp, Cp)  conv1 weights, dw taps fused along contraction
    # w2_ref:  (3, 3*Cp, Cp)  conv2 weights, same layout
    # p_ref:   (5, Cp)        [scale1, shift1, prelu_alpha, scale2, shift2]
    # out_ref: (1, TH, W, Cp) output row-tile
    # xbuf_ref: VMEM (2, TH+4, Wpad, Cp) double-buffered input row window
    # sem:      DMA semaphores (2,)
    _, TH, W, Cp = out_ref.shape
    THp = TH + 4                 # input rows needed (2-row halo each side)
    Hy, Wy = TH + 2, W + 2       # intermediate (y) region incl. conv2 halo

    n = pl.program_id(0)
    i = pl.program_id(1)
    HT = pl.num_programs(1)
    H_total = HT * TH
    slot = i % 2

    # ---- manual, double-buffered DMA of this tile's input row window -------
    def _fetch(tile_idx, dst_slot):
        pltpu.make_async_copy(
            x_hbm.at[n, pl.ds(tile_idx * TH, THp)],
            xbuf_ref.at[dst_slot],
            sem.at[dst_slot],
        ).start()

    @pl.when(i == 0)             # prime the first tile of this image
    def _():
        _fetch(0, 0)

    @pl.when(i + 1 < HT)         # prefetch next tile (same image) into other slot
    def _():
        _fetch(i + 1, 1 - slot)

    pltpu.make_async_copy(
        x_hbm.at[n, pl.ds(i * TH, THp)], xbuf_ref.at[slot], sem.at[slot]
    ).wait()

    xt = xbuf_ref[slot]                                  # (THp, Wpad, Cp)
    w1 = w1_ref[...]
    w2 = w2_ref[...]
    p = p_ref[...]
    scale1, shift1, alpha = p[0:1, :], p[1:2, :], p[2:3, :]
    scale2, shift2 = p[3:4, :], p[4:5, :]

    # ---- conv1 (3x3 SAME) over the (Hy, Wy) halo region ---------------------
    # 3 matmuls with K = 3*Cp instead of 9 matmuls with K = Cp.
    acc = jnp.zeros((Hy * Wy, Cp), jnp.float32)
    for dh in range(3):
        slab = xt[dh:dh + Hy]                            # (Hy, Wpad, Cp)
        cat = jnp.concatenate(
            [slab[:, dw:dw + Wy, :] for dw in range(3)], axis=-1)
        acc = acc + jnp.dot(cat.reshape(Hy * Wy, 3 * Cp), w1[dh],
                            preferred_element_type=jnp.float32)

    # BN1 (folded with conv1 bias) + PReLU
    y = acc * scale1 + shift1
    y = jnp.where(y > 0, y, alpha * y)
    y = y.reshape(Hy, Wy, Cp)

    # Zero halo positions that fall outside the original image: this *is*
    # conv2's SAME zero padding (no VMEM scratch store/reload needed).
    row_id = lax.broadcasted_iota(jnp.int32, (Hy, Wy, 1), 0) + i * TH - 1
    col_id = lax.broadcasted_iota(jnp.int32, (Hy, Wy, 1), 1) - 1
    inside = ((row_id >= 0) & (row_id < H_total)
              & (col_id >= 0) & (col_id < W))
    y = jnp.where(inside, y, 0.0).astype(w2_ref.dtype)

    # ---- conv2 (3x3 SAME) producing the (TH, W) output tile -----------------
    acc2 = jnp.zeros((TH * W, Cp), jnp.float32)
    for dh in range(3):
        slab2 = y[dh:dh + TH]                            # (TH, Wy, Cp)
        cat2 = jnp.concatenate(
            [slab2[:, dw:dw + W, :] for dw in range(3)], axis=-1)
        acc2 = acc2 + jnp.dot(cat2.reshape(TH * W, 3 * Cp), w2[dh],
                              preferred_element_type=jnp.float32)

    # BN2 (folded with conv2 bias) + residual add
    y2 = acc2 * scale2 + shift2
    x_center = xt[2:TH + 2, 2:W + 2, :].reshape(TH * W, Cp)
    out = x_center.astype(jnp.float32) + y2
    out_ref[0] = out.reshape(TH, W, Cp).astype(out_ref.dtype)


def _pick_tile_h(H, W, Cp, budget_bytes=12 * 1024 * 1024):
    """Largest divisor of H whose per-tile VMEM working set fits the budget."""
    Wpad = _round_up(W + 4, 8)
    weights = 2 * 2 * 9 * Cp * Cp * 4            # both convs, double-buffered
    for th in range(H, 0, -1):
        if H % th:
            continue
        est = 4 * (2 * (th + 4) * Wpad * Cp      # double-buffered input window
                   + (th + 2) * (W + 2) * 5 * Cp  # cat slab + acc + y
                   + th * W * 4 * Cp              # cat2 + acc2
                   + 2 * th * W * Cp)             # double-buffered output block
        if est + weights <= budget_bytes:
            return th
    return 1


def residual_block_nhwc(x, w1_hwio, w2_hwio, params, *, tile_h=None):
    """x: (N, H, W, C); weights HWIO (3,3,C,C); params: (5, C) folded values."""
    N, H, W, C = x.shape
    Cp = _round_up(max(C, 128), 128)          # lane-dense channel axis
    Wpad = _round_up(W + 4, 8)                # sublane-aligned padded width

    if tile_h is None:
        tile_h = _pick_tile_h(H, W, Cp)
    TH = tile_h
    assert H % TH == 0, f"tile_h={TH} must divide H={H}"
    HT = H // TH

    # Single layout-plumbing pass: NHWC with channels padded to Cp and a
    # 2-pixel spatial halo so each h-tile can recompute conv1 for its conv2
    # halo rows.  Extra right-side W padding only rounds the sublane dim to 8.
    xp = jnp.pad(x, ((0, 0), (2, 2), (2, Wpad - W - 2), (0, Cp - C)))

    def pad_w(w):  # (3,3,C,C) HWIO -> (3, 3*Cp, Cp) with dw fused into K
        wp = jnp.pad(w, ((0, 0), (0, 0), (0, Cp - C), (0, Cp - C)))
        return wp.reshape(3, 3 * Cp, Cp)

    w1f = pad_w(w1_hwio)
    w2f = pad_w(w2_hwio)
    pp = jnp.pad(params, ((0, 0), (0, Cp - C)))

    out_padded = pl.pallas_call(
        _resblock_kernel,
        out_shape=jax.ShapeDtypeStruct((N, H, W, Cp), x.dtype),
        grid_spec=pltpu.PrefetchScalarGridSpec(
            num_scalar_prefetch=0,
            grid=(N, HT),
            in_specs=[
                pl.BlockSpec(memory_space=pl.ANY),               # x stays in HBM
                pl.BlockSpec((3, 3 * Cp, Cp), lambda n, i: (0, 0, 0)),
                pl.BlockSpec((3, 3 * Cp, Cp), lambda n, i: (0, 0, 0)),
                pl.BlockSpec((5, Cp), lambda n, i: (0, 0)),
            ],
            out_specs=pl.BlockSpec((1, TH, W, Cp), lambda n, i: (n, i, 0, 0)),
            scratch_shapes=[
                pltpu.VMEM((2, TH + 4, Wpad, Cp), x.dtype),
                pltpu.SemaphoreType.DMA((2,)),
            ],
        ),
        compiler_params=pltpu.CompilerParams(
            dimension_semantics=("parallel", "arbitrary")),
    )(xp, w1f, w2f, pp)
    return out_padded[..., :C]


def residual_block_nchw(x_nchw, w1_oihw, b1, bn1, alpha, w2_oihw, b2, bn2,
                        eps=1e-5, tile_h=None):
    """PyTorch-facing wrapper: NCHW in / NCHW out (eval-mode BatchNorm)."""
    gamma1, beta1, mean1, var1 = bn1
    gamma2, beta2, mean2, var2 = bn2
    C = x_nchw.shape[1]

    # Fold conv bias + BatchNorm (inference) into per-channel scale & shift.
    scale1 = gamma1 / jnp.sqrt(var1 + eps)
    shift1 = beta1 + scale1 * (b1 - mean1)
    scale2 = gamma2 / jnp.sqrt(var2 + eps)
    shift2 = beta2 + scale2 * (b2 - mean2)
    alpha_vec = jnp.full((C,), alpha, jnp.float32)   # PReLU single shared alpha
    params = jnp.stack([scale1, shift1, alpha_vec, scale2, shift2], axis=0)

    # OIHW -> HWIO, NCHW -> NHWC (layout plumbing).
    w1_hwio = jnp.transpose(w1_oihw, (2, 3, 1, 0))
    w2_hwio = jnp.transpose(w2_oihw, (2, 3, 1, 0))
    x_nhwc = jnp.transpose(x_nchw, (0, 2, 3, 1))

    out_nhwc = residual_block_nhwc(x_nhwc, w1_hwio, w2_hwio, params,
                                   tile_h=tile_h)
    return jnp.transpose(out_nhwc, (0, 3, 1, 2))


def _reference_nchw(x, w1, b1, bn1, alpha, w2, b2, bn2, eps=1e-5):
    """Pure-JAX reference matching PyTorch (eval-mode BN) semantics."""
    def bn(y, p):
        g, b, m, v = p
        return (g[None, :, None, None] * (y - m[None, :, None, None])
                / jnp.sqrt(v + eps)[None, :, None, None]
                + b[None, :, None, None])
    dn = ('NCHW', 'OIHW', 'NCHW')
    y = lax.conv_general_dilated(x, w1, (1, 1), 'SAME', dimension_numbers=dn)
    y = y + b1[None, :, None, None]
    y = bn(y, bn1)
    y = jnp.where(y > 0, y, alpha * y)
    y = lax.conv_general_dilated(y, w2, (1, 1), 'SAME', dimension_numbers=dn)
    y = y + b2[None, :, None, None]
    y = bn(y, bn2)
    return x + y


if __name__ == "__main__":
    N, C, H, W = 2, 4, 16, 16
    key = jax.random.PRNGKey(0)
    ks = jax.random.split(key, 16)

    x = jax.random.normal(ks[0], (N, C, H, W), jnp.float32)

    # Conv2d(C, C, 3, padding=1) params (OIHW) — deterministic synthetic init.
    w1 = 0.1 * jax.random.normal(ks[1], (C, C, 3, 3), jnp.float32)
    b1 = 0.1 * jax.random.normal(ks[2], (C,), jnp.float32)
    w2 = 0.1 * jax.random.normal(ks[3], (C, C, 3, 3), jnp.float32)
    b2 = 0.1 * jax.random.normal(ks[4], (C,), jnp.float32)

    # BatchNorm2d params (gamma, beta, running_mean, running_var).
    bn1 = (1.0 + 0.1 * jax.random.normal(ks[5], (C,), jnp.float32),
           0.1 * jax.random.normal(ks[6], (C,), jnp.float32),
           0.1 * jax.random.normal(ks[7], (C,), jnp.float32),
           jnp.abs(1.0 + 0.1 * jax.random.normal(ks[8], (C,), jnp.float32)))
    bn2 = (1.0 + 0.1 * jax.random.normal(ks[9], (C,), jnp.float32),
           0.1 * jax.random.normal(ks[10], (C,), jnp.float32),
           0.1 * jax.random.normal(ks[11], (C,), jnp.float32),
           jnp.abs(1.0 + 0.1 * jax.random.normal(ks[12], (C,), jnp.float32)))

    alpha = 0.25  # nn.PReLU() default: single shared parameter = 0.25

    ref = _reference_nchw(x, w1, b1, bn1, alpha, w2, b2, bn2)

    # Multi-tile path (grid = (2, 2)): exercises halo recompute, boundary
    # masking at the top/bottom tiles, and the cross-tile input prefetch.
    out = residual_block_nchw(x, w1, b1, bn1, alpha, w2, b2, bn2, tile_h=8)
    out = jax.block_until_ready(out)
    assert out.shape == (N, C, H, W)
    assert jnp.allclose(out, ref, atol=1e-4, rtol=1e-4), \
        f"max abs err {jnp.max(jnp.abs(out - ref))}"

    # Auto-picked tile (single h-tile) sanity check.
    out2 = residual_block_nchw(x, w1, b1, bn1, alpha, w2, b2, bn2)
    out2 = jax.block_until_ready(out2)
    assert jnp.allclose(out2, ref, atol=1e-4, rtol=1e-4), \
        f"max abs err {jnp.max(jnp.abs(out2 - ref))}"

    print("KERNEL_OK")
</pallas_src>

<mosaic_0001>
module attributes {stable_mosaic.version = 11 : i64} {
  func.func @_resblock_kernel(%arg0: i32, %arg1: i32, %arg2: memref<2x20x24x128xf32, #tpu.memory_space<any>>, %arg3: memref<3x384x128xf32, #tpu.memory_space<vmem>>, %arg4: memref<3x384x128xf32, #tpu.memory_space<vmem>>, %arg5: memref<5x128xf32, #tpu.memory_space<vmem>>, %arg6: memref<1x8x16x128xf32, #tpu.memory_space<vmem>>, %arg7: memref<2x12x24x128xf32, #tpu.memory_space<vmem>>, %arg8: memref<2x!tpu.dma_semaphore, #tpu.memory_space<semaphore_mem>>) attributes {dimension_semantics = [#tpu.dimension_semantics<parallel>, #tpu.dimension_semantics<arbitrary>], iteration_bounds = array<i64: 2, 2>, scalar_prefetch = 0 : i64, scratch_operands = 2 : i64, tpu.core_type = #tpu.core_type<tc>, window_params = [{}, {pipeline_mode = #tpu.pipeline_mode<synchronous>, transform_indices = @transform_1, window_bounds = array<i64: 3, 384, 128>}, {pipeline_mode = #tpu.pipeline_mode<synchronous>, transform_indices = @transform_2, window_bounds = array<i64: 3, 384, 128>}, {pipeline_mode = #tpu.pipeline_mode<synchronous>, transform_indices = @transform_3, window_bounds = array<i64: 5, 128>}, {transform_indices = @transform_4, window_bounds = array<i64: 1, 8, 16, 128>}]} {
    %c2_i32 = arith.constant 2 : i32
    %c0_i32 = arith.constant 0 : i32
    %0 = arith.cmpi eq, %c2_i32, %c0_i32 : i32
    %c1_i32 = arith.constant 1 : i32
    %1 = arith.select %0, %c1_i32, %c2_i32 : i32
    %2 = arith.remsi %arg1, %1 : i32
    %c0_i32_0 = arith.constant 0 : i32
    %3 = arith.cmpi ne, %2, %c0_i32_0 : i32
    %c0_i32_1 = arith.constant 0 : i32
    %4 = arith.cmpi slt, %2, %c0_i32_1 : i32
    %c0_i32_2 = arith.constant 0 : i32
    %5 = arith.cmpi slt, %1, %c0_i32_2 : i32
    %6 = arith.xori %4, %5 : i1
    %7 = arith.andi %6, %3 : i1
    %8 = arith.addi %2, %1 : i32
    %9 = arith.select %7, %8, %2 : i32
    %c0_i32_3 = arith.constant 0 : i32
    %10 = arith.cmpi eq, %arg1, %c0_i32_3 : i32
    %11 = arith.extui %10 : i1 to i32
    %c0_i32_4 = arith.constant 0 : i32
    %12 = arith.cmpi ne, %11, %c0_i32_4 : i32
    scf.if %12 {
      %c0_i32_42 = arith.constant 0 : i32
      %c0_i32_43 = arith.constant 0 : i32
      %c0_i32_44 = arith.constant 0 : i32
      %c0_i32_45 = arith.constant 0 : i32
      %c0_i32_46 = arith.constant 0 : i32
      %142 = tpu.memref_slice %arg2[%arg0, %c0_i32_44, %c0_i32_45, %c0_i32_46] : memref<2x20x24x128xf32, #tpu.memory_space<any>> -> memref<1x12x24x128xf32, #tpu.memory_space<any>>
      %143 = tpu.memref_squeeze %142 : memref<1x12x24x128xf32, #tpu.memory_space<any>> -> memref<12x24x128xf32, #tpu.memory_space<any>>
      %c0_i32_47 = arith.constant 0 : i32
      %c0_i32_48 = arith.constant 0 : i32
      %c0_i32_49 = arith.constant 0 : i32
      %144 = tpu.memref_slice %arg7[%c0_i32_42, %c0_i32_47, %c0_i32_48, %c0_i32_49] : memref<2x12x24x128xf32, #tpu.memory_space<vmem>> -> memref<1x12x24x128xf32, #tpu.memory_space<vmem>>
      %145 = tpu.memref_squeeze %144 : memref<1x12x24x128xf32, #tpu.memory_space<vmem>> -> memref<12x24x128xf32, #tpu.memory_space<vmem>>
      %146 = tpu.memref_slice %arg8[%c0_i32_43] : memref<2x!tpu.dma_semaphore, #tpu.memory_space<semaphore_mem>> -> memref<1x!tpu.dma_semaphore, #tpu.memory_space<semaphore_mem>>
      %147 = tpu.memref_squeeze %146 : memref<1x!tpu.dma_semaphore, #tpu.memory_space<semaphore_mem>> -> memref<!tpu.dma_semaphore, #tpu.memory_space<semaphore_mem>>
      tpu.enqueue_dma source(%143 : memref<12x24x128xf32, #tpu.memory_space<any>>) target(%145 : memref<12x24x128xf32, #tpu.memory_space<vmem>>) target_semaphore(%147 : memref<!tpu.dma_semaphore, #tpu.memory_space<semaphore_mem>>)
    } else {
    }
    %c1_i32_5 = arith.constant 1 : i32
    %13 = arith.addi %arg1, %c1_i32_5 : i32
    %c2_i32_6 = arith.constant 2 : i32
    %14 = arith.cmpi slt, %13, %c2_i32_6 : i32
    %15 = arith.extui %14 : i1 to i32
    %c0_i32_7 = arith.constant 0 : i32
    %16 = arith.cmpi ne, %15, %c0_i32_7 : i32
    scf.if %16 {
      %c1_i32_42 = arith.constant 1 : i32
      %142 = arith.addi %arg1, %c1_i32_42 : i32
      %c1_i32_43 = arith.constant 1 : i32
      %143 = arith.subi %c1_i32_43, %9 : i32
      %c8_i32_44 = arith.constant 8 : i32
      %144 = arith.muli %142, %c8_i32_44 : i32
      %c0_i32_45 = arith.constant 0 : i32
      %c0_i32_46 = arith.constant 0 : i32
      %145 = tpu.memref_slice %arg2[%arg0, %144, %c0_i32_45, %c0_i32_46] : memref<2x20x24x128xf32, #tpu.memory_space<any>> -> memref<1x12x24x128xf32, #tpu.memory_space<any>>
      %146 = tpu.memref_squeeze %145 : memref<1x12x24x128xf32, #tpu.memory_space<any>> -> memref<12x24x128xf32, #tpu.memory_space<any>>
      %c0_i32_47 = arith.constant 0 : i32
      %c0_i32_48 = arith.constant 0 : i32
      %c0_i32_49 = arith.constant 0 : i32
      %147 = tpu.memref_slice %arg7[%143, %c0_i32_47, %c0_i32_48, %c0_i32_49] : memref<2x12x24x128xf32, #tpu.memory_space<vmem>> -> memref<1x12x24x128xf32, #tpu.memory_space<vmem>>
      %148 = tpu.memref_squeeze %147 : memref<1x12x24x128xf32, #tpu.memory_space<vmem>> -> memref<12x24x128xf32, #tpu.memory_space<vmem>>
      %149 = tpu.memref_slice %arg8[%143] : memref<2x!tpu.dma_semaphore, #tpu.memory_space<semaphore_mem>> -> memref<1x!tpu.dma_semaphore, #tpu.memory_space<semaphore_mem>>
      %150 = tpu.memref_squeeze %149 : memref<1x!tpu.dma_semaphore, #tpu.memory_space<semaphore_mem>> -> memref<!tpu.dma_semaphore, #tpu.memory_space<semaphore_mem>>
      tpu.enqueue_dma source(%146 : memref<12x24x128xf32, #tpu.memory_space<any>>) target(%148 : memref<12x24x128xf32, #tpu.memory_space<vmem>>) target_semaphore(%150 : memref<!tpu.dma_semaphore, #tpu.memory_space<semaphore_mem>>)
    } else {
    }
    %c8_i32 = arith.constant 8 : i32
    %17 = arith.muli %arg1, %c8_i32 : i32
    %c0_i32_8 = arith.constant 0 : i32
    %c0_i32_9 = arith.constant 0 : i32
    %18 = tpu.memref_slice %arg2[%arg0, %17, %c0_i32_8, %c0_i32_9] : memref<2x20x24x128xf32, #tpu.memory_space<any>> -> memref<1x12x24x128xf32, #tpu.memory_space<any>>
    %19 = tpu.memref_squeeze %18 : memref<1x12x24x128xf32, #tpu.memory_space<any>> -> memref<12x24x128xf32, #tpu.memory_space<any>>
    %c0_i32_10 = arith.constant 0 : i32
    %c0_i32_11 = arith.constant 0 : i32
    %c0_i32_12 = arith.constant 0 : i32
    %20 = tpu.memref_slice %arg7[%9, %c0_i32_10, %c0_i32_11, %c0_i32_12] : memref<2x12x24x128xf32, #tpu.memory_space<vmem>> -> memref<1x12x24x128xf32, #tpu.memory_space<vmem>>
    %21 = tpu.memref_squeeze %20 : memref<1x12x24x128xf32, #tpu.memory_space<vmem>> -> memref<12x24x128xf32, #tpu.memory_space<vmem>>
    %22 = tpu.memref_slice %arg8[%9] : memref<2x!tpu.dma_semaphore, #tpu.memory_space<semaphore_mem>> -> memref<1x!tpu.dma_semaphore, #tpu.memory_space<semaphore_mem>>
    %23 = tpu.memref_squeeze %22 : memref<1x!tpu.dma_semaphore, #tpu.memory_space<semaphore_mem>> -> memref<!tpu.dma_semaphore, #tpu.memory_space<semaphore_mem>>
    tpu.wait_dma2 semaphore(%23 : memref<!tpu.dma_semaphore, #tpu.memory_space<semaphore_mem>>) src(%19 : memref<12x24x128xf32, #tpu.memory_space<any>>) dst(%21 : memref<12x24x128xf32, #tpu.memory_space<vmem>>)
    %24 = arith.index_cast %9 : i32 to index
    %c0 = arith.constant 0 : index
    %c0_13 = arith.constant 0 : index
    %c0_14 = arith.constant 0 : index
    %25 = vector.load %arg7[%24, %c0, %c0_13, %c0_14] : memref<2x12x24x128xf32, #tpu.memory_space<vmem>>, vector<1x12x24x128xf32>
    %26 = vector.shape_cast %25 : vector<1x12x24x128xf32> to vector<12x24x128xf32>
    %c0_15 = arith.constant 0 : index
    %c0_16 = arith.constant 0 : index
    %c0_17 = arith.constant 0 : index
    %27 = vector.load %arg3[%c0_15, %c0_16, %c0_17] : memref<3x384x128xf32, #tpu.memory_space<vmem>>, vector<3x384x128xf32>
    %c0_18 = arith.constant 0 : index
    %c0_19 = arith.constant 0 : index
    %c0_20 = arith.constant 0 : index
    %28 = vector.load %arg4[%c0_18, %c0_19, %c0_20] : memref<3x384x128xf32, #tpu.memory_space<vmem>>, vector<3x384x128xf32>
    %c0_21 = arith.constant 0 : index
    %c0_22 = arith.constant 0 : index
    %29 = vector.load %arg5[%c0_21, %c0_22] : memref<5x128xf32, #tpu.memory_space<vmem>>, vector<5x128xf32>
    %30 = vector.extract_strided_slice %29 {offsets = [0, 0], sizes = [1, 128], strides = [1, 1]} : vector<5x128xf32> to vector<1x128xf32>
    %31 = vector.extract_strided_slice %29 {offsets = [1, 0], sizes = [1, 128], strides = [1, 1]} : vector<5x128xf32> to vector<1x128xf32>
    %32 = vector.extract_strided_slice %29 {offsets = [2, 0], sizes = [1, 128], strides = [1, 1]} : vector<5x128xf32> to vector<1x128xf32>
    %33 = vector.extract_strided_slice %29 {offsets = [3, 0], sizes = [1, 128], strides = [1, 1]} : vector<5x128xf32> to vector<1x128xf32>
    %34 = vector.extract_strided_slice %29 {offsets = [4, 0], sizes = [1, 128], strides = [1, 1]} : vector<5x128xf32> to vector<1x128xf32>
    %cst = arith.constant 0.000000e+00 : f32
    %35 = vector.broadcast %cst : f32 to vector<180x128xf32>
    %36 = vector.extract_strided_slice %26 {offsets = [0, 0, 0], sizes = [10, 24, 128], strides = [1, 1, 1]} : vector<12x24x128xf32> to vector<10x24x128xf32>
    %37 = vector.extract_strided_slice %36 {offsets = [0, 0, 0], sizes = [10, 18, 128], strides = [1, 1, 1]} : vector<10x24x128xf32> to vector<10x18x128xf32>
    %38 = vector.extract_strided_slice %36 {offsets = [0, 1, 0], sizes = [10, 18, 128], strides = [1, 1, 1]} : vector<10x24x128xf32> to vector<10x18x128xf32>
    %39 = vector.extract_strided_slice %36 {offsets = [0, 2, 0], sizes = [10, 18, 128], strides = [1, 1, 1]} : vector<10x24x128xf32> to vector<10x18x128xf32>
    %40 = tpu.concatenate %37, %38, %39 in 2 : vector<10x18x128xf32>, vector<10x18x128xf32>, vector<10x18x128xf32> -> vector<10x18x384xf32>
    %41 = vector.shape_cast %40 : vector<10x18x384xf32> to vector<180x384xf32>
    %42 = vector.extract_strided_slice %27 {offsets = [0, 0, 0], sizes = [1, 384, 128], strides = [1, 1, 1]} : vector<3x384x128xf32> to vector<1x384x128xf32>
    %43 = vector.shape_cast %42 : vector<1x384x128xf32> to vector<384x128xf32>
    %cst_23 = arith.constant dense<0.000000e+00> : vector<180x128xf32>
    %44 = tpu.matmul %41, %43, %cst_23 {dimension_numbers = #tpu.dot_dimension_numbers<[1], [0], [0], [1], [0, 0, 1, 1], [], []>} : vector<180x384xf32>, vector<384x128xf32>, vector<180x128xf32> -> vector<180x128xf32>
    %45 = arith.addf %35, %44 : vector<180x128xf32>
    %46 = vector.extract_strided_slice %26 {offsets = [1, 0, 0], sizes = [10, 24, 128], strides = [1, 1, 1]} : vector<12x24x128xf32> to vector<10x24x128xf32>
    %47 = vector.extract_strided_slice %46 {offsets = [0, 0, 0], sizes = [10, 18, 128], strides = [1, 1, 1]} : vector<10x24x128xf32> to vector<10x18x128xf32>
    %48 = vector.extract_strided_slice %46 {offsets = [0, 1, 0], sizes = [10, 18, 128], strides = [1, 1, 1]} : vector<10x24x128xf32> to vector<10x18x128xf32>
    %49 = vector.extract_strided_slice %46 {offsets = [0, 2, 0], sizes = [10, 18, 128], strides = [1, 1, 1]} : vector<10x24x128xf32> to vector<10x18x128xf32>
    %50 = tpu.concatenate %47, %48, %49 in 2 : vector<10x18x128xf32>, vector<10x18x128xf32>, vector<10x18x128xf32> -> vector<10x18x384xf32>
    %51 = vector.shape_cast %50 : vector<10x18x384xf32> to vector<180x384xf32>
    %52 = vector.extract_strided_slice %27 {offsets = [1, 0, 0], sizes = [1, 384, 128], strides = [1, 1, 1]} : vector<3x384x128xf32> to vector<1x384x128xf32>
    %53 = vector.shape_cast %52 : vector<1x384x128xf32> to vector<384x128xf32>
    %cst_24 = arith.constant dense<0.000000e+00> : vector<180x128xf32>
    %54 = tpu.matmul %51, %53, %cst_24 {dimension_numbers = #tpu.dot_dimension_numbers<[1], [0], [0], [1], [0, 0, 1, 1], [], []>} : vector<180x384xf32>, vector<384x128xf32>, vector<180x128xf32> -> vector<180x128xf32>
    %55 = arith.addf %45, %54 : vector<180x128xf32>
    %56 = vector.extract_strided_slice %26 {offsets = [2, 0, 0], sizes = [10, 24, 128], strides = [1, 1, 1]} : vector<12x24x128xf32> to vector<10x24x128xf32>
    %57 = vector.extract_strided_slice %56 {offsets = [0, 0, 0], sizes = [10, 18, 128], strides = [1, 1, 1]} : vector<10x24x128xf32> to vector<10x18x128xf32>
    %58 = vector.extract_strided_slice %56 {offsets = [0, 1, 0], sizes = [10, 18, 128], strides = [1, 1, 1]} : vector<10x24x128xf32> to vector<10x18x128xf32>
    %59 = vector.extract_strided_slice %56 {offsets = [0, 2, 0], sizes = [10, 18, 128], strides = [1, 1, 1]} : vector<10x24x128xf32> to vector<10x18x128xf32>
    %60 = tpu.concatenate %57, %58, %59 in 2 : vector<10x18x128xf32>, vector<10x18x128xf32>, vector<10x18x128xf32> -> vector<10x18x384xf32>
    %61 = vector.shape_cast %60 : vector<10x18x384xf32> to vector<180x384xf32>
    %62 = vector.extract_strided_slice %27 {offsets = [2, 0, 0], sizes = [1, 384, 128], strides = [1, 1, 1]} : vector<3x384x128xf32> to vector<1x384x128xf32>
    %63 = vector.shape_cast %62 : vector<1x384x128xf32> to vector<384x128xf32>
    %cst_25 = arith.constant dense<0.000000e+00> : vector<180x128xf32>
    %64 = tpu.matmul %61, %63, %cst_25 {dimension_numbers = #tpu.dot_dimension_numbers<[1], [0], [0], [1], [0, 0, 1, 1], [], []>} : vector<180x384xf32>, vector<384x128xf32>, vector<180x128xf32> -> vector<180x128xf32>
    %65 = arith.addf %55, %64 : vector<180x128xf32>
    %66 = vector.broadcast %30 : vector<1x128xf32> to vector<180x128xf32>
    %67 = arith.mulf %65, %66 : vector<180x128xf32>
    %68 = vector.broadcast %31 : vector<1x128xf32> to vector<180x128xf32>
    %69 = arith.addf %67, %68 : vector<180x128xf32>
    %cst_26 = arith.constant 0.000000e+00 : f32
    %70 = vector.broadcast %cst_26 : f32 to vector<180x128xf32>
    %71 = arith.cmpf ogt, %69, %70 : vector<180x128xf32>
    %72 = vector.broadcast %32 : vector<1x128xf32> to vector<180x128xf32>
    %73 = arith.mulf %72, %69 : vector<180x128xf32>
    %74 = arith.select %71, %69, %73 : vector<180x128xi1>, vector<180x128xf32>
    %75 = vector.shape_cast %74 : vector<180x128xf32> to vector<10x18x128xf32>
    %76 = tpu.iota {dimensions = array<i32: 0>} : vector<10x18x1xi32>
    %c8_i32_27 = arith.constant 8 : i32
    %77 = arith.muli %arg1, %c8_i32_27 : i32
    %78 = vector.broadcast %77 : i32 to vector<10x18x1xi32>
    %79 = arith.addi %76, %78 : vector<10x18x1xi32>
    %c1_i32_28 = arith.constant 1 : i32
    %80 = vector.broadcast %c1_i32_28 : i32 to vector<10x18x1xi32>
    %81 = arith.subi %79, %80 : vector<10x18x1xi32>
    %82 = tpu.iota {dimensions = array<i32: 1>} : vector<10x18x1xi32>
    %c1_i32_29 = arith.constant 1 : i32
    %83 = vector.broadcast %c1_i32_29 : i32 to vector<10x18x1xi32>
    %84 = arith.subi %82, %83 : vector<10x18x1xi32>
    %c0_i32_30 = arith.constant 0 : i32
    %85 = vector.broadcast %c0_i32_30 : i32 to vector<10x18x1xi32>
    %86 = arith.cmpi sge, %81, %85 : vector<10x18x1xi32>
    %c16_i32 = arith.constant 16 : i32
    %87 = vector.broadcast %c16_i32 : i32 to vector<10x18x1xi32>
    %88 = arith.cmpi slt, %81, %87 : vector<10x18x1xi32>
    %89 = arith.andi %86, %88 : vector<10x18x1xi1>
    %c0_i32_31 = arith.constant 0 : i32
    %90 = vector.broadcast %c0_i32_31 : i32 to vector<10x18x1xi32>
    %91 = arith.cmpi sge, %84, %90 : vector<10x18x1xi32>
    %92 = arith.andi %89, %91 : vector<10x18x1xi1>
    %c16_i32_32 = arith.constant 16 : i32
    %93 = vector.broadcast %c16_i32_32 : i32 to vector<10x18x1xi32>
    %94 = arith.cmpi slt, %84, %93 : vector<10x18x1xi32>
    %95 = arith.andi %92, %94 : vector<10x18x1xi1>
    %cst_33 = arith.constant 0.000000e+00 : f32
    %96 = vector.shape_cast %95 : vector<10x18x1xi1> to vector<10x18x1xi1>
    %97 = vector.broadcast %96 : vector<10x18x1xi1> to vector<10x18x128xi1>
    %98 = vector.broadcast %cst_33 : f32 to vector<10x18x128xf32>
    %99 = arith.select %97, %75, %98 : vector<10x18x128xi1>, vector<10x18x128xf32>
    %cst_34 = arith.constant 0.000000e+00 : f32
    %100 = vector.broadcast %cst_34 : f32 to vector<128x128xf32>
    %101 = vector.extract_strided_slice %99 {offsets = [0, 0, 0], sizes = [8, 18, 128], strides = [1, 1, 1]} : vector<10x18x128xf32> to vector<8x18x128xf32>
    %102 = vector.extract_strided_slice %101 {offsets = [0, 0, 0], sizes = [8, 16, 128], strides = [1, 1, 1]} : vector<8x18x128xf32> to vector<8x16x128xf32>
    %103 = vector.extract_strided_slice %101 {offsets = [0, 1, 0], sizes = [8, 16, 128], strides = [1, 1, 1]} : vector<8x18x128xf32> to vector<8x16x128xf32>
    %104 = vector.extract_strided_slice %101 {offsets = [0, 2, 0], sizes = [8, 16, 128], strides = [1, 1, 1]} : vector<8x18x128xf32> to vector<8x16x128xf32>
    %105 = tpu.concatenate %102, %103, %104 in 2 : vector<8x16x128xf32>, vector<8x16x128xf32>, vector<8x16x128xf32> -> vector<8x16x384xf32>
    %106 = vector.shape_cast %105 : vector<8x16x384xf32> to vector<128x384xf32>
    %107 = vector.extract_strided_slice %28 {offsets = [0, 0, 0], sizes = [1, 384, 128], strides = [1, 1, 1]} : vector<3x384x128xf32> to vector<1x384x128xf32>
    %108 = vector.shape_cast %107 : vector<1x384x128xf32> to vector<384x128xf32>
    %cst_35 = arith.constant dense<0.000000e+00> : vector<128x128xf32>
    %109 = tpu.matmul %106, %108, %cst_35 {dimension_numbers = #tpu.dot_dimension_numbers<[1], [0], [0], [1], [0, 0, 1, 1], [], []>} : vector<128x384xf32>, vector<384x128xf32>, vector<128x128xf32> -> vector<128x128xf32>
    %110 = arith.addf %100, %109 : vector<128x128xf32>
    %111 = vector.extract_strided_slice %99 {offsets = [1, 0, 0], sizes = [8, 18, 128], strides = [1, 1, 1]} : vector<10x18x128xf32> to vector<8x18x128xf32>
    %112 = vector.extract_strided_slice %111 {offsets = [0, 0, 0], sizes = [8, 16, 128], strides = [1, 1, 1]} : vector<8x18x128xf32> to vector<8x16x128xf32>
    %113 = vector.extract_strided_slice %111 {offsets = [0, 1, 0], sizes = [8, 16, 128], strides = [1, 1, 1]} : vector<8x18x128xf32> to vector<8x16x128xf32>
    %114 = vector.extract_strided_slice %111 {offsets = [0, 2, 0], sizes = [8, 16, 128], strides = [1, 1, 1]} : vector<8x18x128xf32> to vector<8x16x128xf32>
    %115 = tpu.concatenate %112, %113, %114 in 2 : vector<8x16x128xf32>, vector<8x16x128xf32>, vector<8x16x128xf32> -> vector<8x16x384xf32>
    %116 = vector.shape_cast %115 : vector<8x16x384xf32> to vector<128x384xf32>
    %117 = vector.extract_strided_slice %28 {offsets = [1, 0, 0], sizes = [1, 384, 128], strides = [1, 1, 1]} : vector<3x384x128xf32> to vector<1x384x128xf32>
    %118 = vector.shape_cast %117 : vector<1x384x128xf32> to vector<384x128xf32>
    %cst_36 = arith.constant dense<0.000000e+00> : vector<128x128xf32>
    %119 = tpu.matmul %116, %118, %cst_36 {dimension_numbers = #tpu.dot_dimension_numbers<[1], [0], [0], [1], [0, 0, 1, 1], [], []>} : vector<128x384xf32>, vector<384x128xf32>, vector<128x128xf32> -> vector<128x128xf32>
    %120 = arith.addf %110, %119 : vector<128x128xf32>
    %121 = vector.extract_strided_slice %99 {offsets = [2, 0, 0], sizes = [8, 18, 128], strides = [1, 1, 1]} : vector<10x18x128xf32> to vector<8x18x128xf32>
    %122 = vector.extract_strided_slice %121 {offsets = [0, 0, 0], sizes = [8, 16, 128], strides = [1, 1, 1]} : vector<8x18x128xf32> to vector<8x16x128xf32>
    %123 = vector.extract_strided_slice %121 {offsets = [0, 1, 0], sizes = [8, 16, 128], strides = [1, 1, 1]} : vector<8x18x128xf32> to vector<8x16x128xf32>
    %124 = vector.extract_strided_slice %121 {offsets = [0, 2, 0], sizes = [8, 16, 128], strides = [1, 1, 1]} : vector<8x18x128xf32> to vector<8x16x128xf32>
    %125 = tpu.concatenate %122, %123, %124 in 2 : vector<8x16x128xf32>, vector<8x16x128xf32>, vector<8x16x128xf32> -> vector<8x16x384xf32>
    %126 = vector.shape_cast %125 : vector<8x16x384xf32> to vector<128x384xf32>
    %127 = vector.extract_strided_slice %28 {offsets = [2, 0, 0], sizes = [1, 384, 128], strides = [1, 1, 1]} : vector<3x384x128xf32> to vector<1x384x128xf32>
    %128 = vector.shape_cast %127 : vector<1x384x128xf32> to vector<384x128xf32>
    %cst_37 = arith.constant dense<0.000000e+00> : vector<128x128xf32>
    %129 = tpu.matmul %126, %128, %cst_37 {dimension_numbers = #tpu.dot_dimension_numbers<[1], [0], [0], [1], [0, 0, 1, 1], [], []>} : vector<128x384xf32>, vector<384x128xf32>, vector<128x128xf32> -> vector<128x128xf32>
    %130 = arith.addf %120, %129 : vector<128x128xf32>
    %131 = vector.broadcast %33 : vector<1x128xf32> to vector<128x128xf32>
    %132 = arith.mulf %130, %131 : vector<128x128xf32>
    %133 = vector.broadcast %34 : vector<1x128xf32> to vector<128x128xf32>
    %134 = arith.addf %132, %133 : vector<128x128xf32>
    %135 = vector.extract_strided_slice %26 {offsets = [2, 2, 0], sizes = [8, 16, 128], strides = [1, 1, 1]} : vector<12x24x128xf32> to vector<8x16x128xf32>
    %136 = vector.shape_cast %135 : vector<8x16x128xf32> to vector<128x128xf32>
    %137 = arith.addf %136, %134 : vector<128x128xf32>
    %138 = vector.shape_cast %137 : vector<128x128xf32> to vector<8x16x128xf32>
    %c0_38 = arith.constant 0 : index
    %c0_39 = arith.constant 0 : index
    %c0_40 = arith.constant 0 : index
    %c0_41 = arith.constant 0 : index
    %139 = vector.load %arg6[%c0_38, %c0_39, %c0_40, %c0_41] : memref<1x8x16x128xf32, #tpu.memory_space<vmem>>, vector<1x8x16x128xf32>
    %140 = vector.shape_cast %139 : vector<1x8x16x128xf32> to vector<8x16x128xf32>
    %141 = vector.shape_cast %138 : vector<8x16x128xf32> to vector<1x8x16x128xf32>
    tpu.vector_store %arg6[%c0_38, %c0_39, %c0_40, %c0_41], %141 {strides = array<i32>} : memref<1x8x16x128xf32, #tpu.memory_space<vmem>>, vector<1x8x16x128xf32>,
    return
  }
  func.func @transform_1(%arg0: i32, %arg1: i32) -> (i32, i32, i32) {
    %c0_i32 = arith.constant 0 : i32
    %c0_i32_0 = arith.constant 0 : i32
    %c0_i32_1 = arith.constant 0 : i32
    %c0_i32_2 = arith.constant 0 : i32
    return %c0_i32, %c0_i32_0, %c0_i32_1 : i32, i32, i32
  }
  func.func @transform_2(%arg0: i32, %arg1: i32) -> (i32, i32, i32) {
    %c0_i32 = arith.constant 0 : i32
    %c0_i32_0 = arith.constant 0 : i32
    %c0_i32_1 = arith.constant 0 : i32
    %c0_i32_2 = arith.constant 0 : i32
    return %c0_i32, %c0_i32_0, %c0_i32_1 : i32, i32, i32
  }
  func.func @transform_3(%arg0: i32, %arg1: i32) -> (i32, i32) {
    %c0_i32 = arith.constant 0 : i32
    %c0_i32_0 = arith.constant 0 : i32
    %c0_i32_1 = arith.constant 0 : i32
    return %c0_i32, %c0_i32_0 : i32, i32
  }
  func.func @transform_4(%arg0: i32, %arg1: i32) -> (i32, i32, i32, i32) {
    %c0_i32 = arith.constant 0 : i32
    %c0_i32_0 = arith.constant 0 : i32
    %c0_i32_1 = arith.constant 0 : i32
    return %arg0, %arg1, %c0_i32, %c0_i32_0 : i32, i32, i32, i32
  }
}

</mosaic_0001>

<bundles_post_ra>
// kernel: tpu_custom_call.1
= control target key start
LH: loop header
LB: loop body
LE: loop exit
PB: predicated region body
PF: predicated region fallthrough
CT: control target
= control target key end

     0   :  { %s13100_s0 = inlined_call_operand.hbm [shape: f32[2,20,24,128], index: 0, kind: input, shape index: {}]   ;;  %s13101_s1 = inlined_call_operand.hbm [shape: f32[3,384,128], index: 1, kind: input, shape index: {}]   ;;  %s13102_s2 = inlined_call_operand.hbm [shape: f32[3,384,128], index: 2, kind: input, shape index: {}]   ;;  %s13103_s3 = inlined_call_operand.hbm [shape: f32[5,128], index: 3, kind: input, shape index: {}]   ;;  %s13104_s4 = inlined_call_operand.hbm [shape: f32[2,16,16,128], index: 4, kind: output, shape index: {}]  }
   0x1   :  { %13390 = sst [smem:[#allocation114_spill]] %s13101_s1 }
   0x2   :  { %13391 = sst [smem:[#allocation115_spill]] %s13102_s2 }
   0x3   :  { %13392 = sst [smem:[#allocation116_spill]] %s13103_s3 }
   0x4   :  { %9 = vsyncpa [#allocation5], 0 }
   0x5   :  { %10 = vsyncpa [#allocation8], 0 }
   0x6   :  { %11 = vsyncpa [#allocation6], 0 }
   0x7   :  { %13 = vsyncpa [#allocation6 + $0x1], 0  ;;  %s8860_s15 = smov 0   ;;  %s8862_s16 = smov 0  }
   0x8   :  { %s8864_s17 = smov 0   ;;  %s8866_s18 = smov 0  }
   0x9   :  { %s8868_s19 = smov 0   ;;  %s8870_s20 = smov 0  }
   0xa   :  { %s8872_s21 = smov 0   ;;  %s8874_s22 = smov 0  }
   0xb LB: > { %13393 = sst [smem:[#allocation21_spill]] %s8813_s20  ;;  %s7347_s23 = sadd.s32 4294967295, %s8821_s22   ;;  %s8821_s22 = sphi %s8874_s22, %s19_s22   ;;  %s8817_s21 = sphi %s8872_s21, %s14037_s21   ;;  %s8813_s20 = sphi %s8870_s20, %s14036_s20   ;;  %s8809_s19 = sphi %s8868_s19, %s14035_s19   ;;  %s8805_s18 = sphi %s8866_s18, %s14034_s18   ;;  %s8801_s17 = sphi %s8864_s17, %s14040_s17   ;;  %s8797_s16 = sphi %s8862_s16, %s14039_s16   ;;  %s8793_s15 = sphi %s8860_s15, %s14038_s15  }
   0xc   : > { %13394 = sst [smem:[#allocation22_spill]] %s8817_s21  ;;  %s7348_s24 = sadd.s32 4294967294, %s8821_s22  }
   0xd   : > { %s28_s25 = sadd.s32 1, %s8813_s20  ;;  %s31_s26 = sadd.s32 1, %s8817_s21 }
   0xe   : > { %p29_p0 = scmp.ge.s32.totalorder %s28_s25, 2  ;;  %s103_s27 = sadd.s32 1, %s8801_s17 }
   0xf   : > { %p113_p1 = scmp.ne.s32.totalorder %s8801_s17, %s8797_s16  ;;  %p114_p2 = scmp.eq.s32.totalorder %s7347_s23, 3 }
  0x10   : > { %s14042_s25 = smov (%p29_p0, %s28_s25), 0  ;;  %s14044_s26 = smov (!%p29_p0, %s31_s26), %s8817_s21 }
  0x11   : > { %13395 = sst [smem:[#allocation23_spill]] %s14042_s25  ;;  %s99_s28 = ssub.s32 %s8813_s20, %s14042_s25 }
  0x12   : > { %p8912_p3 = por %p114_p2, %p113_p1  ;;  %p33_p4 = scmp.ge.s32.totalorder %s14044_s26, 2 }
  0x13   : > { %p119_p5 = scmp.ne.s32.totalorder %s8797_s16, %s8793_s15  ;;  %p120_p6 = scmp.eq.s32.totalorder %s7348_s24, 3 }
  0x14   : > { %s13396_s29 = scalar_select %p8912_p3, 1, 0 }
  0x15   : > { %p7349_p7 = scmp.ge.s32.totalorder %s8821_s22, 1  ;;  %s14046_s26 = smov (%p33_p4, %s14044_s26), 0 }
  0x16   : > { %13397 = sst [smem:[#allocation24_spill]] %s14046_s26  ;;  %p8921_p8 = por %p120_p6, %p119_p5 }
  0x17   : > { %p127_p9 = scmp.lt.s32.totalorder %s8821_s22, 5  ;;  %s98_s5 = ssub.s32 %s8817_s21, %s14046_s26 }
  0x18   : > { %s13398_s30 = scalar_select %p8921_p8, 1, 0 }
  0x19   : > { %s100_s6 = sor.u32 %s99_s28, %s98_s5  ;;  %p8928_p10 = pnand %p7349_p7, %p127_p9 }
  0x1a   : > { %p101_p11 = scmp.eq.s32.totalorder %s100_s6, 0  ;;  %p8932_p12 = scmp.eq.s32.totalorder %s7347_s23, 0 }
  0x1b   : > { %s13399_s7 = scalar_select %p8928_p10, 1, 0 }
  0x1c   : > { %s13400_s8 = scalar_select %p8932_p12, 1, 0 }
  0x1d   : > { %p8489_p13 = pneg %p8928_p10  ;;  %s8823_s11 = smov [#allocation7]  }
  0x1e   : > { %s8939_s9 = scalar_select %p101_p11, %s8801_s17, %s103_s27  }
  0x1f   : > { %p8943_p0 = pnand %p8932_p12, %p8489_p13  ;;  %s152_s12 = sshll.u32 %s8823_s11, 4  ;;  %s153_s12 = int_to_ptr.vmem [resolvable:$true] %s152_s12 }
  0x20   : > { %s8599_s13 = scalar_lea.vmem %s153_s12, 18432  ;;  %p8607_p6 = scmp.lt.s32.totalorder %s153_s12, %s153_s12 }
  0x21   : > { %p8590_p1 = pneg %p8943_p0  ;;  %p8600_p2 = scmp.ne.s32.totalorder %s153_s12, %s8599_s13 }
  0x22   : > { %p8608_p7 = scmp.lt.s32.totalorder %s8599_s13, %s8599_s13 }
  0x23   : > { %p8602_p4 = pnand %p8600_p2, %p8590_p1 }
  0x24   : > { %p8609_p9 = por %p8608_p7, %p8607_p6 }
  0x25   : > { %p8603_p5 = pneg %p8602_p4 }
  0x27   : > { %p8610_p11 = pnand %p8609_p9, %p8603_p5 }
  0x29   : > { %8613 = shalt.err (!%p8610_p11)
}
  0x2a   : > { %s8824_s14 = smov 128   ;;  %s8825_s23 = smov 8  }
  0x2b   : > { %s13402_s2 = sld [smem:[#allocation115_spill]]  ;;  %s8826_s28 = smov [#allocation4]  }
  0x2c   : > { %s139_s5 = sshll.u32 %s8826_s28, 4  ;;  %s8827_s6 = smov [#allocation9]   ;;  %s140_s5 = int_to_ptr.vmem [resolvable:$true] %s139_s5 }
  0x2d   : > { %s166_s11 = sshll.u32 %s8827_s6, 4  ;;  %s8625_s26 = scalar_lea.vmem %s140_s5, 18432  ;;  %s167_s11 = int_to_ptr.vmem [resolvable:$true] %s166_s11 }
  0x2e   : > { %p8626_p13 = scmp.ne.s32.totalorder %s140_s5, %s8625_s26  ;;  %p8633_p5 = scmp.lt.s32.totalorder %s140_s5, %s140_s5 }
  0x2f   : > { %p8634_p6 = scmp.lt.s32.totalorder %s8625_s26, %s8625_s26 }
  0x30   : > { %p8628_p2 = pnand %p8626_p13, %p8590_p1 }
  0x31   : > { %8495 = dma.hbm_to_vmem [thread:$0]  (!%p8943_p0), %s13402_s2, 18432, %s153_s12, [#allocation8], %s8824_s14, %s8824_s14, %s8825_s23  }
  0x32   : > { %p8629_p4 = pneg %p8628_p2  ;;  %p8635_p7 = por %p8634_p6, %p8633_p5 }
  0x34   : > { %p8636_p9 = pnand %p8635_p7, %p8629_p4 }
  0x36   : > { %8639 = shalt.err (!%p8636_p9)
}
  0x37   : > { %s13403_s1 = sld [smem:[#allocation114_spill]]  ;;  %s8651_s24 = scalar_lea.vmem %s167_s11, 128 }
  0x38   : > { %p8652_p11 = scmp.ne.s32.totalorder %s167_s11, %s8651_s24  ;;  %p8659_p13 = scmp.lt.s32.totalorder %s167_s11, %s167_s11 }
  0x39   : > { %p8660_p2 = scmp.lt.s32.totalorder %s8651_s24, %s8651_s24 }
  0x3a   : > { %p8654_p8 = pnand %p8652_p11, %p8590_p1 }
  0x3b   : > { %p8661_p12 = por %p8660_p2, %p8659_p13 }
  0x3c   : > { %p8655_p3 = pneg %p8654_p8 }
  0x3d   : > { %8492 = dma.hbm_to_vmem [thread:$0]  (!%p8943_p0), %s13403_s1, 18432, %s140_s5, [#allocation5], %s8824_s14, %s8824_s14, %s8825_s23  }
  0x3e   : > { %p8662_p10 = pnand %p8661_p12, %p8655_p3 }
  0x40   : > { %8665 = shalt.err (!%p8662_p10)
}
  0x41   : > { %s13404_s3 = sld [smem:[#allocation116_spill]]  ;;  %p13405_p4 = scmp.ne.s32.totalorder %s13399_s7, 0 }
  0x43   : > { %179 = sbr.rel (%p13405_p4) target bundleno = 1095 (0x447), region = 32 }
  0x47   : > { %8498 = dma.hbm_to_vmem [thread:$0]  (!%p8943_p0), %s13404_s3, 128, %s167_s11, [#allocation8]  }
  0x48   : > { %p13406_p5 = scmp.ne.s32.totalorder %s13400_s8, 0 }
  0x4a   : > { %8778 = dma.done.wait (%p13406_p5), [#allocation5], 18432  }
  0x4b   : > { %8780 = vsyncadd (%p13406_p5), [#allocation5], 4294948864 }
  0x4c   : > { %8782 = dma.done.wait (%p13406_p5), [#allocation8], 18560  }
  0x4d   : > { %8784 = vsyncadd (%p13406_p5), [#allocation8], 4294948736  ;;  %s13110_s7 = sand.u32 1, %s8797_s16   ;;  %p8509_p3 = scmp.eq.s32.totalorder %s8805_s18, 0 }
  0x4e   : > { %s8986_s10 = sshll.u32 %s13110_s7, 7  ;;  %s7545_s14 = smul.u32 7680, %s8809_s19 }
  0x4f   : > { %p207_p8 = scmp.lt.s32.totalorder %s8805_s18, 0  ;;  %s8828_s8 = smov [#allocation2]  }
  0x50   : > { %s225_s5 = scalar_lea.hbm %s13100_s0, %s7545_s14  ;;  %s233_s6 = sshll.u32 %s8828_s8, 4  ;;  %s8994_s6 = int_to_ptr.vmem [resolvable:$true] %s233_s6 }
  0x51   : > { %s208_s11 = ssub.s32 0, %s8805_s18  ;;  %s8666_s12 = scalar_lea.hbm %s225_s5, 4608 }
  0x52   : > { %p8667_p10 = scmp.ne.s32.totalorder %s225_s5, %s8666_s12  ;;  %s13112_s26 = scalar_lea.hbm %s13100_s0, 15360 }
  0x53   : > { %p8671_p1 = scmp.lt.s32.totalorder %s225_s5, %s13100_s0  ;;  %p8672_p6 = scmp.lt.s32.totalorder %s13112_s26, %s8666_s12 }
  0x54   : > { %p8668_p12 = pnand %p8667_p10, %p8509_p3 }
  0x55   : > { %p8673_p7 = por %p8672_p6, %p8671_p1 }
  0x56   : > { %p8669_p0 = pneg %p8668_p12 }
  0x58   : > { %p8674_p9 = pnand %p8673_p7, %p8669_p0 }
  0x5a   : > { %8677 = shalt.err (!%p8674_p9)  }
  0x5b   : > { %s8678_s28 = scalar_lea.vmem %s8994_s6, 4608  ;;  %s13111_s7 = scalar_lea.vmem %s8994_s6, 9216 }
  0x5c   : > { %p8679_p11 = scmp.ne.s32.totalorder %s8994_s6, %s8678_s28  ;;  %p8685_p4 = scmp.lt.s32.totalorder %s8994_s6, %s8994_s6 }
  0x5d   : > { %p8686_p5 = scmp.lt.s32.totalorder %s13111_s7, %s8678_s28 }
  0x5e   : > { %p8680_p13 = pnand %p8679_p11, %p8509_p3 }
  0x5f   : > { %p8687_p10 = por %p8686_p5, %p8685_p4 }
  0x60   : > { %p8681_p2 = pneg %p8680_p13 }
  0x62   : > { %p8688_p12 = pnand %p8687_p10, %p8681_p2 }
  0x64   : > { %8691 = shalt.err (!%p8688_p12)  }
  0x65   : > { %8484 = dma.hbm_to_vmem [thread:$0]  (%p8509_p3), %s225_s5, 4608, %s8994_s6, [#allocation3] }
  0x66   : > { %s7358_s8 = smin.u32 %s8805_s18, %s208_s11  ;;  %s237_s12 = sadd.s32 1, %s8805_s18 }
  0x67   : > { %s210_s13 = sand.u32 1, %s7358_s8   ;;  %s7271_s27 = smul.u32 192, %s8805_s18 }
  0x68   : > { %s211_s24 = ssub.s32 0, %s210_s13  ;;  %s7272_s28 = smul.u32 480, %s8809_s19 }
  0x69   : > { %s14048_s24 = smov (!%p207_p8, %s211_s24), %s210_s13  ;;  %p9030_p1 = scmp.lt.s32.totalorder %s237_s12, 2 }
  0x6a   : > { %p7360_p0 = scmp.lt.s32.totalorder %s14048_s24, 0  ;;  %s217_s14 = sadd.s32 2, %s14048_s24 }
  0x6b   : > { %s7273_s5 = sadd.s32 %s7272_s28, %s7271_s27  ;;  %s13408_s1 = scalar_lea.hbm %s13100_s0, 15360 }
  0x6c   : > { %s14050_s14 = smov (!%p7360_p0, %s217_s14), %s14048_s24  ;;  %s7364_s8 = sshll.u32 %s7273_s5, 4 }
  0x6d   : > { %s242_s11 = ssub.s32 1, %s14050_s14  ;;  %s7275_s13 = scalar_lea.hbm %s13100_s0, %s7364_s8 }
  0x6e   : > { %s249_s23 = smul.u32 288, %s242_s11  ;;  %s7276_s2 = scalar_lea.hbm %s7275_s13, 3072 }
  0x6f   : > { %s264_s3 = smul.u32 288, %s14050_s14  ;;  %s251_s21 = scalar_lea.sflag [#allocation3], %s242_s11 }
  0x70   : > { %s250_s25 = scalar_lea.vmem [#allocation2], %s249_s23  ;;  %s8718_s20 = scalar_lea.hbm %s7275_s13, 7680 }
  0x71   : > { %s259_s24 = sshll.u32 %s250_s25, 4  ;;  %p8693_p3 = scmp.ne.s32.totalorder %s7276_s2, %s8718_s20  ;;  %s260_s24 = int_to_ptr.vmem [resolvable:$true] %s259_s24 }
  0x72   : > { %p8697_p7 = scmp.lt.s32.totalorder %s7276_s2, %s13100_s0  ;;  %p8698_p9 = scmp.lt.s32.totalorder %s13408_s1, %s8718_s20 }
  0x73   : > { %p8694_p8 = pnand %p8693_p3, %p9030_p1 }
  0x74   : > { %p8699_p11 = por %p8698_p9, %p8697_p7 }
  0x75   : > { %p8695_p6 = pneg %p8694_p8 }
  0x77   : > { %p8700_p13 = pnand %p8699_p11, %p8695_p6 }
  0x79   : > { %8703 = shalt.err (!%p8700_p13)  }
  0x7a   : > { %s8704_s25 = scalar_lea.vmem %s260_s24, 4608  ;;  %p8711_p10 = scmp.lt.s32.totalorder %s260_s24, %s8994_s6 }
  0x7b   : > { %p8705_p2 = scmp.ne.s32.totalorder %s260_s24, %s8704_s25  ;;  %s13409_s26 = scalar_lea.vmem %s8994_s6, 9216 }
  0x7c   : > { %p8712_p12 = scmp.lt.s32.totalorder %s13409_s26, %s8704_s25 }
  0x7d   : > { %p8706_p4 = pnand %p8705_p2, %p9030_p1 }
  0x7e   : > { %p8713_p0 = por %p8712_p12, %p8711_p10 }
  0x7f   : > { %p8707_p5 = pneg %p8706_p4 }
  0x81   : > { %p8714_p3 = pnand %p8713_p0, %p8707_p5 }
  0x83   : > { %8717 = shalt.err (!%p8714_p3)  }
  0x84   : > { %8486 = dma.hbm_to_vmem [thread:$0]  (%p9030_p1), %s7276_s2, 4608, %s260_s24, %s251_s21 }
  0x85   : > { %s9056_s20 = scalar_lea.vmem [#allocation10], %s8986_s10  ;;  %s9058_s23 = scalar_lea.vmem [#allocation2], %s264_s3 }
  0x86   : > { %s266_s11 = scalar_lea.sflag [#allocation3], %s14050_s14 }
  0x87   : > { %8785 = dma.done.wait %s266_s11, 4608 }
  0x88   : > { %8786 = vsyncadd %s266_s11, 4294962688  ;;  %v13125_v0 = vmov 0.0   ;;  %vm8830_vm0 = vmmov 0   ;;  %v370_v1 = vld [vmem:[#allocation4 + $0x1f8] sm:$0xff]  ;;  %v369_v3 = vld [vmem:[#allocation4 + $0x1f0] sm:$0xff]  ;;  %v734_v9 = vlaneseq  ;;  %vm13352_vm1 = vcmask 1045504  }
  0x89   : > { %2543 = vmatprep.subr.mxu0 %v13125_v0  ;;  %8000 = vmatprep.subr.mxu1 %v13125_v0  ;;  %v402_v2 = vld [vmem:[#allocation4 + $0x2f8] sm:$0xff]  ;;  %v401_v4 = vld [vmem:[#allocation4 + $0x2f0] sm:$0xff]  ;;  %v368_v5 = vld [vmem:[#allocation4 + $0x1e8] sm:$0xff]  ;;  %v8831_v7 = vmov 1983009808   ;;  %vm13357_vm2 = vcmask 1046528  }
  0x8a   : > { %8032 = vmatprep.mubr.msk.f32.mxu1 %vm8830_vm0, %v13125_v0  ;;  %2544 = vmatpush1.msra.mxu0 %v370_v1  ;;  %v400_v6 = vld [vmem:[#allocation4 + $0x2e8] sm:$0xff]  ;;  %v732_v8 = vunpack.c.l.s4 %v8831_v7  ;;  %v367_v10 = vld [vmem:[#allocation4 + $0x1e0] sm:$0xff]  ;;  %v366_v12 = vld [vmem:[#allocation4 + $0x1d8] sm:$0xff]  ;;  %v9071_v15 = vshrl.u32 %v734_v9, 7  ;;  %s13766_s2 = sshll.u32 %s8805_s18, 3  ;;  %s7546_s3 = sshll.u32 %s8805_s18, 4 }
  0x8b   : > { %8001 = vmatpush3.msra.mxu1 %v402_v2  ;;  %2545 = vmatprep.subr.mxu0 %v13125_v0  ;;  %v399_v11 = vld [vmem:[#allocation4 + $0x2e0] sm:$0xff]  ;;  %v398_v13 = vld [vmem:[#allocation4 + $0x2d8] sm:$0xff]  ;;  %v365_v16 = vld [vmem:[#allocation4 + $0x1d0] sm:$0xff]  ;;  %s7539_s21 = sshll.u32 %s8809_s19, 5  ;;  %s7225_s18 = sshll.u32 %s9056_s20, 4  ;;  %s13038_s18 = int_to_ptr.vmem [resolvable:$true] %s7225_s18 }
  0x8c   : > { %8002 = vmatprep.subr.mxu1 %v13125_v0  ;;  %2546 = vmatpush1.msra.mxu0 %v369_v3  ;;  %v733_v14 = vunpack.c.0.s8 %v732_v8  ;;  %13410 = vst [vmem:[#allocation25_spill] sm:$0xff] %v9071_v15  ;;  %v397_v17 = vld [vmem:[#allocation4 + $0x2d0] sm:$0xff]  ;;  %v364_v18 = vld [vmem:[#allocation4 + $0x1c8] sm:$0xff]  ;;  %v9078_v20 = vld [vmem:[%s9058_s23 + $0x18] sm:$0xff]  ;;  %s7222_s10 = sadd.s32 %s7546_s3, %s7539_s21  ;;  %s14031_s8 = sand.u32 1, %s8797_s16  }
  0x8d   : > { %8003 = vmatpush3.msra.mxu1 %v401_v4  ;;  %2547 = vmatprep.subr.mxu0 %v13125_v0  ;;  %v396_v19 = vld [vmem:[#allocation4 + $0x2c8] sm:$0xff]  ;;  %v9081_v21 = vld [vmem:[%s9058_s23 + $0x20] sm:$0xff]  ;;  %v683_v22 = vrot.slane %v9078_v20, 2  ;;  %v9095_v29 = vld [vmem:[%s9058_s23 + $0x30] sm:$0xff]  ;;  %s7540_s19 = sshll.u32 %s7222_s10, 7  ;;  %s13049_s13 = scalar_lea.sflag [#allocation6], %s14031_s8 }
  0x8e   : > { %8004 = vmatprep.subr.mxu1 %v13125_v0  ;;  %2548 = vmatpush1.msra.mxu0 %v368_v5  ;;  %v9085_v23 = vsub.s32 %v733_v14, %v9071_v15  ;;  %v363_v24 = vld [vmem:[#allocation4 + $0x1c0] sm:$0xff]  ;;  %v684_v26 = vrot.slane %v9081_v21, 2  ;;  %v9091_v27 = vld [vmem:[%s9058_s23 + $0x28] sm:$0xff]  ;;  %v9098_v30 = vld [vmem:[%s9058_s23 + $0x38] sm:$0xff]  ;;  %v637_v34 = vrot.slane %v9095_v29, 1  ;;  %v688_v36 = vrot.slane %v9095_v29, 2  ;;  %s13044_s14 = scalar_lea.hbm %s13104_s4, %s7540_s19 }
  0x8f   : > { %8005 = vmatpush3.msra.mxu1 %v400_v6  ;;  %2549 = vmatprep.subr.mxu0 %v13125_v0  ;;  %v395_v25 = vld [vmem:[#allocation4 + $0x2c0] sm:$0xff]  ;;  %v686_v28 = vrot.slane %v9091_v27, 2  ;;  %v362_v31 = vld [vmem:[#allocation4 + $0x1b8] sm:$0xff]  ;;  %v638_v35 = vrot.slane %v9098_v30, 1  ;;  %v689_v41 = vrot.slane %v9098_v30, 2  ;;  %v361_v42 = vld [vmem:[#allocation4 + $0x1b0] sm:$0xff] }
  0x90   : > { %8006 = vmatprep.subr.mxu1 %v13125_v0  ;;  %2550 = vmatpush1.msra.mxu0 %v367_v10  ;;  %13411 = vst [vmem:[#allocation26_spill] sm:$0xff] %v9085_v23  ;;  %v394_v32 = vld [vmem:[#allocation4 + $0x2b8] sm:$0xff]  ;;  %v685_v33 = vsel %vm13352_vm1, %v683_v22, %v684_v26  ;;  %v9107_v37 = vld [vmem:[%s9058_s23 + $0x40] sm:$0xff]  ;;  %v393_v43 = vld [vmem:[#allocation4 + $0x2b0] sm:$0xff]  ;;  %s8719_s24 = scalar_lea.vmem %s13038_s18, 2048  ;;  %p14032_p8 = scmp.ne.s32.totalorder %s13396_s29, 0 }
  0x91   : > { %8007 = vmatpush3.msra.mxu1 %v399_v11  ;;  %2551 = vmatprep.subr.mxu0 %v13125_v0  ;;  %v816_v38 = vcombine.high %v685_v33, %v685_v33  ;;  %v9110_v39 = vrot.slane %v685_v33, %v9085_v23  ;;  %v687_v40 = vsel %vm13352_vm1, %v684_v26, %v686_v28  ;;  %v640_v47 = vrot.slane %v9107_v37, 1  ;;  %v360_v51 = vld [vmem:[#allocation4 + $0x1a8] sm:$0xff]  ;;  %v9152_v61 = vld [vmem:[%s9058_s23 + $0x50] sm:$0xff]  ;;  %v359_v62 = vld [vmem:[#allocation4 + $0x1a0] sm:$0xff]  ;;  %p8720_p1 = scmp.ne.s32.totalorder %s13038_s18, %s8719_s24  ;;  %s8832_s12 = smov [#allocation10]  }
  0x92   : > { %8008 = vmatprep.subr.mxu1 %v13125_v0  ;;  %2552 = vmatpush1.msra.mxu0 %v366_v12  ;;  %v851_v44 = vcombine.high %v687_v40, %v687_v40  ;;  %v9117_v45 = vrot.slane %v687_v40, %v9085_v23  ;;  %v9120_v46 = vsel %vm13357_vm2, %v637_v34, %v638_v35  ;;  %v392_v52 = vld [vmem:[#allocation4 + $0x2a8] sm:$0xff]  ;;  %v691_v56 = vrot.slane %v9107_v37, 2  ;;  %v391_v63 = vld [vmem:[#allocation4 + $0x2a0] sm:$0xff]  ;;  %v358_v7 = vld [vmem:[#allocation4 + $0x198] sm:$0xff]  ;;  %s8723_s27 = sshll.u32 %s8832_s12, 4  ;;  %s8724_s27 = int_to_ptr.vmem [resolvable:$false] %s8723_s27 }
  0x93   : > { %8009 = vmatpush3.msra.mxu1 %v398_v13  ;;  %2553 = vmatprep.subr.mxu0 %v13125_v0  ;;  %v9124_v48 = vrot.slane %v816_v38, %v9085_v23  ;;  %v1704_v49 = vrot.slane %v9110_v39, %v9085_v23  ;;  %v9129_v50 = vsel %vm13352_vm1, %v688_v36, %v689_v41  ;;  %v9143_v57 = vld [vmem:[%s9058_s23 + $0x48] sm:$0xff]  ;;  %v390_v8 = vld [vmem:[#allocation4 + $0x298] sm:$0xff]  ;;  %v694_v12 = vrot.slane %v9152_v61, 2  ;;  %v9200_v26 = vld [vmem:[%s9058_s23 + $0x60] sm:$0xff]  ;;  %p8721_p6 = pnand %p8720_p1, %p14032_p8  ;;  %s8725_s28 = scalar_lea.vmem %s8724_s27, 4096 }
  0x94   : > { %8010 = vmatprep.subr.mxu1 %v13125_v0  ;;  %2554 = vmatpush1.msra.mxu0 %v365_v16  ;;  %13412 = vst [vmem:[#allocation27_spill] sm:$0xff] %v9129_v50  ;;  %v9134_v53 = vrot.slane %v851_v44, %v9085_v23  ;;  %v1739_v54 = vrot.slane %v9117_v45, %v9085_v23  ;;  %v693_v6 = vrot.slane %v9143_v57, 2  ;;  %v9183_v13 = vld [vmem:[%s9058_s23 + $0x58] sm:$0xff]  ;;  %v9213_v33 = vld [vmem:[%s9058_s23 + $0x68] sm:$0xff]  ;;  %p8726_p9 = scmp.lt.s32.totalorder %s13038_s18, %s8724_s27  ;;  %p8727_p11 = scmp.lt.s32.totalorder %s8725_s28, %s8719_s24 }
  0x95   : > { %8011 = vmatpush3.msra.mxu1 %v397_v17  ;;  %2555 = vmatprep.subr.mxu0 %v13125_v0  ;;  %v9139_v55 = vrot.slane %v686_v28, %v9085_v23  ;;  %v1718_v58 = vrot.slane %v9124_v48, %v9085_v23  ;;  %v901_v59 = vcombine.high %v9095_v29, %v9120_v46  ;;  %v356_v34 = vld [vmem:[#allocation4 + $0x188] sm:$0xff]  ;;  %p8722_p7 = pneg %p8721_p6 }
  0x96   : > { %8012 = vmatprep.subr.mxu1 %v13125_v0  ;;  %2556 = vmatpush1.msra.mxu0 %v364_v18  ;;  %v902_v60 = vcombine.high %v9129_v50, %v9129_v50  ;;  %v1753_v1 = vrot.slane %v9134_v53, %v9085_v23  ;;  %v9160_v2 = vrot.slane %v9129_v50, %v9085_v23  ;;  %v357_v18 = vld [vmem:[#allocation4 + $0x190] sm:$0xff]  ;;  %p8728_p13 = por %p8727_p11, %p8726_p9 }
  0x97   : > { %8013 = vmatpush3.msra.mxu1 %v396_v19  ;;  %2557 = vmatprep.subr.mxu0 %v13125_v0  ;;  %13413 = vst [vmem:[#allocation28_spill] sm:$0xff] %v9139_v55  ;;  %v641_v3 = vsel %vm13357_vm2, %v638_v35, %v640_v47  ;;  %v9166_v4 = vrot.slane %v901_v59, %v9085_v23  ;;  %v389_v19 = vld [vmem:[#allocation4 + $0x290] sm:$0xff]  ;;  %v388_v35 = vld [vmem:[#allocation4 + $0x288] sm:$0xff] }
  0x98   : > { %8014 = vmatprep.subr.mxu1 %v13125_v0  ;;  %2558 = vmatpush1.msra.mxu0 %v363_v24  ;;  %13414 = vst [vmem:[#allocation29_spill] sm:$0xff] %v9160_v2  ;;  %v9169_v5 = vrot.slane %v902_v60, %v9085_v23  ;;  %v9174_v9 = vcombine.low %v1704_v49, %v1718_v58  ;;  %v698_v49 = vrot.slane %v9200_v26, 2  ;;  %v9247_v58 = vld [vmem:[%s9058_s23 + $0x70] sm:$0xff]  ;;  %p8729_p2 = pnand %p8728_p13, %p8722_p7 }
  0x99   : > { %8015 = vmatpush3.msra.mxu1 %v395_v25  ;;  %2559 = vmatprep.subr.mxu0 %v13125_v0  ;;  %13415 = vst [vmem:[#allocation30_spill] sm:$0xff] %v9166_v4  ;;  %v7367_v10 = vcombine.low %v9139_v55, %v9160_v2  ;;  %v9179_v11 = vsel %vm13352_vm1, %v689_v41, %v691_v56  ;;  %v632_v41 = vrot.slane %v9078_v20, 1 }
  0x9a   : > { %8016 = vmatprep.subr.mxu1 %v13125_v0  ;;  %2560 = vmatpush1.msra.mxu0 %v362_v31  ;;  %13416 = vst [vmem:[#allocation31_spill] sm:$0xff] %v9169_v5  ;;  %13417 = vst [vmem:[#allocation32_spill] sm:$0xff] %v9179_v11  ;;  %v933_v14 = vcombine.low %v9166_v4, %v9169_v5  ;;  %v935_v16 = vcombine.low %v9098_v30, %v641_v3 }
  0x9b   : > { %8017 = vmatpush3.msra.mxu1 %v394_v32  ;;  %2561 = vmatprep.subr.mxu0 %v13125_v0  ;;  %v936_v17 = vcombine.high %v9098_v30, %v641_v3  ;;  %v9191_v22 = vcombine.low %v1739_v54, %v1753_v1  ;;  %v937_v24 = vcombine.high %v9179_v11, %v9179_v11  ;;  %v696_v32 = vrot.slane %v9183_v13, 2  ;;  %v386_v1 = vld [vmem:[#allocation4 + $0x278] sm:$0xff] }
  0x9c   : > { %8018 = vmatprep.subr.mxu1 %v13125_v0  ;;  %2562 = vmatpush1.msra.mxu0 %v361_v42  ;;  %v9197_v25 = vrot.slane %v9179_v11, %v9085_v23  ;;  %v9203_v28 = vcombine.high %v9160_v2, %v933_v14  ;;  %v9206_v30 = vrot.slane %v935_v16, %v9085_v23  ;;  %v13118_v16 = vrot.slane %v9247_v58, 1  ;;  %v320_v11 = vld [vmem:[#allocation4 + $0x68] sm:$0xff] }
  0x9d   : > { %8019 = vmatpush3.msra.mxu1 %v393_v43  ;;  %2563 = vmatprep.subr.mxu0 %v13125_v0  ;;  %v9209_v31 = vrot.slane %v936_v17, %v9085_v23  ;;  %v9218_v36 = vrot.slane %v937_v24, %v9085_v23  ;;  %v9221_v38 = vsel %vm13352_vm1, %v693_v6, %v694_v12  ;;  %v385_v17 = vld [vmem:[#allocation4 + $0x270] sm:$0xff] }
  0x9e   : > { %8020 = vmatprep.subr.mxu1 %v13125_v0  ;;  %2564 = vmatpush1.msra.mxu0 %v360_v51  ;;  %13418 = vst [vmem:[#allocation33_spill] sm:$0xff] %v9197_v25  ;;  %13419 = vst [vmem:[#allocation34_spill] sm:$0xff] %v9206_v30  ;;  %v970_v40 = vcombine.low %v9107_v37, %v640_v47  ;;  %v1774_v42 = vrot.slane %v7367_v10, %v9085_v23  ;;  %v355_v37 = vld [vmem:[#allocation4 + $0x180] sm:$0xff] }
  0x9f   : > { %8021 = vmatpush3.msra.mxu1 %v392_v52  ;;  %2565 = vmatprep.subr.mxu0 %v13125_v0  ;;  %13420 = vst [vmem:[#allocation35_spill] sm:$0xff] %v9209_v31  ;;  %13421 = vst [vmem:[#allocation36_spill] sm:$0xff] %v9218_v36  ;;  %v966_v43 = vcombine.low %v9206_v30, %v9197_v25  ;;  %v9231_v44 = vrot.slane %v691_v56, %v9085_v23  ;;  %v387_v47 = vld [vmem:[#allocation4 + $0x280] sm:$0xff]  ;;  %v699_v56 = vrot.slane %v9213_v33, 2 }
  0xa0   : > { %8022 = vmatprep.subr.mxu1 %v13125_v0  ;;  %2566 = vmatpush1.msra.mxu0 %v359_v62  ;;  %13422 = vst [vmem:[#allocation37_spill] sm:$0xff] %v9221_v38  ;;  %v968_v51 = vcombine.low %v9209_v31, %v9218_v36  ;;  %v9239_v52 = vrot.slane %v970_v40, %v9085_v23  ;;  %v13117_v40 = vrot.slane %v9081_v21, 1 }
  0xa1   : > { %8023 = vmatpush3.msra.mxu1 %v391_v63  ;;  %2567 = vmatprep.subr.mxu0 %v13125_v0  ;;  %13423 = vst [vmem:[#allocation38_spill] sm:$0xff] %v9231_v44  ;;  %v9243_v54 = vrot.slane %v9221_v38, %v9085_v23  ;;  %v1788_v59 = vrot.slane %v9203_v28, %v9085_v23  ;;  %v647_v63 = vrot.slane %v9200_v26, 1  ;;  %v13116_v28 = vrot.slane %v9247_v58, 2 }
  0xa2   : > { %8024 = vmatprep.subr.mxu1 %v13125_v0  ;;  %2568 = vmatpush1.msra.mxu0 %v358_v7  ;;  %13424 = vst [vmem:[#allocation39_spill] sm:$0xff] %v9239_v52  ;;  %v7371_v60 = vcombine.high %v9169_v5, %v966_v43  ;;  %v9253_v62 = vsel %vm13352_vm1, %v694_v12, %v696_v32  ;;  %v384_v43 = vld [vmem:[#allocation4 + $0x268] sm:$0xff] }
  0xa3   : > { %8025 = vmatpush3.msra.mxu1 %v390_v8  ;;  %2569 = vmatprep.subr.mxu0 %v13125_v0  ;;  %13425 = vst [vmem:[#allocation40_spill] sm:$0xff] %v9253_v62  ;;  %v7373_v3 = vcombine.high %v9197_v25, %v968_v51  ;;  %v985_v6 = vcombine.low %v9239_v52, %v9231_v44  ;;  %v648_v8 = vrot.slane %v9213_v33, 1 }
  0xa4   : > { %8026 = vmatprep.subr.mxu1 %v13125_v0  ;;  %2570 = vmatpush1.msra.mxu0 %v357_v18  ;;  %v1858_v7 = vrot.slane %v9243_v54, %v9085_v23  ;;  %v1809_v10 = vrot.slane %v7371_v60, %v9085_v23  ;;  %v988_v12 = vcombine.high %v9221_v38, %v9221_v38 }
  0xa5   : > { %8027 = vmatpush3.msra.mxu1 %v389_v19  ;;  %2571 = vmatprep.subr.mxu0 %v13125_v0  ;;  %v9269_v14 = vrot.slane %v9253_v62, %v9085_v23  ;;  %v1823_v18 = vrot.slane %v7373_v3, %v9085_v23  ;;  %v7375_v19 = vcombine.high %v9218_v36, %v985_v6 }
  0xa6   : > { %8028 = vmatprep.subr.mxu1 %v13125_v0  ;;  %2572 = vmatpush1.msra.mxu0 %v356_v34  ;;  %v9277_v24 = vsel %vm13352_vm1, %v698_v49, %v699_v56  ;;  %v9283_v34 = vrot.slane %v988_v12, %v9085_v23  ;;  %v1791_v49 = vcombine.low %v1774_v42, %v1788_v59 }
  0xa7   : > { %8029 = vmatpush3.msra.mxu1 %v388_v35  ;;  %2573 = vmatprep.subr.mxu0 %v13125_v0  ;;  %13426 = vst [vmem:[#allocation41_spill] sm:$0xff] %v9269_v14  ;;  %13427 = vst [vmem:[#allocation42_spill] sm:$0xff] %v9277_v24  ;;  %v1023_v35 = vcombine.high %v9253_v62, %v9253_v62  ;;  %v9297_v51 = vrot.slane %v9277_v24, %v9085_v23 }
  0xa8   : > { %8030 = vmatprep.subr.mxu1 %v13125_v0  ;;  %2574 = vmatpush1.msra.mxu0 %v355_v37  ;;  %13428 = vst [vmem:[#allocation43_spill] sm:$0xff] %v9283_v34  ;;  %v1844_v37 = vrot.slane %v7375_v19, %v9085_v23  ;;  %v1879_v60 = vrot.slane %v9283_v34, %v9085_v23 }
  0xa9   : > { %8031 = vmatpush3.msra.mxu1 %v387_v47  ;;  %2575 = vmatprep.subr.mxu0 %v13125_v0  ;;  %v9293_v47 = vrot.slane %v696_v32, %v9085_v23  ;;  %13430 = vst [vmem:[#allocation45_spill] sm:$0xff] %v9297_v51  ;;  %v9305_v3 = vsel %vm13357_vm2, %v647_v63, %v648_v8  ;;  %v383_v32 = vld [vmem:[#allocation4 + $0x260] sm:$0xff] }
  0xaa   : > { %8033 = vmatmul.mubr.f32.vlgmr.msra.gmra.mxu1 %v9174_v9  ;;  %2576 = vmatpush2.msra.mxu0 %v386_v1  ;;  %v1893_v9 = vrot.slane %v9269_v14, %v9085_v23  ;;  %v9302_v1 = vrot.slane %v1023_v35, %v9085_v23  ;;  %v651_v42 = vsel %vm13357_vm2, %v648_v8, %v13118_v16  ;;  %v321_v16 = vld [vmem:[#allocation4 + $0x70] sm:$0xff] }
  0xab   : > { %8035 = vmatprep.mubr.msk.f32.mxu1 %vm8830_vm0, %v13125_v0  ;;  %2577 = vmatprep.subr.mxu0 %v13125_v0  ;;  %13429 = vst [vmem:[#allocation44_spill] sm:$0xff] %v9293_v47  ;;  %v1826_v59 = vcombine.low %v1809_v10, %v1823_v18  ;;  %v7377_v6 = vcombine.low %v9293_v47, %v9297_v51  ;;  %v382_v10 = vld [vmem:[#allocation4 + $0x258] sm:$0xff] }
  0xac   : > { %2578 = vmatpush2.msra.mxu0 %v385_v17  ;;  %13431 = vst [vmem:[#allocation46_spill] sm:$0xff] %v9302_v1  ;;  %v9317_v12 = vsel %vm13352_vm1, %v699_v56, %v13116_v28  ;;  %v9321_v63 = vcombine.low %v1844_v37, %v1858_v7  ;;  %v9323_v8 = vcombine.low %v1879_v60, %v1893_v9  ;;  %v322_v9 = vld [vmem:[#allocation4 + $0x78] sm:$0xff]  ;;  %v381_v37 = vld [vmem:[#allocation4 + $0x250] sm:$0xff] }
  0xad   : > { %2579 = vmatprep.subr.mxu0 %v13125_v0  ;;  %13432 = vst [vmem:[#allocation47_spill] sm:$0xff] %v9317_v12  ;;  %v1914_v17 = vrot.slane %v9302_v1, %v9085_v23  ;;  %v1074_v56 = vcombine.high %v9277_v24, %v9277_v24  ;;  %v1107_v18 = vcombine.low %v9213_v33, %v651_v42  ;;  %v9356_v28 = vld [vmem:[%s9058_s23 + $0x78] sm:$0xff]  ;;  %v642_v1 = vrot.slane %v9143_v57, 1 }
  0xae   : > { %8036 = vmatmul.mubr.f32.gmra.mxu1 %v9191_v22  ;;  %2580 = vmatpush2.msra.mxu0 %v384_v43  ;;  %v1073_v22 = vcombine.high %v9200_v26, %v9305_v3  ;;  %v9335_v7 = vrot.slane %v9317_v12, %v9085_v23  ;;  %v634_v35 = vsel %vm13357_vm2, %v632_v41, %v13117_v40 }
  0xaf   : > { %8038 = vmatprep.mubr.msk.f32.mxu1 %vm8830_vm0, %v13125_v0  ;;  %2581 = vmatprep.subr.mxu0 %v13125_v0  ;;  %v1108_v43 = vcombine.high %v9213_v33, %v651_v42  ;;  %v1928_v60 = vrot.slane %v7377_v6, %v9085_v23  ;;  %v814_v33 = vcombine.low %v9078_v20, %v634_v35  ;;  %v9365_v42 = vld [vmem:[%s9058_s23 + $0x80] sm:$0xff]  ;;  %v380_v6 = vld [vmem:[#allocation4 + $0x248] sm:$0xff] }
  0xb0   : > { %13433 = vst [vmem:[#allocation48_spill] sm:$0xff] %v9335_v7  ;;  %2582 = vmatpush2.msra.mxu0 %v383_v32  ;;  %v9338_v19 = vrot.slane %v1073_v22, %v9085_v23  ;;  %3759 = vmatprep.subr.mxu1 %v13125_v0  ;;  %v9350_v32 = vrot.slane %v1074_v56, %v9085_v23  ;;  %v13450_v55 = vrot.slane %v9365_v42, 2 }
  0xb1   : > { %2583 = vmatprep.subr.mxu0 %v13125_v0  ;;  %v9353_v22 = vrot.slane %v1107_v18, %v9085_v23  ;;  %v815_v41 = vcombine.high %v9078_v20, %v634_v35  ;;  %3760 = vmatpush1.msra.mxu1 %v322_v9  ;;  %v9373_v18 = vrot.slane %v1108_v43, %v9085_v23  ;;  %v635_v20 = vrot.slane %v9091_v27, 1  ;;  %v379_v43 = vld [vmem:[#allocation4 + $0x240] sm:$0xff] }
  0xb2   : > { %13434 = vst [vmem:[#allocation49_spill] sm:$0xff] %v9338_v19  ;;  %8039 = vmatmul.mubr.f32.gmra.mxu1 %v1791_v49  ;;  %13435 = vst [vmem:[#allocation50_spill] sm:$0xff] %v9350_v32  ;;  %2584 = vmatpush2.msra.mxu0 %v382_v10  ;;  %v1109_v49 = vcombine.high %v9317_v12, %v9317_v12  ;;  %v1105_v56 = vcombine.low %v9338_v19, %v9350_v32  ;;  %v703_v9 = vrot.slane %v9356_v28, 2 }
  0xb3   : > { %13436 = vst [vmem:[#allocation51_spill] sm:$0xff] %v9353_v22  ;;  %8041 = vmatprep.mubr.msk.f32.mxu1 %vm8830_vm0, %v13125_v0  ;;  %2585 = vmatprep.subr.mxu0 %v13125_v0  ;;  %v1138_v10 = vcombine.low %v9353_v22, %v9335_v7  ;;  %13437 = vst [vmem:[#allocation52_spill] sm:$0xff] %v9373_v18  ;;  %v9378_v35 = vrot.slane %v814_v33, %v9085_v23  ;;  %v13439_v33 = vrot.slane %v9247_v58, 1 }
  0xb4   : > { %2586 = vmatpush2.msra.mxu0 %v381_v37  ;;  %3761 = vmatprep.subr.mxu1 %v13125_v0  ;;  %v9381_v40 = vrot.slane %v815_v41, %v9085_v23  ;;  %v9384_v24 = vrot.slane %v1109_v49, %v9085_v23  ;;  %v7379_v37 = vcombine.high %v9297_v51, %v1105_v56 }
  0xb5   : > { %2587 = vmatprep.subr.mxu0 %v13125_v0  ;;  %v7381_v12 = vcombine.high %v9350_v32, %v1138_v10  ;;  %v1142_v38 = vcombine.low %v9247_v58, %v13439_v33  ;;  %v9398_v49 = vrot.slane %v9378_v35, %v9085_v23  ;;  %v378_v10 = vld [vmem:[#allocation4 + $0x238] sm:$0xff]  ;;  %3762 = vmatpush1.msra.mxu1 %v321_v16  ;;  %v377_v16 = vld [vmem:[#allocation4 + $0x230] sm:$0xff] }
  0xb6   : > { %13438 = vst [vmem:[#allocation53_spill] sm:$0xff] %v9384_v24  ;;  %8042 = vmatmul.mubr.f32.gmra.mxu1 %v1826_v59  ;;  %2588 = vmatpush2.msra.mxu0 %v380_v6  ;;  %v9402_v59 = vrot.slane %v9381_v40, %v9085_v23  ;;  %v1140_v56 = vcombine.low %v9373_v18, %v9384_v24 }
  0xb7   : > { %8044 = vmatprep.mubr.msk.f32.mxu1 %vm8830_vm0, %v13125_v0  ;;  %2589 = vmatprep.subr.mxu0 %v13125_v0  ;;  %v1949_v6 = vrot.slane %v7379_v37, %v9085_v23  ;;  %v1963_v33 = vrot.slane %v7381_v12, %v9085_v23  ;;  %v9410_v41 = vrot.slane %v1142_v38, %v9085_v23  ;;  %v13441_v0 = vrot.slane %v9247_v58, 2  ;;  %v9433_v58 = vld [vmem:[%s9058_s23 + $0x88] sm:$0xff] }
  0xb8   : > { %2590 = vmatpush2.msra.mxu0 %v379_v43  ;;  %v1931_v62 = vcombine.low %v1914_v17, %v1928_v60  ;;  %v1720_v50 = vcombine.high %v9398_v49, %v9402_v59  ;;  %v13443_v37 = vmov 0.0   ;;  %v7383_v38 = vcombine.high %v9335_v7, %v1140_v56 }
  0xb9   : > { %13440 = vst [vmem:[#allocation54_spill] sm:$0xff] %v9410_v41  ;;  %v9419_v15 = vrot.slane %v13441_v0, %v9085_v23  ;;  %2591 = vmatprep.subr.mxu0 %v13443_v37  ;;  %v13444_v12 = vrot.slane %v9081_v21, 1  ;;  %v13445_v60 = vrot.slane %v9365_v42, 2  ;;  %v9437_v0 = vcombine.low %v1949_v6, %v1963_v33  ;;  %v9451_v6 = vld [vmem:[%s9058_s23 + $0x90] sm:$0xff]  ;;  %3763 = vmatprep.subr.mxu1 %v13443_v37 }
  0xba   : > { %8045 = vmatmul.mubr.f32.gmra.mxu1 %v9321_v63  ;;  %2592 = vmatpush2.msra.mxu0 %v378_v10 }
  0xbb   : > { %13442 = vst [vmem:[#allocation55_spill] sm:$0xff] %v9419_v15  ;;  %v636_v17 = vsel %vm13357_vm2, %v13444_v12, %v635_v20  ;;  %v9430_v43 = vsel %vm13352_vm1, %v703_v9, %v13445_v60  ;;  %8047 = vmatprep.mubr.msk.f32.mxu1 %vm8830_vm0, %v13443_v37  ;;  %v1157_v63 = vcombine.low %v9410_v41, %v9419_v15  ;;  %v376_v12 = vld [vmem:[#allocation4 + $0x228] sm:$0xff] }
  0xbc   : > { %13446 = vst [vmem:[#allocation56_spill] sm:$0xff] %v9430_v43  ;;  %v849_v56 = vcombine.low %v9081_v21, %v636_v17  ;;  %2593 = vmatprep.subr.mxu0 %v13443_v37  ;;  %2607 = vmatprep.mubr.f32.mxu0 %v1720_v50  ;;  %v850_v9 = vcombine.high %v9081_v21, %v636_v17  ;;  %v9461_v17 = vld [vmem:[%s9058_s23 + $0x98] sm:$0xff]  ;;  %v319_v50 = vld [vmem:[#allocation4 + $0x60] sm:$0xff] }
  0xbd   : > { %v1160_v10 = vcombine.high %v9430_v43, %v9430_v43  ;;  %v9448_v60 = vrot.slane %v9430_v43, %v9085_v23  ;;  %2594 = vmatpush2.msra.mxu0 %v377_v16  ;;  %v7385_v33 = vcombine.high %v9384_v24, %v1157_v63  ;;  %v884_v21 = vcombine.low %v9091_v27, %v635_v20  ;;  %v375_v43 = vld [vmem:[#allocation4 + $0x220] sm:$0xff] }
  0xbe   : > { %v9456_v15 = vrot.slane %v849_v56, %v9085_v23  ;;  %2595 = vmatprep.subr.mxu0 %v13443_v37  ;;  %8048 = vmatmul.mubr.f32.gmra.mxu1 %v9323_v8  ;;  %v1984_v16 = vrot.slane %v7383_v38, %v9085_v23  ;;  %v9467_v63 = vrot.slane %v850_v9, %v9085_v23  ;;  %v657_v38 = vrot.slane %v9451_v6, 1  ;;  %v374_v56 = vld [vmem:[#allocation4 + $0x218] sm:$0xff] }
  0xbf   : > { %13447 = vst [vmem:[#allocation57_spill] sm:$0xff] %v9448_v60  ;;  %v9470_v47 = vrot.slane %v1160_v10, %v9085_v23  ;;  %2596 = vmatpush2.msra.mxu0 %v376_v12  ;;  %8050 = vmatprep.mubr.msk.f32.mxu1 %vm8830_vm0, %v13443_v37  ;;  %v1998_v27 = vrot.slane %v7385_v33, %v9085_v23 }
  0xc0   : > { %v9477_v20 = vrot.slane %v9456_v15, %v9085_v23  ;;  %v2019_v8 = vrot.slane %v9448_v60, %v9085_v23  ;;  %2597 = vmatprep.subr.mxu0 %v13443_v37  ;;  %3764 = vmatpush1.msra.mxu1 %v320_v11  ;;  %v9485_v12 = vrot.slane %v9467_v63, %v9085_v23  ;;  %v13449_v11 = vrot.slane %v9433_v58, 2 }
  0xc1   : > { %13448 = vst [vmem:[#allocation58_spill] sm:$0xff] %v9470_v47  ;;  %v9488_v9 = vrot.slane %v884_v21, %v9085_v23  ;;  %v900_v10 = vcombine.low %v9095_v29, %v9120_v46  ;;  %2598 = vmatpush2.msra.mxu0 %v375_v43  ;;  %3765 = vmatprep.subr.mxu1 %v13443_v37  ;;  %v373_v29 = vld [vmem:[#allocation4 + $0x210] sm:$0xff] }
  0xc2   : > { %v2033_v44 = vrot.slane %v9470_v47, %v9085_v23  ;;  %v9501_v60 = vsel %vm13352_vm1, %v13450_v55, %v13449_v11  ;;  %v934_v21 = vcombine.high %v9166_v4, %v9169_v5  ;;  %2599 = vmatprep.subr.mxu0 %v13443_v37  ;;  %8051 = vmatmul.mubr.f32.gmra.mxu1 %v1931_v62 }
  0xc3   : > { %13451 = vst [vmem:[#allocation59_spill] sm:$0xff] %v9501_v60  ;;  %v2001_v46 = vcombine.low %v1984_v16, %v1998_v27  ;;  %v1755_v43 = vcombine.high %v9477_v20, %v9485_v12  ;;  %2600 = vmatpush2.msra.mxu0 %v374_v56  ;;  %8053 = vmatprep.mubr.msk.f32.mxu1 %vm8830_vm0, %v13443_v37  ;;  %v708_v16 = vrot.slane %v9451_v6, 2  ;;  %v372_v27 = vld [vmem:[#allocation4 + $0x208] sm:$0xff] }
  0xc4   : > { %v9513_v55 = vrot.slane %v900_v10, %v9085_v23  ;;  %v1195_v11 = vcombine.high %v9501_v60, %v9501_v60  ;;  %v9519_v62 = vrot.slane %v9501_v60, %v9085_v23  ;;  %2601 = vmatprep.subr.mxu0 %v13443_v37  ;;  %3766 = vmatpush1.msra.mxu1 %v319_v50  ;;  %v13453_v10 = vrot.slane %v9461_v17, 1  ;;  %v318_v60 = vld [vmem:[#allocation4 + $0x58] sm:$0xff] }
  0xc5   : > { %v967_v56 = vcombine.high %v9206_v30, %v9197_v25  ;;  %v7370_v33 = vcombine.low %v934_v21, %v9206_v30  ;;  %2602 = vmatpush2.msra.mxu0 %v373_v29  ;;  %3767 = vmatprep.subr.mxu1 %v13443_v37 }
  0xc6   : > { %13452 = vst [vmem:[#allocation60_spill] sm:$0xff] %v9519_v62  ;;  %v9529_v5 = vsel %vm13357_vm2, %v657_v38, %v13453_v10  ;;  %v932_v50 = vcombine.high %v9513_v55, %v9160_v2  ;;  %v7366_v25 = vcombine.low %v9488_v9, %v9513_v55  ;;  %v9538_v21 = vrot.slane %v1195_v11, %v9085_v23  ;;  %v371_v38 = vld [vmem:[#allocation4 + $0x200] sm:$0xff] }
  0xc7   : > { %2603 = vmatprep.subr.mxu0 %v13443_v37  ;;  %8054 = vmatmul.mubr.f32.gmra.mxu1 %v9437_v0  ;;  %v2054_v29 = vrot.slane %v9519_v62, %v9085_v23  ;;  %v7372_v10 = vcombine.low %v967_v56, %v9209_v31  ;;  %v9546_v47 = vrot.slane %v7370_v33, %v9085_v23  ;;  %v9558_v62 = vld [vmem:[%s9058_s23 + $0xa0] sm:$0xff]  ;;  %v13455_v56 = vrot.slane %v9461_v17, 2 }
  0xc8   : > { %13454 = vst [vmem:[#allocation61_spill] sm:$0xff] %v9538_v21  ;;  %2604 = vmatpush2.msra.mxu0 %v372_v27  ;;  %8056 = vmatprep.mubr.msk.f32.mxu1 %vm8830_vm0, %v13443_v37  ;;  %v7368_v11 = vcombine.low %v932_v50, %v9166_v4  ;;  %v9552_v2 = vrot.slane %v7366_v25, %v9085_v23  ;;  %v316_v25 = vld [vmem:[#allocation4 + $0x48] sm:$0xff] }
  0xc9   : > { %v2068_v0 = vrot.slane %v9538_v21, %v9085_v23  ;;  %2605 = vmatprep.subr.mxu0 %v13443_v37  ;;  %v2036_v33 = vcombine.low %v2019_v8, %v2033_v44  ;;  %3768 = vmatpush1.msra.mxu1 %v318_v60  ;;  %v9562_v27 = vrot.slane %v7372_v10, %v9085_v23  ;;  %v354_v21 = vld [vmem:[#allocation4 + $0x178] sm:$0xff]  ;;  %v13457_v44 = vrot.slane %v9433_v58, 2  ;;  %v317_v10 = vld [vmem:[#allocation4 + $0x50] sm:$0xff] }
  0xca   : > { %v9567_v50 = vsel %vm13352_vm1, %v708_v16, %v13455_v56  ;;  %2606 = vmatpush2.msra.mxu0 %v371_v38  ;;  %3769 = vmatprep.subr.mxu1 %v13443_v37  ;;  %v1781_v14 = vrot.slane %v7368_v11, %v9085_v23  ;;  %v1245_v8 = vcombine.high %v9451_v6, %v9529_v5 }
  0xcb   : > { %13456 = vst [vmem:[#allocation62_spill] sm:$0xff] %v9567_v50  ;;  %v9575_v60 = vrot.slane %v13457_v44, %v9085_v23  ;;  %v13459_v16 = vcombine.low %v9398_v49, %v9402_v59  ;;  %8057 = vmatmul.mubr.f32.gmra.mxu1 %v2001_v46  ;;  %v2071_v38 = vcombine.low %v2054_v29, %v2068_v0  ;;  %v13463_v0 = vrot.slane %v9152_v61, 1 }
  0xcc   : > { %v1825_v56 = vcombine.high %v9546_v47, %v9562_v27  ;;  %v1246_v11 = vcombine.high %v9567_v50, %v9567_v50  ;;  %8101 = vmatprep.subr.mxu0 %v13443_v37  ;;  %v1790_v44 = vcombine.high %v9552_v2, %v1781_v14  ;;  %v9592_v59 = vrot.slane %v1245_v8, %v9085_v23  ;;  %v353_v8 = vld [vmem:[#allocation4 + $0x170] sm:$0xff] }
  0xcd   : > { %13458 = vst [vmem:[#allocation63_spill] sm:$0xff] %v9575_v60  ;;  %2608 = vmatmul.mubr.f32.vlgmr.msra.gmra.mxu0 %v13459_v16  ;;  %8059 = vmatprep.mubr.msk.f32.mxu1 %vm8830_vm0, %v13443_v37  ;;  %v9599_v29 = vrot.slane %v9567_v50, %v9085_v23  ;;  %v644_v16 = vsel %vm13357_vm2, %v642_v1, %v13463_v0  ;;  %v13465_v0 = vrot.slane %v9558_v62, 1  ;;  %v9625_v50 = vld [vmem:[%s9058_s23 + $0xa8] sm:$0xff] }
  0xce   : > { %2612 = vmatprep.mubr.f32.mxu0 %v1755_v43  ;;  %13460 = vst [vmem:[#allocation64_spill] sm:$0xff] %v9592_v59  ;;  %8102 = vmatpush3.msra.mxu0 %v354_v21  ;;  %v9602_v43 = vrot.slane %v1246_v11, %v9085_v23  ;;  %v1789_v21 = vcombine.low %v9552_v2, %v1781_v14  ;;  %v13466_v2 = vrot.slane %v9461_v17, 1  ;;  %v713_v34 = vrot.slane %v9625_v50, 2 }
  0xcf   : > { %13461 = vst [vmem:[#allocation65_spill] sm:$0xff] %v9599_v29  ;;  %8103 = vmatprep.subr.mxu0 %v13443_v37  ;;  %3770 = vmatpush1.msra.mxu1 %v317_v10  ;;  %v969_v49 = vcombine.high %v9209_v31, %v9218_v36  ;;  %v986_v46 = vcombine.low %v9143_v57, %v644_v16  ;;  %v9641_v36 = vld [vmem:[%s9058_s23 + $0xb0] sm:$0xff] }
  0xd0   : > { %13462 = vst [vmem:[#allocation66_spill] sm:$0xff] %v9602_v43  ;;  %v13464_v11 = vcombine.low %v9477_v20, %v9485_v12  ;;  %8060 = vmatmul.mubr.f32.gmra.mxu1 %v2036_v33  ;;  %v1277_v1 = vcombine.low %v9592_v59, %v9602_v43  ;;  %v7387_v10 = vcombine.low %v9575_v60, %v9599_v29  ;;  %v13467_v33 = vrot.slane %v9558_v62, 2 }
  0xd1   : > { %v661_v14 = vsel %vm13357_vm2, %v13466_v2, %v13465_v0  ;;  %8062 = vmatprep.mubr.msk.f32.mxu1 %vm8830_vm0, %v13443_v37  ;;  %v9630_v20 = vrot.slane %v986_v46, %v9085_v23  ;;  %v7374_v12 = vcombine.low %v969_v49, %v9239_v52  ;;  %8104 = vmatpush3.msra.mxu0 %v353_v8  ;;  %v315_v2 = vld [vmem:[#allocation4 + $0x40] sm:$0xff]  ;;  %v13156_v31 = vrot.slane %v9641_v36, 2 }
  0xd2   : > { %2613 = vmatmul.mubr.f32.gmra.mxu0 %v13464_v11  ;;  %v13468_v11 = vrot.slane %v9461_v17, 2  ;;  %3771 = vmatprep.subr.mxu1 %v13443_v37  ;;  %v2089_v0 = vrot.slane %v7387_v10, %v9085_v23  ;;  %v1279_v46 = vcombine.low %v9461_v17, %v661_v14  ;;  %v352_v10 = vld [vmem:[#allocation4 + $0x168] sm:$0xff]  ;;  %v1280_v49 = vcombine.high %v9461_v17, %v661_v14  ;;  %v314_v17 = vld [vmem:[#allocation4 + $0x38] sm:$0xff] }
  0xd3   : > { %2617 = vmatprep.mubr.f32.mxu0 %v1790_v44  ;;  %v7389_v44 = vcombine.high %v9599_v29, %v1277_v1  ;;  %3772 = vmatpush1.msra.mxu1 %v316_v25  ;;  %v1851_v8 = vrot.slane %v9630_v20, %v9085_v23 }
  0xd4   : > { %v9638_v60 = vsel %vm13352_vm1, %v13468_v11, %v13467_v33  ;;  %8105 = vmatprep.subr.mxu0 %v13443_v37  ;;  %v987_v33 = vcombine.high %v9143_v57, %v644_v16  ;;  %v1837_v11 = vrot.slane %v7374_v12, %v9085_v23  ;;  %8063 = vmatmul.mubr.f32.gmra.mxu1 %v2071_v38 }
  0xd5   : > { %13469 = vst [vmem:[#allocation67_spill] sm:$0xff] %v9638_v60  ;;  %v2103_v1 = vrot.slane %v7389_v44, %v9085_v23  ;;  %v1281_v25 = vcombine.high %v9638_v60, %v9638_v60  ;;  %3773 = vmatprep.subr.mxu1 %v13443_v37  ;;  %v9661_v12 = vrot.slane %v1279_v46, %v9085_v23  ;;  %v13474_v44 = vrot.slane %v9183_v13, 1 }
  0xd6   : > { %2618 = vmatmul.mubr.f32.gmra.mxu0 %v1789_v21  ;;  %v1860_v57 = vcombine.high %v1837_v11, %v1851_v8  ;;  %v1859_v16 = vcombine.low %v1837_v11, %v1851_v8  ;;  %8065 = vmatprep.mubr.msk.f32.mxu1 %vm8830_vm0, %v13443_v37  ;;  %v9666_v21 = vrot.slane %v1280_v49, %v9085_v23  ;;  %v13475_v46 = vrot.slane %v9152_v61, 1  ;;  %v313_v11 = vld [vmem:[#allocation4 + $0x30] sm:$0xff] }
  0xd7   : > { %2622 = vmatprep.mubr.f32.mxu0 %v1825_v56  ;;  %13470 = vst [vmem:[#allocation68_spill] sm:$0xff] %v9661_v12  ;;  %3774 = vmatpush1.msra.mxu1 %v315_v2  ;;  %v2106_v38 = vcombine.low %v2089_v0, %v2103_v1  ;;  %v9670_v14 = vrot.slane %v9638_v60, %v9085_v23 }
  0xd8   : > { %13471 = vst [vmem:[#allocation69_spill] sm:$0xff] %v9666_v21  ;;  %3775 = vmatprep.subr.mxu1 %v13443_v37  ;;  %8106 = vmatpush3.msra.mxu0 %v352_v10  ;;  %v9674_v56 = vrot.slane %v1281_v25, %v9085_v23  ;;  %v646_v0 = vsel %vm13357_vm2, %v13475_v46, %v13474_v44  ;;  %v9696_v25 = vld [vmem:[%s9058_s23 + $0xb8] sm:$0xff]  ;;  %v9706_v44 = vld [vmem:[%s9058_s23 + $0xc0] sm:$0xff] }
  0xd9   : > { %13472 = vst [vmem:[#allocation70_spill] sm:$0xff] %v9670_v14  ;;  %v9682_v49 = vrot.slane %v987_v33, %v9085_v23  ;;  %v13477_v2 = vcombine.low %v9546_v47, %v9562_v27  ;;  %8066 = vmatmul.mubr.f32.gmra.mxu1 %v2106_v38  ;;  %v1310_v8 = vcombine.low %v9661_v12, %v9670_v14  ;;  %v13479_v33 = vrot.slane %v9558_v62, 1  ;;  %v351_v46 = vld [vmem:[#allocation4 + $0x160] sm:$0xff] }
  0xda   : > { %13473 = vst [vmem:[#allocation71_spill] sm:$0xff] %v9674_v56  ;;  %v1021_v1 = vcombine.low %v9152_v61, %v646_v0  ;;  %v9693_v10 = vsel %vm13352_vm1, %v713_v34, %v13156_v31  ;;  %3776 = vmatpush1.msra.mxu1 %v314_v17  ;;  %v1312_v47 = vcombine.low %v9666_v21, %v9674_v56 }
  0xdb   : > { %13476 = vst [vmem:[#allocation72_spill] sm:$0xff] %v9682_v49  ;;  %2623 = vmatmul.mubr.f32.gmra.mxu0 %v13477_v2  ;;  %13478 = vst [vmem:[#allocation73_spill] sm:$0xff] %v9693_v10  ;;  %v1872_v27 = vrot.slane %v9682_v49, %v9085_v23  ;;  %v1314_v38 = vcombine.low %v9558_v62, %v13479_v33  ;;  %3777 = vmatprep.subr.mxu1 %v13443_v37  ;;  %v13481_v2 = vrot.slane %v9558_v62, 2  ;;  %v9721_v33 = vld [vmem:[%s9058_s23 + $0xc8] sm:$0xff] }
  0xdc   : > { %2627 = vmatprep.mubr.f32.mxu0 %v1860_v57  ;;  %8068 = vmatprep.mubr.msk.f32.mxu1 %vm8830_vm0, %v13443_v37  ;;  %v7391_v34 = vcombine.high %v9602_v43, %v1310_v8  ;;  %v312_v57 = vld [vmem:[#allocation4 + $0x28] sm:$0xff]  ;;  %v9713_v17 = vrot.slane %v1021_v1, %v9085_v23  ;;  %v7393_v60 = vcombine.high %v9670_v14, %v1312_v47  ;;  %v716_v1 = vrot.slane %v9696_v25, 2  ;;  %v311_v47 = vld [vmem:[#allocation4 + $0x20] sm:$0xff] }
  0xdd   : > { %v9718_v31 = vrot.slane %v13481_v2, %v9085_v23  ;;  %3778 = vmatpush1.msra.mxu1 %v313_v11  ;;  %8107 = vmatprep.subr.mxu0 %v13443_v37  ;;  %v9726_v49 = vrot.slane %v1314_v38, %v9085_v23  ;;  %v9730_v8 = vrot.slane %v9693_v10, %v9085_v23  ;;  %v718_v38 = vrot.slane %v9706_v44, 2 }
  0xde   : > { %13480 = vst [vmem:[#allocation74_spill] sm:$0xff] %v9713_v17  ;;  %v2124_v62 = vrot.slane %v7391_v34, %v9085_v23  ;;  %3779 = vmatprep.subr.mxu1 %v13443_v37  ;;  %v1886_v11 = vrot.slane %v9713_v17, %v9085_v23  ;;  %v1022_v2 = vcombine.high %v9152_v61, %v646_v0  ;;  %v13168_v34 = vrot.slane %v9721_v33, 2 }
  0xdf   : > { %13482 = vst [vmem:[#allocation75_spill] sm:$0xff] %v9718_v31  ;;  %13483 = vst [vmem:[#allocation76_spill] sm:$0xff] %v9726_v49  ;;  %2628 = vmatmul.mubr.f32.gmra.mxu0 %v1859_v16  ;;  %v2138_v52 = vrot.slane %v7393_v60, %v9085_v23  ;;  %3780 = vmatpush1.msra.mxu1 %v312_v57  ;;  %v1329_v30 = vcombine.low %v9726_v49, %v9718_v31  ;;  %v13485_v0 = vrot.slane %v9183_v13, 1  ;;  %v310_v31 = vld [vmem:[#allocation4 + $0x18] sm:$0xff] }
  0xe0   : > { %13484 = vst [vmem:[#allocation77_spill] sm:$0xff] %v9730_v8  ;;  %8108 = vmatpush3.msra.mxu0 %v351_v46  ;;  %v2173_v16 = vrot.slane %v9730_v8, %v9085_v23  ;;  %3781 = vmatprep.subr.mxu1 %v13443_v37  ;;  %v1895_v17 = vcombine.high %v1872_v27, %v1886_v11 }
  0xe1   : > { %v1894_v4 = vcombine.low %v1872_v27, %v1886_v11  ;;  %v9747_v61 = vrot.slane %v1022_v2, %v9085_v23  ;;  %v1056_v60 = vcombine.low %v9183_v13, %v13485_v0  ;;  %v2141_v57 = vcombine.low %v2124_v62, %v2138_v52  ;;  %3782 = vmatpush1.msra.mxu1 %v311_v47 }
  0xe2   : > { %v7395_v46 = vcombine.high %v9674_v56, %v1329_v30  ;;  %v1072_v8 = vcombine.low %v9200_v26, %v9305_v3  ;;  %8109 = vmatprep.subr.mxu0 %v13443_v37  ;;  %2632 = vmatprep.mubr.f32.mxu0 %v1895_v17  ;;  %v13487_v13 = vrot.slane %v9641_v36, 2  ;;  %v350_v30 = vld [vmem:[#allocation4 + $0x158] sm:$0xff]  ;;  %v309_v17 = vld [vmem:[#allocation4 + $0x10] sm:$0xff]  ;;  %v1332_v62 = vcombine.high %v9693_v10, %v9693_v10 }
  0xe3   : > { %3783 = vmatprep.subr.mxu1 %v13443_v37  ;;  %v9758_v27 = vrot.slane %v1056_v60, %v9085_v23  ;;  %v1907_v11 = vrot.slane %v9747_v61, %v9085_v23  ;;  %8069 = vmatmul.mubr.f32.gmra.mxu1 %v2141_v57  ;;  %v308_v60 = vld [vmem:[#allocation4 + $0x8] sm:$0xff]  ;;  %v9793_v57 = vld [vmem:[%s9058_s23 + $0xd0] sm:$0xff]  ;;  %v668_v10 = vrot.slane %v9721_v33, 1 }
  0xe4   : > { %v9765_v52 = vsel %vm13352_vm1, %v13487_v13, %v716_v1  ;;  %2633 = vmatmul.mubr.f32.gmra.mxu0 %v1894_v4  ;;  %v2159_v26 = vrot.slane %v7395_v46, %v9085_v23  ;;  %v9769_v3 = vrot.slane %v1072_v8, %v9085_v23  ;;  %8071 = vmatprep.mubr.msk.f32.mxu1 %vm8830_vm0, %v13443_v37  ;;  %v667_v46 = vrot.slane %v9706_v44, 1 }
  0xe5   : > { %13486 = vst [vmem:[#allocation78_spill] sm:$0xff] %v9758_v27  ;;  %13488 = vst [vmem:[#allocation79_spill] sm:$0xff] %v9765_v52  ;;  %3784 = vmatpush1.msra.mxu1 %v310_v31  ;;  %v9777_v47 = vrot.slane %v9765_v52, %v9085_v23  ;;  %v1106_v4 = vcombine.high %v9338_v19, %v9350_v32  ;;  %v9784_v8 = vsel %vm13352_vm1, %v718_v38, %v13168_v34 }
  0xe6   : > { %13489 = vst [vmem:[#allocation80_spill] sm:$0xff] %v9769_v3  ;;  %13491 = vst [vmem:[#allocation82_spill] sm:$0xff] %v9784_v8  ;;  %v2176_v2 = vcombine.low %v2159_v26, %v2173_v16  ;;  %3785 = vmatprep.subr.mxu1 %v13443_v37  ;;  %v7376_v0 = vcombine.low %v9758_v27, %v9769_v3  ;;  %v9790_v31 = vrot.slane %v1332_v62, %v9085_v23 }
  0xe7   : > { %13490 = vst [vmem:[#allocation81_spill] sm:$0xff] %v9777_v47  ;;  %8110 = vmatpush3.msra.mxu0 %v350_v30  ;;  %3786 = vmatpush1.msra.mxu1 %v309_v17  ;;  %v2208_v38 = vrot.slane %v9777_v47, %v9085_v23  ;;  %v1104_v16 = vcombine.high %v9769_v3, %v9297_v51  ;;  %v307_v17 = vld [vmem:[#allocation4] sm:$0xff] }
  0xe8   : > { %13492 = vst [vmem:[#allocation83_spill] sm:$0xff] %v9790_v31  ;;  %v7380_v13 = vcombine.low %v1106_v4, %v9353_v22  ;;  %v1367_v26 = vcombine.high %v9765_v52, %v9765_v52  ;;  %8072 = vmatmul.mubr.f32.gmra.mxu1 %v2176_v2  ;;  %v1921_v30 = vrot.slane %v7376_v0, %v9085_v23 }
  0xe9   : > { %v2194_v62 = vrot.slane %v9790_v31, %v9085_v23  ;;  %3787 = vmatprep.subr.mxu1 %v13443_v37  ;;  %v9808_v34 = vrot.slane %v716_v1, %v9085_v23  ;;  %8074 = vmatprep.mubr.msk.f32.mxu1 %vm8830_vm0, %v13443_v37  ;;  %v7378_v4 = vcombine.low %v1104_v16, %v9338_v19  ;;  %v9941_v19 = vld [vmem:[%s9058_s23 + $0xe8] sm:$0xff] }
  0xea   : > { %3788 = vmatpush1.msra.mxu1 %v308_v60  ;;  %v1956_v2 = vrot.slane %v7380_v13, %v9085_v23  ;;  %v9816_v0 = vrot.slane %v1367_v26, %v9085_v23  ;;  %v1930_v32 = vcombine.high %v1907_v11, %v1921_v30  ;;  %v1929_v51 = vcombine.low %v1907_v11, %v1921_v30  ;;  %v349_v13 = vld [vmem:[#allocation4 + $0x150] sm:$0xff]  ;;  %v338_v30 = vld [vmem:[#allocation4 + $0xf8] sm:$0xff] }
  0xeb   : > { %13493 = vst [vmem:[#allocation84_spill] sm:$0xff] %v9808_v34  ;;  %v2211_v47 = vcombine.low %v2194_v62, %v2208_v38  ;;  %3789 = vmatprep.subr.mxu1 %v13443_v37  ;;  %v9822_v1 = vrot.slane %v9784_v8, %v9085_v23  ;;  %v1942_v60 = vrot.slane %v7378_v4, %v9085_v23  ;;  %v652_v4 = vrot.slane %v9356_v28, 1 }
  0xec   : > { %13494 = vst [vmem:[#allocation85_spill] sm:$0xff] %v9816_v0  ;;  %3790 = vmatpush1.msra.mxu1 %v307_v17  ;;  %v2229_v16 = vrot.slane %v9816_v0, %v9085_v23  ;;  %8111 = vmatprep.subr.mxu0 %v13443_v37  ;;  %v1139_v26 = vcombine.high %v9353_v22, %v9335_v7  ;;  %v13496_v7 = vrot.slane %v9793_v57, 1 }
  0xed   : > { %13495 = vst [vmem:[#allocation86_spill] sm:$0xff] %v9822_v1  ;;  %2637 = vmatprep.mubr.f32.mxu0 %v1930_v32  ;;  %8075 = vmatmul.mubr.f32.gmra.mxu1 %v2211_v47  ;;  %v7397_v38 = vcombine.low %v9808_v34, %v9822_v1  ;;  %v1141_v62 = vcombine.high %v9373_v18, %v9384_v24  ;;  %v337_v24 = vld [vmem:[#allocation4 + $0xf0] sm:$0xff] }
  0xee   : > { %v9836_v17 = vsel %vm13357_vm2, %v667_v46, %v668_v10  ;;  %2638 = vmatmul.mubr.f32.gmra.mxu0 %v1929_v51  ;;  %v1965_v52 = vcombine.high %v1942_v60, %v1956_v2  ;;  %8077 = vmatprep.mubr.msk.f32.mxu1 %vm8830_vm0, %v13443_v37  ;;  %v1964_v11 = vcombine.low %v1942_v60, %v1956_v2  ;;  %v13497_v60 = vrot.slane %v9793_v57, 2 }
  0xef   : > { %v7382_v32 = vcombine.low %v1139_v26, %v9373_v18  ;;  %v2243_v34 = vrot.slane %v7397_v38, %v9085_v23  ;;  %3791 = vmatprep.subr.mxu1 %v13443_v37  ;;  %8112 = vmatpush3.msra.mxu0 %v349_v13  ;;  %v7384_v46 = vcombine.low %v1141_v62, %v9410_v41  ;;  %v13498_v26 = vrot.slane %v9721_v33, 2  ;;  %v333_v18 = vld [vmem:[#allocation4 + $0xd0] sm:$0xff] }
  0xf0   : > { %v671_v51 = vsel %vm13357_vm2, %v668_v10, %v13496_v7  ;;  %2642 = vmatprep.mubr.f32.mxu0 %v1965_v52  ;;  %3792 = vmatpush2.msra.mxu1 %v338_v30  ;;  %v1417_v13 = vcombine.high %v9706_v44, %v9836_v17  ;;  %v1418_v7 = vcombine.high %v9784_v8, %v9784_v8  ;;  %v13506_v41 = vrot.slane %v9793_v57, 2 }
  0xf1   : > { %v1977_v2 = vrot.slane %v7382_v32, %v9085_v23  ;;  %v9855_v38 = vsel %vm13352_vm1, %v13498_v26, %v13497_v60  ;;  %v2246_v62 = vcombine.low %v2229_v16, %v2243_v34  ;;  %3793 = vmatprep.subr.mxu1 %v13443_v37  ;;  %v1991_v47 = vrot.slane %v7384_v46, %v9085_v23  ;;  %v336_v34 = vld [vmem:[#allocation4 + $0xe8] sm:$0xff] }
  0xf2   : > { %13499 = vst [vmem:[#allocation87_spill] sm:$0xff] %v9855_v38  ;;  %v1451_v10 = vcombine.low %v9721_v33, %v671_v51  ;;  %2643 = vmatmul.mubr.f32.gmra.mxu0 %v1964_v11  ;;  %3794 = vmatpush2.msra.mxu1 %v337_v24  ;;  %v9865_v52 = vrot.slane %v1417_v13, %v9085_v23  ;;  %v13501_v16 = vrot.slane %v9365_v42, 1 }
  0xf3   : > { %v9869_v30 = vrot.slane %v9855_v38, %v9085_v23  ;;  %8078 = vmatmul.mubr.f32.gmra.mxu1 %v2246_v62  ;;  %v2000_v46 = vcombine.high %v1977_v2, %v1991_v47  ;;  %v1999_v60 = vcombine.low %v1977_v2, %v1991_v47  ;;  %v9875_v11 = vrot.slane %v1418_v7, %v9085_v23 }
  0xf4   : > { %v654_v32 = vsel %vm13357_vm2, %v652_v4, %v13501_v16  ;;  %v9878_v24 = vrot.slane %v1451_v10, %v9085_v23  ;;  %8080 = vmatprep.mubr.msk.f32.mxu1 %vm8830_vm0, %v13443_v37  ;;  %3795 = vmatprep.subr.mxu1 %v13443_v37  ;;  %v335_v4 = vld [vmem:[#allocation4 + $0xe0] sm:$0xff]  ;;  %v1452_v62 = vcombine.high %v9721_v33, %v671_v51  ;;  %v9887_v16 = vld [vmem:[%s9058_s23 + $0xd8] sm:$0xff] }
  0xf5   : > { %13500 = vst [vmem:[#allocation88_spill] sm:$0xff] %v9869_v30  ;;  %13502 = vst [vmem:[#allocation89_spill] sm:$0xff] %v9875_v11  ;;  %v1158_v26 = vcombine.low %v9356_v28, %v654_v32  ;;  %v1159_v13 = vcombine.high %v9356_v28, %v654_v32  ;;  %2647 = vmatprep.mubr.f32.mxu0 %v2000_v46  ;;  %v1449_v47 = vcombine.low %v9865_v52, %v9875_v11  ;;  %v9896_v10 = vld [vmem:[%s9058_s23 + $0xe0] sm:$0xff]  ;;  %v348_v32 = vld [vmem:[#allocation4 + $0x148] sm:$0xff] }
  0xf6   : > { %v1482_v2 = vcombine.low %v9878_v24, %v9869_v30  ;;  %3796 = vmatpush2.msra.mxu1 %v336_v34  ;;  %v1453_v7 = vcombine.high %v9855_v38, %v9855_v38  ;;  %2648 = vmatmul.mubr.f32.gmra.mxu0 %v1999_v60  ;;  %v9906_v51 = vrot.slane %v1452_v62, %v9085_v23  ;;  %v655_v34 = vrot.slane %v9433_v58, 1 }
  0xf7   : > { %3797 = vmatprep.subr.mxu1 %v13443_v37  ;;  %v9900_v28 = vrot.slane %v1158_v26, %v9085_v23  ;;  %v9903_v33 = vrot.slane %v1159_v13, %v9085_v23  ;;  %v7399_v46 = vcombine.high %v9822_v1, %v1449_v47  ;;  %8113 = vmatprep.subr.mxu0 %v13443_v37  ;;  %v334_v26 = vld [vmem:[#allocation4 + $0xd8] sm:$0xff]  ;;  %v723_v13 = vrot.slane %v9887_v16, 2 }
  0xf8   : > { %v7401_v38 = vcombine.high %v9875_v11, %v1482_v2  ;;  %3798 = vmatpush2.msra.mxu1 %v335_v4  ;;  %v9913_v60 = vrot.slane %v1453_v7, %v9085_v23  ;;  %v13505_v47 = vrot.slane %v9793_v57, 1  ;;  %v724_v4 = vrot.slane %v9896_v10, 2  ;;  %8114 = vmatpush3.msra.mxu0 %v348_v32  ;;  %v9948_v32 = vld [vmem:[%s9058_s23 + $0xf0] sm:$0xff] }
  0xf9   : > { %13503 = vst [vmem:[#allocation90_spill] sm:$0xff] %v9900_v28  ;;  %13504 = vst [vmem:[#allocation91_spill] sm:$0xff] %v9903_v33  ;;  %v2012_v62 = vrot.slane %v9900_v28, %v9085_v23  ;;  %v2026_v8 = vrot.slane %v9903_v33, %v9085_v23  ;;  %3799 = vmatprep.subr.mxu1 %v13443_v37  ;;  %v2264_v7 = vrot.slane %v7399_v46, %v9085_v23 }
  0xfa   : > { %v1486_v2 = vcombine.low %v9793_v57, %v13505_v47  ;;  %v2278_v0 = vrot.slane %v7401_v38, %v9085_v23  ;;  %v1484_v31 = vcombine.low %v9906_v51, %v9913_v60  ;;  %v9932_v33 = vrot.slane %v13506_v41, %v9085_v23  ;;  %3800 = vmatpush2.msra.mxu1 %v334_v26 }
  0xfb   : > { %v2035_v47 = vcombine.high %v2012_v62, %v2026_v8  ;;  %v2034_v22 = vcombine.low %v2012_v62, %v2026_v8  ;;  %v13508_v38 = vrot.slane %v9365_v42, 1  ;;  %3801 = vmatprep.subr.mxu1 %v13443_v37  ;;  %v9953_v62 = vsel %vm13352_vm1, %v723_v13, %v724_v4  ;;  %8115 = vmatprep.subr.mxu0 %v13443_v37 }
  0xfc   : > { %13507 = vst [vmem:[#allocation92_spill] sm:$0xff] %v9932_v33  ;;  %v9935_v28 = vrot.slane %v1486_v2, %v9085_v23  ;;  %v2281_v27 = vcombine.low %v2264_v7, %v2278_v0  ;;  %v7403_v57 = vcombine.high %v9869_v30, %v1484_v31  ;;  %3802 = vmatpush2.msra.mxu1 %v333_v18  ;;  %13509 = vst [vmem:[#allocation93_spill] sm:$0xff] %v9953_v62  ;;  %v332_v2 = vld [vmem:[#allocation4 + $0xc8] sm:$0xff]  ;;  %v9957_v31 = vld [vmem:[%s9058_s23 + $0xf8] sm:$0xff] }
  0xfd   : > { %v656_v46 = vsel %vm13357_vm2, %v13508_v38, %v655_v34  ;;  %2652 = vmatprep.mubr.f32.mxu0 %v2035_v47  ;;  %v1228_v0 = vcombine.low %v9433_v58, %v655_v34  ;;  %v347_v38 = vld [vmem:[#allocation4 + $0x140] sm:$0xff]  ;;  %v726_v18 = vrot.slane %v9941_v19, 2  ;;  %3803 = vmatprep.subr.mxu1 %v13443_v37  ;;  %v1591_v13 = vrot.slane %v9948_v32, 1 }
  0xfe   : > { %v1193_v41 = vcombine.low %v9365_v42, %v656_v46  ;;  %v1194_v8 = vcombine.high %v9365_v42, %v656_v46  ;;  %v1501_v26 = vcombine.low %v9935_v28, %v9932_v33  ;;  %8081 = vmatmul.mubr.f32.gmra.mxu1 %v2281_v27  ;;  %2653 = vmatmul.mubr.f32.gmra.mxu0 %v2034_v22  ;;  %v331_v34 = vld [vmem:[#allocation4 + $0xc0] sm:$0xff] }
  0xff   : > { %v2299_v7 = vrot.slane %v7403_v57, %v9085_v23  ;;  %8083 = vmatprep.mubr.msk.f32.mxu1 %vm8830_vm0, %v13443_v37  ;;  %v1504_v27 = vcombine.high %v9953_v62, %v9953_v62  ;;  %v9974_v22 = vrot.slane %v9953_v62, %v9085_v23  ;;  %3804 = vmatpush2.msra.mxu1 %v332_v2  ;;  %v1596_v2 = vrot.slane %v9948_v32, 2 }
 0x100   : > { %v9961_v42 = vrot.slane %v1193_v41, %v9085_v23  ;;  %v9964_v47 = vrot.slane %v1194_v8, %v9085_v23  ;;  %v7405_v58 = vcombine.high %v9913_v60, %v1501_v26  ;;  %v9984_v41 = vrot.slane %v1228_v0, %v9085_v23  ;;  %3805 = vmatprep.subr.mxu1 %v13443_v37 }
 0x101   : > { %13512 = vst [vmem:[#allocation96_spill] sm:$0xff] %v9974_v22  ;;  %v9989_v62 = vrot.slane %v1504_v27, %v9085_v23  ;;  %v2334_v33 = vrot.slane %v9974_v22, %v9085_v23  ;;  %8116 = vmatpush3.msra.mxu0 %v347_v38  ;;  %v1244_v0 = vcombine.low %v9451_v6, %v9529_v5 }
 0x102   : > { %13510 = vst [vmem:[#allocation94_spill] sm:$0xff] %v9961_v42  ;;  %13511 = vst [vmem:[#allocation95_spill] sm:$0xff] %v9964_v47  ;;  %v2047_v46 = vrot.slane %v9961_v42, %v9085_v23  ;;  %v2061_v57 = vrot.slane %v9964_v47, %v9085_v23  ;;  %v2313_v26 = vrot.slane %v7405_v58, %v9085_v23  ;;  %v330_v47 = vld [vmem:[#allocation4 + $0xb8] sm:$0xff]  ;;  %3806 = vmatpush2.msra.mxu1 %v331_v34 }
 0x103   : > { %13513 = vst [vmem:[#allocation97_spill] sm:$0xff] %v9989_v62  ;;  %v9998_v58 = vsel %vm13352_vm1, %v724_v4, %v726_v18  ;;  %v2348_v8 = vrot.slane %v9989_v62, %v9085_v23  ;;  %3807 = vmatprep.subr.mxu1 %v13443_v37  ;;  %v10010_v5 = vrot.slane %v1244_v0, %v9085_v23  ;;  %v1597_v34 = vrot.slane %v9957_v31, 2  ;;  %v328_v62 = vld [vmem:[#allocation4 + $0xa8] sm:$0xff] }
 0x104   : > { %v2070_v42 = vcombine.high %v2047_v46, %v2061_v57  ;;  %v2069_v3 = vcombine.low %v2047_v46, %v2061_v57  ;;  %13514 = vst [vmem:[#allocation98_spill] sm:$0xff] %v9998_v58  ;;  %v2316_v27 = vcombine.low %v2299_v7, %v2313_v26  ;;  %v1539_v38 = vcombine.high %v9998_v58, %v9998_v58  ;;  %v329_v7 = vld [vmem:[#allocation4 + $0xb0] sm:$0xff]  ;;  %v10018_v46 = vld [vmem:[%s9058_s23 + $0x100] sm:$0xff]  ;;  %v346_v26 = vld [vmem:[#allocation4 + $0x138] sm:$0xff] }
 0x105   : > { %v10006_v22 = vrot.slane %v9998_v58, %v9085_v23  ;;  %3808 = vmatpush2.msra.mxu1 %v330_v47  ;;  %v1278_v6 = vcombine.high %v9592_v59, %v9602_v43  ;;  %v1311_v4 = vcombine.high %v9661_v12, %v9670_v14  ;;  %v2351_v57 = vcombine.low %v2334_v33, %v2348_v8 }
 0x106   : > { %2657 = vmatprep.mubr.f32.mxu0 %v2070_v42  ;;  %8084 = vmatmul.mubr.f32.gmra.mxu1 %v2316_v27  ;;  %v10021_v42 = vrot.slane %v1539_v38, %v9085_v23  ;;  %v662_v0 = vrot.slane %v9625_v50, 1  ;;  %v1276_v58 = vcombine.high %v10010_v5, %v9599_v29  ;;  %v7386_v27 = vcombine.low %v9984_v41, %v10010_v5 }
 0x107   : > { %13515 = vst [vmem:[#allocation99_spill] sm:$0xff] %v10006_v22  ;;  %2658 = vmatmul.mubr.f32.gmra.mxu0 %v2069_v3  ;;  %v2369_v47 = vrot.slane %v10006_v22, %v9085_v23  ;;  %8086 = vmatprep.mubr.msk.f32.mxu1 %vm8830_vm0, %v13443_v37  ;;  %v7390_v3 = vcombine.low %v1278_v6, %v9661_v12  ;;  %v13518_v33 = vrot.slane %v9957_v31, 1  ;;  %v13533_v12 = vrot.slane %v10018_v46, 1 }
 0x108   : > { %13516 = vst [vmem:[#allocation100_spill] sm:$0xff] %v10021_v42  ;;  %3809 = vmatprep.subr.mxu1 %v13443_v37  ;;  %v2383_v8 = vrot.slane %v10021_v42, %v9085_v23  ;;  %8117 = vmatprep.subr.mxu0 %v13443_v37  ;;  %v7392_v38 = vcombine.low %v1311_v4, %v9666_v21 }
 0x109   : > { %3810 = vmatpush2.msra.mxu1 %v329_v7  ;;  %v10040_v14 = vrot.slane %v726_v18, %v9085_v23  ;;  %v7388_v29 = vcombine.low %v1276_v58, %v9592_v59  ;;  %v2082_v22 = vrot.slane %v7386_v27, %v9085_v23  ;;  %v2117_v6 = vrot.slane %v7390_v3, %v9085_v23  ;;  %v10143_v59 = vld [vmem:[%s9058_s23 + $0x10] sm:$0xff] }
 0x10a   : > { %8118 = vmatpush3.msra.mxu0 %v346_v26  ;;  %v10049_v42 = vsel %vm13357_vm2, %v1591_v13, %v13518_v33  ;;  %8087 = vmatmul.mubr.f32.gmra.mxu1 %v2351_v57  ;;  %v2386_v4 = vcombine.low %v2369_v47, %v2383_v8  ;;  %v2131_v18 = vrot.slane %v7392_v38, %v9085_v23  ;;  %v13521_v33 = vrot.slane %v9641_v36, 1  ;;  %v327_v13 = vld [vmem:[#allocation4 + $0xa0] sm:$0xff] }
 0x10b   : > { %13517 = vst [vmem:[#allocation101_spill] sm:$0xff] %v10040_v14  ;;  %v1598_v7 = vsel %vm13352_vm1, %v1596_v2, %v1597_v34  ;;  %v1602_v58 = vcombine.high %v9948_v32, %v10049_v42  ;;  %v2096_v27 = vrot.slane %v7388_v29, %v9085_v23  ;;  %8089 = vmatprep.mubr.msk.f32.mxu1 %vm8830_vm0, %v13443_v37 }
 0x10c   : > { %v1603_v26 = vcombine.high %v1598_v7, %v1598_v7  ;;  %v10059_v3 = vrot.slane %v1598_v7, %v9085_v23  ;;  %3811 = vmatprep.subr.mxu1 %v13443_v37  ;;  %v2140_v57 = vcombine.high %v2117_v6, %v2131_v18  ;;  %v2139_v47 = vcombine.low %v2117_v6, %v2131_v18 }
 0x10d   : > { %v10064_v2 = vrot.slane %v1602_v58, %v9085_v23  ;;  %3812 = vmatpush2.msra.mxu1 %v328_v62  ;;  %v664_v29 = vsel %vm13357_vm2, %v662_v0, %v13521_v33  ;;  %v2105_v8 = vcombine.high %v2082_v22, %v2096_v27  ;;  %v2104_v38 = vcombine.low %v2082_v22, %v2096_v27 }
 0x10e   : > { %13519 = vst [vmem:[#allocation102_spill] sm:$0xff] %v10059_v3  ;;  %v10070_v43 = vrot.slane %v1603_v26, %v9085_v23  ;;  %v7407_v7 = vcombine.low %v10040_v14, %v10059_v3  ;;  %3813 = vmatprep.subr.mxu1 %v13443_v37  ;;  %8090 = vmatmul.mubr.f32.gmra.mxu1 %v2386_v4  ;;  %v13523_v0 = vrot.slane %v10018_v46, 1  ;;  %v13524_v22 = vrot.slane %v9957_v31, 1 }
 0x10f   : > { %13520 = vst [vmem:[#allocation103_spill] sm:$0xff] %v10064_v2  ;;  %v1313_v6 = vcombine.high %v9666_v21, %v9674_v56  ;;  %v1330_v62 = vcombine.low %v9625_v50, %v664_v29  ;;  %v1331_v18 = vcombine.high %v9625_v50, %v664_v29  ;;  %2662 = vmatprep.mubr.f32.mxu0 %v2105_v8  ;;  %v13525_v26 = vrot.slane %v10018_v46, 2 }
 0x110   : > { %13522 = vst [vmem:[#allocation104_spill] sm:$0xff] %v10070_v43  ;;  %v1595_v58 = vsel %vm13357_vm2, %v13524_v22, %v13523_v0  ;;  %8092 = vmatprep.mubr.msk.f32.mxu1 %vm8830_vm0, %v13443_v37  ;;  %v1634_v4 = vcombine.low %v10064_v2, %v10070_v43  ;;  %v2404_v27 = vrot.slane %v7407_v7, %v9085_v23  ;;  %v326_v0 = vld [vmem:[#allocation4 + $0x98] sm:$0xff]  ;;  %v665_v22 = vrot.slane %v9696_v25, 1 }
 0x111   : > { %v1600_v50 = vsel %vm13352_vm1, %v1597_v34, %v13525_v26  ;;  %2663 = vmatmul.mubr.f32.gmra.mxu0 %v2104_v38  ;;  %v10093_v33 = vrot.slane %v1330_v62, %v9085_v23  ;;  %v7394_v29 = vcombine.low %v1313_v6, %v9726_v49  ;;  %3814 = vmatpush2.msra.mxu1 %v327_v13  ;;  %v10104_v38 = vld [vmem:[%s9058_s23] sm:$0xff]  ;;  %v325_v26 = vld [vmem:[#allocation4 + $0x90] sm:$0xff] }
 0x112   : > { %v1636_v8 = vcombine.low %v9957_v31, %v1595_v58  ;;  %2667 = vmatprep.mubr.f32.mxu0 %v2140_v57  ;;  %v7409_v14 = vcombine.high %v10059_v3, %v1634_v4  ;;  %v1637_v7 = vcombine.high %v9957_v31, %v1595_v58  ;;  %v1638_v56 = vcombine.high %v1600_v50, %v1600_v50  ;;  %v345_v57 = vld [vmem:[#allocation4 + $0x130] sm:$0xff] }
 0x113   : > { %13526 = vst [vmem:[#allocation105_spill] sm:$0xff] %v10093_v33  ;;  %v10101_v34 = vrot.slane %v1600_v50, %v9085_v23  ;;  %v2152_v6 = vrot.slane %v7394_v29, %v9085_v23  ;;  %v2166_v13 = vrot.slane %v10093_v33, %v9085_v23  ;;  %3815 = vmatprep.subr.mxu1 %v13443_v37  ;;  %v10122_v50 = vld [vmem:[%s9058_s23 + $0x8] sm:$0xff] }
 0x114   : > { %v10110_v62 = vrot.slane %v1636_v8, %v9085_v23  ;;  %v2418_v4 = vrot.slane %v7409_v14, %v9085_v23  ;;  %v10115_v31 = vrot.slane %v1637_v7, %v9085_v23  ;;  %v10118_v58 = vrot.slane %v1638_v56, %v9085_v23  ;;  %8119 = vmatprep.subr.mxu0 %v13443_v37  ;;  %v344_v33 = vld [vmem:[#allocation4 + $0x128] sm:$0xff] }
 0x115   : > { %13527 = vst [vmem:[#allocation106_spill] sm:$0xff] %v10101_v34  ;;  %3816 = vmatpush2.msra.mxu1 %v326_v0  ;;  %2668 = vmatmul.mubr.f32.gmra.mxu0 %v2139_v47  ;;  %v2175_v29 = vcombine.high %v2152_v6, %v2166_v13  ;;  %v2174_v8 = vcombine.low %v2152_v6, %v2166_v13  ;;  %v627_v14 = vrot.slane %v10104_v38, 1  ;;  %v13531_v0 = vrot.slane %v9641_v36, 1 }
 0x116   : > { %13528 = vst [vmem:[#allocation107_spill] sm:$0xff] %v10110_v62  ;;  %13529 = vst [vmem:[#allocation108_spill] sm:$0xff] %v10115_v31  ;;  %v1667_v21 = vcombine.low %v10110_v62, %v10101_v34  ;;  %3817 = vmatprep.subr.mxu1 %v13443_v37  ;;  %v2421_v7 = vcombine.low %v2404_v27, %v2418_v4  ;;  %v1669_v56 = vcombine.low %v10115_v31, %v10118_v58  ;;  %v324_v4 = vld [vmem:[#allocation4 + $0x88] sm:$0xff] }
 0x117   : > { %13530 = vst [vmem:[#allocation109_spill] sm:$0xff] %v10118_v58  ;;  %8120 = vmatpush3.msra.mxu0 %v345_v57  ;;  %v666_v49 = vsel %vm13357_vm2, %v13531_v0, %v665_v22  ;;  %v10134_v47 = vrot.slane %v1331_v18, %v9085_v23  ;;  %2672 = vmatprep.mubr.f32.mxu0 %v2175_v29  ;;  %v628_v57 = vrot.slane %v10122_v50, 1 }
 0x118   : > { %v7411_v6 = vcombine.high %v10070_v43, %v1667_v21  ;;  %v1365_v13 = vcombine.low %v9641_v36, %v666_v49  ;;  %3818 = vmatpush2.msra.mxu1 %v325_v26  ;;  %v1671_v27 = vcombine.low %v10018_v46, %v13533_v12  ;;  %v7413_v0 = vcombine.high %v10101_v34, %v1669_v56  ;;  %v323_v56 = vld [vmem:[#allocation4 + $0x80] sm:$0xff] }
 0x119   : > { %13532 = vst [vmem:[#allocation110_spill] sm:$0xff] %v10134_v47  ;;  %8093 = vmatmul.mubr.f32.gmra.mxu1 %v2421_v7  ;;  %v2187_v18 = vrot.slane %v10134_v47, %v9085_v23  ;;  %v13534_v21 = vrot.slane %v10018_v46, 2  ;;  %3819 = vmatprep.subr.mxu1 %v13443_v37  ;;  %v1366_v46 = vcombine.high %v9641_v36, %v666_v49 }
 0x11a   : > { %8095 = vmatprep.mubr.msk.f32.mxu1 %vm8830_vm0, %v13443_v37  ;;  %2673 = vmatmul.mubr.f32.gmra.mxu0 %v2174_v8  ;;  %v2439_v12 = vrot.slane %v7411_v6, %v9085_v23  ;;  %v10158_v26 = vrot.slane %v1365_v13, %v9085_v23  ;;  %v10161_v7 = vrot.slane %v1671_v27, %v9085_v23 }
 0x11b   : > { %v10151_v29 = vrot.slane %v13534_v21, %v9085_v23  ;;  %v2453_v47 = vrot.slane %v7413_v0, %v9085_v23  ;;  %3820 = vmatpush2.msra.mxu1 %v324_v4  ;;  %8121 = vmatprep.subr.mxu0 %v13443_v37  ;;  %v1400_v21 = vcombine.low %v9696_v25, %v665_v22 }
 0x11c   : > { %13536 = vst [vmem:[#allocation112_spill] sm:$0xff] %v10158_v26  ;;  %13537 = vst [vmem:[#allocation113_spill] sm:$0xff] %v10161_v7  ;;  %v2201_v6 = vrot.slane %v10158_v26, %v9085_v23  ;;  %3821 = vmatprep.subr.mxu1 %v13443_v37  ;;  %v1416_v27 = vcombine.low %v9706_v44, %v9836_v17  ;;  %v629_v4 = vsel %vm13357_vm2, %v627_v14, %v628_v57 }
 0x11d   : > { %13535 = vst [vmem:[#allocation111_spill] sm:$0xff] %v10151_v29  ;;  %v1686_v13 = vcombine.low %v10161_v7, %v10151_v29  ;;  %v2456_v0 = vcombine.low %v2439_v12, %v2453_v47  ;;  %v10177_v36 = vrot.slane %v1366_v46, %v9085_v23  ;;  %v10180_v49 = vrot.slane %v1400_v21, %v9085_v23 }
 0x11e   : > { %3822 = vmatpush2.msra.mxu1 %v323_v56  ;;  %v728_v25 = vcombine.low %v10104_v38, %v629_v4  ;;  %v2210_v22 = vcombine.high %v2187_v18, %v2201_v6  ;;  %v2209_v8 = vcombine.low %v2187_v18, %v2201_v6  ;;  %v10185_v26 = vrot.slane %v1416_v27, %v9085_v23  ;;  %v343_v56 = vld [vmem:[#allocation4 + $0x120] sm:$0xff] }
 0x11f   : > { %v7415_v29 = vcombine.high %v10118_v58, %v1686_v13  ;;  %8122 = vmatpush3.msra.mxu0 %v344_v33  ;;  %8096 = vmatmul.mubr.f32.gmra.mxu1 %v2456_v0  ;;  %v2222_v44 = vrot.slane %v10177_v36, %v9085_v23  ;;  %v729_v17 = vcombine.high %v10104_v38, %v629_v4  ;;  %v672_v46 = vrot.slane %v9887_v16, 1 }
 0x120   : > { %v737_v14 = vrot.slane %v728_v25, %v9085_v23  ;;  %v1450_v47 = vcombine.high %v9865_v52, %v9875_v11  ;;  %2677 = vmatprep.mubr.f32.mxu0 %v2210_v22  ;;  %8098 = vmatprep.mubr.msk.f32.mxu1 %vm8830_vm0, %v13443_v37  ;;  %v7396_v33 = vcombine.low %v10180_v49, %v10185_v26  ;;  %v13538_v27 = vrot.slane %v10143_v59, 1 }
 0x121   : > { %v2472_v18 = vrot.slane %v7415_v29, %v9085_v23  ;;  %v1448_v12 = vcombine.high %v10185_v26, %v9822_v1  ;;  %2678 = vmatmul.mubr.f32.gmra.mxu0 %v2209_v8  ;;  %v744_v21 = vrot.slane %v729_v17, %v9085_v23  ;;  %8123 = vmatprep.subr.mxu0 %v13443_v37  ;;  %v342_v8 = vld [vmem:[#allocation4 + $0x118] sm:$0xff] }
 0x122   : > { %v2913_v6 = vrot.slane %v737_v14, %v9085_v23  ;;  %v7400_v13 = vcombine.low %v1450_v47, %v9878_v24  ;;  %v631_v29 = vsel %vm13357_vm2, %v628_v57, %v13538_v27  ;;  %v2236_v4 = vrot.slane %v7396_v33, %v9085_v23  ;;  %8124 = vmatpush3.msra.mxu0 %v343_v56 }
 0x123   : > { %v7398_v0 = vcombine.low %v1448_v12, %v9865_v52  ;;  %v763_v25 = vcombine.low %v10122_v50, %v631_v29  ;;  %v764_v22 = vcombine.high %v10122_v50, %v631_v29  ;;  %8099 = vmatmul.mubr.f32.gmra.mxu1 %v2472_v18  ;;  %v2927_v17 = vrot.slane %v744_v21, %v9085_v23 }
 0x124   : > { %v2271_v14 = vrot.slane %v7400_v13, %v9085_v23  ;;  %v1483_v57 = vcombine.high %v9878_v24, %v9869_v30  ;;  %v673_v47 = vrot.slane %v9896_v10, 1  ;;  %v2245_v33 = vcombine.high %v2222_v44, %v2236_v4  ;;  %8125 = vmatprep.subr.mxu0 %v13443_v37  ;;  %4498 = vmatprep.subr.mxu1 %v13443_v37 }
 0x125   : > { %v2244_v12 = vcombine.low %v2222_v44, %v2236_v4  ;;  %v2257_v27 = vrot.slane %v7398_v0, %v9085_v23  ;;  %v772_v29 = vrot.slane %v763_v25, %v9085_v23  ;;  %v2935_v11 = vcombine.low %v2913_v6, %v2927_v17  ;;  %8126 = vmatpush3.msra.mxu0 %v342_v8 }
 0x126   : > { %v2936_v18 = vcombine.high %v2913_v6, %v2927_v17  ;;  %v779_v21 = vrot.slane %v764_v22, %v9085_v23  ;;  %v1485_v56 = vcombine.high %v9906_v51, %v9913_v60  ;;  %2682 = vmatprep.mubr.f32.mxu0 %v2245_v33  ;;  %v7402_v44 = vcombine.low %v1483_v57, %v9906_v51  ;;  %v341_v22 = vld [vmem:[#allocation4 + $0x110] sm:$0xff] }
 0x127   : > { %v2280_v13 = vcombine.high %v2257_v27, %v2271_v14  ;;  %v2948_v30 = vrot.slane %v772_v29, %v9085_v23  ;;  %v2279_v1 = vcombine.low %v2257_v27, %v2271_v14  ;;  %2683 = vmatmul.mubr.f32.gmra.mxu0 %v2244_v12  ;;  %v13539_v6 = vrot.slane %v10143_v59, 1  ;;  %8127 = vmatprep.subr.mxu0 %v13443_v37 }
 0x128   : > { %3823 = vmatprep.mubr.f32.mxu1 %v2936_v18  ;;  %v2962_v4 = vrot.slane %v779_v21, %v9085_v23  ;;  %v7404_v0 = vcombine.low %v1485_v56, %v9935_v28  ;;  %v2292_v8 = vrot.slane %v7402_v44, %v9085_v23  ;;  %v846_v17 = vcombine.high %v9378_v35, %v9110_v39 }
 0x129   : > { %v798_v25 = vcombine.low %v10143_v59, %v13539_v6  ;;  %3824 = vmatmul.mubr.f32.vlgmr.msra.gmra.mxu1 %v2935_v11  ;;  %2687 = vmatprep.mubr.f32.mxu0 %v2280_v13  ;;  %v674_v14 = vsel %vm13357_vm2, %v672_v46, %v673_v47  ;;  %v675_v57 = vrot.slane %v9941_v19, 1  ;;  %v848_v56 = vcombine.high %v9381_v40, %v9124_v48 }
 0x12a   : > { %v2971_v33 = vcombine.high %v2948_v30, %v2962_v4  ;;  %v2970_v12 = vcombine.low %v2948_v30, %v2962_v4  ;;  %v2306_v27 = vrot.slane %v7404_v0, %v9085_v23  ;;  %v7418_v11 = vcombine.low %v846_v17, %v9381_v40  ;;  %8128 = vmatpush3.msra.mxu0 %v341_v22 }
 0x12b   : > { %v805_v29 = vrot.slane %v798_v25, %v9085_v23  ;;  %v1502_v18 = vcombine.low %v9887_v16, %v674_v14  ;;  %v1503_v21 = vcombine.high %v9887_v16, %v674_v14  ;;  %2688 = vmatmul.mubr.f32.gmra.mxu0 %v2279_v1  ;;  %v881_v6 = vcombine.high %v9456_v15, %v9117_v45 }
 0x12c   : > { %3828 = vmatprep.mubr.f32.mxu1 %v2971_v33  ;;  %v2315_v30 = vcombine.high %v2292_v8, %v2306_v27  ;;  %v2314_v44 = vcombine.low %v2292_v8, %v2306_v27  ;;  %v2997_v4 = vrot.slane %v7418_v11, %v9085_v23  ;;  %v7420_v1 = vcombine.low %v848_v56, %v9456_v15  ;;  %v340_v8 = vld [vmem:[#allocation4 + $0x108] sm:$0xff] }
 0x12d   : > { %v7416_v13 = vcombine.low %v805_v29, %v9378_v35  ;;  %3829 = vmatmul.mubr.f32.gmra.mxu1 %v2970_v12  ;;  %v10247_v0 = vrot.slane %v1502_v18, %v9085_v23  ;;  %v10250_v16 = vrot.slane %v1503_v21, %v9085_v23  ;;  %v676_v35 = vsel %vm13357_vm2, %v673_v47, %v675_v57 }
 0x12e   : > { %2692 = vmatprep.mubr.f32.mxu0 %v2315_v30  ;;  %v883_v22 = vcombine.high %v9467_v63, %v9134_v53  ;;  %v7422_v12 = vcombine.low %v881_v6, %v9467_v63  ;;  %8129 = vmatprep.subr.mxu0 %v13443_v37  ;;  %v3018_v29 = vrot.slane %v7420_v1, %v9085_v23 }
 0x12f   : > { %v2983_v25 = vrot.slane %v7416_v13, %v9085_v23  ;;  %v2327_v14 = vrot.slane %v10247_v0, %v9085_v23  ;;  %v2341_v33 = vrot.slane %v10250_v16, %v9085_v23  ;;  %2693 = vmatmul.mubr.f32.gmra.mxu0 %v2314_v44  ;;  %v1537_v11 = vcombine.low %v9896_v10, %v676_v35 }
 0x130   : > { %v3032_v21 = vrot.slane %v7422_v12, %v9085_v23  ;;  %v1538_v30 = vcombine.high %v9896_v10, %v676_v35  ;;  %8130 = vmatpush3.msra.mxu0 %v340_v8  ;;  %v7424_v6 = vcombine.low %v883_v22, %v9488_v9  ;;  %v10277_v44 = vrot.slane %v9513_v55, %v9085_v23  ;;  %v13540_v8 = vld [vmem:[#allocation30_spill] sm:$0xff]  ;;  %v339_v10 = vld [vmem:[#allocation4 + $0x100] sm:$0xff] }
 0x131   : > { %v3006_v27 = vcombine.high %v2983_v25, %v2997_v4  ;;  %v3005_v47 = vcombine.low %v2983_v25, %v2997_v4  ;;  %v2350_v18 = vcombine.high %v2327_v14, %v2341_v33  ;;  %v2349_v56 = vcombine.low %v2327_v14, %v2341_v33  ;;  %v13541_v12 = vld [vmem:[#allocation34_spill] sm:$0xff]  ;;  %8131 = vmatprep.subr.mxu0 %v13443_v37 }
 0x132   : > { %v10272_v13 = vrot.slane %v1537_v11, %v9085_v23  ;;  %v1572_v4 = vcombine.low %v9941_v19, %v675_v57  ;;  %v3041_v25 = vcombine.high %v3018_v29, %v3032_v21  ;;  %v3040_v1 = vcombine.low %v3018_v29, %v3032_v21  ;;  %8132 = vmatpush3.msra.mxu0 %v339_v10 }
 0x133   : > { %3833 = vmatprep.mubr.f32.mxu1 %v3006_v27  ;;  %2697 = vmatprep.mubr.f32.mxu0 %v2350_v18  ;;  %v10281_v14 = vrot.slane %v1538_v30, %v9085_v23  ;;  %v3053_v22 = vrot.slane %v7424_v6, %v9085_v23  ;;  %v1601_v19 = vcombine.low %v9948_v32, %v10049_v42 }
 0x134   : > { %3834 = vmatmul.mubr.f32.gmra.mxu1 %v3005_v47  ;;  %2698 = vmatmul.mubr.f32.gmra.mxu0 %v2349_v56  ;;  %v2362_v35 = vrot.slane %v10272_v13, %v9085_v23  ;;  %v10288_v55 = vrot.slane %v1572_v4, %v9085_v23  ;;  %v10296_v33 = vrot.slane %v13540_v8, %v9085_v23 }
 0x135   : > { %3838 = vmatprep.mubr.f32.mxu1 %v3041_v25  ;;  %v2376_v57 = vrot.slane %v10281_v14, %v9085_v23  ;;  %v10300_v27 = vrot.slane %v13541_v12, %v9085_v23  ;;  %v1635_v47 = vcombine.high %v10064_v2, %v10070_v43  ;;  %v3076_v29 = vcombine.high %v3053_v22, %v10277_v44  ;;  %v13547_v12 = vld [vmem:[#allocation43_spill] sm:$0xff] }
 0x136   : > { %v3075_v11 = vcombine.low %v3053_v22, %v10277_v44  ;;  %v10307_v32 = vrot.slane %v1601_v19, %v9085_v23  ;;  %v1668_v42 = vcombine.high %v10110_v62, %v10101_v34  ;;  %v13545_v19 = vld [vmem:[#allocation35_spill] sm:$0xff]  ;;  %v1670_v8 = vcombine.high %v10115_v31, %v10118_v58  ;;  %8202 = vmatprep.subr.mxu0 %v13443_v37 }
 0x137   : > { %13542 = vst [vmem:[#allocation30_spill] sm:$0xff] %v10300_v27  ;;  %v2385_v18 = vcombine.high %v2362_v35, %v2376_v57  ;;  %v2384_v21 = vcombine.low %v2362_v35, %v2376_v57  ;;  %v3111_v56 = vcombine.high %v10296_v33, %v10300_v27  ;;  %v3110_v30 = vcombine.low %v10296_v33, %v10300_v27 }
 0x138   : > { %13543 = vst [vmem:[#allocation34_spill] sm:$0xff] %v10307_v32  ;;  %3839 = vmatmul.mubr.f32.gmra.mxu1 %v3040_v1  ;;  %v1633_v6 = vcombine.high %v10307_v32, %v10059_v3  ;;  %v7406_v4 = vcombine.low %v10288_v55, %v10307_v32  ;;  %v7410_v25 = vcombine.low %v1635_v47, %v10110_v62  ;;  %v13544_v1 = vld [vmem:[#allocation39_spill] sm:$0xff]  ;;  %v13558_v3 = vld [vmem:[#allocation80_spill] sm:$0xff] }
 0x139   : > { %3843 = vmatprep.mubr.f32.mxu1 %v3076_v29  ;;  %v7412_v22 = vcombine.low %v1668_v42, %v10115_v31  ;;  %2702 = vmatprep.mubr.f32.mxu0 %v2385_v18  ;;  %v7426_v35 = vcombine.low %v13544_v1, %v9630_v20  ;;  %v10326_v57 = vrot.slane %v13545_v19, %v9085_v23  ;;  %v13548_v29 = vld [vmem:[#allocation72_spill] sm:$0xff]  ;;  %v13560_v31 = vld [vmem:[#allocation78_spill] sm:$0xff] }
 0x13a   : > { %v1020_v46 = vcombine.high %v13548_v29, %v13547_v12  ;;  %2703 = vmatmul.mubr.f32.gmra.mxu0 %v2384_v21  ;;  %v7408_v47 = vcombine.low %v1633_v6, %v10064_v2  ;;  %v2397_v42 = vrot.slane %v7406_v4, %v9085_v23  ;;  %v2432_v18 = vrot.slane %v7410_v25, %v9085_v23  ;;  %v13551_v21 = vld [vmem:[#allocation74_spill] sm:$0xff] }
 0x13b   : > { %13546 = vst [vmem:[#allocation39_spill] sm:$0xff] %v10326_v57  ;;  %v2446_v1 = vrot.slane %v7412_v22, %v9085_v23  ;;  %v10337_v19 = vrot.slane %v7426_v35, %v9085_v23  ;;  %v7414_v17 = vcombine.low %v1670_v8, %v10161_v7  ;;  %v13550_v58 = vcombine.high %v9630_v20, %v9243_v54 }
 0x13c   : > { %3844 = vmatmul.mubr.f32.gmra.mxu1 %v3075_v11  ;;  %v7430_v43 = vcombine.low %v1020_v46, %v13551_v21  ;;  %v2411_v6 = vrot.slane %v7408_v47, %v9085_v23  ;;  %v681_v25 = vrot.slane %v10143_v59, 2  ;;  %v418_v59 = vld [vmem:[#allocation4 + $0x378] sm:$0xff]  ;;  %v10374_v7 = vrot.slane %v13558_v3, %v9085_v23 }
 0x13d   : > { %13549 = vst [vmem:[#allocation35_spill] sm:$0xff] %v10337_v19  ;;  %v7428_v34 = vcombine.low %v13550_v58, %v13548_v29  ;;  %3848 = vmatprep.mubr.f32.mxu1 %v3111_v56  ;;  %v2455_v4 = vcombine.high %v2432_v18, %v2446_v1  ;;  %v3146_v11 = vcombine.high %v10326_v57, %v10337_v19  ;;  %v13554_v56 = vld [vmem:[#allocation41_spill] sm:$0xff]  ;;  %v13564_v3 = vrot.slane %v10122_v50, 2 }
 0x13e   : > { %v2454_v22 = vcombine.low %v2432_v18, %v2446_v1  ;;  %v2465_v35 = vrot.slane %v7414_v17, %v9085_v23  ;;  %v2420_v20 = vcombine.high %v2397_v42, %v2411_v6  ;;  %v2419_v58 = vcombine.low %v2397_v42, %v2411_v6  ;;  %13559 = vst [vmem:[#allocation74_spill] sm:$0xff] %v10374_v7 }
 0x13f   : > { %v10351_v8 = vrot.slane %v7428_v34, %v9085_v23  ;;  %v10355_v46 = vrot.slane %v7430_v43, %v9085_v23  ;;  %v1053_v10 = vcombine.high %v13551_v21, %v13554_v56  ;;  %v3145_v17 = vcombine.low %v10326_v57, %v10337_v19  ;;  %v13555_v34 = vld [vmem:[#allocation46_spill] sm:$0xff]  ;;  %4499 = vmatpush1.msra.mxu1 %v418_v59 }
 0x140   : > { %3849 = vmatmul.mubr.f32.gmra.mxu1 %v3110_v30  ;;  %v2473_v47 = vcombine.high %v2465_v35, %v2465_v35  ;;  %v1055_v18 = vcombine.high %v9747_v61, %v13555_v34  ;;  %v13556_v1 = vrot.slane %v10122_v50, 2  ;;  %v13557_v42 = vrot.slane %v10104_v38, 2  ;;  %2707 = vmatprep.mubr.f32.mxu0 %v2420_v20  ;;  %v417_v38 = vld [vmem:[#allocation4 + $0x370] sm:$0xff]  ;;  %v13562_v20 = vld [vmem:[#allocation49_spill] sm:$0xff] }
 0x141   : > { %13552 = vst [vmem:[#allocation43_spill] sm:$0xff] %v10351_v8  ;;  %13553 = vst [vmem:[#allocation72_spill] sm:$0xff] %v10355_v46  ;;  %3853 = vmatprep.mubr.f32.mxu1 %v3146_v11  ;;  %v3181_v6 = vcombine.high %v10351_v8, %v10355_v46  ;;  %v7432_v30 = vcombine.low %v1053_v10, %v9747_v61  ;;  %2708 = vmatmul.mubr.f32.gmra.mxu0 %v2419_v58 }
 0x142   : > { %v680_v43 = vsel %vm13352_vm1, %v13557_v42, %v13556_v1  ;;  %v7434_v62 = vcombine.low %v1055_v18, %v13560_v31  ;;  %2712 = vmatprep.mubr.f32.mxu0 %v2455_v4  ;;  %v10383_v1 = vrot.slane %v13562_v20, %v9085_v23  ;;  %4500 = vmatprep.subr.mxu1 %v13443_v37  ;;  %v13566_v42 = vld [vmem:[#allocation57_spill] sm:$0xff] }
 0x143   : > { %v730_v2 = vcombine.high %v680_v43, %v680_v43  ;;  %v751_v32 = vrot.slane %v680_v43, %v9085_v23  ;;  %v10379_v11 = vrot.slane %v7432_v30, %v9085_v23  ;;  %v682_v58 = vsel %vm13352_vm1, %v13564_v3, %v681_v25  ;;  %v13567_v43 = vld [vmem:[#allocation90_spill] sm:$0xff]  ;;  %4501 = vmatpush1.msra.mxu1 %v417_v38  ;;  %v13570_v38 = vld [vmem:[#allocation52_spill] sm:$0xff] }
 0x144   : > { %13563 = vst [vmem:[#allocation46_spill] sm:$0xff] %v10383_v1  ;;  %3854 = vmatmul.mubr.f32.gmra.mxu1 %v3145_v17  ;;  %v3180_v10 = vcombine.low %v10351_v8, %v10355_v46  ;;  %v10392_v59 = vrot.slane %v7434_v62, %v9085_v23  ;;  %v765_v18 = vcombine.high %v682_v58, %v682_v58  ;;  %v416_v46 = vld [vmem:[#allocation4 + $0x368] sm:$0xff] }
 0x145   : > { %13561 = vst [vmem:[#allocation41_spill] sm:$0xff] %v10379_v11  ;;  %v758_v4 = vrot.slane %v730_v2, %v9085_v23  ;;  %v1190_v30 = vcombine.high %v13567_v43, %v13566_v42  ;;  %3858 = vmatprep.mubr.f32.mxu1 %v3181_v6  ;;  %v2920_v20 = vrot.slane %v751_v32, %v9085_v23  ;;  %v13568_v32 = vld [vmem:[#allocation51_spill] sm:$0xff] }
 0x146   : > { %13565 = vst [vmem:[#allocation80_spill] sm:$0xff] %v10392_v59  ;;  %v786_v50 = vrot.slane %v682_v58, %v9085_v23  ;;  %2713 = vmatmul.mubr.f32.gmra.mxu0 %v2454_v22  ;;  %v3216_v17 = vcombine.high %v10379_v11, %v10392_v59  ;;  %v3251_v62 = vcombine.high %v10374_v7, %v10383_v1 }
 0x147   : > { %v2934_v3 = vrot.slane %v758_v4, %v9085_v23  ;;  %v793_v2 = vrot.slane %v765_v18, %v9085_v23  ;;  %2717 = vmatprep.mubr.f32.mxu0 %v2473_v47  ;;  %v3250_v6 = vcombine.low %v10374_v7, %v10383_v1  ;;  %4502 = vmatprep.subr.mxu1 %v13443_v37  ;;  %v415_v7 = vld [vmem:[#allocation4 + $0x360] sm:$0xff] }
 0x148   : > { %v10410_v22 = vrot.slane %v13568_v32, %v9085_v23  ;;  %v10414_v58 = vrot.slane %v13570_v38, %v9085_v23  ;;  %3859 = vmatmul.mubr.f32.gmra.mxu1 %v3180_v10  ;;  %v3215_v4 = vcombine.low %v10379_v11, %v10392_v59  ;;  %v2955_v18 = vrot.slane %v786_v50, %v9085_v23  ;;  %v13572_v38 = vld [vmem:[#allocation54_spill] sm:$0xff] }
 0x149   : > { %v812_v47 = vrot.slane %v681_v25, %v9085_v23  ;;  %v847_v1 = vcombine.low %v9381_v40, %v9124_v48  ;;  %3863 = vmatprep.mubr.f32.mxu1 %v3216_v17  ;;  %v2937_v19 = vcombine.low %v2920_v20, %v2934_v3  ;;  %v2969_v32 = vrot.slane %v793_v2, %v9085_v23  ;;  %v414_v40 = vld [vmem:[#allocation4 + $0x358] sm:$0xff] }
 0x14a   : > { %13569 = vst [vmem:[#allocation78_spill] sm:$0xff] %v10410_v22  ;;  %13571 = vst [vmem:[#allocation49_spill] sm:$0xff] %v10414_v58  ;;  %4503 = vmatpush1.msra.mxu1 %v416_v46  ;;  %v7436_v8 = vcombine.low %v13572_v38, %v13567_v43  ;;  %2718 = vmatmul.mubr.f32.gmra.mxu0 %v2465_v35  ;;  %v3286_v10 = vcombine.high %v10410_v22, %v10414_v58  ;;  %v13573_v20 = vld [vmem:[#allocation91_spill] sm:$0xff]  ;;  %v13576_v38 = vld [vmem:[#allocation60_spill] sm:$0xff] }
 0x14b   : > { %v7417_v50 = vcombine.low %v812_v47, %v9110_v39  ;;  %v7419_v25 = vcombine.high %v9110_v39, %v847_v1  ;;  %4504 = vmatprep.subr.mxu1 %v13443_v37  ;;  %8133 = vmatprep.mubr.msk.f32.mxu0 %vm8830_vm0, %v13443_v37  ;;  %v7438_v46 = vcombine.low %v1190_v30, %v13573_v20  ;;  %v450_v43 = vld [vmem:[#allocation4 + $0x478] sm:$0xff]  ;;  %v13575_v30 = vld [vmem:[#allocation58_spill] sm:$0xff] }
 0x14c   : > { %4505 = vmatpush1.msra.mxu1 %v415_v7  ;;  %v10434_v17 = vrot.slane %v7436_v8, %v9085_v23  ;;  %v880_v35 = vcombine.low %v9456_v15, %v9117_v45  ;;  %v882_v1 = vcombine.low %v9467_v63, %v9134_v53  ;;  %v1192_v15 = vcombine.high %v13573_v20, %v13575_v30 }
 0x14d   : > { %3864 = vmatmul.mubr.f32.gmra.mxu1 %v3215_v4  ;;  %v2990_v3 = vrot.slane %v7417_v50, %v9085_v23  ;;  %v3004_v39 = vrot.slane %v7419_v25, %v9085_v23  ;;  %4506 = vmatprep.subr.mxu1 %v13443_v37  ;;  %v10444_v7 = vrot.slane %v7438_v46, %v9085_v23  ;;  %v449_v4 = vld [vmem:[#allocation4 + $0x470] sm:$0xff]  ;;  %v13579_v46 = vld [vmem:[#allocation28_spill] sm:$0xff] }
 0x14e   : > { %13574 = vst [vmem:[#allocation57_spill] sm:$0xff] %v10434_v17  ;;  %3868 = vmatprep.mubr.f32.mxu1 %v3251_v62  ;;  %v7421_v8 = vcombine.high %v9124_v48, %v880_v35  ;;  %4507 = vmatpush1.msra.mxu1 %v414_v40  ;;  %v2972_v2 = vcombine.low %v2955_v18, %v2969_v32  ;;  %v13577_v50 = vld [vmem:[#allocation94_spill] sm:$0xff]  ;;  %v13578_v32 = vld [vmem:[#allocation95_spill] sm:$0xff] }
 0x14f   : > { %8134 = vmatmul.mubr.f32.vlgmr.msra.gmra.mxu0 %v2937_v19  ;;  %v7423_v47 = vcombine.high %v9117_v45, %v882_v1  ;;  %v1225_v63 = vcombine.high %v13577_v50, %v13576_v38  ;;  %4508 = vmatprep.subr.mxu1 %v13443_v37  ;;  %v3285_v48 = vcombine.low %v10410_v22, %v10414_v58  ;;  %v448_v45 = vld [vmem:[#allocation4 + $0x468] sm:$0xff]  ;;  %v13589_v58 = vld [vmem:[#allocation68_spill] sm:$0xff] }
 0x150   : > { %8203 = vmatpush3.msra.mxu0 %v450_v43  ;;  %8136 = vmatprep.mubr.msk.f32.mxu0 %vm8830_vm0, %v13443_v37  ;;  %v3007_v62 = vcombine.low %v2990_v3, %v3004_v39  ;;  %v3321_v19 = vcombine.high %v10434_v17, %v10444_v7  ;;  %v7440_v18 = vcombine.low %v1192_v15, %v13577_v50  ;;  %v13580_v43 = vld [vmem:[#allocation61_spill] sm:$0xff] }
 0x151   : > { %3869 = vmatmul.mubr.f32.gmra.mxu1 %v3250_v6  ;;  %8204 = vmatprep.subr.mxu0 %v13443_v37  ;;  %v7442_v25 = vcombine.low %v1225_v63, %v13578_v32  ;;  %v3025_v40 = vrot.slane %v7421_v8, %v9085_v23  ;;  %v899_v35 = vcombine.low %v9488_v9, %v13579_v46  ;;  %v412_v63 = vld [vmem:[#allocation4 + $0x348] sm:$0xff]  ;;  %v447_v46 = vld [vmem:[#allocation4 + $0x460] sm:$0xff] }
 0x152   : > { %3873 = vmatprep.mubr.f32.mxu1 %v3286_v10  ;;  %8205 = vmatpush3.msra.mxu0 %v449_v4  ;;  %v1227_v6 = vcombine.high %v13578_v32, %v13580_v43  ;;  %v3039_v3 = vrot.slane %v7423_v47, %v9085_v23  ;;  %v10470_v39 = vrot.slane %v7440_v18, %v9085_v23  ;;  %v413_v10 = vld [vmem:[#allocation4 + $0x350] sm:$0xff]  ;;  %v13583_v18 = vld [vmem:[#allocation31_spill] sm:$0xff] }
 0x153   : > { %8137 = vmatmul.mubr.f32.gmra.mxu0 %v2972_v2  ;;  %8206 = vmatprep.subr.mxu0 %v13443_v37  ;;  %v10473_v1 = vrot.slane %v7442_v25, %v9085_v23  ;;  %v3320_v9 = vcombine.low %v10434_v17, %v10444_v7  ;;  %v7425_v8 = vcombine.high %v9134_v53, %v899_v35  ;;  %v13581_v2 = vld [vmem:[#allocation29_spill] sm:$0xff] }
 0x154   : > { %8139 = vmatprep.mubr.msk.f32.mxu0 %vm8830_vm0, %v13443_v37  ;;  %8207 = vmatpush3.msra.mxu0 %v448_v45  ;;  %v7444_v15 = vcombine.low %v1227_v6, %v9984_v41  ;;  %v10483_v4 = vrot.slane %v13581_v2, %v9085_v23  ;;  %v10488_v47 = vrot.slane %v10010_v5, %v9085_v23  ;;  %v13585_v35 = vld [vmem:[#allocation77_spill] sm:$0xff] }
 0x155   : > { %3874 = vmatmul.mubr.f32.gmra.mxu1 %v3285_v48  ;;  %8208 = vmatprep.subr.mxu0 %v13443_v37  ;;  %v10492_v25 = vrot.slane %v13583_v18, %v9085_v23  ;;  %v3356_v53 = vcombine.high %v10470_v39, %v10473_v1  ;;  %v3060_v48 = vrot.slane %v7425_v8, %v9085_v23  ;;  %v13586_v6 = vld [vmem:[#allocation105_spill] sm:$0xff]  ;;  %v411_v18 = vld [vmem:[#allocation4 + $0x340] sm:$0xff] }
 0x156   : > { %13582 = vst [vmem:[#allocation90_spill] sm:$0xff] %v10483_v4  ;;  %3878 = vmatprep.mubr.f32.mxu1 %v3321_v19  ;;  %4509 = vmatpush1.msra.mxu1 %v413_v10  ;;  %v10498_v45 = vrot.slane %v7444_v15, %v9085_v23  ;;  %v1362_v5 = vcombine.high %v13586_v6, %v13585_v35  ;;  %v13587_v8 = vld [vmem:[#allocation33_spill] sm:$0xff] }
 0x157   : > { %13584 = vst [vmem:[#allocation51_spill] sm:$0xff] %v10492_v25  ;;  %8140 = vmatmul.mubr.f32.gmra.mxu0 %v3007_v62  ;;  %v3042_v2 = vcombine.low %v3025_v40, %v3039_v3  ;;  %4510 = vmatprep.subr.mxu1 %v13443_v37  ;;  %v3355_v10 = vcombine.low %v10470_v39, %v10473_v1  ;;  %v13588_v62 = vld [vmem:[#allocation64_spill] sm:$0xff] }
 0x158   : > { %8142 = vmatprep.mubr.msk.f32.mxu0 %vm8830_vm0, %v13443_v37  ;;  %4511 = vmatpush1.msra.mxu1 %v412_v63  ;;  %v10511_v15 = vrot.slane %v13587_v8, %v9085_v23  ;;  %v10515_v40 = vrot.slane %v13588_v62, %v9085_v23  ;;  %v3077_v3 = vcombine.low %v3060_v48, %v10483_v4  ;;  %v13591_v8 = vld [vmem:[#allocation38_spill] sm:$0xff] }
 0x159   : > { %3879 = vmatmul.mubr.f32.gmra.mxu1 %v3320_v9  ;;  %v3391_v19 = vcombine.high %v10498_v45, %v10488_v47  ;;  %8209 = vmatpush3.msra.mxu0 %v447_v46  ;;  %v10522_v17 = vrot.slane %v13589_v58, %v9085_v23  ;;  %v3390_v63 = vcombine.low %v10498_v45, %v10488_v47  ;;  %v13592_v9 = vld [vmem:[#allocation76_spill] sm:$0xff]  ;;  %v410_v58 = vld [vmem:[#allocation4 + $0x338] sm:$0xff] }
 0x15a   : > { %3883 = vmatprep.mubr.f32.mxu1 %v3356_v53  ;;  %4512 = vmatprep.subr.mxu1 %v13443_v37  ;;  %v7427_v62 = vcombine.low %v13591_v8, %v9243_v54  ;;  %v7446_v48 = vcombine.low %v13592_v9, %v13586_v6  ;;  %v13593_v46 = vld [vmem:[#allocation36_spill] sm:$0xff]  ;;  %v1019_v53 = vcombine.low %v13548_v29, %v13547_v12  ;;  %v446_v29 = vld [vmem:[#allocation4 + $0x458] sm:$0xff] }
 0x15b   : > { %13590 = vst [vmem:[#allocation52_spill] sm:$0xff] %v10522_v17  ;;  %8143 = vmatmul.mubr.f32.gmra.mxu0 %v3042_v2  ;;  %4513 = vmatpush1.msra.mxu1 %v411_v18  ;;  %v10533_v4 = vrot.slane %v13593_v46, %v9085_v23  ;;  %v1052_v22 = vcombine.low %v13551_v21, %v13554_v56  ;;  %v13594_v2 = vld [vmem:[#allocation83_spill] sm:$0xff]  ;;  %v13595_v18 = vld [vmem:[#allocation110_spill] sm:$0xff]  ;;  %v13596_v21 = vld [vmem:[#allocation69_spill] sm:$0xff] }
 0x15c   : > { %8145 = vmatprep.mubr.msk.f32.mxu0 %vm8830_vm0, %v13443_v37  ;;  %v3112_v8 = vcombine.low %v10492_v25, %v10511_v15  ;;  %4514 = vmatprep.subr.mxu1 %v13443_v37  ;;  %v10545_v6 = vrot.slane %v7427_v62, %v9085_v23  ;;  %v1364_v9 = vcombine.high %v13595_v18, %v13594_v2 }
 0x15d   : > { %3884 = vmatmul.mubr.f32.gmra.mxu1 %v3355_v10  ;;  %8210 = vmatprep.subr.mxu0 %v13443_v37  ;;  %v10552_v46 = vrot.slane %v13596_v21, %v9085_v23  ;;  %v10555_v59 = vrot.slane %v7446_v48, %v9085_v23  ;;  %v7448_v25 = vcombine.low %v1362_v5, %v13595_v18  ;;  %v409_v48 = vld [vmem:[#allocation4 + $0x330] sm:$0xff]  ;;  %v13599_v5 = vld [vmem:[#allocation112_spill] sm:$0xff] }
 0x15e   : > { %3888 = vmatprep.mubr.f32.mxu1 %v3391_v19  ;;  %v3426_v62 = vcombine.high %v10515_v40, %v10522_v17  ;;  %v3425_v11 = vcombine.low %v10515_v40, %v10522_v17  ;;  %4515 = vmatpush1.msra.mxu1 %v410_v58  ;;  %v7429_v10 = vcombine.high %v9243_v54, %v1019_v53 }
 0x15f   : > { %13597 = vst [vmem:[#allocation54_spill] sm:$0xff] %v10552_v46  ;;  %13598 = vst [vmem:[#allocation91_spill] sm:$0xff] %v10555_v59  ;;  %8146 = vmatmul.mubr.f32.gmra.mxu0 %v3077_v3  ;;  %v3147_v21 = vcombine.low %v10533_v4, %v10545_v6  ;;  %4516 = vmatprep.subr.mxu1 %v13443_v37  ;;  %v7431_v27 = vcombine.high %v13547_v12, %v1052_v22  ;;  %v13601_v3 = vld [vmem:[#allocation44_spill] sm:$0xff]  ;;  %v408_v12 = vld [vmem:[#allocation4 + $0x328] sm:$0xff] }
 0x160   : > { %v7450_v19 = vcombine.low %v1364_v9, %v13599_v5  ;;  %8148 = vmatprep.mubr.msk.f32.mxu0 %vm8830_vm0, %v13443_v37  ;;  %8211 = vmatpush3.msra.mxu0 %v446_v29  ;;  %v10571_v57 = vrot.slane %v7448_v25, %v9085_v23  ;;  %v1054_v54 = vcombine.low %v9747_v61, %v13555_v34  ;;  %v13603_v9 = vld [vmem:[#allocation81_spill] sm:$0xff]  ;;  %v445_v29 = vld [vmem:[#allocation4 + $0x450] sm:$0xff] }
 0x161   : > { %v1071_v58 = vcombine.low %v13560_v31, %v13601_v3  ;;  %3889 = vmatmul.mubr.f32.gmra.mxu1 %v3390_v63  ;;  %v3461_v53 = vcombine.high %v10552_v46, %v10555_v59  ;;  %8212 = vmatprep.subr.mxu0 %v13443_v37  ;;  %v1397_v25 = vcombine.high %v13599_v5, %v13603_v9  ;;  %v13604_v63 = vld [vmem:[#allocation85_spill] sm:$0xff] }
 0x162   : > { %13600 = vst [vmem:[#allocation58_spill] sm:$0xff] %v10571_v57  ;;  %v10581_v22 = vrot.slane %v7450_v19, %v9085_v23  ;;  %3893 = vmatprep.mubr.f32.mxu1 %v3426_v62  ;;  %4517 = vmatpush1.msra.mxu1 %v409_v48  ;;  %v7433_v61 = vcombine.high %v13554_v56, %v1054_v54 }
 0x163   : > { %v7435_v31 = vcombine.high %v13555_v34, %v1071_v58  ;;  %v1399_v3 = vcombine.high %v10177_v36, %v13604_v63  ;;  %8149 = vmatmul.mubr.f32.gmra.mxu0 %v3112_v8  ;;  %v10590_v17 = vrot.slane %v7429_v10, %v9085_v23  ;;  %v10593_v19 = vrot.slane %v7431_v27, %v9085_v23  ;;  %v407_v8 = vld [vmem:[#allocation4 + $0x320] sm:$0xff] }
 0x164   : > { %13602 = vst [vmem:[#allocation60_spill] sm:$0xff] %v10581_v22  ;;  %4518 = vmatprep.subr.mxu1 %v13443_v37  ;;  %v7452_v62 = vcombine.low %v1397_v25, %v10177_v36  ;;  %8151 = vmatprep.mubr.msk.f32.mxu0 %vm8830_vm0, %v13443_v37  ;;  %v3460_v56 = vcombine.low %v10552_v46, %v10555_v59 }
 0x165   : > { %4519 = vmatpush1.msra.mxu1 %v408_v12  ;;  %v3496_v34 = vcombine.high %v10571_v57, %v10581_v22  ;;  %v7454_v10 = vcombine.low %v1399_v3, %v10180_v49  ;;  %8213 = vmatpush3.msra.mxu0 %v445_v29  ;;  %v10605_v27 = vrot.slane %v7433_v61, %v9085_v23  ;;  %v13607_v12 = vld [vmem:[#allocation45_spill] sm:$0xff] }
 0x166   : > { %3894 = vmatmul.mubr.f32.gmra.mxu1 %v3425_v11  ;;  %v10608_v48 = vrot.slane %v7435_v31, %v9085_v23  ;;  %v10611_v54 = vrot.slane %v7452_v62, %v9085_v23  ;;  %4520 = vmatprep.subr.mxu1 %v13443_v37  ;;  %v10619_v25 = vrot.slane %v13607_v12, %v9085_v23  ;;  %v13608_v11 = vld [vmem:[#allocation50_spill] sm:$0xff]  ;;  %v406_v31 = vld [vmem:[#allocation4 + $0x318] sm:$0xff] }
 0x167   : > { %3898 = vmatprep.mubr.f32.mxu1 %v3461_v53  ;;  %v10615_v58 = vrot.slane %v7454_v10, %v9085_v23  ;;  %v10623_v29 = vrot.slane %v13608_v11, %v9085_v23  ;;  %8152 = vmatmul.mubr.f32.gmra.mxu0 %v3147_v21  ;;  %v3182_v61 = vcombine.low %v10590_v17, %v10593_v19  ;;  %v13609_v53 = vld [vmem:[#allocation96_spill] sm:$0xff]  ;;  %v444_v21 = vld [vmem:[#allocation4 + $0x448] sm:$0xff] }
 0x168   : > { %13605 = vst [vmem:[#allocation94_spill] sm:$0xff] %v10611_v54  ;;  %4521 = vmatpush1.msra.mxu1 %v407_v8  ;;  %v1534_v3 = vcombine.high %v10247_v0, %v13609_v53  ;;  %8154 = vmatprep.mubr.msk.f32.mxu0 %vm8830_vm0, %v13443_v37  ;;  %v3495_v62 = vcombine.low %v10571_v57, %v10581_v22  ;;  %v405_v22 = vld [vmem:[#allocation4 + $0x310] sm:$0xff] }
 0x169   : > { %13606 = vst [vmem:[#allocation95_spill] sm:$0xff] %v10615_v58  ;;  %4522 = vmatprep.subr.mxu1 %v13443_v37  ;;  %8214 = vmatprep.subr.mxu0 %v13443_v37  ;;  %v10637_v10 = vrot.slane %v10185_v26, %v9085_v23  ;;  %v10641_v8 = vrot.slane %v9865_v52, %v9085_v23  ;;  %v13612_v52 = vld [vmem:[#allocation48_spill] sm:$0xff] }
 0x16a   : > { %3899 = vmatmul.mubr.f32.gmra.mxu1 %v3460_v56  ;;  %v3217_v12 = vcombine.low %v10605_v27, %v10608_v48  ;;  %v3531_v56 = vcombine.high %v10611_v54, %v10615_v58  ;;  %v3252_v11 = vcombine.low %v10619_v25, %v10623_v29  ;;  %v3530_v26 = vcombine.low %v10611_v54, %v10615_v58 }
 0x16b   : > { %13610 = vst [vmem:[#allocation28_spill] sm:$0xff] %v10637_v10  ;;  %13611 = vst [vmem:[#allocation61_spill] sm:$0xff] %v10641_v8  ;;  %3903 = vmatprep.mubr.f32.mxu1 %v3496_v34  ;;  %4523 = vmatpush1.msra.mxu1 %v406_v31  ;;  %v10654_v34 = vrot.slane %v13612_v52, %v9085_v23  ;;  %v1191_v59 = vcombine.low %v13573_v20, %v13575_v30  ;;  %v13613_v31 = vld [vmem:[#allocation53_spill] sm:$0xff] }
 0x16c   : > { %8155 = vmatmul.mubr.f32.gmra.mxu0 %v3182_v61  ;;  %4524 = vmatprep.subr.mxu1 %v13443_v37  ;;  %v10662_v61 = vrot.slane %v13613_v31, %v9085_v23  ;;  %v7456_v58 = vcombine.low %v9935_v28, %v10247_v0  ;;  %v7458_v54 = vcombine.low %v1534_v3, %v10250_v16  ;;  %v404_v20 = vld [vmem:[#allocation4 + $0x308] sm:$0xff]  ;;  %v443_v28 = vld [vmem:[#allocation4 + $0x440] sm:$0xff]  ;;  %v13616_v0 = vld [vmem:[#allocation55_spill] sm:$0xff] }
 0x16d   : > { %8157 = vmatprep.mubr.msk.f32.mxu0 %vm8830_vm0, %v13443_v37  ;;  %8215 = vmatpush3.msra.mxu0 %v444_v21  ;;  %v3566_v52 = vcombine.high %v10637_v10, %v10641_v8  ;;  %v10672_v57 = vrot.slane %v9878_v24, %v9085_v23  ;;  %v10676_v21 = vrot.slane %v9906_v51, %v9085_v23 }
 0x16e   : > { %3904 = vmatmul.mubr.f32.gmra.mxu1 %v3495_v62  ;;  %8216 = vmatprep.subr.mxu0 %v13443_v37  ;;  %v7437_v3 = vcombine.low %v13616_v0, %v13566_v42  ;;  %v1224_v62 = vcombine.low %v13577_v50, %v13576_v38  ;;  %v1226_v31 = vcombine.low %v13578_v32, %v13580_v43  ;;  %v403_v0 = vld [vmem:[#allocation4 + $0x300] sm:$0xff] }
 0x16f   : > { %13614 = vst [vmem:[#allocation29_spill] sm:$0xff] %v10672_v57  ;;  %13615 = vst [vmem:[#allocation31_spill] sm:$0xff] %v10676_v21  ;;  %3908 = vmatprep.mubr.f32.mxu1 %v3531_v56  ;;  %4525 = vmatpush1.msra.mxu1 %v405_v22  ;;  %v3565_v24 = vcombine.low %v10637_v10, %v10641_v8  ;;  %v7439_v51 = vcombine.high %v13566_v42, %v1191_v59  ;;  %v13617_v56 = vld [vmem:[#allocation97_spill] sm:$0xff]  ;;  %v13620_v8 = vld [vmem:[#allocation99_spill] sm:$0xff] }
 0x170   : > { %8158 = vmatmul.mubr.f32.gmra.mxu0 %v3217_v12  ;;  %4526 = vmatprep.subr.mxu1 %v13443_v37  ;;  %v1536_v22 = vcombine.high %v10250_v16, %v13617_v56  ;;  %v3287_v50 = vcombine.low %v10654_v34, %v10662_v61  ;;  %v10695_v32 = vrot.slane %v7456_v58, %v9085_v23 }
 0x171   : > { %8160 = vmatprep.mubr.msk.f32.mxu0 %vm8830_vm0, %v13443_v37  ;;  %4527 = vmatpush1.msra.mxu1 %v404_v20  ;;  %v10698_v12 = vrot.slane %v7458_v54, %v9085_v23  ;;  %v7441_v59 = vcombine.high %v13575_v30, %v1224_v62  ;;  %v7443_v42 = vcombine.high %v13576_v38, %v1226_v31  ;;  %v434_v30 = vld [vmem:[#allocation4 + $0x3f8] sm:$0xff] }
 0x172   : > { %13618 = vst [vmem:[#allocation77_spill] sm:$0xff] %v10695_v32  ;;  %3909 = vmatmul.mubr.f32.gmra.mxu1 %v3530_v26  ;;  %8217 = vmatpush3.msra.mxu0 %v443_v28  ;;  %v1569_v10 = vcombine.high %v10272_v13, %v13620_v8  ;;  %v3601_v20 = vcombine.high %v10672_v57, %v10676_v21  ;;  %v13621_v26 = vld [vmem:[#allocation63_spill] sm:$0xff] }
 0x173   : > { %13619 = vst [vmem:[#allocation105_spill] sm:$0xff] %v10698_v12  ;;  %3913 = vmatprep.mubr.f32.mxu1 %v3566_v52  ;;  %v10707_v46 = vrot.slane %v7437_v3, %v9085_v23  ;;  %4528 = vmatprep.subr.mxu1 %v13443_v37  ;;  %v7460_v54 = vcombine.low %v1536_v22, %v10272_v13  ;;  %v13622_v3 = vld [vmem:[#allocation100_spill] sm:$0xff]  ;;  %v442_v62 = vld [vmem:[#allocation4 + $0x438] sm:$0xff] }
 0x174   : > { %8161 = vmatmul.mubr.f32.gmra.mxu0 %v3252_v11  ;;  %v10712_v58 = vrot.slane %v7439_v51, %v9085_v23  ;;  %4529 = vmatpush1.msra.mxu1 %v403_v0  ;;  %v7462_v38 = vcombine.low %v1569_v10, %v10281_v14  ;;  %v1243_v52 = vcombine.low %v9984_v41, %v13621_v26  ;;  %v10744_v26 = vpop.f32.mrf.mxu1 }
 0x175   : > { %8163 = vmatprep.mubr.msk.f32.mxu0 %vm8830_vm0, %v13443_v37  ;;  %v3600_v28 = vcombine.low %v10672_v57, %v10676_v21  ;;  %4530 = vmatprep.subr.mxu1 %v13443_v37  ;;  %v1571_v11 = vcombine.high %v10281_v14, %v13622_v3  ;;  %v3636_v10 = vcombine.high %v10695_v32, %v10698_v12 }
 0x176   : > { %3914 = vmatmul.mubr.f32.gmra.mxu1 %v3565_v24  ;;  %8218 = vmatprep.subr.mxu0 %v13443_v37  ;;  %v10728_v41 = vrot.slane %v7441_v59, %v9085_v23  ;;  %v10731_v31 = vrot.slane %v7443_v42, %v9085_v23  ;;  %v10734_v51 = vrot.slane %v7460_v54, %v9085_v23  ;;  %v433_v59 = vld [vmem:[#allocation4 + $0x3f0] sm:$0xff] }
 0x177   : > { %3918 = vmatprep.mubr.f32.mxu1 %v3601_v20  ;;  %4531 = vmatpush2.msra.mxu1 %v434_v30  ;;  %v10737_v22 = vrot.slane %v7462_v38, %v9085_v23  ;;  %v7464_v24 = vcombine.low %v1571_v11, %v10288_v55  ;;  %v3322_v0 = vcombine.low %v10707_v46, %v10712_v58  ;;  %v13625_v20 = vld [vmem:[#allocation75_spill] sm:$0xff]  ;;  %v13626_v38 = vld [vmem:[#allocation65_spill] sm:$0xff] }
 0x178   : > { %13623 = vst [vmem:[#allocation33_spill] sm:$0xff] %v10734_v51  ;;  %8164 = vmatmul.mubr.f32.gmra.mxu0 %v3287_v50  ;;  %4532 = vmatprep.subr.mxu1 %v13443_v37  ;;  %v7445_v42 = vcombine.high %v13580_v43, %v1243_v52  ;;  %13624 = vst [vmem:[#allocation64_spill] sm:$0xff] %v10744_v26  ;;  %v7447_v54 = vcombine.low %v13625_v20, %v13585_v35  ;;  %v432_v43 = vld [vmem:[#allocation4 + $0x3e8] sm:$0xff]  ;;  %v8034_v52 = vpop.f32.mrf.mxu1  ;;  %v13629_v26 = vld [vmem:[#allocation66_spill] sm:$0xff] }
 0x179   : > { %8166 = vmatprep.mubr.msk.f32.mxu0 %vm8830_vm0, %v13443_v37  ;;  %8219 = vmatpush3.msra.mxu0 %v442_v62  ;;  %v3635_v50 = vcombine.low %v10695_v32, %v10698_v12  ;;  %v3357_v30 = vcombine.low %v10728_v41, %v10731_v31  ;;  %v10756_v11 = vrot.slane %v13626_v38, %v9085_v23 }
 0x17a   : > { %3919 = vmatmul.mubr.f32.gmra.mxu1 %v3600_v28  ;;  %8220 = vmatprep.subr.mxu0 %v13443_v37  ;;  %v3671_v62 = vcombine.high %v10734_v51, %v10737_v22  ;;  %v441_v28 = vld [vmem:[#allocation4 + $0x430] sm:$0xff]  ;;  %v10762_v20 = vrot.slane %v7464_v24, %v9085_v23  ;;  %v10766_v12 = vrot.slane %v13629_v26, %v9085_v23  ;;  %v10778_v21 = vpop.f32.mrf.mxu1  ;;  %v431_v24 = vld [vmem:[#allocation4 + $0x3e0] sm:$0xff] }
 0x17b   : > { %13627 = vst [vmem:[#allocation68_spill] sm:$0xff] %v10756_v11  ;;  %3923 = vmatprep.mubr.f32.mxu1 %v3636_v10  ;;  %4533 = vmatpush2.msra.mxu1 %v433_v59  ;;  %v10769_v38 = vrot.slane %v7445_v42, %v9085_v23  ;;  %v13632_v10 = vld [vmem:[#allocation70_spill] sm:$0xff]  ;;  %v1363_v52 = vcombine.low %v13595_v18, %v13594_v2  ;;  %13634 = vst [vmem:[#allocation110_spill] sm:$0xff] %v10778_v21 }
 0x17c   : > { %13628 = vst [vmem:[#allocation38_spill] sm:$0xff] %v10762_v20  ;;  %13630 = vst [vmem:[#allocation76_spill] sm:$0xff] %v10766_v12  ;;  %8167 = vmatmul.mubr.f32.gmra.mxu0 %v3322_v0  ;;  %4534 = vmatprep.subr.mxu1 %v13443_v37  ;;  %v10774_v59 = vrot.slane %v13632_v10, %v9085_v23  ;;  %v13635_v0 = vld [vmem:[#allocation71_spill] sm:$0xff]  ;;  %v10787_v26 = vrot.slane %v7447_v54, %v9085_v23  ;;  %v8037_v57 = vpop.f32.mrf.mxu1 }
 0x17d   : > { %13631 = vst [vmem:[#allocation36_spill] sm:$0xff] %v10769_v38  ;;  %8169 = vmatprep.mubr.msk.f32.mxu0 %vm8830_vm0, %v13443_v37  ;;  %4535 = vmatpush2.msra.mxu1 %v432_v43  ;;  %v10784_v42 = vrot.slane %v13635_v0, %v9085_v23  ;;  %v1396_v10 = vcombine.low %v13599_v5, %v13603_v9  ;;  %v13637_v43 = vld [vmem:[#allocation84_spill] sm:$0xff] }
 0x17e   : > { %13633 = vst [vmem:[#allocation83_spill] sm:$0xff] %v10774_v59  ;;  %3924 = vmatmul.mubr.f32.gmra.mxu1 %v3635_v50  ;;  %v3670_v18 = vcombine.low %v10734_v51, %v10737_v22  ;;  %8221 = vmatpush3.msra.mxu0 %v441_v28  ;;  %v1398_v21 = vcombine.low %v10177_v36, %v13604_v63  ;;  %v430_v50 = vld [vmem:[#allocation4 + $0x3d8] sm:$0xff]  ;;  %v10803_v0 = vpop.f32.mrf.mxu1 }
 0x17f   : > { %13636 = vst [vmem:[#allocation69_spill] sm:$0xff] %v10784_v42  ;;  %v1415_v32 = vcombine.low %v10180_v49, %v13637_v43  ;;  %3928 = vmatprep.mubr.f32.mxu1 %v3671_v62  ;;  %v3689_v54 = vcombine.high %v10762_v20, %v10762_v20  ;;  %4536 = vmatprep.subr.mxu1 %v13443_v37  ;;  %13638 = vst [vmem:[#allocation112_spill] sm:$0xff] %v10803_v0  ;;  %v13639_v43 = vld [vmem:[#allocation86_spill] sm:$0xff] }
 0x180   : > { %8170 = vmatmul.mubr.f32.gmra.mxu0 %v3357_v30  ;;  %v3392_v5 = vcombine.low %v10769_v38, %v10756_v11  ;;  %4537 = vmatpush2.msra.mxu1 %v431_v24  ;;  %v7449_v28 = vcombine.high %v13585_v35, %v1363_v52  ;;  %v3427_v36 = vcombine.low %v10766_v12, %v10774_v59  ;;  %v440_v30 = vld [vmem:[#allocation4 + $0x428] sm:$0xff]  ;;  %v8040_v52 = vpop.f32.mrf.mxu1  ;;  %v13658_v12 = vld [vmem:[#allocation94_spill] sm:$0xff]  ;;  %v13661_v59 = vld [vmem:[#allocation95_spill] sm:$0xff] }
 0x181   : > { %8172 = vmatprep.mubr.msk.f32.mxu0 %vm8830_vm0, %v13443_v37  ;;  %4538 = vmatprep.subr.mxu1 %v13443_v37  ;;  %v7451_v57 = vcombine.high %v13594_v2, %v1396_v10  ;;  %v7453_v35 = vcombine.high %v13603_v9, %v1398_v21  ;;  %v7455_v62 = vcombine.high %v13604_v63, %v1415_v32  ;;  %v13641_v2 = vld [vmem:[#allocation89_spill] sm:$0xff]  ;;  %v429_v9 = vld [vmem:[#allocation4 + $0x3d0] sm:$0xff]  ;;  %v435_v38 = vld [vmem:[#allocation4 + $0x400] sm:$0xff] }
 0x182   : > { %3929 = vmatmul.mubr.f32.gmra.mxu1 %v3670_v18  ;;  %8222 = vmatprep.subr.mxu0 %v13443_v37  ;;  %v1570_v24 = vcombine.low %v10281_v14, %v13622_v3  ;;  %v10820_v0 = vrot.slane %v13639_v43, %v9085_v23  ;;  %v10824_v10 = vrot.slane %v13641_v2, %v9085_v23  ;;  %v13643_v18 = vld [vmem:[#allocation101_spill] sm:$0xff]  ;;  %v439_v14 = vld [vmem:[#allocation4 + $0x420] sm:$0xff]  ;;  %v10832_v21 = vpop.f32.mrf.mxu1 }
 0x183   : > { %3933 = vmatprep.mubr.f32.mxu1 %v3689_v54  ;;  %4539 = vmatpush2.msra.mxu1 %v430_v50  ;;  %v1587_v49 = vcombine.low %v10288_v55, %v13643_v18  ;;  %v10830_v63 = vrot.slane %v7449_v28, %v9085_v23  ;;  %v1535_v32 = vcombine.low %v10250_v16, %v13617_v56  ;;  %v428_v28 = vld [vmem:[#allocation4 + $0x3c8] sm:$0xff]  ;;  %v13650_v43 = vld [vmem:[#allocation88_spill] sm:$0xff] }
 0x184   : > { %13640 = vst [vmem:[#allocation44_spill] sm:$0xff] %v10820_v0  ;;  %13642 = vst [vmem:[#allocation81_spill] sm:$0xff] %v10824_v10  ;;  %8173 = vmatmul.mubr.f32.gmra.mxu0 %v3392_v5  ;;  %4540 = vmatprep.subr.mxu1 %v13443_v37  ;;  %v7463_v54 = vcombine.high %v13620_v8, %v1570_v24  ;;  %v10840_v55 = vrot.slane %v7451_v57, %v9085_v23  ;;  %v8043_v24 = vpop.f32.mrf.mxu1  ;;  %v13663_v11 = vld [vmem:[#allocation61_spill] sm:$0xff] }
 0x185   : > { %13644 = vst [vmem:[#allocation85_spill] sm:$0xff] %v10830_v63  ;;  %8175 = vmatprep.mubr.msk.f32.mxu0 %vm8830_vm0, %v13443_v37  ;;  %8223 = vmatpush3.msra.mxu0 %v440_v30  ;;  %v1568_v5 = vcombine.low %v10272_v13, %v13620_v8  ;;  %v7465_v50 = vcombine.high %v13622_v3, %v1587_v49  ;;  %v13648_v30 = vld [vmem:[#allocation92_spill] sm:$0xff]  ;;  %v424_v24 = vld [vmem:[#allocation4 + $0x3a8] sm:$0xff] }
 0x186   : > { %13645 = vst [vmem:[#allocation45_spill] sm:$0xff] %v10840_v55  ;;  %3934 = vmatmul.mubr.f32.gmra.mxu1 %v10762_v20  ;;  %8224 = vmatprep.subr.mxu0 %v13443_v37  ;;  %v10848_v16 = vrot.slane %v7453_v35, %v9085_v23  ;;  %v10851_v52 = vrot.slane %v7455_v62, %v9085_v23  ;;  %v427_v49 = vld [vmem:[#allocation4 + $0x3c0] sm:$0xff]  ;;  %v438_v35 = vld [vmem:[#allocation4 + $0x418] sm:$0xff]  ;;  %v436_v3 = vld [vmem:[#allocation4 + $0x408] sm:$0xff] }
 0x187   : > { %v7457_v57 = vcombine.low %v13648_v30, %v13609_v53  ;;  %4541 = vmatpush2.msra.mxu1 %v429_v9  ;;  %8225 = vmatpush3.msra.mxu0 %v439_v14  ;;  %v10856_v13 = vrot.slane %v7463_v54, %v9085_v23  ;;  %v10859_v8 = vrot.slane %v7465_v50, %v9085_v23  ;;  %v10871_v9 = vpop.f32.mrf.mxu1  ;;  %v13657_v62 = vld [vmem:[#allocation91_spill] sm:$0xff] }
 0x188   : > { %13646 = vst [vmem:[#allocation50_spill] sm:$0xff] %v10848_v16  ;;  %13647 = vst [vmem:[#allocation96_spill] sm:$0xff] %v10851_v52  ;;  %8176 = vmatmul.mubr.f32.gmra.mxu0 %v3427_v36  ;;  %4542 = vmatprep.subr.mxu1 %v13443_v37  ;;  %v10868_v2 = vrot.slane %v13650_v43, %v9085_v23  ;;  %v7459_v18 = vcombine.high %v13609_v53, %v1535_v32  ;;  %v426_v53 = vld [vmem:[#allocation4 + $0x3b8] sm:$0xff] }
 0x189   : > { %13649 = vst [vmem:[#allocation48_spill] sm:$0xff] %v10856_v13  ;;  %8178 = vmatprep.mubr.msk.f32.mxu0 %vm8830_vm0, %v13443_v37  ;;  %4543 = vmatpush2.msra.mxu1 %v428_v28  ;;  %v7461_v36 = vcombine.high %v13617_v56, %v1568_v5  ;;  %v3497_v50 = vcombine.low %v10830_v63, %v10840_v55  ;;  %v8046_v28 = vpop.f32.mrf.mxu1 }
 0x18a   : > { %13651 = vst [vmem:[#allocation53_spill] sm:$0xff] %v10868_v2  ;;  %4544 = vmatprep.subr.mxu1 %v13443_v37  ;;  %8226 = vmatprep.subr.mxu0 %v13443_v37  ;;  %v10886_v32 = vrot.slane %v9913_v60, %v9085_v23  ;;  %v3532_v5 = vcombine.low %v10848_v16, %v10851_v52  ;;  %v425_v60 = vld [vmem:[#allocation4 + $0x3b0] sm:$0xff]  ;;  %v13665_v16 = vld [vmem:[#allocation31_spill] sm:$0xff] }
 0x18b   : > { %4545 = vmatpush2.msra.mxu1 %v427_v49  ;;  %8227 = vmatpush3.msra.mxu0 %v438_v35  ;;  %v10893_v30 = vrot.slane %v7457_v57, %v9085_v23  ;;  %v13653_v43 = vcombine.low %v10784_v42, %v10787_v26  ;;  %v437_v28 = vld [vmem:[#allocation4 + $0x410] sm:$0xff]  ;;  %v10902_v14 = vrot.slane %v7459_v18, %v9085_v23  ;;  %v10904_v56 = vpop.f32.mrf.mxu1  ;;  %v423_v49 = vld [vmem:[#allocation4 + $0x3a0] sm:$0xff]  ;;  %v13662_v18 = vld [vmem:[#allocation29_spill] sm:$0xff] }
 0x18c   : > { %13652 = vst [vmem:[#allocation55_spill] sm:$0xff] %v10886_v32  ;;  %4546 = vmatprep.subr.mxu1 %v13443_v37  ;;  %v10913_v35 = vrot.slane %v7461_v36, %v9085_v23  ;;  %8228 = vmatprep.subr.mxu0 %v13443_v37  ;;  %v13655_v36 = vld [vmem:[#allocation52_spill] sm:$0xff]  ;;  %v421_v57 = vld [vmem:[#allocation4 + $0x390] sm:$0xff]  ;;  %v13667_v63 = vcombine.low %v10820_v0, %v10824_v10 }
 0x18d   : > { %8179 = vmatmul.mubr.f32.gmra.mxu0 %v13653_v43  ;;  %4547 = vmatpush2.msra.mxu1 %v426_v53  ;;  %v8049_v54 = vpop.f32.mrf.mxu1  ;;  %v13654_v43 = vld [vmem:[#allocation54_spill] sm:$0xff]  ;;  %v13660_v42 = vld [vmem:[#allocation28_spill] sm:$0xff]  ;;  %v2609_v23 = vpop.f32.mrf.mxu0  ;;  %v13672_v0 = vcombine.high %v10277_v44, %v10296_v33  ;;  %v3637_v55 = vcombine.low %v10893_v30, %v10902_v14 }
 0x18e   : > { %8181 = vmatprep.mubr.msk.f32.mxu0 %vm8830_vm0, %v13443_v37  ;;  %4548 = vmatprep.subr.mxu1 %v13443_v37  ;;  %v13656_v54 = vld [vmem:[#allocation58_spill] sm:$0xff] }
 0x18f   : > { %4549 = vmatpush2.msra.mxu1 %v425_v60  ;;  %8229 = vmatpush3.msra.mxu0 %v437_v28  ;;  %v10934_v53 = vpop.f32.mrf.mxu1  ;;  %v422_v28 = vld [vmem:[#allocation4 + $0x398] sm:$0xff]  ;;  %v2611_v51 = vpop.f32.mrf.mxu0 }
 0x190   : > { %4550 = vmatprep.subr.mxu1 %v13443_v37  ;;  %8230 = vmatprep.subr.mxu0 %v13443_v37 }
 0x191   : > { %8182 = vmatmul.mubr.f32.gmra.mxu0 %v3497_v50  ;;  %4551 = vmatpush2.msra.mxu1 %v424_v24  ;;  %v8052_v60 = vpop.f32.mrf.mxu1  ;;  %v13659_v50 = vld [vmem:[#allocation60_spill] sm:$0xff] }
 0x192   : > { %8184 = vmatprep.mubr.msk.f32.mxu0 %vm8830_vm0, %v13443_v37  ;;  %4552 = vmatprep.subr.mxu1 %v13443_v37  ;;  %v13664_v60 = vld [vmem:[#allocation77_spill] sm:$0xff]  ;;  %v2614_v20 = vpop.f32.mrf.mxu0 }
 0x193   : > { %4553 = vmatpush2.msra.mxu1 %v423_v49  ;;  %8231 = vmatpush3.msra.mxu0 %v436_v3  ;;  %v10965_v24 = vpop.f32.mrf.mxu1  ;;  %v420_v3 = vld [vmem:[#allocation4 + $0x388] sm:$0xff] }
 0x194   : > { %4554 = vmatprep.subr.mxu1 %v13443_v37  ;;  %8232 = vmatprep.subr.mxu0 %v13443_v37 }
 0x195   : > { %8185 = vmatmul.mubr.f32.gmra.mxu0 %v3532_v5  ;;  %4555 = vmatpush2.msra.mxu1 %v422_v28  ;;  %v8055_v49 = vpop.f32.mrf.mxu1  ;;  %v3602_v28 = vcombine.low %v10868_v2, %v10886_v32  ;;  %v13670_v32 = vld [vmem:[#allocation64_spill] sm:$0xff] }
 0x196   : > { %8187 = vmatprep.mubr.msk.f32.mxu0 %vm8830_vm0, %v13443_v37  ;;  %4556 = vmatprep.subr.mxu1 %v13443_v37  ;;  %v13669_v49 = vld [vmem:[#allocation30_spill] sm:$0xff]  ;;  %v11012_v2 = vadd.f32 %v13670_v32, %v2609_v23 }
 0x197   : > { %4557 = vmatpush2.msra.mxu1 %v421_v57  ;;  %8233 = vmatpush3.msra.mxu0 %v435_v38  ;;  %v419_v57 = vld [vmem:[#allocation4 + $0x380] sm:$0xff]  ;;  %v4218_v38 = vcombine.low %v10277_v44, %v10296_v33  ;;  %v11003_v52 = vpop.f32.mrf.mxu1  ;;  %v13673_v44 = vld [vmem:[#allocation43_spill] sm:$0xff] }
 0x198   : > { %4558 = vmatprep.subr.mxu1 %v13443_v37  ;;  %13671 = vst [vmem:[#allocation97_spill] sm:$0xff] %v11012_v2  ;;  %4562 = vmatprep.mubr.f32.mxu1 %v13672_v0  ;;  %v13674_v33 = vld [vmem:[#allocation35_spill] sm:$0xff]  ;;  %v13675_v0 = vld [vmem:[#allocation110_spill] sm:$0xff] }
 0x199   : > { %8188 = vmatmul.mubr.f32.gmra.mxu0 %v13667_v63  ;;  %4559 = vmatpush2.msra.mxu1 %v420_v3  ;;  %v13668_v63 = vld [vmem:[#allocation39_spill] sm:$0xff]  ;;  %v8058_v5 = vpop.f32.mrf.mxu1  ;;  %v4225_v51 = vcombine.high %v13674_v33, %v13673_v44  ;;  %v11029_v32 = vadd.f32 %v13675_v0, %v2614_v20  ;;  %v13678_v20 = vld [vmem:[#allocation72_spill] sm:$0xff] }
 0x19a   : > { %8190 = vmatprep.mubr.msk.f32.mxu0 %vm8830_vm0, %v13443_v37  ;;  %v4222_v10 = vcombine.high %v13669_v49, %v13668_v63  ;;  %4560 = vmatprep.subr.mxu1 %v13443_v37  ;;  %v4221_v3 = vcombine.low %v13669_v49, %v13668_v63  ;;  %v2616_v5 = vpop.f32.mrf.mxu0  ;;  %v4224_v49 = vcombine.low %v13674_v33, %v13673_v44 }
 0x19b   : > { %4561 = vmatpush2.msra.mxu1 %v419_v57  ;;  %v11022_v23 = vpop.f32.mrf.mxu1  ;;  %13676 = vst [vmem:[#allocation99_spill] sm:$0xff] %v11029_v32  ;;  %v3672_v57 = vcombine.low %v10913_v35, %v10856_v13  ;;  %v13679_v5 = vld [vmem:[#allocation112_spill] sm:$0xff] }
 0x19c   : > { %4563 = vmatmul.mubr.f32.vlgmr.msra.gmra.mxu1 %v4218_v38  ;;  %v2619_v38 = vpop.f32.mrf.mxu0  ;;  %v13681_v13 = vld [vmem:[#allocation80_spill] sm:$0xff] }
 0x19d   : > { %8191 = vmatmul.mubr.f32.gmra.mxu0 %v3602_v28  ;;  %4567 = vmatprep.mubr.f32.mxu1 %v4222_v10  ;;  %v8061_v28 = vpop.f32.mrf.mxu1  ;;  %v13677_v10 = vld [vmem:[#allocation41_spill] sm:$0xff] }
 0x19e   : > { %8193 = vmatprep.mubr.msk.f32.mxu0 %vm8830_vm0, %v13443_v37  ;;  %v4228_v0 = vcombine.high %v13678_v20, %v13677_v10  ;;  %v11042_v28 = vadd.f32 %v13679_v5, %v2619_v38 }
 0x19f   : > { %v11035_v63 = vpop.f32.mrf.mxu1 }
 0x1a0   : > { %4568 = vmatmul.mubr.f32.gmra.mxu1 %v4221_v3  ;;  %v4227_v3 = vcombine.low %v13678_v20, %v13677_v10  ;;  %v13683_v10 = vld [vmem:[#allocation78_spill] sm:$0xff] }
 0x1a1   : > { %8194 = vmatmul.mubr.f32.gmra.mxu0 %v3637_v55  ;;  %4572 = vmatprep.mubr.f32.mxu1 %v4225_v51  ;;  %v2621_v55 = vpop.f32.mrf.mxu0  ;;  %v8064_v32 = vpop.f32.mrf.mxu1  ;;  %v13680_v51 = vld [vmem:[#allocation74_spill] sm:$0xff] }
 0x1a2   : > { %8196 = vmatprep.mubr.msk.f32.mxu0 %vm8830_vm0, %v13443_v37  ;;  %v4231_v2 = vcombine.high %v13681_v13, %v13680_v51  ;;  %v13684_v20 = vld [vmem:[#allocation46_spill] sm:$0xff] }
 0x1a3   : > { %v2624_v44 = vpop.f32.mrf.mxu0  ;;  %v11046_v33 = vpop.f32.mrf.mxu1 }
 0x1a4   : > { %4573 = vmatmul.mubr.f32.gmra.mxu1 %v4224_v49  ;;  %v11053_v38 = vadd.f32 %v10832_v21, %v2624_v44  ;;  %v13685_v44 = vld [vmem:[#allocation90_spill] sm:$0xff] }
 0x1a5   : > { %8197 = vmatmul.mubr.f32.gmra.mxu0 %v3672_v57  ;;  %4577 = vmatprep.mubr.f32.mxu1 %v4228_v0  ;;  %v2626_v5 = vpop.f32.mrf.mxu0  ;;  %v8067_v32 = vpop.f32.mrf.mxu1  ;;  %v4230_v57 = vcombine.low %v13681_v13, %v13680_v51  ;;  %v4234_v0 = vcombine.high %v13684_v20, %v13683_v10  ;;  %v4233_v13 = vcombine.low %v13684_v20, %v13683_v10 }
 0x1a6   : > { %8199 = vmatprep.mubr.msk.f32.mxu0 %vm8830_vm0, %v13443_v37  ;;  %13682 = vst [vmem:[#allocation63_spill] sm:$0xff] %v11053_v38  ;;  %v13686_v5 = vld [vmem:[#allocation51_spill] sm:$0xff] }
 0x1a7   : > { %v2629_v49 = vpop.f32.mrf.mxu0  ;;  %v13687_v32 = vcombine.low %v13685_v44, %v13686_v5  ;;  %v11074_v38 = vpop.f32.mrf.mxu1 }
 0x1a8   : > { %4578 = vmatmul.mubr.f32.gmra.mxu1 %v4227_v3  ;;  %v11063_v55 = vadd.f32 %v10871_v9, %v2629_v49  ;;  %v13689_v3 = vld [vmem:[#allocation49_spill] sm:$0xff] }
 0x1a9   : > { %8200 = vmatmul.mubr.f32.gmra.mxu0 %v10859_v8  ;;  %4582 = vmatprep.mubr.f32.mxu1 %v4231_v2  ;;  %v2631_v21 = vpop.f32.mrf.mxu0  ;;  %v13688_v2 = vld [vmem:[#allocation57_spill] sm:$0xff] }
 0x1aa   : > { %8234 = vmatprep.mubr.msk.f32.mxu0 %vm8830_vm0, %v13443_v37  ;;  %v4237_v51 = vcombine.high %v13689_v3, %v13688_v2  ;;  %v8070_v21 = vpop.f32.mrf.mxu1  ;;  %v4236_v10 = vcombine.low %v13689_v3, %v13688_v2  ;;  %v13693_v2 = vcombine.low %v10593_v19, %v10605_v27  ;;  %v13695_v3 = vcombine.high %v10473_v1, %v10498_v45 }
 0x1ab   : > { %v2634_v9 = vpop.f32.mrf.mxu0  ;;  %v13696_v19 = vcombine.low %v10608_v48, %v10619_v25  ;;  %v13698_v27 = vcombine.high %v10488_v47, %v10515_v40  ;;  %v13699_v48 = vcombine.low %v10623_v29, %v10654_v34  ;;  %v13701_v25 = vcombine.high %v13655_v36, %v13654_v43 }
 0x1ac   : > { %4583 = vmatmul.mubr.f32.gmra.mxu1 %v4230_v57  ;;  %v11077_v49 = vadd.f32 %v10904_v56, %v2634_v9  ;;  %v13690_v57 = vcombine.low %v10511_v15, %v10533_v4  ;;  %v11086_v20 = vpop.f32.mrf.mxu1  ;;  %v13691_v56 = vcombine.low %v10545_v6, %v10590_v17  ;;  %v13692_v4 = vcombine.high %v10444_v7, %v10470_v39 }
 0x1ad   : > { %8235 = vmatmul.mubr.f32.vlgmr.msra.gmra.mxu0 %v13687_v32  ;;  %4587 = vmatprep.mubr.f32.mxu1 %v4234_v0  ;;  %v2636_v44 = vpop.f32.mrf.mxu0  ;;  %v13694_v17 = vcombine.low %v10444_v7, %v10470_v39  ;;  %v13697_v7 = vcombine.low %v10473_v1, %v10498_v45  ;;  %v13700_v1 = vcombine.low %v10488_v47, %v10515_v40 }
 0x1ae   : > { %8237 = vmatprep.mubr.msk.f32.mxu0 %vm8830_vm0, %v13443_v37  ;;  %v8073_v0 = vpop.f32.mrf.mxu1  ;;  %v13702_v29 = vcombine.low %v10662_v61, %v10707_v46  ;;  %v13703_v47 = vcombine.low %v13655_v36, %v13654_v43  ;;  %v13704_v34 = vcombine.high %v13657_v62, %v13656_v54  ;;  %v11159_v46 = vld [vmem:[%s9058_s23 + $0x108] sm:$0xff]  ;;  %v11162_v61 = vld [vmem:[%s9058_s23 + $0x110] sm:$0xff] }
 0x1af   : > { %v2639_v5 = vpop.f32.mrf.mxu0  ;;  %v529_v43 = vld [vmem:[#allocation7 + $0x270] sm:$0xff] }
 0x1b0   : > { %4588 = vmatmul.mubr.f32.gmra.mxu1 %v4233_v13  ;;  %v11096_v15 = vpop.f32.mrf.mxu1  ;;  %v11099_v32 = vadd.f32 %v10934_v53, %v2639_v5  ;;  %v13706_v5 = vcombine.low %v13657_v62, %v13656_v54  ;;  %v13710_v54 = vcombine.low %v13659_v50, %v13658_v12 }
 0x1b1   : > { %8238 = vmatmul.mubr.f32.gmra.mxu0 %v13690_v57  ;;  %4592 = vmatprep.mubr.f32.mxu1 %v4237_v51  ;;  %v2641_v6 = vpop.f32.mrf.mxu0  ;;  %v514_v57 = vld [vmem:[#allocation7 + $0x1f8] sm:$0xff] }
 0x1b2   : > { %8240 = vmatprep.mubr.msk.f32.mxu0 %vm8830_vm0, %v13443_v37  ;;  %v8076_v13 = vpop.f32.mrf.mxu1  ;;  %v11178_v6 = vld [vmem:[%s9058_s23 + $0x118] sm:$0xff] }
 0x1b3   : > { %v2644_v51 = vpop.f32.mrf.mxu0  ;;  %v4122_v13 = vrot.slane %v11159_v46, 1 }
 0x1b4   : > { %4593 = vmatmul.mubr.f32.gmra.mxu1 %v4236_v10  ;;  %v11113_v53 = vadd.f32 %v10965_v24, %v2644_v51  ;;  %v11115_v9 = vpop.f32.mrf.mxu1 }
 0x1b5   : > { %8241 = vmatmul.mubr.f32.gmra.mxu0 %v13691_v56  ;;  %4597 = vmatprep.mubr.f32.mxu1 %v13692_v4  ;;  %v2646_v39 = vpop.f32.mrf.mxu0  ;;  %v13705_v4 = vcombine.low %v10712_v58, %v10728_v41  ;;  %v13708_v58 = vld [vmem:[#allocation36_spill] sm:$0xff] }
 0x1b6   : > { %8243 = vmatprep.mubr.msk.f32.mxu0 %vm8830_vm0, %v13443_v37  ;;  %v8079_v24 = vpop.f32.mrf.mxu1  ;;  %v13709_v41 = vcombine.low %v10731_v31, %v13708_v58  ;;  %v4128_v39 = vrot.slane %v11162_v61, 2 }
 0x1b7   : > { %v2649_v21 = vpop.f32.mrf.mxu0  ;;  %v4125_v24 = vrot.slane %v11178_v6, 1 }
 0x1b8   : > { %4598 = vmatmul.mubr.f32.gmra.mxu1 %v13694_v17  ;;  %v11129_v44 = vadd.f32 %v11003_v52, %v2649_v21  ;;  %v530_v52 = vld [vmem:[#allocation7 + $0x278] sm:$0xff]  ;;  %v513_v17 = vld [vmem:[#allocation7 + $0x1f0] sm:$0xff]  ;;  %v512_v21 = vld [vmem:[#allocation7 + $0x1e8] sm:$0xff] }
 0x1b9   : > { %8244 = vmatmul.mubr.f32.gmra.mxu0 %v13693_v2  ;;  %4602 = vmatprep.mubr.f32.mxu1 %v13695_v3  ;;  %v2651_v45 = vpop.f32.mrf.mxu0  ;;  %v4123_v2 = vrot.slane %v11162_v61, 1 }
 0x1ba   : > { %8246 = vmatprep.mubr.msk.f32.mxu0 %vm8830_vm0, %v13443_v37  ;;  %7664 = vmatprep.subr.mxu1 %v530_v52 }
 0x1bb   : > { %7665 = vmatpush3.msra.mxu1 %v514_v57  ;;  %v4124_v31 = vsel %vm13357_vm2, %v4122_v13, %v4123_v2  ;;  %v13716_v57 = vcombine.high %v13663_v11, %v13662_v18 }
 0x1bc   : > { %4603 = vmatmul.mubr.f32.gmra.mxu1 %v13697_v7  ;;  %7666 = vmatprep.subr.mxu1 %v529_v43  ;;  %v4127_v7 = vrot.slane %v11159_v46, 2  ;;  %v4132_v52 = vcombine.low %v11159_v46, %v4124_v31  ;;  %v13718_v43 = vld [vmem:[#allocation69_spill] sm:$0xff] }
 0x1bd   : > { %8247 = vmatmul.mubr.f32.gmra.mxu0 %v13696_v19  ;;  %4607 = vmatprep.mubr.f32.mxu1 %v13698_v27  ;;  %v13711_v19 = vcombine.high %v13661_v59, %v13660_v42  ;;  %v528_v27 = vld [vmem:[#allocation7 + $0x268] sm:$0xff] }
 0x1be   : > { %8249 = vmatprep.mubr.msk.f32.mxu0 %vm8830_vm0, %v13443_v37  ;;  %v11150_v40 = vpop.f32.mrf.mxu1  ;;  %v2654_v10 = vpop.f32.mrf.mxu0  ;;  %7667 = vmatpush3.msra.mxu1 %v513_v17  ;;  %v13722_v17 = vcombine.high %v13665_v16, %v13664_v60 }
 0x1bf   : > { %v11156_v0 = vadd.f32 %v11022_v23, %v2654_v10  ;;  %v13707_v23 = vcombine.high %v13659_v50, %v13658_v12  ;;  %7668 = vmatprep.subr.mxu1 %v528_v27  ;;  %v4130_v10 = vrot.slane %v11178_v6, 2 }
 0x1c0   : > { %4608 = vmatmul.mubr.f32.gmra.mxu1 %v13700_v1  ;;  %v8082_v36 = vpop.f32.mrf.mxu1  ;;  %v2656_v56 = vpop.f32.mrf.mxu0 }
 0x1c1   : > { %8250 = vmatmul.mubr.f32.gmra.mxu0 %v13699_v48  ;;  %4612 = vmatprep.mubr.f32.mxu1 %v13701_v25  ;;  %v13713_v48 = vld [vmem:[#allocation76_spill] sm:$0xff]  ;;  %v13715_v25 = vcombine.low %v13661_v59, %v13660_v42  ;;  %v13717_v42 = vld [vmem:[#allocation83_spill] sm:$0xff] }
 0x1c2   : > { %8252 = vmatprep.mubr.msk.f32.mxu0 %vm8830_vm0, %v13443_v37  ;;  %7669 = vmatpush3.msra.mxu1 %v512_v21  ;;  %v527_v59 = vld [vmem:[#allocation7 + $0x260] sm:$0xff]  ;;  %v13719_v36 = vcombine.low %v13717_v42, %v13718_v43 }
 0x1c3   : > { %7670 = vmatprep.subr.mxu1 %v527_v59  ;;  %v13732_v43 = vld [vmem:[#allocation108_spill] sm:$0xff] }
 0x1c4   : > { %4613 = vmatmul.mubr.f32.gmra.mxu1 %v13703_v47 }
 0x1c5   : > { %8253 = vmatmul.mubr.f32.gmra.mxu0 %v13702_v29  ;;  %4617 = vmatprep.mubr.f32.mxu1 %v13704_v34  ;;  %v4129_v29 = vsel %vm13352_vm1, %v4127_v7, %v4128_v39  ;;  %v4126_v34 = vsel %vm13357_vm2, %v4123_v2, %v4125_v24  ;;  %v4131_v7 = vsel %vm13352_vm1, %v4128_v39, %v4130_v10  ;;  %v13728_v39 = vld [vmem:[#allocation105_spill] sm:$0xff] }
 0x1c6   : > { %8255 = vmatprep.mubr.msk.f32.mxu0 %vm8830_vm0, %v13443_v37  ;;  %v11183_v62 = vpop.f32.mrf.mxu1  ;;  %v4167_v58 = vcombine.low %v11162_v61, %v4126_v34 }
 0x1c7   : > { %v2659_v3 = vpop.f32.mrf.mxu0 }
 0x1c8   : > { %4618 = vmatmul.mubr.f32.gmra.mxu1 %v13706_v5  ;;  %v11191_v51 = vadd.f32 %v11035_v63, %v2659_v3  ;;  %v8085_v12 = vpop.f32.mrf.mxu1  ;;  %v13712_v63 = vld [vmem:[#allocation68_spill] sm:$0xff]  ;;  %v4133_v5 = vcombine.high %v11159_v46, %v4124_v31  ;;  %v13724_v3 = vld [vmem:[#allocation103_spill] sm:$0xff]  ;;  %v4134_v31 = vcombine.high %v4129_v29, %v4129_v29 }
 0x1c9   : > { %8256 = vmatmul.mubr.f32.gmra.mxu0 %v13705_v4  ;;  %4622 = vmatprep.mubr.f32.mxu1 %v13707_v23  ;;  %v2661_v50 = vpop.f32.mrf.mxu0  ;;  %v13714_v1 = vcombine.low %v13712_v63, %v13713_v48  ;;  %v13720_v4 = vcombine.low %v13663_v11, %v13662_v18  ;;  %v13721_v23 = vld [vmem:[#allocation26_spill] sm:$0xff]  ;;  %v13725_v12 = vld [vmem:[#allocation85_spill] sm:$0xff]  ;;  %v13727_v63 = vcombine.low %v13665_v16, %v13664_v60  ;;  %v526_v60 = vld [vmem:[#allocation7 + $0x258] sm:$0xff] }
 0x1ca   : > { %8258 = vmatprep.mubr.msk.f32.mxu0 %vm8830_vm0, %v13443_v37  ;;  %v11203_v45 = vpop.f32.mrf.mxu1  ;;  %v4141_v13 = vrot.slane %v4132_v52, %v13721_v23  ;;  %v11230_v2 = vrot.slane %v4129_v29, %v13721_v23  ;;  %v13723_v18 = vld [vmem:[#allocation34_spill] sm:$0xff]  ;;  %v13726_v50 = vcombine.low %v10787_v26, %v13725_v12  ;;  %v11259_v48 = vrot.slane %v4133_v5, %v13721_v23  ;;  %v13733_v5 = vld [vmem:[#allocation45_spill] sm:$0xff] }
 0x1cb   : > { %v11240_v46 = vrot.slane %v13723_v18, %v13721_v23  ;;  %v4168_v26 = vcombine.high %v11162_v61, %v4126_v34  ;;  %v11269_v52 = vrot.slane %v4167_v58, %v13721_v23  ;;  %v11272_v16 = vrot.slane %v4131_v7, %v13721_v23  ;;  %v13731_v61 = vld [vmem:[#allocation107_spill] sm:$0xff] }
 0x1cc   : > { %4623 = vmatmul.mubr.f32.gmra.mxu1 %v13710_v54  ;;  %v8088_v47 = vpop.f32.mrf.mxu1  ;;  %v11277_v59 = vrot.slane %v4134_v31, %v13721_v23  ;;  %v4317_v34 = vrot.slane %v13731_v61, %v13721_v23  ;;  %v13741_v61 = vld [vmem:[#allocation44_spill] sm:$0xff] }
 0x1cd   : > { %8259 = vmatmul.mubr.f32.gmra.mxu0 %v13709_v41  ;;  %4627 = vmatprep.mubr.f32.mxu1 %v13711_v19  ;;  %v511_v41 = vld [vmem:[#allocation7 + $0x1e0] sm:$0xff]  ;;  %v11244_v19 = vrot.slane %v13724_v3, %v13721_v23 }
 0x1ce   : > { %8261 = vmatprep.mubr.msk.f32.mxu0 %vm8830_vm0, %v13443_v37  ;;  %v11222_v56 = vpop.f32.mrf.mxu1  ;;  %7671 = vmatpush3.msra.mxu1 %v511_v41  ;;  %v4166_v3 = vcombine.high %v11259_v48, %v11277_v59 }
 0x1cf   : > { %v4305_v47 = vcombine.high %v11240_v46, %v11244_v19  ;;  %7672 = vmatprep.subr.mxu1 %v526_v60 }
 0x1d0   : > { %4628 = vmatmul.mubr.f32.gmra.mxu1 %v13715_v25  ;;  %v8091_v11 = vpop.f32.mrf.mxu1 }
 0x1d1   : > { %8262 = vmatmul.mubr.f32.gmra.mxu0 %v13714_v1  ;;  %4632 = vmatprep.mubr.f32.mxu1 %v13716_v57  ;;  %v2664_v54 = vpop.f32.mrf.mxu0  ;;  %v4164_v1 = vcombine.high %v4141_v13, %v11230_v2  ;;  %v510_v57 = vld [vmem:[#allocation7 + $0x1d8] sm:$0xff]  ;;  %v13737_v11 = vld [vmem:[#allocation113_spill] sm:$0xff] }
 0x1d2   : > { %8264 = vmatprep.mubr.msk.f32.mxu0 %vm8830_vm0, %v13443_v37  ;;  %v11250_v27 = vadd.f32 %v11046_v33, %v2664_v54  ;;  %v13729_v33 = vld [vmem:[#allocation33_spill] sm:$0xff]  ;;  %7673 = vmatpush3.msra.mxu1 %v510_v57  ;;  %v509_v57 = vld [vmem:[#allocation7 + $0x1d0] sm:$0xff] }
 0x1d3   : > { %v2666_v21 = vpop.f32.mrf.mxu0  ;;  %v13730_v25 = vcombine.high %v13728_v39, %v13729_v33  ;;  %v13736_v54 = vcombine.low %v13728_v39, %v13729_v33  ;;  %v7468_v18 = vcombine.low %v4164_v1, %v11259_v48  ;;  %v525_v1 = vld [vmem:[#allocation7 + $0x250] sm:$0xff] }
 0x1d4   : > { %4633 = vmatmul.mubr.f32.gmra.mxu1 %v13720_v4  ;;  %v4169_v4 = vcombine.high %v4131_v7, %v4131_v7  ;;  %v13738_v7 = vld [vmem:[#allocation38_spill] sm:$0xff]  ;;  %v4202_v21 = vcombine.low %v11178_v6, %v4125_v24  ;;  %7674 = vmatprep.subr.mxu1 %v525_v1  ;;  %v508_v1 = vld [vmem:[#allocation7 + $0x1c8] sm:$0xff] }
 0x1d5   : > { %8265 = vmatmul.mubr.f32.gmra.mxu0 %v13719_v36  ;;  %4637 = vmatprep.mubr.f32.mxu1 %v13722_v17  ;;  %v2669_v29 = vpop.f32.mrf.mxu0  ;;  %v4331_v36 = vrot.slane %v13732_v43, %v13721_v23  ;;  %v13734_v17 = vld [vmem:[#allocation50_spill] sm:$0xff]  ;;  %v13739_v12 = vcombine.high %v10737_v22, %v13738_v7 }
 0x1d6   : > { %8267 = vmatprep.mubr.msk.f32.mxu0 %vm8830_vm0, %v13443_v37  ;;  %v11280_v42 = vadd.f32 %v11074_v38, %v2669_v29  ;;  %v13735_v58 = vcombine.low %v13733_v5, %v13734_v17  ;;  %v7466_v38 = vcombine.low %v13737_v11, %v4141_v13  ;;  %v4199_v13 = vcombine.high %v11269_v52, %v11272_v16  ;;  %v13740_v29 = vld [vmem:[#allocation96_spill] sm:$0xff]  ;;  %v13745_v11 = vld [vmem:[#allocation53_spill] sm:$0xff] }
 0x1d7   : > { %v2671_v41 = vpop.f32.mrf.mxu0  ;;  %v4340_v60 = vcombine.high %v4317_v34, %v4331_v36  ;;  %v13742_v43 = vcombine.low %v13740_v29, %v13741_v61  ;;  %v13743_v5 = vcombine.low %v10737_v22, %v13738_v7  ;;  %v4366_v17 = vrot.slane %v7468_v18, %v13721_v23  ;;  %7675 = vmatpush3.msra.mxu1 %v509_v57  ;;  %v546_v22 = vld [vmem:[#allocation7 + $0x2f8] sm:$0xff] }
 0x1d8   : > { %4638 = vmatmul.mubr.f32.gmra.mxu1 %v13727_v63  ;;  %8303 = vmatprep.subr.mxu0 %v546_v22  ;;  %v4339_v18 = vcombine.low %v4317_v34, %v4331_v36 }
 0x1d9   : > { %8268 = vmatmul.mubr.f32.gmra.mxu0 %v13726_v50  ;;  %4642 = vmatprep.mubr.f32.mxu1 %v13730_v25  ;;  %v11298_v31 = vpop.f32.mrf.mxu1  ;;  %v11304_v50 = vrot.slane %v4168_v26, %v13721_v23  ;;  %v4304_v25 = vcombine.low %v11240_v46, %v11244_v19  ;;  %v11317_v26 = vrot.slane %v4169_v4, %v13721_v23 }
 0x1da   : > { %8270 = vmatprep.mubr.msk.f32.mxu0 %vm8830_vm0, %v13443_v37  ;;  %v2674_v63 = vpop.f32.mrf.mxu0  ;;  %v7470_v46 = vcombine.low %v4166_v3, %v11269_v52  ;;  %8304 = vmatpush3.msra.mxu0 %v546_v22  ;;  %v13751_v22 = vcombine.low %v10902_v14, %v10913_v35  ;;  %v13753_v35 = vld [vmem:[#allocation106_spill] sm:$0xff] }
 0x1db   : > { %v8094_v39 = vpop.f32.mrf.mxu1  ;;  %v11312_v33 = vadd.f32 %v11086_v20, %v2674_v63  ;;  %v4352_v20 = vrot.slane %v7466_v38, %v13721_v23  ;;  %v7472_v19 = vcombine.low %v4199_v13, %v11304_v50  ;;  %v4201_v4 = vcombine.high %v11304_v50, %v11317_v26  ;;  %v524_v63 = vld [vmem:[#allocation7 + $0x248] sm:$0xff] }
 0x1dc   : > { %4643 = vmatmul.mubr.f32.gmra.mxu1 %v13736_v54  ;;  %v2676_v24 = vpop.f32.mrf.mxu0  ;;  %v13744_v54 = vld [vmem:[#allocation81_spill] sm:$0xff]  ;;  %7676 = vmatprep.subr.mxu1 %v524_v63 }
 0x1dd   : > { %8271 = vmatmul.mubr.f32.gmra.mxu0 %v13735_v58  ;;  %4647 = vmatprep.mubr.f32.mxu1 %v13739_v12  ;;  %v11334_v58 = vrot.slane %v4202_v21, %v13721_v23  ;;  %v13746_v38 = vcombine.low %v13744_v54, %v13745_v11  ;;  %v4375_v12 = vcombine.high %v4352_v20, %v4366_v17  ;;  %v13749_v24 = vld [vmem:[#allocation102_spill] sm:$0xff]  ;;  %v13754_v63 = vld [vmem:[#allocation109_spill] sm:$0xff] }
 0x1de   : > { %8273 = vmatprep.mubr.msk.f32.mxu0 %vm8830_vm0, %v13443_v37  ;;  %v4401_v13 = vrot.slane %v7472_v19, %v13721_v23  ;;  %7677 = vmatpush3.msra.mxu1 %v508_v1  ;;  %v4338_v1 = vrot.slane %v13754_v63, %v13721_v23 }
 0x1df   : > { %v11336_v41 = vpop.f32.mrf.mxu1  ;;  %v7474_v21 = vcombine.low %v4201_v4, %v11334_v58 }
 0x1e0   : > { %4648 = vmatmul.mubr.f32.gmra.mxu1 %v13743_v5  ;;  %v4289_v5 = vrot.slane %v13749_v24, %v13721_v23  ;;  %v13758_v24 = vld [vmem:[#allocation99_spill] sm:$0xff] }
 0x1e1   : > { %8274 = vmatmul.mubr.f32.gmra.mxu0 %v13742_v43  ;;  %4652 = vmatprep.mubr.f32.mxu1 %v4305_v47  ;;  %v4387_v47 = vrot.slane %v7470_v46, %v13721_v23  ;;  %v8097_v3 = vpop.f32.mrf.mxu1  ;;  %v2679_v7 = vpop.f32.mrf.mxu0  ;;  %v545_v43 = vld [vmem:[#allocation7 + $0x2f0] sm:$0xff]  ;;  %v13750_v46 = vld [vmem:[#allocation104_spill] sm:$0xff] }
 0x1e2   : > { %8276 = vmatprep.mubr.msk.f32.mxu0 %vm8830_vm0, %v13443_v37  ;;  %v11347_v39 = vadd.f32 %v11096_v15, %v2679_v7  ;;  %v4420_v15 = vrot.slane %v7474_v21, %v13721_v23  ;;  %v4303_v19 = vrot.slane %v13750_v46, %v13721_v23  ;;  %8305 = vmatprep.subr.mxu0 %v545_v43 }
 0x1e3   : > { %v11349_v34 = vpop.f32.mrf.mxu1  ;;  %v2681_v36 = vpop.f32.mrf.mxu0  ;;  %v4410_v61 = vcombine.high %v4387_v47, %v4401_v13  ;;  %8306 = vmatpush3.msra.mxu0 %v545_v43  ;;  %v4200_v43 = vcombine.low %v11304_v50, %v11317_v26 }
 0x1e4   : > { %4653 = vmatmul.mubr.f32.gmra.mxu1 %v4304_v25  ;;  %v13747_v25 = vld [vmem:[#allocation55_spill] sm:$0xff]  ;;  %v4428_v7 = vcombine.high %v4420_v15, %v4420_v15  ;;  %v4306_v21 = vcombine.low %v4289_v5, %v4303_v19 }
 0x1e5   : > { %8277 = vmatmul.mubr.f32.gmra.mxu0 %v13746_v38  ;;  %4657 = vmatprep.mubr.f32.mxu1 %v4340_v60  ;;  %v13748_v57 = vcombine.low %v13747_v25, %v10893_v30  ;;  %v4374_v60 = vcombine.low %v4352_v20, %v4366_v17  ;;  %v8100_v29 = vpop.f32.mrf.mxu1  ;;  %v523_v30 = vld [vmem:[#allocation7 + $0x240] sm:$0xff]  ;;  %v4165_v20 = vcombine.low %v11259_v48, %v11277_v59 }
 0x1e6   : > { %8279 = vmatprep.mubr.msk.f32.mxu0 %vm8830_vm0, %v13443_v37  ;;  %7678 = vmatprep.subr.mxu1 %v523_v30  ;;  %v507_v17 = vld [vmem:[#allocation7 + $0x1c0] sm:$0xff]  ;;  %v4409_v38 = vcombine.low %v4387_v47, %v4401_v13  ;;  %v13755_v47 = vld [vmem:[#allocation111_spill] sm:$0xff] }
 0x1e7   : > { %v2684_v4 = vpop.f32.mrf.mxu0  ;;  %7679 = vmatpush3.msra.mxu1 %v507_v17  ;;  %v7467_v13 = vcombine.low %v13755_v47, %v11230_v2  ;;  %v7469_v36 = vcombine.high %v11230_v2, %v4165_v20  ;;  %v13756_v25 = vld [vmem:[#allocation48_spill] sm:$0xff]  ;;  %v7473_v20 = vcombine.high %v11272_v16, %v4200_v43  ;;  %v521_v43 = vld [vmem:[#allocation7 + $0x230] sm:$0xff] }
 0x1e8   : > { %4658 = vmatmul.mubr.f32.gmra.mxu1 %v4339_v18  ;;  %v11367_v54 = vadd.f32 %v11115_v9, %v2684_v4  ;;  %v13752_v18 = vld [vmem:[#allocation97_spill] sm:$0xff]  ;;  %v4324_v9 = vrot.slane %v13753_v35, %v13721_v23 }
 0x1e9   : > { %8280 = vmatmul.mubr.f32.gmra.mxu0 %v13748_v57  ;;  %4662 = vmatprep.mubr.f32.mxu1 %v4375_v12  ;;  %v3825_v11 = vpop.f32.mrf.mxu1  ;;  %v2686_v48 = vpop.f32.mrf.mxu0  ;;  %v13757_v57 = vcombine.low %v13756_v25, %v10859_v8  ;;  %v4359_v19 = vrot.slane %v7467_v13, %v13721_v23  ;;  %v4373_v30 = vrot.slane %v7469_v36, %v13721_v23  ;;  %v506_v13 = vld [vmem:[#allocation7 + $0x1b8] sm:$0xff]  ;;  %v541_v36 = vld [vmem:[#allocation7 + $0x2d0] sm:$0xff] }
 0x1ea   : > { %8282 = vmatprep.mubr.msk.f32.mxu0 %vm8830_vm0, %v13443_v37  ;;  %v11372_v3 = vadd.f32 %v3825_v11, %v13752_v18  ;;  %v544_v18 = vld [vmem:[#allocation7 + $0x2e8] sm:$0xff] }
 0x1eb   : > { %v3827_v12 = vpop.f32.mrf.mxu1  ;;  %v2689_v14 = vpop.f32.mrf.mxu0  ;;  %v4376_v6 = vcombine.low %v4359_v19, %v4373_v30  ;;  %8307 = vmatprep.subr.mxu0 %v544_v18 }
 0x1ec   : > { %4663 = vmatmul.mubr.f32.gmra.mxu1 %v4374_v60  ;;  %v11385_v60 = vadd.f32 %v11150_v40, %v2689_v14  ;;  %v4341_v40 = vcombine.low %v4324_v9, %v4338_v1  ;;  %8308 = vmatpush3.msra.mxu0 %v544_v18  ;;  %v543_v12 = vld [vmem:[#allocation7 + $0x2e0] sm:$0xff]  ;;  %v542_v9 = vld [vmem:[#allocation7 + $0x2d8] sm:$0xff] }
 0x1ed   : > { %8283 = vmatmul.mubr.f32.gmra.mxu0 %v13751_v22  ;;  %4667 = vmatprep.mubr.f32.mxu1 %v4410_v61  ;;  %v3830_v29 = vpop.f32.mrf.mxu1  ;;  %v4198_v61 = vcombine.low %v11269_v52, %v11272_v16  ;;  %v2691_v5 = vpop.f32.mrf.mxu0  ;;  %v4216_v52 = vrot.slane %v4130_v10, %v13721_v23  ;;  %v4408_v16 = vrot.slane %v7473_v20, %v13721_v23 }
 0x1ee   : > { %8285 = vmatprep.mubr.msk.f32.mxu0 %vm8830_vm0, %v13443_v37  ;;  %v11394_v2 = vadd.f32 %v3830_v29, %v13758_v24  ;;  %8309 = vmatprep.subr.mxu0 %v543_v12  ;;  %v505_v24 = vld [vmem:[#allocation7 + $0x1b0] sm:$0xff]  ;;  %v539_v5 = vld [vmem:[#allocation7 + $0x2c0] sm:$0xff] }
 0x1ef   : > { %v3832_v8 = vpop.f32.mrf.mxu1  ;;  %v2694_v46 = vpop.f32.mrf.mxu0  ;;  %v7471_v4 = vcombine.high %v11277_v59, %v4198_v61  ;;  %8310 = vmatpush3.msra.mxu0 %v543_v12  ;;  %v540_v61 = vld [vmem:[#allocation7 + $0x2c8] sm:$0xff]  ;;  %v502_v12 = vld [vmem:[#allocation7 + $0x198] sm:$0xff] }
 0x1f0   : > { %4668 = vmatmul.mubr.f32.gmra.mxu1 %v4409_v38  ;;  %v11402_v50 = vadd.f32 %v11183_v62, %v2694_v46  ;;  %8311 = vmatprep.subr.mxu0 %v542_v9 }
 0x1f1   : > { %8286 = vmatmul.mubr.f32.gmra.mxu0 %v13757_v57  ;;  %4672 = vmatprep.mubr.f32.mxu1 %v4428_v7  ;;  %v2696_v17 = vpop.f32.mrf.mxu0  ;;  %v4394_v59 = vrot.slane %v7471_v4, %v13721_v23  ;;  %v522_v7 = vld [vmem:[#allocation7 + $0x238] sm:$0xff]  ;;  %v537_v4 = vld [vmem:[#allocation7 + $0x2b0] sm:$0xff] }
 0x1f2   : > { %8288 = vmatprep.mubr.msk.f32.mxu0 %vm8830_vm0, %v13443_v37  ;;  %7680 = vmatprep.subr.mxu1 %v522_v7 }
 0x1f3   : > { %v4411_v35 = vcombine.low %v4394_v59, %v4408_v16  ;;  %7681 = vmatpush3.msra.mxu1 %v506_v13  ;;  %8312 = vmatpush3.msra.mxu0 %v542_v9  ;;  %v519_v59 = vld [vmem:[#allocation7 + $0x220] sm:$0xff]  ;;  %v501_v9 = vld [vmem:[#allocation7 + $0x190] sm:$0xff]  ;;  %v532_v13 = vld [vmem:[#allocation7 + $0x288] sm:$0xff] }
 0x1f4   : > { %4673 = vmatmul.mubr.f32.gmra.mxu1 %v4420_v15  ;;  %v3835_v22 = vpop.f32.mrf.mxu1  ;;  %v2699_v38 = vpop.f32.mrf.mxu0  ;;  %v4217_v15 = vcombine.low %v11334_v58, %v4216_v52  ;;  %8313 = vmatprep.subr.mxu0 %v541_v36  ;;  %v520_v52 = vld [vmem:[#allocation7 + $0x228] sm:$0xff]  ;;  %v535_v16 = vld [vmem:[#allocation7 + $0x2a0] sm:$0xff] }
 0x1f5   : > { %8289 = vmatmul.mubr.f32.gmra.mxu0 %v4306_v21  ;;  %v11409_v11 = vadd.f32 %v3835_v22, %v11042_v28  ;;  %v11412_v62 = vadd.f32 %v11203_v45, %v2699_v38  ;;  %v13759_v21 = vld [vmem:[#allocation63_spill] sm:$0xff]  ;;  %7682 = vmatprep.subr.mxu1 %v521_v43  ;;  %v536_v22 = vld [vmem:[#allocation7 + $0x2a8] sm:$0xff]  ;;  %v499_v43 = vld [vmem:[#allocation7 + $0x180] sm:$0xff] }
 0x1f6   : > { %8291 = vmatprep.mubr.msk.f32.mxu0 %vm8830_vm0, %v13443_v37  ;;  %v3837_v10 = vpop.f32.mrf.mxu1  ;;  %v2701_v48 = vpop.f32.mrf.mxu0  ;;  %v7475_v58 = vcombine.high %v11317_v26, %v4217_v15  ;;  %8314 = vmatpush3.msra.mxu0 %v541_v36  ;;  %v503_v15 = vld [vmem:[#allocation7 + $0x1a0] sm:$0xff] }
 0x1f7   : > { %8315 = vmatprep.subr.mxu0 %v540_v61  ;;  %7683 = vmatpush3.msra.mxu1 %v505_v24 }
 0x1f8   : > { %v3840_v28 = vpop.f32.mrf.mxu1  ;;  %v4427_v29 = vrot.slane %v7475_v58, %v13721_v23  ;;  %8316 = vmatpush3.msra.mxu0 %v540_v61  ;;  %7684 = vmatprep.subr.mxu1 %v520_v52  ;;  %v531_v61 = vld [vmem:[#allocation7 + $0x280] sm:$0xff] }
 0x1f9   : > { %8292 = vmatmul.mubr.f32.gmra.mxu0 %v4341_v40  ;;  %v11420_v14 = vadd.f32 %v3840_v28, %v13759_v21  ;;  %v538_v40 = vld [vmem:[#allocation7 + $0x2b8] sm:$0xff]  ;;  %8317 = vmatprep.subr.mxu0 %v539_v5 }
 0x1fa   : > { %8294 = vmatprep.mubr.msk.f32.mxu0 %vm8830_vm0, %v13443_v37  ;;  %v3842_v45 = vpop.f32.mrf.mxu1  ;;  %v2704_v63 = vpop.f32.mrf.mxu0  ;;  %8318 = vmatpush3.msra.mxu0 %v539_v5  ;;  %v518_v28 = vld [vmem:[#allocation7 + $0x218] sm:$0xff] }
 0x1fb   : > { %v11426_v1 = vadd.f32 %v11222_v56, %v2704_v63  ;;  %8319 = vmatprep.subr.mxu0 %v538_v40 }
 0x1fc   : > { %v3845_v47 = vpop.f32.mrf.mxu1  ;;  %v2706_v57 = vpop.f32.mrf.mxu0  ;;  %8320 = vmatpush3.msra.mxu0 %v538_v40 }
 0x1fd   : > { %8295 = vmatmul.mubr.f32.gmra.mxu0 %v4376_v6  ;;  %v11429_v25 = vadd.f32 %v3845_v47, %v11063_v55  ;;  %8321 = vmatprep.subr.mxu0 %v537_v4  ;;  %v500_v57 = vld [vmem:[#allocation7 + $0x188] sm:$0xff] }
 0x1fe   : > { %8297 = vmatprep.mubr.msk.f32.mxu0 %vm8830_vm0, %v13443_v37  ;;  %v3847_v26 = vpop.f32.mrf.mxu1  ;;  %8322 = vmatpush3.msra.mxu0 %v537_v4 }
 0x1ff   : > { %8323 = vmatprep.subr.mxu0 %v536_v22 }
 0x200   : > { %v3850_v56 = vpop.f32.mrf.mxu1  ;;  %8324 = vmatpush3.msra.mxu0 %v536_v22 }
 0x201   : > { %8298 = vmatmul.mubr.f32.gmra.mxu0 %v4411_v35  ;;  %v11435_v55 = vadd.f32 %v3850_v56, %v11077_v49  ;;  %v2709_v8 = vpop.f32.mrf.mxu0  ;;  %8325 = vmatprep.subr.mxu0 %v535_v16  ;;  %v533_v35 = vld [vmem:[#allocation7 + $0x290] sm:$0xff] }
 0x202   : > { %8300 = vmatprep.mubr.msk.f32.mxu0 %vm8830_vm0, %v13443_v37  ;;  %v3852_v46 = vpop.f32.mrf.mxu1  ;;  %v11438_v19 = vadd.f32 %v11298_v31, %v2709_v8  ;;  %v504_v31 = vld [vmem:[#allocation7 + $0x1a8] sm:$0xff]  ;;  %8326 = vmatpush3.msra.mxu0 %v535_v16 }
 0x203   : > { %v2711_v37 = vpop.f32.mrf.mxu0  ;;  %7685 = vmatpush3.msra.mxu1 %v504_v31 }
 0x204   : > { %v3855_v30 = vpop.f32.mrf.mxu1  ;;  %7686 = vmatprep.subr.mxu1 %v519_v59 }
 0x205   : > { %8301 = vmatmul.mubr.f32.gmra.mxu0 %v4427_v29  ;;  %v11441_v20 = vadd.f32 %v3855_v30, %v11099_v32  ;;  %7687 = vmatpush3.msra.mxu1 %v503_v15 }
 0x206   : > { %v2714_v49 = vpop.f32.mrf.mxu0  ;;  %v3857_v17 = vpop.f32.mrf.mxu1  ;;  %7688 = vmatprep.subr.mxu1 %v518_v28 }
 0x207   : > { %v11444_v38 = vadd.f32 %v11336_v41, %v2714_v49  ;;  %v534_v41 = vld [vmem:[#allocation7 + $0x298] sm:$0xff]  ;;  %7689 = vmatpush3.msra.mxu1 %v502_v12 }
 0x208   : > { %v2716_v6 = vpop.f32.mrf.mxu0  ;;  %v3860_v10 = vpop.f32.mrf.mxu1  ;;  %8327 = vmatprep.subr.mxu0 %v534_v41 }
 0x209   : > { %v11447_v32 = vadd.f32 %v3860_v10, %v11113_v53  ;;  %v517_v53 = vld [vmem:[#allocation7 + $0x210] sm:$0xff]  ;;  %8328 = vmatpush3.msra.mxu0 %v534_v41 }
 0x20a   : > { %v2719_v18 = vpop.f32.mrf.mxu0  ;;  %v3862_v48 = vpop.f32.mrf.mxu1  ;;  %7690 = vmatprep.subr.mxu1 %v517_v53  ;;  %8329 = vmatprep.subr.mxu0 %v533_v35 }
 0x20b   : > { %v11450_v7 = vadd.f32 %v11349_v34, %v2719_v18  ;;  %7691 = vmatpush3.msra.mxu1 %v501_v9  ;;  %v516_v34 = vld [vmem:[#allocation7 + $0x208] sm:$0xff]  ;;  %8330 = vmatpush3.msra.mxu0 %v533_v35 }
 0x20c   : > { %v2721_v21 = vpop.f32.mrf.mxu0  ;;  %7692 = vmatprep.subr.mxu1 %v516_v34  ;;  %8331 = vmatprep.subr.mxu0 %v532_v13 }
 0x20d   : > { %v3865_v45 = vpop.f32.mrf.mxu1  ;;  %7693 = vmatpush3.msra.mxu1 %v500_v57  ;;  %8332 = vmatpush3.msra.mxu0 %v532_v13  ;;  %v11487_v57 = vld [vmem:[#allocation7 + $0x178] sm:$0xff] }
 0x20e   : > { %v11453_v58 = vadd.f32 %v3865_v45, %v11129_v44  ;;  %v515_v44 = vld [vmem:[#allocation7 + $0x200] sm:$0xff]  ;;  %8333 = vmatprep.subr.mxu0 %v531_v61 }
 0x20f   : > { %v4005_v63 = vpop.f32.mrf.mxu0  ;;  %v3867_v47 = vpop.f32.mrf.mxu1  ;;  %7694 = vmatprep.subr.mxu1 %v515_v44  ;;  %8334 = vmatpush3.msra.mxu0 %v531_v61 }
 0x210   : > { %v11456_v36 = vadd.f32 %v4005_v63, %v11372_v3  ;;  %7695 = vmatpush3.msra.mxu1 %v499_v43 }
 0x211   : > { %v8135_v26 = vpop.f32.mrf.mxu0  ;;  %v3870_v29 = vpop.f32.mrf.mxu1  ;;  %8359 = vmatprep.subr.mxu1 %v11487_v57 }
 0x212   : > { %v3871_v56 = vadd.f32 %v3870_v29, %v11156_v0 }
 0x213   : > { %v4010_v24 = vpop.f32.mrf.mxu0  ;;  %v3872_v5 = vpop.f32.mrf.mxu1 }
 0x214   : > { %v11460_v3 = vadd.f32 %v4010_v24, %v11394_v2 }
 0x215   : > { %v8138_v8 = vpop.f32.mrf.mxu0  ;;  %v3875_v46 = vpop.f32.mrf.mxu1 }
 0x216   : > { %v3876_v40 = vadd.f32 %v3875_v46, %v11191_v51 }
 0x217   : > { %v4015_v37 = vpop.f32.mrf.mxu0  ;;  %v3877_v30 = vpop.f32.mrf.mxu1 }
 0x218   : > { %v11464_v0 = vadd.f32 %v4015_v37, %v11409_v11 }
 0x219   : > { %v8141_v52 = vpop.f32.mrf.mxu0  ;;  %v3880_v4 = vpop.f32.mrf.mxu1 }
 0x21a   : > { %v3881_v49 = vadd.f32 %v3880_v4, %v11250_v27 }
 0x21b   : > { %v4020_v17 = vpop.f32.mrf.mxu0  ;;  %v3882_v22 = vpop.f32.mrf.mxu1 }
 0x21c   : > { %v11468_v2 = vadd.f32 %v4020_v17, %v11420_v14 }
 0x21d   : > { %v8144_v31 = vpop.f32.mrf.mxu0  ;;  %v3885_v6 = vpop.f32.mrf.mxu1 }
 0x21e   : > { %v3886_v10 = vadd.f32 %v3885_v6, %v11280_v42 }
 0x21f   : > { %v4025_v59 = vpop.f32.mrf.mxu0  ;;  %v3887_v51 = vpop.f32.mrf.mxu1 }
 0x220   : > { %v11472_v16 = vadd.f32 %v4025_v59, %v11429_v25 }
 0x221   : > { %v8147_v11 = vpop.f32.mrf.mxu0  ;;  %v3890_v15 = vpop.f32.mrf.mxu1 }
 0x222   : > { %v3891_v18 = vadd.f32 %v3890_v15, %v11312_v33 }
 0x223   : > { %v4030_v48 = vpop.f32.mrf.mxu0  ;;  %v3892_v27 = vpop.f32.mrf.mxu1 }
 0x224   : > { %v11476_v28 = vadd.f32 %v4030_v48, %v11435_v55 }
 0x225   : > { %v8150_v14 = vpop.f32.mrf.mxu0 }
 0x226   : > { %v3895_v41 = vpop.f32.mrf.mxu1 }
 0x227   : > { %v3896_v12 = vadd.f32 %v3895_v41, %v11347_v39  ;;  %v4035_v21 = vpop.f32.mrf.mxu0 }
 0x228   : > { %v3897_v42 = vpop.f32.mrf.mxu1  ;;  %v11480_v45 = vadd.f32 %v4035_v21, %v11441_v20 }
 0x229   : > { %v8153_v25 = vpop.f32.mrf.mxu0 }
 0x22a   : > { %v3900_v53 = vpop.f32.mrf.mxu1 }
 0x22b   : > { %v3901_v35 = vadd.f32 %v3900_v53, %v11367_v54 }
 0x22c   : > { %v4040_v9 = vpop.f32.mrf.mxu0  ;;  %v3902_v33 = vpop.f32.mrf.mxu1 }
 0x22d   : > { %v11484_v63 = vadd.f32 %v4040_v9, %v11447_v32 }
 0x22e   : > { %v8156_v55 = vpop.f32.mrf.mxu0  ;;  %v3905_v47 = vpop.f32.mrf.mxu1 }
 0x22f   : > { %v3906_v34 = vadd.f32 %v3905_v47, %v11385_v60  ;;  %v482_v47 = vld [vmem:[#allocation7 + $0xf8] sm:$0xff] }
 0x230   : > { %v4045_v13 = vpop.f32.mrf.mxu0  ;;  %v3907_v39 = vpop.f32.mrf.mxu1  ;;  %7776 = vmatprep.subr.mxu0 %v482_v47 }
 0x231   : > { %v11490_v20 = vadd.f32 %v4045_v13, %v11453_v58 }
 0x232   : > { %v8159_v26 = vpop.f32.mrf.mxu0  ;;  %v3910_v54 = vpop.f32.mrf.mxu1 }
 0x233   : > { %v3911_v29 = vadd.f32 %v3910_v54, %v11402_v50 }
 0x234   : > { %v4050_v44 = vpop.f32.mrf.mxu0  ;;  %v3912_v32 = vpop.f32.mrf.mxu1 }
 0x235   : > { %v11494_v61 = vadd.f32 %v4050_v44, %v3871_v56 }
 0x236   : > { %v8162_v43 = vpop.f32.mrf.mxu0  ;;  %v3915_v24 = vpop.f32.mrf.mxu1 }
 0x237   : > { %v3916_v60 = vadd.f32 %v3915_v24, %v11412_v62 }
 0x238   : > { %v4055_v5 = vpop.f32.mrf.mxu0  ;;  %v3917_v8 = vpop.f32.mrf.mxu1 }
 0x239   : > { %v11497_v46 = vadd.f32 %v4055_v5, %v3876_v40 }
 0x23a   : > { %v8165_v58 = vpop.f32.mrf.mxu0  ;;  %v3920_v37 = vpop.f32.mrf.mxu1 }
 0x23b   : > { %v3921_v30 = vadd.f32 %v3920_v37, %v11426_v1 }
 0x23c   : > { %v4060_v52 = vpop.f32.mrf.mxu0  ;;  %v3922_v4 = vpop.f32.mrf.mxu1 }
 0x23d   : > { %v11500_v17 = vadd.f32 %v4060_v52, %v3881_v49 }
 0x23e   : > { %v8168_v50 = vpop.f32.mrf.mxu0  ;;  %v3925_v22 = vpop.f32.mrf.mxu1 }
 0x23f   : > { %v3926_v56 = vadd.f32 %v3925_v22, %v11438_v19 }
 0x240   : > { %v4065_v31 = vpop.f32.mrf.mxu0  ;;  %v3927_v6 = vpop.f32.mrf.mxu1 }
 0x241   : > { %v11503_v59 = vadd.f32 %v4065_v31, %v3886_v10  ;;  %v595_v6 = vld [vmem:[#allocation9] sm:$0x1f] }
 0x242   : > { %v8171_v62 = vpop.f32.mrf.mxu0  ;;  %v3930_v51 = vpop.f32.mrf.mxu1 }
 0x243   : > { %v3931_v40 = vadd.f32 %v3930_v51, %v11444_v38 }
 0x244   : > { %v4070_v11 = vpop.f32.mrf.mxu0  ;;  %v3932_v15 = vpop.f32.mrf.mxu1 }
 0x245   : > { %v11506_v48 = vadd.f32 %v4070_v11, %v3891_v18 }
 0x246   : > { %v8174_v1 = vpop.f32.mrf.mxu0  ;;  %v3935_v27 = vpop.f32.mrf.mxu1 }
 0x247   : > { %v3936_v49 = vadd.f32 %v3935_v27, %v11450_v7 }
 0x248   : > { %v4075_v14 = vpop.f32.mrf.mxu0  ;;  %v3937_v41 = vpop.f32.mrf.mxu1 }
 0x249   : > { %v11509_v21 = vadd.f32 %v4075_v14, %v3896_v12 }
 0x24a   : > { %v8177_v19 = vpop.f32.mrf.mxu0 }
 0x24d   : > { %v4080_v42 = vpop.f32.mrf.mxu0 }
 0x24e   : > { %v11511_v10 = vadd.f32 %v4080_v42, %v3901_v35 }
 0x24f   : > { %v8180_v25 = vpop.f32.mrf.mxu0 }
 0x251   : > { %v4085_v53 = vpop.f32.mrf.mxu0 }
 0x252   : > { %v11513_v9 = vadd.f32 %v4085_v53, %v3906_v34 }
 0x253   : > { %v8183_v38 = vpop.f32.mrf.mxu0 }
 0x255   : > { %v4090_v33 = vpop.f32.mrf.mxu0 }
 0x256   : > { %v11515_v18 = vadd.f32 %v4090_v33, %v3911_v29  ;;  %v11544_v33 = vstv %s13766_s2 }
 0x257   : > { %v8186_v55 = vpop.f32.mrf.mxu0  ;;  %vm5439_vm6 = vcmp.ge.s32.totalorder %v11544_v33, 0  ;;  %vm5449_vm7 = vcmp.lt.s32.totalorder %v11544_v33, 16 }
 0x258   : > { %vm11647_vm12 = vmand %vm5439_vm6, %vm5449_vm7 }
 0x259   : > { %v4095_v13 = vpop.f32.mrf.mxu0 }
 0x25a   : > { %v11517_v7 = vadd.f32 %v4095_v13, %v3916_v60 }
 0x25b   : > { %v8189_v12 = vpop.f32.mrf.mxu0 }
 0x25c   : > { %13760 = vst [vmem:[#allocation100_spill] sm:$0xff] %v11517_v7  ;;  %v4564_v26 = vpop.f32.mrf.mxu1  ;;  %v5414_v12 = vadd.s32 2, %v11544_v33 }
 0x25d   : > { %v4100_v39 = vpop.f32.mrf.mxu0 }
 0x25e   : > { %v11519_v54 = vadd.f32 %v4100_v39, %v3921_v30  ;;  %v4566_v44 = vpop.f32.mrf.mxu1  ;;  %v13765_v30 = vld [vmem:[#allocation25_spill] sm:$0xff] }
 0x25f   : > { %v8192_v35 = vpop.f32.mrf.mxu0  ;;  %v4883_v22 = vsub.s32 0, %v13765_v30  ;;  %v4960_v1 = vsub.s32 2, %v13765_v30  ;;  %v5434_v13 = vadd.s32 16, %v13765_v30  ;;  %v5415_v44 = vadd.s32 3, %v11544_v33 }
 0x260   : > { %13761 = vst [vmem:[#allocation75_spill] sm:$0xff] %v11519_v54  ;;  %v4569_v34 = vpop.f32.mrf.mxu1 }
 0x261   : > { %v4105_v32 = vpop.f32.mrf.mxu0  ;;  %v11540_v53 = vrot.slane %v595_v6, %v4960_v1 }
 0x262   : > { %v11521_v43 = vadd.f32 %v4105_v32, %v3926_v56  ;;  %v4571_v29 = vpop.f32.mrf.mxu1  ;;  %v4910_v56 = vsub.s32 1, %v13765_v30  ;;  %v5416_v32 = vadd.s32 4, %v11544_v33 }
 0x263   : > { %v8195_v24 = vpop.f32.mrf.mxu0 }
 0x264   : > { %13762 = vst [vmem:[#allocation65_spill] sm:$0xff] %v11521_v43  ;;  %v4574_v8 = vpop.f32.mrf.mxu1  ;;  %v11535_v41 = vrot.slane %v595_v6, %v4910_v56  ;;  %v5417_v56 = vadd.s32 5, %v11544_v33 }
 0x265   : > { %v4110_v5 = vpop.f32.mrf.mxu0 }
 0x266   : > { %v11523_v58 = vadd.f32 %v4110_v5, %v3931_v40  ;;  %v4576_v60 = vpop.f32.mrf.mxu1  ;;  %v11531_v40 = vrot.slane %v595_v6, %v4883_v22  ;;  %v11564_v22 = vadd.s32 4294967295, %v11544_v33 }
 0x267   : > { %v8198_v37 = vpop.f32.mrf.mxu0  ;;  %v11557_v60 = vadd.s32 4294967295, %v13765_v30 }
 0x268   : > { %13763 = vst [vmem:[#allocation66_spill] sm:$0xff] %v11523_v58  ;;  %v4579_v4 = vpop.f32.mrf.mxu1 }
 0x269   : > { %v4115_v52 = vpop.f32.mrf.mxu0  ;;  %vm13351_vm9 = vcmp.ge.s32.totalorder %v11557_v60, 0 }
 0x26a   : > { %v11525_v50 = vadd.f32 %v4115_v52, %v3936_v49  ;;  %v4581_v62 = vpop.f32.mrf.mxu1  ;;  %v11559_v52 = vadd.s32 4294967295, %v5434_v13  ;;  %v5418_v13 = vadd.s32 6, %v11544_v33  ;;  %vm11669_vm14 = vmand %vm11647_vm12, %vm13351_vm9 }
 0x26b   : > { %v8201_v31 = vpop.f32.mrf.mxu0 }
 0x26c   : > { %13764 = vst [vmem:[#allocation70_spill] sm:$0xff] %v11525_v50  ;;  %v11529_v11 = vpop.f32.mrf.mxu1  ;;  %vm13330_vm0 = vcmp.lt.s32.totalorder %v11559_v52, 16 }
 0x26d   : > { %v4744_v51 = vpop.f32.mrf.mxu0  ;;  %vm11755_vm7 = vmand %vm11647_vm12, %vm13330_vm0 }
 0x26e   : > { %v4745_v15 = vadd.f32 %v4744_v51, %v4564_v26  ;;  %v4586_v14 = vpop.f32.mrf.mxu1 }
 0x26f   : > { %v8236_v27 = vpop.f32.mrf.mxu0  ;;  %v11574_v14 = vadd.s32 4294967295, %v5416_v32 }
 0x270   : > { %v4858_v49 = vadd.f32 %v4745_v15, %v11456_v36  ;;  %v11537_v42 = vpop.f32.mrf.mxu1  ;;  %v11572_v27 = vadd.s32 4294967295, %v5415_v44  ;;  %v11583_v44 = vadd.s32 4294967295, %v5417_v56 }
 0x271   : > { %v4749_v19 = vpop.f32.mrf.mxu0 }
 0x272   : > { %v4885_v25 = vmul.f32 %v11531_v40, %v4858_v49  ;;  %v4750_v38 = vadd.f32 %v4749_v19, %v4569_v34  ;;  %v4591_v47 = vpop.f32.mrf.mxu1 }
 0x273   : > { %v8239_v55 = vpop.f32.mrf.mxu0 }
 0x274   : > { %v4912_v36 = vadd.f32 %v11535_v41, %v4885_v25  ;;  %v4859_v39 = vadd.f32 %v4750_v38, %v11460_v3  ;;  %v11550_v35 = vpop.f32.mrf.mxu1  ;;  %v11561_v3 = vadd.s32 4294967295, %v5414_v12  ;;  %v5419_v12 = vadd.s32 7, %v11544_v33 }
 0x275   : > { %v4754_v26 = vpop.f32.mrf.mxu0 }
 0x276   : > { %vm4935_vm3 = vcmp.gt.f32.partialorder %v4912_v36, 0.0  ;;  %v4962_v34 = vmul.f32 %v11540_v53, %v4912_v36  ;;  %v4886_v24 = vmul.f32 %v11531_v40, %v4859_v39  ;;  %v4755_v29 = vadd.f32 %v4754_v26, %v4574_v8  ;;  %v4596_v37 = vpop.f32.mrf.mxu1 }
 0x277   : > { %v8242_v5 = vpop.f32.mrf.mxu0 }
 0x278   : > { %v4985_v31 = vsel %vm4935_vm3, %v4912_v36, %v4962_v34  ;;  %v4913_v6 = vadd.f32 %v11535_v41, %v4886_v24  ;;  %v4860_v62 = vadd.f32 %v4755_v29, %v11464_v0  ;;  %v11570_v1 = vpop.f32.mrf.mxu1 }
 0x279   : > { %v5031_v8 = vcombine.high %v4985_v31, %v4985_v31  ;;  %v5038_v51 = vrot.slane %v4985_v31, %v13721_v23  ;;  %v4759_v15 = vpop.f32.mrf.mxu0 }
 0x27a   : > { %vm4936_vm4 = vcmp.gt.f32.partialorder %v4913_v6, 0.0  ;;  %v4963_v49 = vmul.f32 %v11540_v53, %v4913_v6  ;;  %v4887_v19 = vmul.f32 %v11531_v40, %v4860_v62  ;;  %v4760_v25 = vadd.f32 %v4759_v15, %v4579_v4  ;;  %v4601_v47 = vpop.f32.mrf.mxu1 }
 0x27b   : > { %v5045_v0 = vrot.slane %v5031_v8, %v13721_v23  ;;  %v5046_v38 = vcombine.high %v5038_v51, %v5038_v51  ;;  %v8245_v55 = vpop.f32.mrf.mxu0  ;;  %v11592_v8 = vadd.s32 4294967295, %v5418_v13  ;;  %v11594_v15 = vadd.s32 4294967295, %v5419_v12 }
 0x27c   : > { %v4986_v36 = vsel %vm4936_vm4, %v4913_v6, %v4963_v49  ;;  %v4914_v39 = vadd.f32 %v11535_v41, %v4887_v19  ;;  %v4861_v26 = vadd.f32 %v4760_v25, %v11468_v2  ;;  %v11586_v24 = vpop.f32.mrf.mxu1  ;;  %vm5440_vm4 = vcmp.ge.s32.totalorder %v11561_v3, 0 }
 0x27d   : > { %v5048_v32 = vcombine.high %v4986_v36, %v4986_v36  ;;  %v5055_v34 = vrot.slane %v4986_v36, %v13721_v23  ;;  %v4764_v4 = vpop.f32.mrf.mxu0  ;;  %v5047_v29 = vcombine.high %v5045_v0, %v5045_v0  ;;  %v5594_v5 = vcombine.low %v5038_v51, %v5046_v38  ;;  %13767 = vst [vmem:[#allocation71_spill] sm:$0xff] %v11592_v8 }
 0x27e   : > { %vm4937_vm5 = vcmp.gt.f32.partialorder %v4914_v39, 0.0  ;;  %v4964_v37 = vmul.f32 %v11540_v53, %v4914_v39  ;;  %v4888_v31 = vmul.f32 %v11531_v40, %v4861_v26  ;;  %v4765_v6 = vadd.f32 %v4764_v4, %v11529_v11  ;;  %v4606_v56 = vpop.f32.mrf.mxu1  ;;  %13768 = vst [vmem:[#allocation84_spill] sm:$0xff] %v11594_v15 }
 0x27f   : > { %v5062_v62 = vrot.slane %v5048_v32, %v13721_v23  ;;  %v8248_v2 = vpop.f32.mrf.mxu0  ;;  %v5595_v49 = vcombine.low %v5045_v0, %v5047_v29  ;;  %v5063_v19 = vcombine.high %v5055_v34, %v5055_v34  ;;  %v5602_v12 = vrot.slane %v5594_v5, %v13721_v23 }
 0x280   : > { %v4987_v25 = vsel %vm4937_vm5, %v4914_v39, %v4964_v37  ;;  %v4915_v51 = vadd.f32 %v11535_v41, %v4888_v31  ;;  %v4862_v38 = vadd.f32 %v4765_v6, %v11472_v16  ;;  %v11603_v13 = vpop.f32.mrf.mxu1  ;;  %vm5450_vm5 = vcmp.lt.s32.totalorder %v11561_v3, 16 }
 0x281   : > { %v5065_v11 = vcombine.high %v4987_v25, %v4987_v25  ;;  %v11601_v55 = vrot.slane %v4987_v25, %v13721_v23  ;;  %v4769_v47 = vpop.f32.mrf.mxu0  ;;  %v5609_v0 = vrot.slane %v5595_v49, %v13721_v23  ;;  %v5064_v37 = vcombine.high %v5062_v62, %v5062_v62 }
 0x282   : > { %vm4938_vm8 = vcmp.gt.f32.partialorder %v4915_v51, 0.0  ;;  %v4965_v36 = vmul.f32 %v11540_v53, %v4915_v51  ;;  %v4889_v16 = vmul.f32 %v11531_v40, %v4862_v38  ;;  %v4770_v39 = vadd.f32 %v4769_v47, %v11537_v42  ;;  %v4611_v29 = vpop.f32.mrf.mxu1 }
 0x283   : > { %13769 = vst [vmem:[#allocation86_spill] sm:$0xff] %v11601_v55  ;;  %v5079_v26 = vrot.slane %v5065_v11, %v13721_v23  ;;  %v5080_v32 = vcombine.high %v11601_v55, %v11601_v55  ;;  %v8251_v4 = vpop.f32.mrf.mxu0  ;;  %v11613_v31 = vcombine.low %v5602_v12, %v5609_v0  ;;  %v11617_v56 = vcombine.low %v5055_v34, %v5063_v19 }
 0x284   : > { %v4988_v5 = vsel %vm4938_vm8, %v4915_v51, %v4965_v36  ;;  %v4916_v6 = vadd.f32 %v11535_v41, %v4889_v16  ;;  %v4863_v2 = vadd.f32 %v4770_v39, %v11476_v28  ;;  %v11620_v11 = vpop.f32.mrf.mxu1  ;;  %v11627_v39 = vcombine.low %v5062_v62, %v5064_v37 }
 0x285   : > { %13770 = vst [vmem:[#allocation89_spill] sm:$0xff] %v11613_v31  ;;  %13771 = vst [vmem:[#allocation101_spill] sm:$0xff] %v11617_v56  ;;  %v5081_v49 = vcombine.high %v5079_v26, %v5079_v26  ;;  %v5082_v25 = vcombine.high %v4988_v5, %v4988_v5  ;;  %v5089_v42 = vrot.slane %v4988_v5, %v13721_v23  ;;  %v4774_v38 = vpop.f32.mrf.mxu0 }
 0x286   : > { %v5635_v47 = vcombine.low %v5080_v32, %v5079_v26  ;;  %vm4939_vm10 = vcmp.gt.f32.partialorder %v4916_v6, 0.0  ;;  %v4966_v12 = vmul.f32 %v11540_v53, %v4916_v6  ;;  %v4890_v51 = vmul.f32 %v11531_v40, %v4863_v2  ;;  %v4616_v16 = vpop.f32.mrf.mxu1  ;;  %13772 = vst [vmem:[#allocation92_spill] sm:$0xff] %v11627_v39 }
 0x287   : > { %v4775_v0 = vadd.f32 %v4774_v38, %v11550_v35  ;;  %v5096_v28 = vrot.slane %v5082_v25, %v13721_v23  ;;  %v5097_v34 = vcombine.high %v5089_v42, %v5089_v42  ;;  %v5636_v19 = vcombine.low %v5081_v49, %v5089_v42  ;;  %v8254_v36 = vpop.f32.mrf.mxu0 }
 0x288   : > { %v4989_v4 = vsel %vm4939_vm10, %v4916_v6, %v4966_v12  ;;  %v4917_v29 = vadd.f32 %v11535_v41, %v4890_v51  ;;  %v5643_v32 = vrot.slane %v5635_v47, %v13721_v23  ;;  %v11636_v49 = vpop.f32.mrf.mxu1  ;;  %v13773_v47 = vmov 0  ;;  %vm11796_vm10 = vmand %vm5440_vm4, %vm5450_vm5 }
 0x289   : > { %v4864_v26 = vadd.f32 %v4775_v0, %v11480_v45  ;;  %v5098_v5 = vcombine.high %v5096_v28, %v5096_v28  ;;  %v5099_v30 = vcombine.high %v4989_v4, %v4989_v4  ;;  %v11633_v2 = vrot.slane %v4989_v4, %v13721_v23  ;;  %v4779_v35 = vpop.f32.mrf.mxu0  ;;  %vm11878_vm5 = vmand %vm11796_vm10, %vm13330_vm0 }
 0x28a   : > { %v5650_v25 = vrot.slane %v5636_v19, %v13721_v23  ;;  %vm4940_vm11 = vcmp.gt.f32.partialorder %v4917_v29, 0.0  ;;  %v4967_v62 = vmul.f32 %v11540_v53, %v4917_v29  ;;  %v4780_v6 = vadd.f32 %v4779_v35, %v11570_v1  ;;  %v4621_v51 = vpop.f32.mrf.mxu1 }
 0x28b   : > { %v4891_v37 = vmul.f32 %v11531_v40, %v4864_v26  ;;  %v5113_v45 = vrot.slane %v5099_v30, %v13721_v23  ;;  %v5653_v42 = vcombine.low %v5098_v5, %v11633_v2  ;;  %v8257_v38 = vpop.f32.mrf.mxu0  ;;  %v13774_v47 = vsel %vm11647_vm12, 4294967295, %v13773_v47 }
 0x28c   : > { %13775 = vst [vmem:[#allocation88_spill] sm:$0xff] %v13774_v47  ;;  %v11651_v12 = vcombine.low %v5643_v32, %v5650_v25  ;;  %v4990_v1 = vsel %vm4940_vm11, %v4917_v29, %v4967_v62  ;;  %v4865_v19 = vadd.f32 %v4780_v6, %v11484_v63  ;;  %v5652_v36 = vcombine.low %v5097_v34, %v5096_v28  ;;  %v11660_v32 = vpop.f32.mrf.mxu1  ;;  %vm11825_vm11 = vmand %vm11796_vm10, %vm13351_vm9 }
 0x28d   : > { %v4918_v30 = vadd.f32 %v11535_v41, %v4891_v37  ;;  %v5115_v4 = vcombine.high %v5113_v45, %v5113_v45  ;;  %v5116_v26 = vcombine.high %v4990_v1, %v4990_v1  ;;  %v5123_v5 = vrot.slane %v4990_v1, %v13721_v23  ;;  %v4784_v35 = vpop.f32.mrf.mxu0 }
 0x28e   : > { %13776 = vst [vmem:[#allocation54_spill] sm:$0xff] %v11651_v12  ;;  %v4892_v29 = vmul.f32 %v11531_v40, %v4865_v19  ;;  %v4785_v62 = vadd.f32 %v4784_v35, %v11586_v24  ;;  %v13777_v63 = vmov 0  ;;  %v5667_v38 = vrot.slane %v5653_v42, %v13721_v23  ;;  %v4626_v51 = vpop.f32.mrf.mxu1 }
 0x28f   : > { %vm4941_vm13 = vcmp.gt.f32.partialorder %v4918_v30, 0.0  ;;  %v4968_v25 = vmul.f32 %v11540_v53, %v4918_v30  ;;  %v13778_v63 = vsel %vm11669_vm14, 4294967295, %v13777_v63  ;;  %v11673_v28 = vcombine.low %v5113_v45, %v5115_v4  ;;  %v8260_v6 = vpop.f32.mrf.mxu0 }
 0x290   : > { %13779 = vst [vmem:[#allocation52_spill] sm:$0xff] %v13778_v63  ;;  %v5130_v34 = vrot.slane %v5116_v26, %v13721_v23  ;;  %v5131_v37 = vcombine.high %v5123_v5, %v5123_v5  ;;  %v4919_v24 = vadd.f32 %v11535_v41, %v4892_v29  ;;  %v4866_v19 = vadd.f32 %v4785_v62, %v11490_v20 }
 0x291   : > { %v11677_v1 = vsel %vm4941_vm13, %v4918_v30, %v4968_v25  ;;  %v5660_v35 = vrot.slane %v5652_v36, %v13721_v23  ;;  %v4789_v4 = vpop.f32.mrf.mxu0  ;;  %v11689_v42 = vsel %vm11669_vm14, %v11651_v12, 0.0  ;;  %v11691_v30 = vpop.f32.mrf.mxu1  ;;  %vm5441_vm13 = vcmp.ge.s32.totalorder %v11572_v27, 0 }
 0x292   : > { %v5132_v0 = vcombine.high %v5130_v34, %v5130_v34  ;;  %v11682_v16 = vcombine.low %v5123_v5, %v5131_v37  ;;  %v5140_v45 = vrot.slane %v11677_v1, %v13721_v23  ;;  %vm4942_vm15 = vcmp.gt.f32.partialorder %v4919_v24, 0.0 }
 0x293   : > { %v4969_v26 = vmul.f32 %v11540_v53, %v4919_v24  ;;  %v4893_v20 = vmul.f32 %v11531_v40, %v4866_v19  ;;  %v4790_v36 = vadd.f32 %v4789_v4, %v11603_v13  ;;  %v8263_v62 = vpop.f32.mrf.mxu0  ;;  %v11701_v37 = vcombine.low %v5660_v35, %v5667_v38  ;;  %v4631_v6 = vpop.f32.mrf.mxu1 }
 0x294   : > { %v5148_v29 = vcombine.high %v5140_v45, %v5140_v45  ;;  %v11703_v51 = vcombine.low %v5130_v34, %v5132_v0 }
 0x295   : > { %13780 = vst [vmem:[#allocation58_spill] sm:$0xff] %v11701_v37  ;;  %v4992_v56 = vsel %vm4942_vm15, %v4919_v24, %v4969_v26  ;;  %v4920_v19 = vadd.f32 %v11535_v41, %v4893_v20  ;;  %v4867_v13 = vadd.f32 %v4790_v36, %v11494_v61  ;;  %v4794_v39 = vpop.f32.mrf.mxu0  ;;  %v11715_v38 = vsel %vm11647_vm12, %v11701_v37, 0.0  ;;  %v11717_v35 = vpop.f32.mrf.mxu1 }
 0x296   : > { %v11707_v4 = vcombine.low %v5140_v45, %v5148_v29  ;;  %v5150_v55 = vcombine.high %v4992_v56, %v4992_v56  ;;  %v11710_v5 = vrot.slane %v4992_v56, %v13721_v23  ;;  %v4795_v61 = vadd.f32 %v4794_v39, %v11620_v11 }
 0x297   : > { %vm4943_vm3 = vcmp.gt.f32.partialorder %v4920_v19, 0.0  ;;  %v4970_v0 = vmul.f32 %v11540_v53, %v4920_v19  ;;  %v4894_v34 = vmul.f32 %v11531_v40, %v4867_v13  ;;  %v6093_v45 = vrot.slane %v11689_v42, 1  ;;  %v8266_v20 = vpop.f32.mrf.mxu0  ;;  %v4636_v36 = vpop.f32.mrf.mxu1 }
 0x298   : > { %v5164_v24 = vrot.slane %v5150_v55, %v13721_v23  ;;  %v13314_v26 = vrot.slane %v11715_v38, 1  ;;  %v5165_v29 = vcombine.high %v11710_v5, %v11710_v5  ;;  %v4868_v39 = vadd.f32 %v4795_v61, %v11497_v46 }
 0x299   : > { %v4993_v62 = vsel %vm4943_vm3, %v4920_v19, %v4970_v0  ;;  %v4921_v11 = vadd.f32 %v11535_v41, %v4894_v34  ;;  %v6149_v55 = vrot.slane %v11689_v42, 2  ;;  %v4799_v25 = vpop.f32.mrf.mxu0  ;;  %v11735_v50 = vpop.f32.mrf.mxu1  ;;  %v6150_v42 = vrot.slane %v11715_v38, 2 }
 0x29a   : > { %v5166_v6 = vcombine.high %v5164_v24, %v5164_v24  ;;  %v5167_v13 = vcombine.high %v4993_v62, %v4993_v62  ;;  %v5174_v56 = vrot.slane %v4993_v62, %v13721_v23  ;;  %v4895_v36 = vmul.f32 %v11531_v40, %v4868_v39  ;;  %v497_v62 = vld [vmem:[#allocation7 + $0x170] sm:$0xff] }
 0x29b   : > { %vm4944_vm6 = vcmp.gt.f32.partialorder %v4921_v11, 0.0  ;;  %v4971_v20 = vmul.f32 %v11540_v53, %v4921_v11  ;;  %v11742_v19 = vsel %vm13357_vm2, %v6093_v45, %v13314_v26  ;;  %v8269_v45 = vpop.f32.mrf.mxu0  ;;  %v4641_v39 = vpop.f32.mrf.mxu1  ;;  %v11768_v15 = vcombine.low %v5165_v29, %v5164_v24 }
 0x29c   : > { %13781 = vst [vmem:[#allocation91_spill] sm:$0xff] %v11742_v19  ;;  %v11745_v46 = vrot.slane %v5167_v13, %v13721_v23  ;;  %v5182_v0 = vcombine.high %v5174_v56, %v5174_v56  ;;  %v11747_v34 = vcombine.low %v5166_v6, %v5174_v56  ;;  %6281 = vmatprep.mubr.f32.mxu1 %v11742_v19  ;;  %vm5451_vm15 = vcmp.lt.s32.totalorder %v11572_v27, 16 }
 0x29d   : > { %v4994_v13 = vsel %vm4944_vm6, %v4921_v11, %v4971_v20  ;;  %v4922_v26 = vadd.f32 %v11535_v41, %v4895_v36  ;;  %7488 = vmatmul.mubr.msk.f32.vlgmr.msra.gmra.mxu1 %vm11669_vm14, %v11651_v12  ;;  %v13784_v56 = vcombine.high %v11633_v2, %v11633_v2  ;;  %v4800_v19 = vadd.f32 %v4799_v25, %v11636_v49  ;;  %v4804_v20 = vpop.f32.mrf.mxu0  ;;  %v496_v36 = vld [vmem:[#allocation7 + $0x168] sm:$0xff]  ;;  %v11775_v63 = vpop.f32.mrf.mxu1  ;;  %vm11929_vm6 = vmand %vm5441_vm13, %vm5451_vm15 }
 0x29e   : > { %v11771_v45 = vcombine.low %v5182_v0, %v11745_v46  ;;  %v5184_v39 = vcombine.high %v4994_v13, %v4994_v13  ;;  %v5191_v11 = vrot.slane %v4994_v13, %v13721_v23  ;;  %8360 = vmatpush3.msra.mxu1 %v11487_v57  ;;  %v495_v13 = vld [vmem:[#allocation7 + $0x160] sm:$0xff]  ;;  %v4805_v61 = vadd.f32 %v4804_v20, %v11660_v32  ;;  %vm11964_vm13 = vmand %vm11929_vm6, %vm13351_vm9 }
 0x29f   : > { %v5675_v6 = vrot.slane %v13784_v56, %v13721_v23  ;;  %vm4945_vm8 = vcmp.gt.f32.partialorder %v4922_v26, 0.0  ;;  %v4972_v2 = vmul.f32 %v11540_v53, %v4922_v26  ;;  %v11779_v56 = vsel %vm13352_vm1, %v6149_v55, %v6150_v42  ;;  %8361 = vmatprep.subr.mxu1 %v497_v62  ;;  %v8272_v0 = vpop.f32.mrf.mxu0  ;;  %v4646_v12 = vpop.f32.mrf.mxu1 }
 0x2a0   : > { %13785 = vst [vmem:[#allocation94_spill] sm:$0xff] %v11779_v56  ;;  %v5198_v24 = vrot.slane %v5184_v39, %v13721_v23  ;;  %v5199_v29 = vcombine.high %v5191_v11, %v5191_v11  ;;  %8335 = vmatprep.mubr.f32.mxu0 %v11779_v56  ;;  %8362 = vmatpush3.msra.mxu1 %v497_v62  ;;  %v13786_v62 = vmov 0  ;;  %v481_v0 = vld [vmem:[#allocation7 + $0xf0] sm:$0xff] }
 0x2a1   : > { %v6039_v49 = vsel %vm11755_vm7, %v5675_v6, 0.0  ;;  %v4995_v43 = vsel %vm4945_vm8, %v4922_v26, %v4972_v2  ;;  %v4869_v58 = vadd.f32 %v4800_v19, %v11500_v17  ;;  %8363 = vmatprep.subr.mxu1 %v496_v36  ;;  %v13787_v62 = vsel %vm11796_vm10, 4294967295, %v13786_v62  ;;  %v4809_v12 = vpop.f32.mrf.mxu0  ;;  %v11800_v17 = vpop.f32.mrf.mxu1 }
 0x2a2   : > { %v6152_v57 = vrot.slane %v6039_v49, 2  ;;  %v6096_v55 = vrot.slane %v6039_v49, 1  ;;  %v5200_v6 = vcombine.high %v5198_v24, %v5198_v24  ;;  %v11789_v54 = vcombine.low %v5191_v11, %v5199_v29  ;;  %13788 = vst [vmem:[#allocation60_spill] sm:$0xff] %v13787_v62  ;;  %8364 = vmatpush3.msra.mxu1 %v496_v36  ;;  %v466_v49 = vld [vmem:[#allocation7 + $0x78] sm:$0xff]  ;;  %v12014_v62 = vld [vmem:[#allocation7 + $0x120] sm:$0xff] }
 0x2a3   : > { %v5201_v25 = vcombine.high %v4995_v43, %v4995_v43  ;;  %v5208_v39 = vrot.slane %v4995_v43, %v13721_v23  ;;  %v4896_v26 = vmul.f32 %v11531_v40, %v4869_v58  ;;  %v4870_v19 = vadd.f32 %v4805_v61, %v11503_v59  ;;  %8365 = vmatprep.subr.mxu1 %v495_v13  ;;  %v8275_v2 = vpop.f32.mrf.mxu0  ;;  %v4651_v58 = vpop.f32.mrf.mxu1 }
 0x2a4   : > { %v11803_v32 = vsel %vm13352_vm1, %v6150_v42, %v6152_v57  ;;  %v5684_v43 = vrot.slane %v11673_v28, %v13721_v23  ;;  %v11809_v3 = vcombine.low %v5198_v24, %v5200_v6  ;;  %v13790_v36 = vrot.slane %v11715_v38, 1  ;;  %v494_v57 = vld [vmem:[#allocation7 + $0x158] sm:$0xff]  ;;  %8366 = vmatpush3.msra.mxu1 %v495_v13  ;;  %v493_v58 = vld [vmem:[#allocation7 + $0x150] sm:$0xff] }
 0x2a5   : > { %13789 = vst [vmem:[#allocation28_spill] sm:$0xff] %v11803_v32  ;;  %v5215_v11 = vrot.slane %v5201_v25, %v13721_v23  ;;  %v5216_v20 = vcombine.high %v5208_v39, %v5208_v39  ;;  %8336 = vmatmul.mubr.f32.vlgmr.msra.gmra.mxu0 %v11803_v32  ;;  %v4923_v59 = vadd.f32 %v11535_v41, %v4896_v26  ;;  %v11849_v26 = vpop.f32.mrf.mxu0  ;;  %vm5442_vm7 = vcmp.ge.s32.totalorder %v11574_v14, 0  ;;  %v584_v25 = vld [vmem:[#allocation7 + $0x428] sm:$0xff] }
 0x2a6   : > { %v11816_v42 = vsel %vm13357_vm2, %v13790_v36, %v6096_v55  ;;  %v4897_v28 = vmul.f32 %v11531_v40, %v4870_v19  ;;  %v13794_v38 = vrot.slane %v11682_v16, %v13721_v23  ;;  %v5701_v29 = vrot.slane %v11703_v51, %v13721_v23  ;;  %v11851_v19 = vpop.f32.mrf.mxu1  ;;  %7777 = vmatpush3.msra.mxu0 %v466_v49  ;;  %v492_v49 = vld [vmem:[#allocation7 + $0x148] sm:$0xff] }
 0x2a7   : > { %13791 = vst [vmem:[#allocation95_spill] sm:$0xff] %v11816_v42  ;;  %6286 = vmatprep.mubr.f32.mxu1 %v11816_v42  ;;  %v5217_v61 = vcombine.high %v5215_v11, %v5215_v11  ;;  %v11840_v6 = vcombine.low %v5208_v39, %v5216_v20  ;;  %v13795_v16 = vcombine.high %v11677_v1, %v11677_v1  ;;  %vm4946_vm3 = vcmp.gt.f32.partialorder %v4923_v59, 0.0  ;;  %v480_v1 = vld [vmem:[#allocation7 + $0xe8] sm:$0xff] }
 0x2a8   : > { %v11832_v24 = vcombine.low %v5684_v43, %v13794_v38  ;;  %7489 = vmatmul.mubr.msk.f32.gmra.mxu1 %vm11647_vm12, %v11701_v37  ;;  %v465_v43 = vld [vmem:[#allocation7 + $0x70] sm:$0xff]  ;;  %v4973_v36 = vmul.f32 %v11540_v53, %v4923_v59  ;;  %v4924_v39 = vadd.f32 %v11535_v41, %v4897_v28  ;;  %v13796_v20 = vrot.slane %v11707_v4, %v13721_v23  ;;  %v8278_v37 = vpop.f32.mrf.mxu0  ;;  %v4656_v28 = vpop.f32.mrf.mxu1  ;;  %v464_v4 = vld [vmem:[#allocation7 + $0x68] sm:$0xff] }
 0x2a9   : > { %v5147_v51 = vrot.slane %v13795_v16, %v13721_v23  ;;  %v11860_v38 = vcombine.low %v5215_v11, %v5217_v61  ;;  %v4810_v47 = vadd.f32 %v4809_v12, %v11691_v30  ;;  %8367 = vmatprep.subr.mxu1 %v494_v57  ;;  %7778 = vmatprep.subr.mxu0 %v481_v0  ;;  %vm5452_vm8 = vcmp.lt.s32.totalorder %v11574_v14, 16 }
 0x2aa   : > { %v11858_v2 = vcombine.low %v5701_v29, %v13796_v20  ;;  %v6040_v16 = vsel %vm11825_vm11, %v11832_v24, 0.0  ;;  %v4996_v29 = vsel %vm4946_vm3, %v4923_v59, %v4973_v36  ;;  %vm4947_vm4 = vcmp.gt.f32.partialorder %v4924_v39, 0.0  ;;  %8368 = vmatpush3.msra.mxu1 %v494_v57  ;;  %7779 = vmatpush3.msra.mxu0 %v465_v43  ;;  %v11882_v0 = vpop.f32.mrf.mxu0  ;;  %v11884_v57 = vpop.f32.mrf.mxu1  ;;  %v479_v43 = vld [vmem:[#allocation7 + $0xe0] sm:$0xff]  ;;  %vm11998_vm3 = vmand %vm11929_vm6, %vm13330_vm0 }
 0x2ab   : > { %v5149_v55 = vcombine.high %v5147_v51, %v5147_v51  ;;  %v4974_v13 = vmul.f32 %v11540_v53, %v4924_v39  ;;  %v5218_v61 = vcombine.high %v4996_v29, %v4996_v29  ;;  %v11872_v30 = vrot.slane %v4996_v29, %v13721_v23  ;;  %8369 = vmatprep.subr.mxu1 %v493_v58 }
 0x2ac   : > { %v6041_v11 = vsel %vm11796_vm10, %v11858_v2, 0.0  ;;  %v6098_v37 = vrot.slane %v6040_v16, 1  ;;  %7780 = vmatprep.subr.mxu0 %v480_v1  ;;  %v6154_v20 = vrot.slane %v6040_v16, 2  ;;  %v5716_v29 = vrot.slane %v5147_v51, %v13721_v23  ;;  %8370 = vmatpush3.msra.mxu1 %v493_v58  ;;  %v8281_v8 = vpop.f32.mrf.mxu0  ;;  %v4661_v1 = vpop.f32.mrf.mxu1  ;;  %v491_v16 = vld [vmem:[#allocation7 + $0x140] sm:$0xff] }
 0x2ad   : > { %v6099_v12 = vrot.slane %v6041_v11, 1  ;;  %v4997_v36 = vsel %vm4947_vm4, %v4924_v39, %v4974_v13  ;;  %v6155_v28 = vrot.slane %v6041_v11, 2  ;;  %7781 = vmatpush3.msra.mxu0 %v464_v4  ;;  %v5232_v42 = vrot.slane %v5218_v61, %v13721_v23  ;;  %8371 = vmatprep.subr.mxu1 %v492_v49  ;;  %v462_v4 = vld [vmem:[#allocation7 + $0x58] sm:$0xff] }
 0x2ae   : > { %v5233_v32 = vcombine.high %v11872_v30, %v11872_v30  ;;  %v5235_v56 = vcombine.high %v4997_v36, %v4997_v36  ;;  %v5242_v31 = vrot.slane %v4997_v36, %v13721_v23  ;;  %v5717_v51 = vcombine.low %v5149_v55, %v11710_v5  ;;  %8372 = vmatpush3.msra.mxu1 %v492_v49  ;;  %v4824_v61 = vpop.f32.mrf.mxu0 }
 0x2af   : > { %v11893_v7 = vsel %vm13357_vm2, %v6098_v37, %v6099_v12  ;;  %v11896_v39 = vsel %vm13352_vm1, %v6154_v20, %v6155_v28  ;;  %v6042_v58 = vsel %vm11878_vm5, %v5716_v29, 0.0  ;;  %7782 = vmatprep.subr.mxu0 %v479_v43  ;;  %v5234_v8 = vcombine.high %v5232_v42, %v5232_v42  ;;  %v11907_v37 = vpop.f32.mrf.mxu1  ;;  %8373 = vmatprep.subr.mxu1 %v491_v16  ;;  %v490_v29 = vld [vmem:[#allocation7 + $0x138] sm:$0xff] }
 0x2b0   : > { %v11904_v13 = vrot.slane %v5235_v56, %v13721_v23  ;;  %v5250_v11 = vcombine.high %v5242_v31, %v5242_v31  ;;  %6291 = vmatprep.mubr.f32.mxu1 %v11893_v7  ;;  %8338 = vmatprep.mubr.f32.mxu0 %v11896_v39  ;;  %v6157_v5 = vrot.slane %v6042_v58, 2  ;;  %v4871_v55 = vadd.f32 %v4810_v47, %v11506_v48  ;;  %v8284_v47 = vpop.f32.mrf.mxu0 }
 0x2b1   : > { %7490 = vmatmul.mubr.msk.f32.gmra.mxu1 %vm11825_vm11, %v11832_v24  ;;  %v6101_v49 = vrot.slane %v6042_v58, 1  ;;  %v4815_v56 = vadd.f32 %v11849_v26, %v11717_v35  ;;  %v11916_v59 = vcombine.low %v5233_v32, %v5232_v42  ;;  %v11918_v43 = vcombine.low %v5234_v8, %v5242_v31  ;;  %v4666_v35 = vpop.f32.mrf.mxu1 }
 0x2b2   : > { %v11921_v36 = vcombine.low %v5250_v11, %v11904_v13  ;;  %v13799_v48 = vmov 0  ;;  %v11934_v31 = vsel %vm13352_vm1, %v6155_v28, %v6157_v5  ;;  %v4898_v32 = vmul.f32 %v11531_v40, %v4871_v55  ;;  %8374 = vmatpush3.msra.mxu1 %v491_v16  ;;  %v4829_v58 = vpop.f32.mrf.mxu0  ;;  %v478_v5 = vld [vmem:[#allocation7 + $0xd8] sm:$0xff]  ;;  %v489_v55 = vld [vmem:[#allocation7 + $0x130] sm:$0xff] }
 0x2b3   : > { %v13800_v48 = vsel %vm11929_vm6, 4294967295, %v13799_v48  ;;  %v11938_v42 = vsel %vm13357_vm2, %v6099_v12, %v6101_v49  ;;  %v4872_v26 = vadd.f32 %v4815_v56, %v11509_v21  ;;  %8339 = vmatmul.mubr.f32.gmra.mxu0 %v11934_v31  ;;  %v5725_v27 = vrot.slane %v5717_v51, %v13721_v23  ;;  %v11950_v21 = vpop.f32.mrf.mxu1  ;;  %v463_v12 = vld [vmem:[#allocation7 + $0x60] sm:$0xff]  ;;  %8375 = vmatprep.subr.mxu1 %v490_v29 }
 0x2b4   : > { %13801 = vst [vmem:[#allocation29_spill] sm:$0xff] %v13800_v48  ;;  %6296 = vmatprep.mubr.f32.mxu1 %v11938_v42  ;;  %v5732_v1 = vrot.slane %v11768_v15, %v13721_v23  ;;  %v5749_v28 = vrot.slane %v11771_v45, %v13721_v23  ;;  %v11953_v16 = vadd.s32 8, %v11544_v33  ;;  %v4925_v8 = vadd.f32 %v11535_v41, %v4898_v32 }
 0x2b5   : > { %7491 = vmatmul.mubr.msk.f32.gmra.mxu1 %vm11796_vm10, %v11858_v2  ;;  %v4899_v15 = vmul.f32 %v11531_v40, %v4872_v26  ;;  %v13802_v45 = vmov 0  ;;  %v5183_v51 = vcombine.high %v11745_v46, %v11745_v46  ;;  %v4820_v11 = vadd.f32 %v11882_v0, %v11735_v50  ;;  %v8287_v26 = vpop.f32.mrf.mxu0  ;;  %v4671_v46 = vpop.f32.mrf.mxu1  ;;  %7783 = vmatpush3.msra.mxu0 %v463_v12 }
 0x2b6   : > { %v13803_v45 = vsel %vm11964_vm13, 4294967295, %v13802_v45  ;;  %v11972_v49 = vcombine.low %v5725_v27, %v5732_v1  ;;  %v13806_v56 = vrot.slane %v11747_v34, %v13721_v23  ;;  %v4825_v35 = vadd.f32 %v4824_v61, %v11775_v63  ;;  %8376 = vmatpush3.msra.mxu1 %v490_v29  ;;  %v477_v34 = vld [vmem:[#allocation7 + $0xd0] sm:$0xff]  ;;  %v488_v1 = vld [vmem:[#allocation7 + $0x128] sm:$0xff]  ;;  %7784 = vmatprep.subr.mxu0 %v478_v5 }
 0x2b7   : > { %13804 = vst [vmem:[#allocation61_spill] sm:$0xff] %v13803_v45  ;;  %v11981_v32 = vadd.f32 %v4829_v58, %v11800_v17  ;;  %vm4948_vm15 = vcmp.gt.f32.partialorder %v4925_v8, 0.0  ;;  %v4975_v50 = vmul.f32 %v11540_v53, %v4925_v8  ;;  %v4926_v0 = vadd.f32 %v11535_v41, %v4899_v15  ;;  %v12004_v58 = vpop.f32.mrf.mxu0  ;;  %8377 = vmatprep.subr.mxu1 %v489_v55  ;;  %v12006_v12 = vpop.f32.mrf.mxu1  ;;  %v461_v15 = vld [vmem:[#allocation7 + $0x50] sm:$0xff]  ;;  %v476_v46 = vld [vmem:[#allocation7 + $0xc8] sm:$0xff] }
 0x2b8   : > { %13805 = vst [vmem:[#allocation77_spill] sm:$0xff] %v11972_v49  ;;  %v11977_v47 = vcombine.low %v13806_v56, %v5749_v28  ;;  %v5757_v27 = vrot.slane %v5183_v51, %v13721_v23  ;;  %v6043_v63 = vsel %vm11964_vm13, %v11972_v49, 0.0  ;;  %v4873_v29 = vadd.f32 %v4820_v11, %v11511_v10  ;;  %7785 = vmatpush3.msra.mxu0 %v462_v4 }
 0x2b9   : > { %v4874_v28 = vadd.f32 %v4825_v35, %v11513_v9  ;;  %v4998_v51 = vsel %vm4948_vm15, %v4925_v8, %v4975_v50  ;;  %vm4949_vm4 = vcmp.gt.f32.partialorder %v4926_v0, 0.0  ;;  %v4976_v56 = vmul.f32 %v11540_v53, %v4926_v0  ;;  %8378 = vmatpush3.msra.mxu1 %v489_v55  ;;  %v8290_v5 = vpop.f32.mrf.mxu0  ;;  %7786 = vmatprep.subr.mxu0 %v477_v34  ;;  %v460_v35 = vld [vmem:[#allocation7 + $0x48] sm:$0xff]  ;;  %v4676_v8 = vpop.f32.mrf.mxu1 }
 0x2ba   : > { %13807 = vst [vmem:[#allocation31_spill] sm:$0xff] %v11977_v47  ;;  %v11992_v17 = vsel %vm11929_vm6, %v11977_v47, 0.0  ;;  %v6103_v26 = vrot.slane %v6043_v63, 1  ;;  %v5252_v20 = vcombine.high %v4998_v51, %v4998_v51  ;;  %v12011_v10 = vrot.slane %v4998_v51, %v13721_v23  ;;  %8379 = vmatprep.subr.mxu1 %v488_v1  ;;  %7787 = vmatpush3.msra.mxu0 %v461_v15 }
 0x2bb   : > { %v6104_v9 = vrot.slane %v11992_v17, 1  ;;  %v6159_v11 = vrot.slane %v6043_v63, 2  ;;  %v4999_v50 = vsel %vm4949_vm4, %v4926_v0, %v4976_v56  ;;  %v6160_v4 = vrot.slane %v11992_v17, 2  ;;  %8380 = vmatpush3.msra.mxu1 %v488_v1  ;;  %v12029_v56 = vpop.f32.mrf.mxu0  ;;  %7788 = vmatprep.subr.mxu0 %v476_v46  ;;  %v475_v46 = vld [vmem:[#allocation7 + $0xc0] sm:$0xff]  ;;  %vm12057_vm4 = vmand %vm5442_vm7, %vm5452_vm8 }
 0x2bc   : > { %v6045_v55 = vsel %vm11998_vm3, %v5757_v27, 0.0  ;;  %v4900_v51 = vmul.f32 %v11531_v40, %v4873_v29  ;;  %v5266_v63 = vrot.slane %v5252_v20, %v13721_v23  ;;  %v13810_v34 = vcombine.high %v11904_v13, %v11904_v13  ;;  %7789 = vmatpush3.msra.mxu0 %v460_v35  ;;  %8381 = vmatprep.subr.mxu1 %v12014_v62  ;;  %vm12091_vm7 = vmand %vm12057_vm4, %vm13351_vm9 }
 0x2bd   : > { %v5269_v8 = vcombine.high %v4999_v50, %v4999_v50  ;;  %v5276_v0 = vrot.slane %v4999_v50, %v13721_v23  ;;  %vm5438_vm5 = vcmp.ge.s32.totalorder %v11564_v22, 0  ;;  %vm5448_vm15 = vcmp.lt.s32.totalorder %v11564_v22, 16  ;;  %7790 = vmatprep.subr.mxu0 %v475_v46  ;;  %vm12113_vm8 = vmand %vm12057_vm4, %vm13330_vm0  ;;  %8382 = vmatpush3.msra.mxu1 %v12014_v62 }
 0x2be   : > { %v12026_v5 = vcombine.low %v13810_v34, %v12011_v10  ;;  %v12034_v27 = vsel %vm13357_vm2, %v6103_v26, %v6104_v9  ;;  %v12037_v20 = vsel %vm13352_vm1, %v6159_v11, %v6160_v4  ;;  %v6162_v1 = vrot.slane %v6045_v55, 2  ;;  %v8293_v26 = vpop.f32.mrf.mxu0 }
 0x2bf   : > { %13811 = vst [vmem:[#allocation39_spill] sm:$0xff] %v12034_v27  ;;  %v4927_v13 = vadd.f32 %v11535_v41, %v4900_v51  ;;  %v5268_v61 = vcombine.high %v5266_v63, %v5266_v63  ;;  %v5283_v29 = vrot.slane %v5269_v8, %v13721_v23  ;;  %v5284_v15 = vcombine.high %v5276_v0, %v5276_v0 }
 0x2c0   : > { %6301 = vmatprep.mubr.f32.mxu1 %v12034_v27  ;;  %8341 = vmatprep.mubr.f32.mxu0 %v12037_v20  ;;  %v12050_v11 = vsel %vm13352_vm1, %v6160_v4, %v6162_v1  ;;  %v6106_v50 = vrot.slane %v6045_v55, 1  ;;  %v13812_v51 = vmov 0  ;;  %v4901_v4 = vmul.f32 %v11531_v40, %v4874_v28  ;;  %v12067_v1 = vpop.f32.mrf.mxu0 }
 0x2c1   : > { %7492 = vmatmul.mubr.msk.f32.gmra.mxu1 %vm11964_vm13, %v11972_v49  ;;  %vm4950_vm3 = vcmp.gt.f32.partialorder %v4927_v13, 0.0  ;;  %v4977_v35 = vmul.f32 %v11540_v53, %v4927_v13  ;;  %v13813_v51 = vsel %vm12057_vm4, 4294967295, %v13812_v51  ;;  %v5285_v8 = vcombine.high %v5283_v29, %v5283_v29  ;;  %8342 = vmatmul.mubr.f32.gmra.mxu0 %v12050_v11 }
 0x2c2   : > { %13814 = vst [vmem:[#allocation30_spill] sm:$0xff] %v13813_v51  ;;  %v12063_v26 = vcombine.low %v5276_v0, %v5284_v15  ;;  %v12072_v14 = vsel %vm13357_vm2, %v6104_v9, %v6106_v50  ;;  %v4875_v17 = vadd.f32 %v11981_v32, %v11515_v18  ;;  %v5773_v34 = vrot.slane %v11809_v3, %v13721_v23  ;;  %v459_v0 = vld [vmem:[#allocation7 + $0x40] sm:$0xff]  ;;  %v8296_v3 = vpop.f32.mrf.mxu0  ;;  %v474_v32 = vld [vmem:[#allocation7 + $0xb8] sm:$0xff]  ;;  %v13846_v51 = vld [vmem:[#allocation66_spill] sm:$0xff] }
 0x2c3   : > { %v12069_v55 = vsel %vm4950_vm3, %v4927_v13, %v4977_v35  ;;  %13815 = vst [vmem:[#allocation64_spill] sm:$0xff] %v12072_v14  ;;  %v12078_v15 = vcombine.low %v5266_v63, %v5268_v61  ;;  %v12082_v45 = vcombine.low %v5283_v29, %v5285_v8  ;;  %6306 = vmatprep.mubr.f32.mxu1 %v12072_v14  ;;  %v13816_v18 = vmov 0  ;;  %v458_v50 = vld [vmem:[#allocation7 + $0x38] sm:$0xff]  ;;  %v473_v3 = vld [vmem:[#allocation7 + $0xb0] sm:$0xff] }
 0x2c4   : > { %v5293_v13 = vrot.slane %v12069_v55, %v13721_v23  ;;  %v13817_v18 = vsel %vm12091_vm7, 4294967295, %v13816_v18  ;;  %v4928_v9 = vadd.f32 %v11535_v41, %v4901_v4  ;;  %v4902_v63 = vmul.f32 %v11531_v40, %v4875_v17  ;;  %v486_v8 = vld [vmem:[#allocation7 + $0x118] sm:$0xff]  ;;  %7791 = vmatpush3.msra.mxu0 %v459_v0 }
 0x2c5   : > { %13818 = vst [vmem:[#allocation43_spill] sm:$0xff] %v13817_v18  ;;  %7493 = vmatmul.mubr.msk.f32.gmra.mxu1 %vm11929_vm6, %v11977_v47  ;;  %v13819_v61 = vrot.slane %v11789_v54, %v13721_v23  ;;  %v5790_v46 = vrot.slane %v11860_v38, %v13721_v23  ;;  %v5798_v54 = vrot.slane %v11872_v30, %v13721_v23  ;;  %v457_v30 = vld [vmem:[#allocation7 + $0x30] sm:$0xff]  ;;  %vm13868_vm6 = vcmask 1045504  }
 0x2c6   : > { %v5301_v4 = vcombine.high %v5293_v13, %v5293_v13  ;;  %v4835_v38 = vadd.f32 %v12004_v58, %v11851_v19  ;;  %vm4951_vm0 = vcmp.gt.f32.partialorder %v4928_v9, 0.0  ;;  %v4929_v28 = vadd.f32 %v11535_v41, %v4902_v63  ;;  %7792 = vmatprep.subr.mxu0 %v474_v32  ;;  %v485_v47 = vld [vmem:[#allocation7 + $0x110] sm:$0xff]  ;;  %8383 = vmatprep.subr.mxu1 %v486_v8 }
 0x2c7   : > { %v12105_v29 = vcombine.low %v13819_v61, %v5773_v34  ;;  %v12123_v34 = vpop.f32.mrf.mxu0  ;;  %v4978_v61 = vmul.f32 %v11540_v53, %v4928_v9  ;;  %v13823_v48 = vrot.slane %v11840_v6, %v13721_v23  ;;  %v6048_v0 = vsel %vm12113_vm8, %v5798_v54, 0.0  ;;  %7793 = vmatpush3.msra.mxu0 %v458_v50  ;;  %8384 = vmatpush3.msra.mxu1 %v486_v8  ;;  %vm12151_vm8 = vmand %vm5438_vm5, %vm5448_vm15  ;;  %v13827_v50 = vld [vmem:[#allocation100_spill] sm:$0xff]  ;;  %v12161_v8 = vld [vmem:[#allocation7 + $0x108] sm:$0xff] }
 0x2c8   : > { %v12133_v19 = vcombine.low %v5293_v13, %v5301_v4  ;;  %v4840_v63 = vadd.f32 %v12029_v56, %v11884_v57  ;;  %vm4952_vm3 = vcmp.gt.f32.partialorder %v4929_v28, 0.0  ;;  %v4979_v13 = vmul.f32 %v11540_v53, %v4929_v28  ;;  %7794 = vmatprep.subr.mxu0 %v473_v3  ;;  %v471_v3 = vld [vmem:[#allocation7 + $0xa0] sm:$0xff]  ;;  %8385 = vmatprep.subr.mxu1 %v485_v47  ;;  %v576_v57 = vld [vmem:[#allocation7 + $0x3e8] sm:$0xff] }
 0x2c9   : > { %13820 = vst [vmem:[#allocation35_spill] sm:$0xff] %v12105_v29  ;;  %v12130_v17 = vcombine.low %v13823_v48, %v5790_v46  ;;  %v6046_v58 = vsel %vm12091_vm7, %v12105_v29, 0.0  ;;  %v8299_v6 = vpop.f32.mrf.mxu0  ;;  %v472_v48 = vld [vmem:[#allocation7 + $0xa8] sm:$0xff]  ;;  %v5001_v62 = vsel %vm4951_vm0, %v4928_v9, %v4978_v61  ;;  %v4876_v4 = vadd.f32 %v4835_v38, %v13827_v50  ;;  %7795 = vmatpush3.msra.mxu0 %v457_v30  ;;  %vm12172_vm0 = vmand %vm12151_vm8, %vm13351_vm9 }
 0x2ca   : > { %v456_v46 = vld [vmem:[#allocation7 + $0x28] sm:$0xff]  ;;  %v5303_v56 = vcombine.high %v5001_v62, %v5001_v62  ;;  %v12156_v9 = vrot.slane %v5001_v62, %v13721_v23  ;;  %v6108_v35 = vrot.slane %v6046_v58, 1  ;;  %v5002_v22 = vsel %vm4952_vm3, %v4929_v28, %v4979_v13  ;;  %7796 = vmatprep.subr.mxu0 %v472_v48  ;;  %8386 = vmatpush3.msra.mxu1 %v485_v47 }
 0x2cb   : > { %13824 = vst [vmem:[#allocation110_spill] sm:$0xff] %v12130_v17  ;;  %v6047_v32 = vsel %vm12057_vm4, %v12130_v17, 0.0  ;;  %v12159_v54 = vpop.f32.mrf.mxu0  ;;  %v6164_v6 = vrot.slane %v6046_v58, 2  ;;  %v5320_v38 = vcombine.high %v5002_v22, %v5002_v22  ;;  %v5327_v50 = vrot.slane %v5002_v22, %v13721_v23  ;;  %7797 = vmatpush3.msra.mxu0 %v456_v46  ;;  %8387 = vmatprep.subr.mxu1 %v12161_v8 }
 0x2cc   : > { %v6109_v61 = vrot.slane %v6047_v32, 1  ;;  %v6165_v14 = vrot.slane %v6047_v32, 2  ;;  %v5317_v62 = vrot.slane %v5303_v56, %v13721_v23  ;;  %v5318_v49 = vcombine.high %v12156_v9, %v12156_v9  ;;  %v13831_v32 = vld [vmem:[#allocation71_spill] sm:$0xff]  ;;  %7798 = vmatprep.subr.mxu0 %v471_v3  ;;  %8388 = vmatpush3.msra.mxu1 %v12161_v8 }
 0x2cd   : > { %v8302_v30 = vpop.f32.mrf.mxu0  ;;  %v6167_v48 = vrot.slane %v6048_v0, 2  ;;  %v6111_v13 = vrot.slane %v6048_v0, 1  ;;  %vm13834_vm3 = vcmp.lt.s32.totalorder %v11583_v44, 16  ;;  %vm13835_vm5 = vcmp.ge.s32.totalorder %v11583_v44, 0  ;;  %v454_v44 = vld [vmem:[#allocation7 + $0x18] sm:$0xff] }
 0x2ce   : > { %v12177_v47 = vsel %vm13357_vm2, %v6108_v35, %v6109_v61  ;;  %v12180_v58 = vsel %vm13352_vm1, %v6164_v6, %v6165_v14  ;;  %v12187_v56 = vcombine.low %v5318_v49, %v5317_v62  ;;  %v5319_v22 = vcombine.high %v5317_v62, %v5317_v62  ;;  %v455_v6 = vld [vmem:[#allocation7 + $0x20] sm:$0xff]  ;;  %vm12208_vm15 = vmand %vm13835_vm5, %vm13834_vm3  ;;  %v13839_v30 = vld [vmem:[#allocation89_spill] sm:$0xff] }
 0x2cf   : > { %13830 = vst [vmem:[#allocation41_spill] sm:$0xff] %v12177_v47  ;;  %v12190_v35 = vrot.slane %v5320_v38, %v13721_v23  ;;  %6311 = vmatprep.mubr.f32.mxu1 %v12177_v47  ;;  %8344 = vmatprep.mubr.f32.mxu0 %v12180_v58  ;;  %v12198_v0 = vsel %vm13352_vm1, %v6165_v14, %v6167_v48  ;;  %v13836_v62 = vmov 0  ;;  %v470_v38 = vld [vmem:[#allocation7 + $0x98] sm:$0xff]  ;;  %v12215_v46 = vsel %vm12172_vm0, %v13839_v30, 0.0  ;;  %vm12237_vm5 = vmand %vm12208_vm15, %vm13351_vm9 }
 0x2d0   : > { %7494 = vmatmul.mubr.msk.f32.gmra.mxu1 %vm12091_vm7, %v12105_v29  ;;  %13832 = vst [vmem:[#allocation72_spill] sm:$0xff] %v12198_v0  ;;  %v12201_v3 = vsel %vm13357_vm2, %v6109_v61, %v6111_v13  ;;  %v4903_v49 = vmul.f32 %v11531_v40, %v4876_v4  ;;  %v13837_v62 = vsel %vm12208_vm15, 4294967295, %v13836_v62  ;;  %v5335_v14 = vcombine.high %v5327_v50, %v5327_v50  ;;  %v13840_v4 = vld [vmem:[#allocation75_spill] sm:$0xff] }
 0x2d1   : > { %13833 = vst [vmem:[#allocation112_spill] sm:$0xff] %v12201_v3  ;;  %13838 = vst [vmem:[#allocation74_spill] sm:$0xff] %v13837_v62  ;;  %v12217_v48 = vcombine.low %v5319_v22, %v5327_v50  ;;  %8345 = vmatmul.mubr.f32.gmra.mxu0 %v12198_v0  ;;  %6316 = vmatprep.mubr.f32.mxu1 %v12201_v3  ;;  %v4877_v61 = vadd.f32 %v4840_v63, %v13840_v4  ;;  %v12223_v13 = vadd.s32 4294967295, %v11953_v16  ;;  %v469_v22 = vld [vmem:[#allocation7 + $0x90] sm:$0xff]  ;;  %v13841_v16 = vmov 0 }
 0x2d2   : > { %v4930_v18 = vadd.f32 %v11535_v41, %v4903_v49  ;;  %v5807_v29 = vrot.slane %v11916_v59, %v13721_v23  ;;  %v5824_v47 = vrot.slane %v11921_v36, %v13721_v23  ;;  %v5267_v50 = vcombine.high %v12011_v10, %v12011_v10  ;;  %7799 = vmatpush3.msra.mxu0 %v455_v6  ;;  %v453_v10 = vld [vmem:[#allocation7 + $0x10] sm:$0xff] }
 0x2d3   : > { %v4904_v3 = vmul.f32 %v11531_v40, %v4877_v61  ;;  %v13842_v16 = vsel %vm12237_vm5, 4294967295, %v13841_v16  ;;  %v4845_v59 = vadd.f32 %v12067_v1, %v11907_v37  ;;  %v4850_v36 = vadd.f32 %v12123_v34, %v11950_v21  ;;  %7800 = vmatprep.subr.mxu0 %v470_v38  ;;  %v468_v1 = vld [vmem:[#allocation7 + $0x88] sm:$0xff]  ;;  %v483_v34 = vld [vmem:[#allocation7 + $0x100] sm:$0xff] }
 0x2d4   : > { %vm4953_vm3 = vcmp.gt.f32.partialorder %v4930_v18, 0.0  ;;  %v4980_v6 = vmul.f32 %v11540_v53, %v4930_v18  ;;  %7495 = vmatmul.mubr.msk.f32.gmra.mxu1 %vm12057_vm4, %v12130_v17  ;;  %v13843_v49 = vrot.slane %v11918_v43, %v13721_v23  ;;  %v13844_v37 = vrot.slane %v12026_v5, %v13721_v23  ;;  %7801 = vmatpush3.msra.mxu0 %v454_v44  ;;  %v452_v43 = vld [vmem:[#allocation7 + $0x8] sm:$0xff]  ;;  %v578_v44 = vld [vmem:[#allocation7 + $0x3f8] sm:$0xff] }
 0x2d5   : > { %v12261_v38 = vcombine.low %v5335_v14, %v12190_v35  ;;  %v4931_v61 = vadd.f32 %v11535_v41, %v4904_v3  ;;  %v5839_v63 = vrot.slane %v5267_v50, %v13721_v23  ;;  %v4879_v17 = vadd.f32 %v4850_v36, %v13846_v51  ;;  %7802 = vmatprep.subr.mxu0 %v469_v22  ;;  %v13850_v51 = vld [vmem:[#allocation65_spill] sm:$0xff] }
 0x2d6   : > { %v12253_v4 = vcombine.low %v5807_v29, %v13843_v49  ;;  %v12258_v21 = vcombine.low %v5824_v47, %v13844_v37  ;;  %v5003_v29 = vsel %vm4953_vm3, %v4930_v18, %v4980_v6  ;;  %vm13847_vm9 = vcmp.lt.s32.totalorder %v11559_v52, 16  ;;  %7803 = vmatpush3.msra.mxu0 %v453_v10  ;;  %v467_v18 = vld [vmem:[#allocation7 + $0x80] sm:$0xff]  ;;  %8389 = vmatprep.subr.mxu1 %v483_v34 }
 0x2d7   : > { %vm12276_vm1 = vmand %vm12208_vm15, %vm13847_vm9  ;;  %v4878_v14 = vadd.f32 %v4845_v59, %v13850_v51  ;;  %v5337_v50 = vcombine.high %v5003_v29, %v5003_v29  ;;  %v5344_v22 = vrot.slane %v5003_v29, %v13721_v23  ;;  %vm4954_vm3 = vcmp.gt.f32.partialorder %v4931_v61, 0.0  ;;  %7804 = vmatprep.subr.mxu0 %v468_v1  ;;  %v451_v6 = vld [vmem:[#allocation7] sm:$0xff]  ;;  %8390 = vmatpush3.msra.mxu1 %v483_v34 }
 0x2d8   : > { %13845 = vst [vmem:[#allocation80_spill] sm:$0xff] %v12258_v21  ;;  %v6049_v5 = vsel %vm12237_vm5, %v12253_v4, 0.0  ;;  %v6050_v47 = vsel %vm12208_vm15, %v12258_v21, 0.0  ;;  %v4981_v36 = vmul.f32 %v11540_v53, %v4931_v61  ;;  %7805 = vmatpush3.msra.mxu0 %v452_v43  ;;  %v6051_v29 = vsel %vm12276_vm1, %v5839_v63, 0.0  ;;  %7888 = vmatprep.subr.mxu1 %v578_v44  ;;  %v13857_v63 = vld [vmem:[#allocation84_spill] sm:$0xff] }
 0x2d9   : > { %v6113_v49 = vrot.slane %v6049_v5, 1  ;;  %v6114_v37 = vrot.slane %v6050_v47, 1  ;;  %v6169_v27 = vrot.slane %v6049_v5, 2  ;;  %v6170_v0 = vrot.slane %v6050_v47, 2  ;;  %7806 = vmatprep.subr.mxu0 %v467_v18 }
 0x2da   : > { %v12285_v59 = vrot.slane %v5337_v50, %v13721_v23  ;;  %v5352_v8 = vcombine.high %v5344_v22, %v5344_v22  ;;  %v5004_v10 = vsel %vm4954_vm3, %v4931_v61, %v4981_v36  ;;  %vm13851_vm9 = vcmp.lt.s32.totalorder %v13831_v32, 16  ;;  %7807 = vmatpush3.msra.mxu0 %v451_v6 }
 0x2db   : > { %vm13852_vm2 = vcmp.ge.s32.totalorder %v13831_v32, 0  ;;  %v13853_v1 = vmov 0  ;;  %v5354_v43 = vcombine.high %v5004_v10, %v5004_v10  ;;  %v5361_v34 = vrot.slane %v5004_v10, %v13721_v23  ;;  %v12306_v32 = vld [vmem:[#allocation7 + $0x478] sm:$0xff] }
 0x2dc   : > { %vm12293_vm4 = vmand %vm13852_vm2, %vm13851_vm9  ;;  %vm13855_vm7 = vcmask 1046528   ;;  %vm13856_vm3 = vcmask 1045504   ;;  %v6172_v3 = vrot.slane %v6051_v29, 2  ;;  %v6116_v51 = vrot.slane %v6051_v29, 1  ;;  %8415 = vmatprep.subr.mxu0 %v12306_v32 }
 0x2dd   : > { %v13854_v1 = vsel %vm12293_vm4, 4294967295, %v13853_v1  ;;  %v12299_v5 = vsel %vm13855_vm7, %v6113_v49, %v6114_v37  ;;  %v12302_v61 = vsel %vm13856_vm3, %v6169_v27, %v6170_v0  ;;  %v5848_v27 = vrot.slane %v12078_v15, %v13721_v23  ;;  %vm13861_vm9 = vmmov %vm13856_vm3 }
 0x2de   : > { %6321 = vmatprep.mubr.f32.mxu1 %v12299_v5  ;;  %8347 = vmatprep.mubr.f32.mxu0 %v12302_v61  ;;  %v12316_v44 = vcombine.low %v5344_v22, %v5352_v8  ;;  %v4905_v50 = vmul.f32 %v11531_v40, %v4878_v14  ;;  %v4906_v36 = vmul.f32 %v11531_v40, %v4879_v17  ;;  %vm13858_vm2 = vcmp.ge.s32.totalorder %v11557_v60, 0 }
 0x2df   : > { %7496 = vmatmul.mubr.msk.f32.gmra.mxu1 %vm12237_vm5, %v12253_v4  ;;  %vm12327_vm7 = vmand %vm12293_vm4, %vm13858_vm2  ;;  %v13859_v6 = vmov 0  ;;  %v12332_v15 = vsel %vm13861_vm9, %v6170_v0, %v6172_v3  ;;  %vm13862_vm3 = vcmask 1046528   ;;  %v13863_v49 = vrot.slane %v12063_v26, %v13721_v23 }
 0x2e0   : > { %v13860_v6 = vsel %vm12327_vm7, 4294967295, %v13859_v6  ;;  %v12335_v22 = vsel %vm13862_vm3, %v6114_v37, %v6116_v51  ;;  %v5865_v17 = vrot.slane %v12082_v45, %v13721_v23  ;;  %v12346_v8 = vrot.slane %v5354_v43, %v13721_v23  ;;  %8348 = vmatmul.mubr.f32.gmra.mxu0 %v12332_v15 }
 0x2e1   : > { %v12340_v14 = vcombine.low %v5848_v27, %v13863_v49  ;;  %v5369_v10 = vcombine.high %v5361_v34, %v5361_v34  ;;  %6326 = vmatprep.mubr.f32.mxu1 %v12335_v22  ;;  %v4932_v0 = vadd.f32 %v11535_v41, %v4905_v50  ;;  %v4933_v45 = vadd.f32 %v11535_v41, %v4906_v36 }
 0x2e2   : > { %v13864_v37 = vrot.slane %v12133_v19, %v13721_v23  ;;  %v13865_v3 = vcombine.high %v12069_v55, %v12069_v55  ;;  %vm13866_vm9 = vcmp.lt.s32.totalorder %v11559_v52, 16  ;;  %vm13896_vm5 = vcmask 1045504  }
 0x2e3   : > { %v6052_v43 = vsel %vm12327_vm7, %v12340_v14, 0.0  ;;  %vm4955_vm3 = vcmp.gt.f32.partialorder %v4932_v0, 0.0  ;;  %v4982_v27 = vmul.f32 %v11540_v53, %v4932_v0  ;;  %7497 = vmatmul.mubr.msk.f32.gmra.mxu1 %vm12208_vm15, %v12258_v21  ;;  %vm4956_vm2 = vcmp.gt.f32.partialorder %v4933_v45, 0.0  ;;  %vm5524_vm1 = vmand %vm12293_vm4, %vm13866_vm9 }
 0x2e4   : > { %v12358_v29 = vcombine.low %v5865_v17, %v13864_v37  ;;  %v5300_v51 = vrot.slane %v13865_v3, %v13721_v23  ;;  %v6118_v50 = vrot.slane %v6052_v43, 1  ;;  %v6174_v19 = vrot.slane %v6052_v43, 2 }
 0x2e5   : > { %v4983_v36 = vmul.f32 %v11540_v53, %v4933_v45  ;;  %v5005_v37 = vsel %vm4955_vm3, %v4932_v0, %v4982_v27  ;;  %v5370_v0 = vcombine.high %v12346_v8, %v12346_v8  ;;  %v12388_v27 = vcombine.low %v5361_v34, %v5369_v10 }
 0x2e6   : > { %v6053_v49 = vsel %vm12293_vm4, %v12358_v29, 0.0  ;;  %v5302_v17 = vcombine.high %v5300_v51, %v5300_v51  ;;  %v5880_v26 = vrot.slane %v5300_v51, %v13721_v23  ;;  %v5371_v47 = vcombine.high %v5005_v37, %v5005_v37 }
 0x2e7   : > { %v6119_v55 = vrot.slane %v6053_v49, 1  ;;  %v6175_v3 = vrot.slane %v6053_v49, 2  ;;  %v12381_v43 = vrot.slane %v5005_v37, %v13721_v23  ;;  %v12383_v18 = vsel %vm4956_vm2, %v4933_v45, %v4983_v36 }
 0x2e8   : > { %v5881_v62 = vcombine.low %v5302_v17, %v12156_v9  ;;  %vm13867_vm3 = vcmask 1046528   ;;  %v5388_v51 = vcombine.high %v12383_v18, %v12383_v18  ;;  %v12400_v45 = vrot.slane %v12383_v18, %v13721_v23 }
 0x2e9   : > { %v12391_v49 = vsel %vm13867_vm3, %v6118_v50, %v6119_v55  ;;  %v12394_v21 = vsel %vm13868_vm6, %v6174_v19, %v6175_v3  ;;  %v6054_v9 = vsel %vm5524_vm1, %v5880_v26, 0.0  ;;  %v4855_v34 = vadd.f32 %v12159_v54, %v12006_v12  ;;  %v13874_v54 = vld [vmem:[#allocation70_spill] sm:$0xff] }
 0x2ea   : > { %6331 = vmatprep.mubr.f32.mxu1 %v12391_v49  ;;  %8350 = vmatprep.mubr.f32.mxu0 %v12394_v21  ;;  %vm13869_vm2 = vcmp.lt.s32.totalorder %v13857_v63, 16  ;;  %vm13870_vm6 = vcmp.ge.s32.totalorder %v13857_v63, 0  ;;  %v13871_v10 = vmov 0  ;;  %v12415_v50 = vrot.slane %v5371_v47, %v13721_v23 }
 0x2eb   : > { %vm12410_vm9 = vmand %vm13870_vm6, %vm13869_vm2  ;;  %7498 = vmatmul.mubr.msk.f32.gmra.mxu1 %vm12327_vm7, %v12340_v14  ;;  %v6177_v26 = vrot.slane %v6054_v9, 2  ;;  %v6121_v12 = vrot.slane %v6054_v9, 1  ;;  %v4880_v19 = vadd.f32 %v4855_v34, %v13874_v54  ;;  %v5889_v63 = vrot.slane %v5881_v62, %v13721_v23 }
 0x2ec   : > { %v13872_v10 = vsel %vm12410_vm9, 4294967295, %v13871_v10  ;;  %v5896_v36 = vrot.slane %v12187_v56, %v13721_v23  ;;  %v5913_v47 = vrot.slane %v12261_v38, %v13721_v23  ;;  %vm13875_vm1 = vcmask 1045504  }
 0x2ed   : > { %13873 = vst [vmem:[#allocation78_spill] sm:$0xff] %v13872_v10  ;;  %v12429_v17 = vsel %vm13875_vm1, %v6175_v3, %v6177_v26  ;;  %v12432_v37 = vsel %vm13867_vm3, %v6119_v55, %v6121_v12  ;;  %vm13876_vm2 = vcmp.ge.s32.totalorder %v11557_v60, 0  ;;  %v13877_v9 = vmov 0 }
 0x2ee   : > { %vm12438_vm6 = vmand %vm12410_vm9, %vm13876_vm2  ;;  %v5336_v56 = vcombine.high %v12190_v35, %v12190_v35  ;;  %v13880_v62 = vcombine.high %v12285_v59, %v12285_v59  ;;  %8351 = vmatmul.mubr.f32.gmra.mxu0 %v12429_v17  ;;  %v4907_v55 = vmul.f32 %v11531_v40, %v4880_v19  ;;  %6336 = vmatprep.mubr.f32.mxu1 %v12432_v37  ;;  %vm13884_vm1 = vcmp.lt.s32.totalorder %v12223_v13, 16 }
 0x2ef   : > { %v13878_v9 = vsel %vm12438_vm6, 4294967295, %v13877_v9  ;;  %v12451_v3 = vcombine.low %v5889_v63, %v5896_v36  ;;  %v13882_v34 = vrot.slane %v12217_v48, %v13721_v23  ;;  %vm13885_vm3 = vcmp.ge.s32.totalorder %v12223_v13, 0  ;;  %7499 = vmatmul.mubr.msk.f32.gmra.mxu1 %vm12293_vm4, %v12358_v29 }
 0x2f0   : > { %13879 = vst [vmem:[#allocation46_spill] sm:$0xff] %v13878_v9  ;;  %v5923_v38 = vcombine.low %v12285_v59, %v13880_v62  ;;  %vm12462_vm2 = vmand %vm13885_vm3, %vm13884_vm1  ;;  %v5421_v59 = vadd.s32 9, %v11544_v33  ;;  %vm13888_vm7 = vcmp.lt.s32.totalorder %v11559_v52, 16  ;;  %v5921_v48 = vrot.slane %v5336_v56, %v13721_v23 }
 0x2f1   : > { %13881 = vst [vmem:[#allocation90_spill] sm:$0xff] %v12451_v3  ;;  %v12456_v26 = vcombine.low %v13882_v34, %v5913_v47  ;;  %vm12474_vm15 = vmand %vm12410_vm9, %vm13888_vm7  ;;  %v5930_v13 = vrot.slane %v12316_v44, %v13721_v23  ;;  %v5940_v33 = vcombine.low %v12346_v8, %v5370_v0  ;;  %v4934_v54 = vadd.f32 %v11535_v41, %v4907_v55 }
 0x2f2   : > { %v5937_v12 = vrot.slane %v5923_v38, %v13721_v23  ;;  %v6055_v19 = vsel %vm12438_vm6, %v12451_v3, 0.0  ;;  %v5947_v36 = vrot.slane %v12388_v27, %v13721_v23  ;;  %vm13891_vm7 = vcmp.ge.s32.totalorder %v11557_v60, 0 }
 0x2f3   : > { %13883 = vst [vmem:[#allocation51_spill] sm:$0xff] %v12456_v26  ;;  %v6056_v63 = vsel %vm12410_vm9, %v12456_v26, 0.0  ;;  %v6123_v47 = vrot.slane %v6055_v19, 1  ;;  %v6179_v44 = vrot.slane %v6055_v19, 2  ;;  %vm12496_vm1 = vmand %vm12462_vm2, %vm13891_vm7  ;;  %vm4957_vm3 = vcmp.gt.f32.partialorder %v4934_v54, 0.0 }
 0x2f4   : > { %v6124_v56 = vrot.slane %v6056_v63, 1  ;;  %v6180_v62 = vrot.slane %v6056_v63, 2  ;;  %v4984_v8 = vmul.f32 %v11540_v53, %v4934_v54  ;;  %v6057_v0 = vsel %vm12474_vm15, %v5921_v48, 0.0 }
 0x2f5   : > { %v12503_v38 = vcombine.low %v5930_v13, %v5937_v12  ;;  %vm13894_vm4 = vcmask 1046528   ;;  %v6182_v34 = vrot.slane %v6057_v0, 2  ;;  %v6126_v19 = vrot.slane %v6057_v0, 1 }
 0x2f6   : > { %v12506_v27 = vsel %vm13894_vm4, %v6123_v47, %v6124_v56  ;;  %v12509_v55 = vsel %vm13896_vm5, %v6179_v44, %v6180_v62  ;;  %vm13897_vm7 = vcmp.lt.s32.totalorder %v11559_v52, 16  ;;  %v5007_v63 = vsel %vm4957_vm3, %v4934_v54, %v4984_v8  ;;  %vm13898_vm4 = vmmov %vm13896_vm5  ;;  %v13901_v44 = vld [vmem:[#allocation92_spill] sm:$0xff] }
 0x2f7   : > { %13895 = vst [vmem:[#allocation57_spill] sm:$0xff] %v12506_v27  ;;  %vm5530_vm13 = vmand %vm12462_vm2, %vm13897_vm7  ;;  %6341 = vmatprep.mubr.f32.mxu1 %v12506_v27  ;;  %8353 = vmatprep.mubr.f32.mxu0 %v12509_v55  ;;  %v5954_v53 = vrot.slane %v5940_v33, %v13721_v23  ;;  %v6058_v40 = vsel %vm12496_vm1, %v12503_v38, 0.0  ;;  %v5962_v48 = vrot.slane %v12381_v43, %v13721_v23  ;;  %vm13899_vm15 = vcmask 1046528  }
 0x2f8   : > { %v5402_v13 = vrot.slane %v5388_v51, %v13721_v23  ;;  %v5403_v12 = vcombine.high %v12400_v45, %v12400_v45  ;;  %7500 = vmatmul.mubr.msk.f32.gmra.mxu1 %vm12438_vm6, %v12451_v3  ;;  %v12530_v54 = vsel %vm13898_vm4, %v6180_v62, %v6182_v34  ;;  %v12533_v33 = vsel %vm13899_vm15, %v6124_v56, %v6126_v19  ;;  %v13902_v62 = vld [vmem:[#allocation86_spill] sm:$0xff]  ;;  %vm13907_vm4 = vmmov %vm13899_vm15 }
 0x2f9   : > { %13900 = vst [vmem:[#allocation49_spill] sm:$0xff] %v12533_v33  ;;  %8354 = vmatmul.mubr.f32.gmra.mxu0 %v12530_v54  ;;  %6346 = vmatprep.mubr.f32.mxu1 %v12533_v33  ;;  %v12537_v47 = vcombine.low %v5947_v36, %v5954_v53  ;;  %v6060_v51 = vsel %vm5530_vm13, %v5962_v48, 0.0  ;;  %v5626_v8 = vrot.slane %v13901_v44, %v13721_v23  ;;  %v7484_v0 = vadd.s32 4294967295, %v5421_v59  ;;  %v13903_v33 = vld [vmem:[#allocation101_spill] sm:$0xff]  ;;  %vm13905_vm13 = vmmov %vm13897_vm7 }
 0x2fa   : > { %v5411_v18 = vrot.slane %v5007_v63, %v13721_v23  ;;  %v6203_v9 = vrot.slane %v6058_v40, 1  ;;  %v6210_v3 = vrot.slane %v6058_v40, 2  ;;  %v5634_v34 = vrot.slane %v13902_v62, %v13721_v23  ;;  %vm5506_vm5 = vmand %vm12151_vm8, %vm13905_vm13 }
 0x2fb   : > { %v6059_v56 = vsel %vm12462_vm2, %v12537_v47, 0.0  ;;  %v6213_v19 = vrot.slane %v6060_v51, 2  ;;  %v13904_v36 = vrot.slane %v13903_v33, %v13721_v23  ;;  %v5387_v59 = vcombine.high %v12415_v50, %v12415_v50  ;;  %vm13910_vm3 = vmmov %vm13907_vm4 }
 0x2fc   : > { %7501 = vmatmul.mubr.msk.f32.gmra.mxu1 %vm12410_vm9, %v12456_v26  ;;  %v6204_v63 = vrot.slane %v6059_v56, 1  ;;  %v6211_v40 = vrot.slane %v6059_v56, 2  ;;  %v6206_v48 = vrot.slane %v6060_v51, 1  ;;  %v5404_v44 = vcombine.high %v5402_v13, %v5402_v13 }
 0x2fd   : > { %v5627_v53 = vcombine.low %v13904_v36, %v5626_v8  ;;  %vm5457_vm7 = vcmp.lt.s32.totalorder %v7484_v0, 16  ;;  %v13906_v8 = vcombine.high %v12381_v43, %v12381_v43  ;;  %vm13908_vm15 = vcmask 1045504  }
 0x2fe   : > { %v12566_v36 = vsel %vm13907_vm4, %v6203_v9, %v6204_v63  ;;  %v12569_v10 = vsel %vm13908_vm15, %v6210_v3, %v6211_v40  ;;  %vm13909_vm13 = vmmov %vm13908_vm15  ;;  %v6036_v51 = vsel %vm5506_vm5, %v5634_v34, 0.0  ;;  %v12577_v26 = vsel %vm13910_vm3, %v6204_v63, %v6206_v48 }
 0x2ff   : > { %v6035_v33 = vsel %vm12151_vm8, %v5627_v53, 0.0  ;;  %v5963_v62 = vcombine.low %v13906_v8, %v12415_v50  ;;  %v12572_v56 = vsel %vm13909_vm13, %v6211_v40, %v6213_v19  ;;  %6351 = vmatprep.mubr.f32.mxu1 %v12566_v36  ;;  %8356 = vmatprep.mubr.f32.mxu0 %v12569_v10  ;;  %v5964_v50 = vcombine.low %v5387_v59, %v12400_v45  ;;  %vm13915_vm5 = vmmov %vm13910_vm3 }
 0x300   : > { %v6089_v27 = vrot.slane %v6035_v33, 1  ;;  %v6145_v43 = vrot.slane %v6035_v33, 2  ;;  %7502 = vmatmul.mubr.msk.f32.gmra.mxu1 %vm12496_vm1, %v12503_v38  ;;  %8357 = vmatmul.mubr.f32.gmra.mxu0 %v12572_v56  ;;  %vm13911_vm4 = vcmp.ge.s32.totalorder %v7484_v0, 0  ;;  %v5980_v3 = vcombine.low %v5403_v12, %v5402_v13  ;;  %vm13917_vm3 = vmmov %vm13909_vm13 }
 0x301   : > { %vm12585_vm15 = vmand %vm13911_vm4, %vm5457_vm7  ;;  %v5981_v34 = vcombine.low %v5404_v44, %v5411_v18  ;;  %v5412_v19 = vcombine.high %v5411_v18, %v5411_v18  ;;  %6356 = vmatprep.mubr.f32.mxu1 %v12577_v26  ;;  %v13914_v63 = vrot.slane %v12215_v46, 1  ;;  %v6091_v59 = vrot.slane %v6036_v51, 1 }
 0x302   : > { %v13916_v40 = vrot.slane %v12215_v46, 2  ;;  %v5971_v0 = vrot.slane %v5963_v62, %v13721_v23  ;;  %vm13918_vm7 = vcmp.lt.s32.totalorder %v11559_v52, 16  ;;  %v5978_v18 = vrot.slane %v5964_v50, %v13721_v23 }
 0x303   : > { %v6090_v45 = vsel %vm13915_vm5, %v13914_v63, %v6089_v27  ;;  %vm5533_vm13 = vmand %vm12585_vm15, %vm13918_vm7  ;;  %v5988_v13 = vrot.slane %v5980_v3, %v13721_v23  ;;  %v5995_v12 = vrot.slane %v5981_v34, %v13721_v23  ;;  %v6003_v44 = vrot.slane %v5412_v19, %v13721_v23  ;;  %v593_v23 = vld [vmem:[#allocation7 + $0x470] sm:$0xff] }
 0x304   : > { %v6146_v48 = vsel %vm13917_vm3, %v13916_v40, %v6145_v43  ;;  %6571 = vmatprep.mubr.f32.mxu0 %v6090_v45  ;;  %v6147_v33 = vrot.slane %v6036_v51, 2  ;;  %vm13919_vm4 = vcmp.ge.s32.totalorder %v11557_v60, 0  ;;  %7503 = vmatmul.mubr.msk.f32.gmra.mxu1 %vm12462_vm2, %v12537_v47  ;;  %vm13922_vm3 = vcmask 1046528   ;;  %v13925_v40 = vld [vmem:[#allocation94_spill] sm:$0xff] }
 0x305   : > { %vm12609_vm5 = vmand %vm12585_vm15, %vm13919_vm4  ;;  %7504 = vmatmul.mubr.msk.f32.vlgmr.msra.gmra.mxu0 %vm12172_vm0, %v13839_v30  ;;  %v6092_v52 = vsel %vm13922_vm3, %v6089_v27, %v6091_v59  ;;  %v12620_v8 = vcombine.low %v5971_v0, %v5978_v18  ;;  %v12622_v60 = vcombine.low %v5988_v13, %v5995_v12  ;;  %v6063_v62 = vsel %vm5533_vm13, %v6003_v44, 0.0  ;;  %8391 = vmatprep.mubr.f32.mxu1 %v6146_v48  ;;  %v562_v27 = vld [vmem:[#allocation7 + $0x378] sm:$0xff]  ;;  %v561_v48 = vld [vmem:[#allocation7 + $0x370] sm:$0xff] }
 0x306   : > { %6576 = vmatprep.mubr.f32.mxu0 %v6092_v52  ;;  %vm13923_vm7 = vcmask 1045504   ;;  %8416 = vmatpush3.msra.mxu0 %v12306_v32  ;;  %v6810_v30 = vrot.slane %v6063_v62, 2  ;;  %v577_v32 = vld [vmem:[#allocation7 + $0x3f0] sm:$0xff]  ;;  %v6803_v45 = vrot.slane %v6063_v62, 1  ;;  %v13924_v59 = vld [vmem:[#allocation91_spill] sm:$0xff]  ;;  %vm13926_vm0 = vmmov %vm13922_vm3 }
 0x307   : > { %v6148_v51 = vsel %vm13923_vm7, %v6145_v43, %v6147_v33  ;;  %v6061_v50 = vsel %vm12609_vm5, %v12620_v8, 0.0  ;;  %v6062_v28 = vsel %vm12585_vm15, %v12622_v60, 0.0  ;;  %8417 = vmatprep.subr.mxu0 %v593_v23  ;;  %v592_v43 = vld [vmem:[#allocation7 + $0x468] sm:$0xff]  ;;  %vm13927_vm13 = vmmov %vm13923_vm7  ;;  %v13930_v12 = vld [vmem:[#allocation54_spill] sm:$0xff] }
 0x308   : > { %v6800_v3 = vrot.slane %v6061_v50, 1  ;;  %v6801_v34 = vrot.slane %v6062_v28, 1  ;;  %v6807_v19 = vrot.slane %v6061_v50, 2  ;;  %v6808_v63 = vrot.slane %v6062_v28, 2  ;;  %8392 = vmatmul.mubr.f32.vlgmr.msra.gmra.mxu1 %v6148_v51  ;;  %vm13928_vm4 = vmmov %vm13923_vm7  ;;  %8418 = vmatpush3.msra.mxu0 %v593_v23  ;;  %v560_v33 = vld [vmem:[#allocation7 + $0x368] sm:$0xff]  ;;  %v13932_v52 = vld [vmem:[#allocation28_spill] sm:$0xff] }
 0x309   : > { %7505 = vmatmul.mubr.msk.f32.gmra.mxu0 %vm12151_vm8, %v5627_v53  ;;  %8394 = vmatprep.mubr.f32.mxu1 %v13925_v40  ;;  %vm13929_vm8 = vmmov %vm13926_vm0  ;;  %v575_v62 = vld [vmem:[#allocation7 + $0x3e0] sm:$0xff]  ;;  %v13933_v51 = vld [vmem:[#allocation95_spill] sm:$0xff] }
 0x30a   : > { %6581 = vmatprep.mubr.f32.mxu0 %v13924_v59  ;;  %v12637_v0 = vsel %vm13926_vm0, %v6800_v3, %v6801_v34  ;;  %v12640_v18 = vsel %vm13927_vm13, %v6807_v19, %v6808_v63  ;;  %v12643_v13 = vsel %vm13928_vm4, %v6808_v63, %v6810_v30  ;;  %7889 = vmatpush3.msra.mxu1 %v562_v27  ;;  %v559_v23 = vld [vmem:[#allocation7 + $0x360] sm:$0xff]  ;;  %v574_v50 = vld [vmem:[#allocation7 + $0x3d8] sm:$0xff]  ;;  %v13934_v28 = vld [vmem:[#allocation58_spill] sm:$0xff] }
 0x30b   : > { %v12646_v53 = vsel %vm13929_vm8, %v6801_v34, %v6803_v45  ;;  %7890 = vmatprep.subr.mxu1 %v577_v32  ;;  %8419 = vmatprep.subr.mxu0 %v592_v43  ;;  %v558_v27 = vld [vmem:[#allocation7 + $0x358] sm:$0xff]  ;;  %v573_v3 = vld [vmem:[#allocation7 + $0x3d0] sm:$0xff]  ;;  %v572_v19 = vld [vmem:[#allocation7 + $0x3c8] sm:$0xff]  ;;  %vm13954_vm0 = vnez %v13842_v16  ;;  %vm13959_vm13 = vnez %v13854_v1 }
 0x30c   : > { %7891 = vmatpush3.msra.mxu1 %v561_v48  ;;  %8420 = vmatpush3.msra.mxu0 %v592_v43  ;;  %v557_v34 = vld [vmem:[#allocation7 + $0x350] sm:$0xff]  ;;  %v556_v63 = vld [vmem:[#allocation7 + $0x348] sm:$0xff]  ;;  %v571_v32 = vld [vmem:[#allocation7 + $0x3c0] sm:$0xff] }
 0x30d   : > { %7506 = vmatmul.mubr.msk.f32.gmra.mxu0 %vm11669_vm14, %v13930_v12  ;;  %8395 = vmatmul.mubr.f32.gmra.mxu1 %v13932_v52  ;;  %v591_v43 = vld [vmem:[#allocation7 + $0x460] sm:$0xff]  ;;  %v570_v59 = vld [vmem:[#allocation7 + $0x3b8] sm:$0xff]  ;;  %v569_v12 = vld [vmem:[#allocation7 + $0x3b0] sm:$0xff] }
 0x30e   : > { %7892 = vmatprep.subr.mxu1 %v576_v57  ;;  %6586 = vmatprep.mubr.f32.mxu0 %v13933_v51  ;;  %v555_v45 = vld [vmem:[#allocation7 + $0x340] sm:$0xff]  ;;  %v554_v40 = vld [vmem:[#allocation7 + $0x338] sm:$0xff]  ;;  %v553_v52 = vld [vmem:[#allocation7 + $0x330] sm:$0xff] }
 0x30f   : > { %8397 = vmatprep.mubr.f32.mxu1 %v11896_v39  ;;  %7893 = vmatpush3.msra.mxu1 %v560_v33  ;;  %v13937_v57 = vld [vmem:[#allocation72_spill] sm:$0xff]  ;;  %v590_v44 = vld [vmem:[#allocation7 + $0x458] sm:$0xff]  ;;  %v552_v51 = vld [vmem:[#allocation7 + $0x328] sm:$0xff] }
 0x310   : > { %7894 = vmatprep.subr.mxu1 %v575_v62  ;;  %8421 = vmatprep.subr.mxu0 %v591_v43  ;;  %v13938_v33 = vld [vmem:[#allocation39_spill] sm:$0xff]  ;;  %v568_v62 = vld [vmem:[#allocation7 + $0x3a8] sm:$0xff]  ;;  %v589_v30 = vld [vmem:[#allocation7 + $0x450] sm:$0xff] }
 0x311   : > { %7507 = vmatmul.mubr.msk.f32.gmra.mxu0 %vm11647_vm12, %v13934_v28  ;;  %7895 = vmatpush3.msra.mxu1 %v559_v23  ;;  %v13939_v23 = vld [vmem:[#allocation77_spill] sm:$0xff]  ;;  %v567_v28 = vld [vmem:[#allocation7 + $0x3a0] sm:$0xff]  ;;  %v582_v48 = vld [vmem:[#allocation7 + $0x418] sm:$0xff] }
 0x312   : > { %6591 = vmatprep.mubr.f32.mxu0 %v11893_v7  ;;  %8398 = vmatmul.mubr.f32.gmra.mxu1 %v11934_v31 }
 0x313   : > { %7896 = vmatprep.subr.mxu1 %v574_v50  ;;  %8400 = vmatprep.mubr.f32.mxu1 %v12037_v20  ;;  %v13940_v50 = vld [vmem:[#allocation61_spill] sm:$0xff] }
 0x314   : > { %7897 = vmatpush3.msra.mxu1 %v558_v27  ;;  %8422 = vmatpush3.msra.mxu0 %v591_v43  ;;  %vm13941_vm12 = vnez %v13940_v50  ;;  %v13942_v27 = vld [vmem:[#allocation64_spill] sm:$0xff]  ;;  %v565_v43 = vld [vmem:[#allocation7 + $0x390] sm:$0xff] }
 0x315   : > { %7898 = vmatprep.subr.mxu1 %v573_v3  ;;  %7508 = vmatmul.mubr.msk.f32.gmra.mxu0 %vm11825_vm11, %v11832_v24  ;;  %v551_v3 = vld [vmem:[#allocation7 + $0x320] sm:$0xff]  ;;  %v13961_v50 = vld [vmem:[#allocation90_spill] sm:$0xff] }
 0x316   : > { %7899 = vmatpush3.msra.mxu1 %v557_v34  ;;  %6596 = vmatprep.mubr.f32.mxu0 %v11938_v42  ;;  %v566_v34 = vld [vmem:[#allocation7 + $0x398] sm:$0xff] }
 0x317   : > { %8401 = vmatmul.mubr.f32.gmra.mxu1 %v12050_v11  ;;  %7900 = vmatprep.subr.mxu1 %v572_v19  ;;  %v550_v19 = vld [vmem:[#allocation7 + $0x318] sm:$0xff] }
 0x318   : > { %8403 = vmatprep.mubr.f32.mxu1 %v12180_v58  ;;  %7901 = vmatpush3.msra.mxu1 %v556_v63  ;;  %v13943_v63 = vld [vmem:[#allocation31_spill] sm:$0xff] }
 0x319   : > { %7902 = vmatprep.subr.mxu1 %v571_v32  ;;  %7509 = vmatmul.mubr.msk.f32.gmra.mxu0 %vm11796_vm10, %v11858_v2  ;;  %v13944_v32 = vld [vmem:[#allocation29_spill] sm:$0xff] }
 0x31a   : > { %7903 = vmatpush3.msra.mxu1 %v555_v45  ;;  %6601 = vmatprep.mubr.f32.mxu0 %v13938_v33  ;;  %vm13945_vm14 = vnez %v13944_v32  ;;  %v588_v45 = vld [vmem:[#allocation7 + $0x448] sm:$0xff] }
 0x31b   : > { %8404 = vmatmul.mubr.f32.gmra.mxu1 %v13937_v57  ;;  %7904 = vmatprep.subr.mxu1 %v570_v59  ;;  %v13946_v59 = vld [vmem:[#allocation41_spill] sm:$0xff] }
 0x31c   : > { %8406 = vmatprep.mubr.f32.mxu1 %v12302_v61  ;;  %7905 = vmatpush3.msra.mxu1 %v554_v40  ;;  %v549_v40 = vld [vmem:[#allocation7 + $0x310] sm:$0xff]  ;;  %v580_v32 = vld [vmem:[#allocation7 + $0x408] sm:$0xff] }
 0x31d   : > { %7906 = vmatprep.subr.mxu1 %v569_v12  ;;  %8423 = vmatprep.subr.mxu0 %v590_v44  ;;  %v564_v12 = vld [vmem:[#allocation7 + $0x388] sm:$0xff] }
 0x31e   : > { %7907 = vmatpush3.msra.mxu1 %v553_v52  ;;  %8424 = vmatpush3.msra.mxu0 %v590_v44  ;;  %v548_v44 = vld [vmem:[#allocation7 + $0x308] sm:$0xff]  ;;  %v13947_v52 = vld [vmem:[#allocation35_spill] sm:$0xff] }
 0x31f   : > { %7510 = vmatmul.mubr.msk.f32.gmra.mxu0 %vm13941_vm12, %v13939_v23  ;;  %8407 = vmatmul.mubr.f32.gmra.mxu1 %v12332_v15 }
 0x320   : > { %7908 = vmatprep.subr.mxu1 %v568_v62  ;;  %6606 = vmatprep.mubr.f32.mxu0 %v13942_v27  ;;  %v13948_v62 = vld [vmem:[#allocation43_spill] sm:$0xff] }
 0x321   : > { %8409 = vmatprep.mubr.f32.mxu1 %v12394_v21  ;;  %7909 = vmatpush3.msra.mxu1 %v552_v51  ;;  %vm13949_vm3 = vnez %v13948_v62  ;;  %v563_v51 = vld [vmem:[#allocation7 + $0x380] sm:$0xff] }
 0x322   : > { %7910 = vmatprep.subr.mxu1 %v567_v28  ;;  %8425 = vmatprep.subr.mxu0 %v589_v30  ;;  %v587_v28 = vld [vmem:[#allocation7 + $0x440] sm:$0xff] }
 0x323   : > { %7911 = vmatpush3.msra.mxu1 %v551_v3  ;;  %8426 = vmatpush3.msra.mxu0 %v589_v30  ;;  %v13950_v30 = vld [vmem:[#allocation112_spill] sm:$0xff] }
 0x324   : > { %7511 = vmatmul.mubr.msk.f32.gmra.mxu0 %vm13945_vm14, %v13943_v63  ;;  %8410 = vmatmul.mubr.f32.gmra.mxu1 %v12429_v17  ;;  %v547_v3 = vld [vmem:[#allocation7 + $0x300] sm:$0xff] }
 0x325   : > { %7912 = vmatprep.subr.mxu1 %v566_v34  ;;  %6611 = vmatprep.mubr.f32.mxu0 %v13946_v59  ;;  %v586_v34 = vld [vmem:[#allocation7 + $0x438] sm:$0xff] }
 0x326   : > { %8412 = vmatprep.mubr.f32.mxu1 %v12509_v55  ;;  %7913 = vmatpush3.msra.mxu1 %v550_v19  ;;  %v13951_v19 = vld [vmem:[#allocation110_spill] sm:$0xff] }
 0x327   : > { %7914 = vmatprep.subr.mxu1 %v565_v43  ;;  %8427 = vmatprep.subr.mxu0 %v588_v45  ;;  %v13952_v43 = vld [vmem:[#allocation30_spill] sm:$0xff] }
 0x328   : > { %7915 = vmatpush3.msra.mxu1 %v549_v40  ;;  %8428 = vmatpush3.msra.mxu0 %v588_v45  ;;  %vm13953_vm7 = vnez %v13952_v43  ;;  %v13964_v45 = vld [vmem:[#allocation51_spill] sm:$0xff]  ;;  %v579_v40 = vld [vmem:[#allocation7 + $0x400] sm:$0xff] }
 0x329   : > { %7512 = vmatmul.mubr.msk.f32.gmra.mxu0 %vm13949_vm3, %v13947_v52  ;;  %8413 = vmatmul.mubr.f32.gmra.mxu1 %v12530_v54 }
 0x32a   : > { %7916 = vmatprep.subr.mxu1 %v564_v12  ;;  %6616 = vmatprep.mubr.f32.mxu0 %v13950_v30 }
 0x32b   : > { %7917 = vmatpush3.msra.mxu1 %v548_v44  ;;  %6878 = vmatprep.mubr.f32.mxu1 %v11893_v7  ;;  %v585_v7 = vld [vmem:[#allocation7 + $0x430] sm:$0xff] }
 0x32c   : > { %7918 = vmatprep.subr.mxu1 %v563_v51  ;;  %8429 = vmatprep.subr.mxu0 %v587_v28 }
 0x32d   : > { %7919 = vmatpush3.msra.mxu1 %v547_v3  ;;  %8430 = vmatpush3.msra.mxu0 %v587_v28 }
 0x32e   : > { %7513 = vmatmul.mubr.msk.f32.gmra.mxu0 %vm13953_vm7, %v13951_v19  ;;  %7520 = vmatmul.mubr.msk.f32.vlgmr.msra.gmra.mxu1 %vm11825_vm11, %v11832_v24  ;;  %v13955_v24 = vld [vmem:[#allocation80_spill] sm:$0xff] }
 0x32f   : > { %6621 = vmatprep.mubr.f32.mxu0 %v12299_v5  ;;  %6883 = vmatprep.mubr.f32.mxu1 %v11938_v42  ;;  %v13956_v42 = vld [vmem:[#allocation74_spill] sm:$0xff] }
 0x330   : > { %8431 = vmatprep.subr.mxu0 %v586_v34  ;;  %vm13957_vm11 = vnez %v13956_v42 }
 0x331   : > { %8432 = vmatpush3.msra.mxu0 %v586_v34 }
 0x332   : > { %7514 = vmatmul.mubr.msk.f32.gmra.mxu0 %vm13954_vm0, %v12253_v4  ;;  %7521 = vmatmul.mubr.msk.f32.gmra.mxu1 %vm11796_vm10, %v11858_v2  ;;  %v583_v2 = vld [vmem:[#allocation7 + $0x420] sm:$0xff]  ;;  %vm13958_vm10 = vnez %v13860_v6 }
 0x333   : > { %6626 = vmatprep.mubr.f32.mxu0 %v12335_v22  ;;  %6888 = vmatprep.mubr.f32.mxu1 %v13938_v33  ;;  %v13960_v33 = vld [vmem:[#allocation57_spill] sm:$0xff] }
 0x334   : > { %8433 = vmatprep.subr.mxu0 %v585_v7 }
 0x335   : > { %8434 = vmatpush3.msra.mxu0 %v585_v7 }
 0x336   : > { %7515 = vmatmul.mubr.msk.f32.gmra.mxu0 %vm13957_vm11, %v13955_v24  ;;  %7522 = vmatmul.mubr.msk.f32.gmra.mxu1 %vm13941_vm12, %v13939_v23  ;;  %v581_v23 = vld [vmem:[#allocation7 + $0x410] sm:$0xff] }
 0x337   : > { %6631 = vmatprep.mubr.f32.mxu0 %v12391_v49  ;;  %6893 = vmatprep.mubr.f32.mxu1 %v13942_v27 }
 0x338   : > { %8435 = vmatprep.subr.mxu0 %v584_v25 }
 0x339   : > { %8436 = vmatpush3.msra.mxu0 %v584_v25 }
 0x33a   : > { %7516 = vmatmul.mubr.msk.f32.gmra.mxu0 %vm13958_vm10, %v12340_v14  ;;  %7523 = vmatmul.mubr.msk.f32.gmra.mxu1 %vm13945_vm14, %v13943_v63  ;;  %v13963_v63 = vld [vmem:[#allocation49_spill] sm:$0xff] }
 0x33b   : > { %6636 = vmatprep.mubr.f32.mxu0 %v12432_v37  ;;  %6898 = vmatprep.mubr.f32.mxu1 %v13946_v59 }
 0x33c   : > { %8437 = vmatprep.subr.mxu0 %v583_v2 }
 0x33d   : > { %8438 = vmatpush3.msra.mxu0 %v583_v2 }
 0x33e   : > { %7517 = vmatmul.mubr.msk.f32.gmra.mxu0 %vm13959_vm13, %v12358_v29  ;;  %7524 = vmatmul.mubr.msk.f32.gmra.mxu1 %vm13949_vm3, %v13947_v52 }
 0x33f   : > { %6641 = vmatprep.mubr.f32.mxu0 %v13960_v33  ;;  %6903 = vmatprep.mubr.f32.mxu1 %v13950_v30 }
 0x340   : > { %8439 = vmatprep.subr.mxu0 %v582_v48 }
 0x341   : > { %8440 = vmatpush3.msra.mxu0 %v582_v48 }
 0x342   : > { %7518 = vmatmul.mubr.msk.f32.gmra.mxu0 %vm12438_vm6, %v13961_v50  ;;  %7525 = vmatmul.mubr.msk.f32.gmra.mxu1 %vm13953_vm7, %v13951_v19 }
 0x343   : > { %6646 = vmatprep.mubr.f32.mxu0 %v13963_v63  ;;  %6908 = vmatprep.mubr.f32.mxu1 %v12299_v5 }
 0x344   : > { %8441 = vmatprep.subr.mxu0 %v581_v23 }
 0x345   : > { %8442 = vmatpush3.msra.mxu0 %v581_v23 }
 0x346   : > { %7519 = vmatmul.mubr.msk.f32.gmra.mxu0 %vm12410_vm9, %v13964_v45  ;;  %7526 = vmatmul.mubr.msk.f32.gmra.mxu1 %vm13954_vm0, %v12253_v4 }
 0x347   : > { %8443 = vmatprep.subr.mxu0 %v580_v32  ;;  %6913 = vmatprep.mubr.f32.mxu1 %v12335_v22 }
 0x348   : > { %8444 = vmatpush3.msra.mxu0 %v580_v32  ;;  %8447 = vmatprep.mubr.f32.mxu0 %v11896_v39 }
 0x349   : > { %8445 = vmatprep.subr.mxu0 %v579_v40 }
 0x34a   : > { %8446 = vmatpush3.msra.mxu0 %v579_v40  ;;  %7527 = vmatmul.mubr.msk.f32.gmra.mxu1 %vm13957_vm11, %v13955_v24 }
 0x34b   : > { %8448 = vmatmul.mubr.f32.vlgmr.msra.gmra.mxu0 %v11934_v31  ;;  %6918 = vmatprep.mubr.f32.mxu1 %v12391_v49 }
 0x34c   : > { %8450 = vmatprep.mubr.f32.mxu0 %v12037_v20 }
 0x34e   : > { %7528 = vmatmul.mubr.msk.f32.gmra.mxu1 %vm13958_vm10, %v12340_v14 }
 0x34f   : > { %8451 = vmatmul.mubr.f32.gmra.mxu0 %v12050_v11  ;;  %6923 = vmatprep.mubr.f32.mxu1 %v12432_v37 }
 0x350   : > { %8453 = vmatprep.mubr.f32.mxu0 %v12180_v58 }
 0x352   : > { %7529 = vmatmul.mubr.msk.f32.gmra.mxu1 %vm13959_vm13, %v12358_v29 }
 0x353   : > { %8454 = vmatmul.mubr.f32.gmra.mxu0 %v13937_v57  ;;  %6928 = vmatprep.mubr.f32.mxu1 %v13960_v33 }
 0x354   : > { %8456 = vmatprep.mubr.f32.mxu0 %v12302_v61 }
 0x356   : > { %7530 = vmatmul.mubr.msk.f32.gmra.mxu1 %vm12438_vm6, %v13961_v50 }
 0x357   : > { %8457 = vmatmul.mubr.f32.gmra.mxu0 %v12332_v15  ;;  %6933 = vmatprep.mubr.f32.mxu1 %v13963_v63 }
 0x358   : > { %8459 = vmatprep.mubr.f32.mxu0 %v12394_v21 }
 0x35a   : > { %7531 = vmatmul.mubr.msk.f32.gmra.mxu1 %vm12410_vm9, %v13964_v45 }
 0x35b   : > { %8460 = vmatmul.mubr.f32.gmra.mxu0 %v12429_v17  ;;  %6938 = vmatprep.mubr.f32.mxu1 %v12566_v36 }
 0x35c   : > { %8462 = vmatprep.mubr.f32.mxu0 %v12509_v55 }
 0x35d   : > { %v7696_v39 = vpop.f32.mrf.mxu1 }
 0x35e   : > { %7532 = vmatmul.mubr.msk.f32.gmra.mxu1 %vm12496_vm1, %v12503_v38 }
 0x35f   : > { %8463 = vmatmul.mubr.f32.gmra.mxu0 %v12530_v54  ;;  %6943 = vmatprep.mubr.f32.mxu1 %v12577_v26  ;;  %v7697_v31 = vpop.f32.mrf.mxu1 }
 0x360   : > { %8465 = vmatprep.mubr.f32.mxu0 %v12569_v10  ;;  %v7698_v20 = vadd.f32 %v7697_v31, %v7696_v39 }
 0x362   : > { %7533 = vmatmul.mubr.msk.f32.gmra.mxu1 %vm12462_vm2, %v12537_v47 }
 0x363   : > { %8466 = vmatmul.mubr.f32.gmra.mxu0 %v12572_v56  ;;  %6948 = vmatprep.mubr.f32.mxu1 %v12637_v0 }
 0x364   : > { %8468 = vmatprep.mubr.f32.mxu0 %v12640_v18 }
 0x365   : > { %v8337_v11 = vpop.f32.mrf.mxu0 }
 0x366   : > { %7534 = vmatmul.mubr.msk.f32.gmra.mxu1 %vm12609_vm5, %v12620_v8 }
 0x367   : > { %8469 = vmatmul.mubr.f32.gmra.mxu0 %v12643_v13  ;;  %6953 = vmatprep.mubr.f32.mxu1 %v12646_v53  ;;  %v6428_v58 = vpop.f32.mrf.mxu0 }
 0x368   : > { %v7699_v16 = vpop.f32.mrf.mxu1  ;;  %v12796_v4 = vadd.f32 %v7698_v20, %v6428_v58 }
 0x36a   : > { %7535 = vmatmul.mubr.msk.f32.gmra.mxu1 %vm12585_vm15, %v12622_v60  ;;  %v7700_v21 = vpop.f32.mrf.mxu1 }
 0x36b   : > { %v7701_v1 = vadd.f32 %v7700_v21, %v7699_v16 }
 0x36d   : > { %v12798_v5 = vadd.f32 %v8337_v11, %v7701_v1 }
 0x371   : > { %v7702_v61 = vpop.f32.mrf.mxu1 }
 0x373   : > { %v7703_v6 = vpop.f32.mrf.mxu1  ;;  %v8340_v15 = vpop.f32.mrf.mxu0 }
 0x374   : > { %v7704_v22 = vadd.f32 %v7703_v6, %v7702_v61 }
 0x375   : > { %v7705_v14 = vpop.f32.mrf.mxu1  ;;  %v6438_v29 = vpop.f32.mrf.mxu0 }
 0x376   : > { %v12800_v49 = vadd.f32 %v7704_v22, %v6438_v29 }
 0x377   : > { %v7706_v10 = vpop.f32.mrf.mxu1 }
 0x378   : > { %v7707_v17 = vadd.f32 %v7706_v10, %v7705_v14 }
 0x37a   : > { %v12802_v37 = vadd.f32 %v8340_v15, %v7707_v17 }
 0x381   : > { %v7708_v26 = vpop.f32.mrf.mxu1  ;;  %v8343_v35 = vpop.f32.mrf.mxu0 }
 0x383   : > { %v7709_v41 = vpop.f32.mrf.mxu1  ;;  %v6448_v55 = vpop.f32.mrf.mxu0 }
 0x384   : > { %v7710_v38 = vadd.f32 %v7709_v41, %v7708_v26 }
 0x385   : > { %v7711_v54 = vpop.f32.mrf.mxu1 }
 0x386   : > { %v12804_v47 = vadd.f32 %v7710_v38, %v6448_v55 }
 0x387   : > { %v7712_v36 = vpop.f32.mrf.mxu1 }
 0x388   : > { %v7713_v56 = vadd.f32 %v7712_v36, %v7711_v54 }
 0x38a   : > { %v12806_v9 = vadd.f32 %v8343_v35, %v7713_v56 }
 0x390   : > { %v7714_v46 = vpop.f32.mrf.mxu1 }
 0x391   : > { %v8346_v8 = vpop.f32.mrf.mxu0 }
 0x392   : > { %v7715_v60 = vpop.f32.mrf.mxu1 }
 0x393   : > { %v7716_v0 = vadd.f32 %v7715_v60, %v7714_v46  ;;  %v6458_v18 = vpop.f32.mrf.mxu0 }
 0x394   : > { %v7717_v13 = vpop.f32.mrf.mxu1 }
 0x395   : > { %v12808_v53 = vadd.f32 %v7716_v0, %v6458_v18 }
 0x396   : > { %v7718_v57 = vpop.f32.mrf.mxu1 }
 0x397   : > { %v7719_v12 = vadd.f32 %v7718_v57, %v7717_v13 }
 0x399   : > { %v12810_v44 = vadd.f32 %v8346_v8, %v7719_v12 }
 0x39f   : > { %v7720_v52 = vpop.f32.mrf.mxu1 }
 0x3a0   : > { %v8349_v62 = vpop.f32.mrf.mxu0 }
 0x3a1   : > { %v7721_v51 = vpop.f32.mrf.mxu1 }
 0x3a2   : > { %v7722_v28 = vadd.f32 %v7721_v51, %v7720_v52  ;;  %v6468_v30 = vpop.f32.mrf.mxu0 }
 0x3a3   : > { %v7723_v3 = vpop.f32.mrf.mxu1 }
 0x3a4   : > { %v12812_v34 = vadd.f32 %v7722_v28, %v6468_v30 }
 0x3a5   : > { %v7724_v19 = vpop.f32.mrf.mxu1 }
 0x3a6   : > { %13966 = vst [vmem:[#allocation36_spill] sm:$0xff] %v12812_v34  ;;  %v7725_v43 = vadd.f32 %v7724_v19, %v7723_v3 }
 0x3a8   : > { %v12814_v7 = vadd.f32 %v8349_v62, %v7725_v43 }
 0x3aa   : > { %13967 = vst [vmem:[#allocation68_spill] sm:$0xff] %v12814_v7 }
 0x3ab   : > { %v7726_v25 = vpop.f32.mrf.mxu1 }
 0x3ad   : > { %v7727_v24 = vpop.f32.mrf.mxu1 }
 0x3ae   : > { %v8352_v42 = vpop.f32.mrf.mxu0  ;;  %v7728_v2 = vadd.f32 %v7727_v24, %v7726_v25 }
 0x3af   : > { %v7729_v48 = vpop.f32.mrf.mxu1 }
 0x3b0   : > { %v6478_v33 = vpop.f32.mrf.mxu0 }
 0x3b1   : > { %v12816_v23 = vadd.f32 %v7728_v2, %v6478_v33  ;;  %v7730_v50 = vpop.f32.mrf.mxu1 }
 0x3b2   : > { %v7731_v27 = vadd.f32 %v7730_v50, %v7729_v48 }
 0x3b3   : > { %13968 = vst [vmem:[#allocation76_spill] sm:$0xff] %v12816_v23 }
 0x3b4   : > { %v12818_v63 = vadd.f32 %v8352_v42, %v7731_v27 }
 0x3b6   : > { %13969 = vst [vmem:[#allocation83_spill] sm:$0xff] %v12818_v63 }
 0x3b8   : > { %v7732_v32 = vpop.f32.mrf.mxu1 }
 0x3b9   : > { %v8355_v45 = vpop.f32.mrf.mxu0 }
 0x3ba   : > { %v7733_v59 = vpop.f32.mrf.mxu1 }
 0x3bb   : > { %v7734_v40 = vadd.f32 %v7733_v59, %v7732_v32  ;;  %v6488_v39 = vpop.f32.mrf.mxu0 }
 0x3bc   : > { %v7735_v31 = vpop.f32.mrf.mxu1 }
 0x3bd   : > { %v12820_v20 = vadd.f32 %v7734_v40, %v6488_v39 }
 0x3be   : > { %v7736_v11 = vpop.f32.mrf.mxu1 }
 0x3bf   : > { %13970 = vst [vmem:[#allocation69_spill] sm:$0xff] %v12820_v20  ;;  %v7737_v58 = vadd.f32 %v7736_v11, %v7735_v31 }
 0x3c0   : > { %v7738_v16 = vpop.f32.mrf.mxu1  ;;  %v8358_v21 = vpop.f32.mrf.mxu0 }
 0x3c1   : > { %v12822_v1 = vadd.f32 %v8355_v45, %v7737_v58 }
 0x3c2   : > { %v7739_v61 = vpop.f32.mrf.mxu1  ;;  %v6498_v6 = vpop.f32.mrf.mxu0 }
 0x3c3   : > { %v7740_v15 = vadd.f32 %v7739_v61, %v7738_v16 }
 0x3c4   : > { %v7741_v22 = vpop.f32.mrf.mxu1 }
 0x3c5   : > { %v12824_v14 = vpop.f32.mrf.mxu0  ;;  %v12826_v29 = vadd.f32 %v7740_v15, %v6498_v6 }
 0x3c6   : > { %v7742_v10 = vpop.f32.mrf.mxu1 }
 0x3c7   : > { %13971 = vst [vmem:[#allocation26_spill] sm:$0xff] %v12826_v29  ;;  %v12828_v17 = vpop.f32.mrf.mxu0  ;;  %v7743_v26 = vadd.f32 %v7742_v10, %v7741_v22 }
 0x3c8   : > { %v12830_v41 = vpop.f32.mrf.mxu1 }
 0x3c9   : > { %v7811_v35 = vpop.f32.mrf.mxu0  ;;  %v12832_v38 = vadd.f32 %v8358_v21, %v7743_v26 }
 0x3ca   : > { %v12834_v54 = vpop.f32.mrf.mxu1 }
 0x3cb   : > { %v7812_v55 = vpop.f32.mrf.mxu0 }
 0x3cd   : > { %v12836_v36 = vpop.f32.mrf.mxu0  ;;  %v12838_v56 = vpop.f32.mrf.mxu1 }
 0x3cf   : > { %v12840_v46 = vpop.f32.mrf.mxu0  ;;  %v12842_v8 = vpop.f32.mrf.mxu1 }
 0x3d1   : > { %v7817_v60 = vpop.f32.mrf.mxu0 }
 0x3d2   : > { %v12844_v0 = vpop.f32.mrf.mxu1 }
 0x3d3   : > { %v7818_v18 = vpop.f32.mrf.mxu0 }
 0x3d4   : > { %v12846_v13 = vpop.f32.mrf.mxu1 }
 0x3d5   : > { %v7820_v57 = vpop.f32.mrf.mxu0 }
 0x3d7   : > { %v12848_v12 = vpop.f32.mrf.mxu1  ;;  %v7821_v52 = vpop.f32.mrf.mxu0 }
 0x3d9   : > { %v12850_v62 = vpop.f32.mrf.mxu1  ;;  %v7823_v51 = vpop.f32.mrf.mxu0 }
 0x3da   : > { %13972 = vst [vmem:[#allocation34_spill] sm:$0xff] %v12850_v62  ;;  %v7813_v62 = vadd.f32 %v7812_v55, %v7811_v35  ;;  %v7822_v35 = vadd.f32 %v7821_v52, %v7820_v57 }
 0x3db   : > { %v12852_v28 = vpop.f32.mrf.mxu1  ;;  %v7824_v30 = vpop.f32.mrf.mxu0 }
 0x3dc   : > { %13973 = vst [vmem:[#allocation103_spill] sm:$0xff] %v12852_v28  ;;  %v7825_v55 = vadd.f32 %v7824_v30, %v7823_v51  ;;  %v6594_v57 = vadd.f32 %v7822_v35, %v12804_v47 }
 0x3dd   : > { %v12854_v3 = vpop.f32.mrf.mxu1 }
 0x3de   : > { %13974 = vst [vmem:[#allocation85_spill] sm:$0xff] %v12854_v3 }
 0x3df   : > { %v12856_v19 = vpop.f32.mrf.mxu0  ;;  %v12858_v43 = vpop.f32.mrf.mxu1 }
 0x3e0   : > { %13975 = vst [vmem:[#allocation105_spill] sm:$0xff] %v12858_v43 }
 0x3e1   : > { %v12860_v25 = vpop.f32.mrf.mxu0  ;;  %v12862_v24 = vpop.f32.mrf.mxu1 }
 0x3e2   : > { %13976 = vst [vmem:[#allocation33_spill] sm:$0xff] %v12862_v24 }
 0x3e4   : > { %v7829_v42 = vpop.f32.mrf.mxu0  ;;  %v8411_v2 = vpop.f32.mrf.mxu1 }
 0x3e6   : > { %v7830_v48 = vpop.f32.mrf.mxu0  ;;  %v12864_v33 = vpop.f32.mrf.mxu1 }
 0x3e7   : > { %13977 = vst [vmem:[#allocation107_spill] sm:$0xff] %v12864_v33 }
 0x3e9   : > { %v12866_v50 = vpop.f32.mrf.mxu0  ;;  %v8414_v27 = vpop.f32.mrf.mxu1 }
 0x3eb   : > { %v12868_v32 = vpop.f32.mrf.mxu0  ;;  %v12870_v45 = vpop.f32.mrf.mxu1 }
 0x3ec   : > { %13978 = vst [vmem:[#allocation108_spill] sm:$0xff] %v12868_v32  ;;  %13979 = vst [vmem:[#allocation45_spill] sm:$0xff] %v12870_v45 }
 0x3ee   : > { %v12872_v59 = vpop.f32.mrf.mxu0  ;;  %v7920_v40 = vpop.f32.mrf.mxu1 }
 0x3f0   : > { %v12874_v39 = vpop.f32.mrf.mxu0  ;;  %v7921_v31 = vpop.f32.mrf.mxu1 }
 0x3f2   : > { %v12876_v11 = vpop.f32.mrf.mxu0  ;;  %v7923_v58 = vpop.f32.mrf.mxu1 }
 0x3f3   : > { %13980 = vst [vmem:[#allocation50_spill] sm:$0xff] %v12876_v11  ;;  %v7819_v11 = vadd.f32 %v7818_v18, %v7817_v60  ;;  %v7831_v18 = vadd.f32 %v7830_v48, %v7829_v42 }
 0x3f4   : > { %v12878_v16 = vpop.f32.mrf.mxu0  ;;  %v7924_v21 = vpop.f32.mrf.mxu1 }
 0x3f5   : > { %13981 = vst [vmem:[#allocation113_spill] sm:$0xff] %v12878_v16  ;;  %v6589_v60 = vadd.f32 %v7819_v11, %v12802_v37  ;;  %v6599_v37 = vadd.f32 %v7825_v55, %v12806_v9 }
 0x3f6   : > { %v12880_v61 = vpop.f32.mrf.mxu0  ;;  %v7926_v6 = vpop.f32.mrf.mxu1 }
 0x3f7   : > { %13982 = vst [vmem:[#allocation38_spill] sm:$0xff] %v12880_v61 }
 0x3f8   : > { %v12882_v15 = vpop.f32.mrf.mxu0  ;;  %v7927_v22 = vpop.f32.mrf.mxu1 }
 0x3f9   : > { %13983 = vst [vmem:[#allocation96_spill] sm:$0xff] %v12882_v15 }
 0x3fa   : > { %v12884_v10 = vpop.f32.mrf.mxu0  ;;  %v7929_v26 = vpop.f32.mrf.mxu1 }
 0x3fb   : > { %13984 = vst [vmem:[#allocation44_spill] sm:$0xff] %v12884_v10 }
 0x3fc   : > { %v12886_v45 = vpop.f32.mrf.mxu0  ;;  %v7930_v29 = vpop.f32.mrf.mxu1 }
 0x3fd   : > { %13985 = vst [vmem:[#allocation81_spill] sm:$0xff] %v12886_v45  ;;  %v7810_v45 = vadd.f32 %v12828_v17, %v12824_v14  ;;  %v7925_v17 = vadd.f32 %v7924_v21, %v7923_v58  ;;  %v7931_v30 = vadd.f32 %v7930_v29, %v7929_v26 }
 0x3fe   : > { %v7847_v33 = vpop.f32.mrf.mxu0  ;;  %v12888_v24 = vpop.f32.mrf.mxu1 }
 0x3ff   : > { %v6574_v14 = vadd.f32 %v7810_v45, %v12796_v4 }
 0x400   : > { %v7848_v20 = vpop.f32.mrf.mxu0  ;;  %v12890_v43 = vpop.f32.mrf.mxu1 }
 0x401   : > { %v7849_v3 = vadd.f32 %v7848_v20, %v7847_v33  ;;  %v13989_v20 = vld [vmem:[#allocation25_spill] sm:$0xff]  ;;  %v6719_v51 = vadd.f32 %v12834_v54, %v6574_v14  ;;  %v7837_v54 = vadd.f32 %v12874_v39, %v12872_v59 }
 0x402   : > { %v12892_v28 = vpop.f32.mrf.mxu0  ;;  %v12894_v63 = vpop.f32.mrf.mxu1  ;;  %v7122_v33 = vsub.s32 3, %v13989_v20 }
 0x403   : > { %13986 = vst [vmem:[#allocation53_spill] sm:$0xff] %v12892_v28  ;;  %v6639_v23 = vadd.f32 %v7849_v3, %v12822_v1  ;;  %v6579_v28 = vadd.f32 %v7813_v62, %v12798_v5  ;;  %v7142_v1 = vsub.s32 4, %v13989_v20  ;;  %v7922_v20 = vadd.f32 %v7921_v31, %v7920_v40 }
 0x404   : > { %v12897_v34 = vpop.f32.mrf.mxu0  ;;  %v7936_v10 = vpop.f32.mrf.mxu1  ;;  %v7928_v40 = vadd.f32 %v7927_v22, %v7926_v6 }
 0x405   : > { %13987 = vst [vmem:[#allocation55_spill] sm:$0xff] %v12897_v34  ;;  %v12899_v15 = vadd.f32 %v8411_v2, %v6639_v23  ;;  %v7816_v23 = vadd.f32 %v12840_v46, %v12836_v36  ;;  %v7937_v59 = vadd.f32 %v7936_v10, %v12894_v63  ;;  %v13994_v10 = vld [vmem:[#allocation27_spill] sm:$0xff] }
 0x406   : > { %v7853_v61 = vpop.f32.mrf.mxu0  ;;  %v12903_v16 = vpop.f32.mrf.mxu1 }
 0x407   : > { %13988 = vst [vmem:[#allocation102_spill] sm:$0xff] %v12899_v15  ;;  %v8587_v15 = vld [vmem:[#allocation9] sm:$0x1f]  ;;  %v6584_v4 = vadd.f32 %v7816_v23, %v12800_v49  ;;  %v6734_v49 = vadd.f32 %v12838_v56, %v6589_v60 }
 0x408   : > { %v7854_v7 = vpop.f32.mrf.mxu0  ;;  %v12907_v32 = vpop.f32.mrf.mxu1  ;;  %v12915_v34 = vrot.slane %v8587_v15, %v7122_v33  ;;  %v12918_v46 = vrot.slane %v8587_v15, %v7142_v1  ;;  %v13991_v15 = vld [vmem:[#allocation32_spill] sm:$0xff] }
 0x409   : > { %13990 = vst [vmem:[#allocation104_spill] sm:$0xff] %v12907_v32  ;;  %v7855_v3 = vadd.f32 %v7854_v7, %v7853_v61  ;;  %v6724_v32 = vadd.f32 %v12830_v41, %v6579_v28  ;;  %v7828_v41 = vadd.f32 %v12860_v25, %v12856_v19  ;;  %v6609_v28 = vadd.f32 %v7831_v18, %v12810_v44  ;;  %v13992_v23 = vld [vmem:[#allocation108_spill] sm:$0xff]  ;;  %v13995_v18 = vld [vmem:[#allocation50_spill] sm:$0xff] }
 0x40a   : > { %v7941_v2 = vpop.f32.mrf.mxu1  ;;  %v6729_v29 = vadd.f32 %v12842_v8, %v6584_v4  ;;  %v6744_v19 = vadd.f32 %v12844_v0, %v6599_v37  ;;  %v6739_v44 = vadd.f32 %v12846_v13, %v6594_v57  ;;  %v7934_v8 = vadd.f32 %v12890_v43, %v12888_v24  ;;  %v14000_v37 = vld [vmem:[#allocation40_spill] sm:$0xff] }
 0x40b   : > { %v6649_v5 = vadd.f32 %v7855_v3, %v12832_v38  ;;  %v8449_v62 = vpop.f32.mrf.mxu0  ;;  %v6604_v6 = vadd.f32 %v7828_v41, %v12808_v53  ;;  %v6754_v0 = vadd.f32 %v12848_v12, %v6609_v28  ;;  %v7834_v35 = vadd.f32 %v13992_v23, %v12866_v50  ;;  %v13993_v53 = vld [vmem:[#allocation68_spill] sm:$0xff]  ;;  %v14009_v23 = vld [vmem:[#allocation47_spill] sm:$0xff] }
 0x40c   : > { %v7031_v36 = vadd.f32 %v8449_v62, %v7925_v17  ;;  %v7942_v7 = vpop.f32.mrf.mxu1  ;;  %v6619_v55 = vadd.f32 %v7837_v54, %v13993_v53  ;;  %v13998_v50 = vld [vmem:[#allocation96_spill] sm:$0xff] }
 0x40d   : > { %v12923_v52 = vadd.f32 %v8414_v27, %v6649_v5  ;;  %v7025_v38 = vpop.f32.mrf.mxu0  ;;  %v7943_v43 = vadd.f32 %v7942_v7, %v7941_v2  ;;  %v13996_v5 = vld [vmem:[#allocation113_spill] sm:$0xff]  ;;  %v14001_v41 = vld [vmem:[#allocation36_spill] sm:$0xff] }
 0x40e   : > { %v7105_v42 = vadd.f32 %v7031_v36, %v6724_v32  ;;  %v7026_v48 = vadd.f32 %v7922_v20, %v7025_v38  ;;  %v12926_v45 = vpop.f32.mrf.mxu1  ;;  %v7840_v62 = vadd.f32 %v13996_v5, %v13995_v18  ;;  %v13997_v20 = vld [vmem:[#allocation38_spill] sm:$0xff]  ;;  %v6614_v28 = vadd.f32 %v7834_v35, %v14001_v41 }
 0x40f   : > { %v8452_v47 = vpop.f32.mrf.mxu0  ;;  %v7843_v36 = vadd.f32 %v13998_v50, %v13997_v20  ;;  %v14013_v20 = vld [vmem:[#allocation59_spill] sm:$0xff] }
 0x410   : > { %v7125_v9 = vmul.f32 %v12915_v34, %v7105_v42  ;;  %v7104_v27 = vadd.f32 %v7026_v48, %v6719_v51  ;;  %v7041_v31 = vadd.f32 %v8452_v47, %v7931_v30  ;;  %v12933_v11 = vpop.f32.mrf.mxu1  ;;  %v13999_v2 = vld [vmem:[#allocation104_spill] sm:$0xff] }
 0x411   : > { %v7035_v32 = vpop.f32.mrf.mxu0  ;;  %v7940_v7 = vadd.f32 %v13999_v2, %v12903_v16  ;;  %v14003_v16 = vld [vmem:[#allocation37_spill] sm:$0xff] }
 0x412   : > { %v7145_v56 = vadd.f32 %v12918_v46, %v7125_v9  ;;  %v7124_v25 = vmul.f32 %v12915_v34, %v7104_v27  ;;  %v7107_v58 = vadd.f32 %v7041_v31, %v6734_v49  ;;  %v7036_v21 = vadd.f32 %v7928_v40, %v7035_v32  ;;  %v7947_v61 = vpop.f32.mrf.mxu1  ;;  %v14002_v40 = vld [vmem:[#allocation34_spill] sm:$0xff] }
 0x413   : > { %v8455_v39 = vpop.f32.mrf.mxu0  ;;  %v6749_v9 = vadd.f32 %v14002_v40, %v6604_v6  ;;  %v14017_v40 = vld [vmem:[#allocation53_spill] sm:$0xff] }
 0x414   : > { %v7177_v13 = vadd.f32 %v7145_v56, %v13991_v15  ;;  %v7144_v22 = vadd.f32 %v12918_v46, %v7124_v25  ;;  %v7127_v26 = vmul.f32 %v12915_v34, %v7107_v58  ;;  %v7106_v33 = vadd.f32 %v7036_v21, %v6729_v29  ;;  %v7948_v1 = vpop.f32.mrf.mxu1  ;;  %v14005_v25 = vld [vmem:[#allocation83_spill] sm:$0xff] }
 0x415   : > { %v7051_v24 = vadd.f32 %v8455_v39, %v7937_v59  ;;  %v7045_v63 = vpop.f32.mrf.mxu0  ;;  %v7949_v47 = vadd.f32 %v7948_v1, %v7947_v61  ;;  %v6629_v58 = vadd.f32 %v7843_v36, %v14005_v25  ;;  %v7946_v1 = vadd.f32 %v12933_v11, %v12926_v45 }
 0x416   : > { %7193 = vst [vmem:[%s9056_s20 + $0x8] sm:$0xff] %v7177_v13  ;;  %v7176_v12 = vadd.f32 %v7144_v22, %v13994_v10  ;;  %v7147_v3 = vadd.f32 %v12918_v46, %v7127_v26  ;;  %v7126_v14 = vmul.f32 %v12915_v34, %v7106_v33  ;;  %v7046_v17 = vadd.f32 %v7934_v8, %v7045_v63  ;;  %v7950_v60 = vpop.f32.mrf.mxu1  ;;  %v14006_v8 = vld [vmem:[#allocation103_spill] sm:$0xff]  ;;  %v14007_v22 = vld [vmem:[#allocation44_spill] sm:$0xff]  ;;  %v14008_v26 = vld [vmem:[#allocation81_spill] sm:$0xff] }
 0x417   : > { %v7109_v4 = vadd.f32 %v7051_v24, %v6744_v19  ;;  %v8458_v57 = vpop.f32.mrf.mxu0  ;;  %v6764_v59 = vadd.f32 %v14006_v8, %v6619_v55  ;;  %v7846_v33 = vadd.f32 %v14008_v26, %v14007_v22  ;;  %v14022_v22 = vld [vmem:[#allocation62_spill] sm:$0xff] }
 0x418   : > { %7192 = vst [vmem:[%s9056_s20] sm:$0xff] %v7176_v12  ;;  %v7179_v38 = vadd.f32 %v7147_v3, %v14000_v37  ;;  %v7146_v51 = vadd.f32 %v12918_v46, %v7126_v14  ;;  %v7108_v30 = vadd.f32 %v7046_v17, %v6739_v44  ;;  %v7061_v42 = vadd.f32 %v8458_v57, %v7943_v43  ;;  %v7951_v48 = vpop.f32.mrf.mxu1  ;;  %v14004_v44 = vld [vmem:[#allocation76_spill] sm:$0xff]  ;;  %v14010_v43 = vld [vmem:[#allocation42_spill] sm:$0xff]  ;;  %v14011_v17 = vld [vmem:[#allocation85_spill] sm:$0xff] }
 0x419   : > { %v7129_v49 = vmul.f32 %v12915_v34, %v7109_v4  ;;  %v7055_v27 = vpop.f32.mrf.mxu0  ;;  %v6624_v56 = vadd.f32 %v7840_v62, %v14004_v44  ;;  %v7952_v14 = vadd.f32 %v7951_v48, %v7950_v60  ;;  %v6759_v18 = vadd.f32 %v14011_v17, %v6614_v28  ;;  %v14012_v62 = vld [vmem:[#allocation105_spill] sm:$0xff] }
 0x41a   : > { %7195 = vst [vmem:[%s9056_s20 + $0x18] sm:$0xff] %v7179_v38  ;;  %v7178_v31 = vadd.f32 %v7146_v51, %v14003_v16  ;;  %v7128_v29 = vmul.f32 %v12915_v34, %v7108_v30  ;;  %v7111_v54 = vadd.f32 %v7061_v42, %v6754_v0  ;;  %v7056_v32 = vadd.f32 %v7940_v7, %v7055_v27  ;;  %v7953_v19 = vpop.f32.mrf.mxu1  ;;  %v14014_v57 = vld [vmem:[#allocation69_spill] sm:$0xff]  ;;  %v14016_v42 = vld [vmem:[#allocation56_spill] sm:$0xff] }
 0x41b   : > { %v7149_v21 = vadd.f32 %v12918_v46, %v7129_v49  ;;  %v8461_v61 = vpop.f32.mrf.mxu0  ;;  %v6774_v45 = vadd.f32 %v14012_v62, %v6629_v58  ;;  %v6634_v37 = vadd.f32 %v7846_v33, %v14014_v57  ;;  %v14015_v60 = vld [vmem:[#allocation33_spill] sm:$0xff] }
 0x41c   : > { %7194 = vst [vmem:[%s9056_s20 + $0x10] sm:$0xff] %v7178_v31  ;;  %v7148_v6 = vadd.f32 %v12918_v46, %v7128_v29  ;;  %v7131_v39 = vmul.f32 %v12915_v34, %v7111_v54  ;;  %v7110_v15 = vadd.f32 %v7056_v32, %v6749_v9  ;;  %v7071_v13 = vadd.f32 %v8461_v61, %v7949_v47  ;;  %v7954_v0 = vpop.f32.mrf.mxu1  ;;  %v14018_v9 = vld [vmem:[#allocation55_spill] sm:$0xff]  ;;  %v14026_v62 = vld [vmem:[#allocation45_spill] sm:$0xff] }
 0x41d   : > { %v7181_v35 = vadd.f32 %v7149_v21, %v14009_v23  ;;  %v7955_v53 = vadd.f32 %v7954_v0, %v7953_v19  ;;  %v7065_v55 = vpop.f32.mrf.mxu0  ;;  %v6769_v51 = vadd.f32 %v14015_v60, %v6624_v56  ;;  %v7852_v27 = vadd.f32 %v14018_v9, %v14017_v40  ;;  %v14019_v29 = vld [vmem:[#allocation67_spill] sm:$0xff] }
 0x41e   : > { %v7180_v24 = vadd.f32 %v7148_v6, %v14010_v43  ;;  %v7151_v63 = vadd.f32 %v12918_v46, %v7131_v39  ;;  %v7130_v10 = vmul.f32 %v12915_v34, %v7110_v15  ;;  %v7113_v12 = vadd.f32 %v7071_v13, %v6764_v59  ;;  %v7956_v3 = vpop.f32.mrf.mxu1  ;;  %v14020_v61 = vld [vmem:[#allocation107_spill] sm:$0xff]  ;;  %v14021_v13 = vld [vmem:[#allocation26_spill] sm:$0xff] }
 0x41f   : > { %7197 = vst [vmem:[%s9056_s20 + $0x28] sm:$0xff] %v7181_v35  ;;  %v7066_v5 = vadd.f32 %v7946_v1, %v7065_v55  ;;  %v8464_v11 = vpop.f32.mrf.mxu0  ;;  %v6779_v6 = vadd.f32 %v14020_v61, %v6634_v37  ;;  %v6644_v0 = vadd.f32 %v7852_v27, %v14021_v13  ;;  %v14023_v23 = vld [vmem:[#allocation79_spill] sm:$0xff] }
 0x420   : > { %7196 = vst [vmem:[%s9056_s20 + $0x20] sm:$0xff] %v7180_v24  ;;  %v7183_v50 = vadd.f32 %v7151_v63, %v14013_v20  ;;  %v7150_v36 = vadd.f32 %v12918_v46, %v7130_v10  ;;  %v7133_v2 = vmul.f32 %v12915_v34, %v7113_v12  ;;  %v7081_v7 = vadd.f32 %v8464_v11, %v7955_v53  ;;  %v7957_v4 = vpop.f32.mrf.mxu1  ;;  %v14024_v24 = vld [vmem:[#allocation102_spill] sm:$0xff]  ;;  %v14025_v12 = vld [vmem:[#allocation73_spill] sm:$0xff]  ;;  %v14028_v37 = vld [vmem:[#allocation87_spill] sm:$0xff] }
 0x421   : > { %v7112_v38 = vadd.f32 %v7066_v5, %v6759_v18  ;;  %v7075_v30 = vpop.f32.mrf.mxu0  ;;  %v7958_v19 = vadd.f32 %v7957_v4, %v7956_v3  ;;  %v14027_v4 = vld [vmem:[#allocation82_spill] sm:$0xff] }
 0x422   : > { %7199 = vst [vmem:[%s9056_s20 + $0x38] sm:$0xff] %v7183_v50  ;;  %v7182_v48 = vadd.f32 %v7150_v36, %v14016_v42  ;;  %v7153_v41 = vadd.f32 %v12918_v46, %v7133_v2  ;;  %v7115_v28 = vadd.f32 %v7081_v7, %v6774_v45  ;;  %v7076_v49 = vadd.f32 %v7952_v14, %v7075_v30  ;;  %v7959_v47 = vpop.f32.mrf.mxu1 }
 0x423   : > { %v7132_v16 = vmul.f32 %v12915_v34, %v7112_v38  ;;  %v8467_v31 = vpop.f32.mrf.mxu0  ;;  %v6789_v45 = vadd.f32 %v14026_v62, %v6644_v0 }
 0x424   : > { %7198 = vst [vmem:[%s9056_s20 + $0x30] sm:$0xff] %v7182_v48  ;;  %v7185_v54 = vadd.f32 %v7153_v41, %v14019_v29  ;;  %v7135_v32 = vmul.f32 %v12915_v34, %v7115_v28  ;;  %v7114_v44 = vadd.f32 %v7076_v49, %v6769_v51  ;;  %v7960_v56 = vpop.f32.mrf.mxu1  ;;  %v14029_v48 = vld [vmem:[#allocation93_spill] sm:$0xff] }
 0x425   : > { %v7152_v25 = vadd.f32 %v12918_v46, %v7132_v16  ;;  %v7961_v58 = vadd.f32 %v7960_v56, %v7959_v47  ;;  %v7085_v21 = vpop.f32.mrf.mxu0  ;;  %v14030_v47 = vld [vmem:[#allocation98_spill] sm:$0xff] }
 0x426   : > { %7201 = vst [vmem:[%s9056_s20 + $0x48] sm:$0xff] %v7185_v54  ;;  %v7155_v8 = vadd.f32 %v12918_v46, %v7135_v32  ;;  %v7134_v59 = vmul.f32 %v12915_v34, %v7114_v44  ;;  %v7086_v39 = vadd.f32 %v7958_v19, %v7085_v21  ;;  %v7962_v15 = vpop.f32.mrf.mxu1 }
 0x427   : > { %v7184_v26 = vadd.f32 %v7152_v25, %v14022_v22  ;;  %v7091_v33 = vadd.f32 %v8467_v31, %v7961_v58  ;;  %v8470_v1 = vpop.f32.mrf.mxu0 }
 0x428   : > { %v7187_v35 = vadd.f32 %v7155_v8, %v14023_v23  ;;  %v7154_v53 = vadd.f32 %v12918_v46, %v7134_v59  ;;  %v7116_v55 = vadd.f32 %v7086_v39, %v6779_v6  ;;  %v7963_v43 = vpop.f32.mrf.mxu1 }
 0x429   : > { %7200 = vst [vmem:[%s9056_s20 + $0x40] sm:$0xff] %v7184_v26  ;;  %v7117_v63 = vadd.f32 %v7091_v33, %v14024_v24  ;;  %v7964_v10 = vadd.f32 %v7963_v43, %v7962_v15  ;;  %v7095_v17 = vpop.f32.mrf.mxu0 }
 0x42a   : > { %7203 = vst [vmem:[%s9056_s20 + $0x58] sm:$0xff] %v7187_v35  ;;  %v7186_v3 = vadd.f32 %v7154_v53, %v14025_v12  ;;  %v7136_v14 = vmul.f32 %v12915_v34, %v7116_v55  ;;  %v7965_v18 = vpop.f32.mrf.mxu1 }
 0x42b   : > { %v7137_v5 = vmul.f32 %v12915_v34, %v7117_v63  ;;  %v7096_v11 = vadd.f32 %v7964_v10, %v7095_v17 }
 0x42c   : > { %7202 = vst [vmem:[%s9056_s20 + $0x50] sm:$0xff] %v7186_v3  ;;  %v7156_v20 = vadd.f32 %v12918_v46, %v7136_v14  ;;  %v7966_v50 = vpop.f32.mrf.mxu1 }
 0x42d   : > { %v7157_v36 = vadd.f32 %v12918_v46, %v7137_v5  ;;  %v7118_v2 = vadd.f32 %v7096_v11, %v6789_v45  ;;  %v7967_v7 = vadd.f32 %v7966_v50, %v7965_v18 }
 0x42e   : > { %v7188_v57 = vadd.f32 %v7156_v20, %v14027_v4 }
 0x42f   : > { %v7189_v38 = vadd.f32 %v7157_v36, %v14028_v37  ;;  %v7138_v60 = vmul.f32 %v12915_v34, %v7118_v2  ;;  %v7101_v51 = vadd.f32 %v8470_v1, %v7967_v7 }
 0x430   : > { %7204 = vst [vmem:[%s9056_s20 + $0x60] sm:$0xff] %v7188_v57 }
 0x431   : > { %7205 = vst [vmem:[%s9056_s20 + $0x68] sm:$0xff] %v7189_v38  ;;  %v7158_v30 = vadd.f32 %v12918_v46, %v7138_v60  ;;  %v7119_v42 = vadd.f32 %v7101_v51, %v12923_v52 }
 0x433   : > { %v7190_v41 = vadd.f32 %v7158_v30, %v14029_v48  ;;  %v7139_v28 = vmul.f32 %v12915_v34, %v7119_v42 }
 0x435   : > { %7206 = vst [vmem:[%s9056_s20 + $0x70] sm:$0xff] %v7190_v41  ;;  %v7159_v49 = vadd.f32 %v12918_v46, %v7139_v28 }
 0x437   : > { %v7191_v40 = vadd.f32 %v7159_v49, %v14030_v47 }
 0x439   : > { %7207 = vst [vmem:[%s9056_s20 + $0x78] sm:$0xff] %v7191_v40 }
 0x43a   : > { %8732 = shalt.err (!%p8729_p2)
}
 0x43b   : > { %s8733_s5 = scalar_lea.hbm %s13044_s14, 2048  ;;  %s8737_s26 = scalar_lea.hbm %s13104_s4, 8192 }
 0x43c   : > { %p8734_p4 = scmp.ne.s32.totalorder %s13044_s14, %s8733_s5  ;;  %p8738_p12 = scmp.lt.s32.totalorder %s13044_s14, %s13104_s4 }
 0x43d   : > { %p8739_p0 = scmp.lt.s32.totalorder %s8737_s26, %s8733_s5 }
 0x43e   : > { %p8735_p5 = pnand %p8734_p4, %p14032_p8 }
 0x43f   : > { %p8740_p3 = por %p8739_p0, %p8738_p12 }
 0x440   : > { %p8736_p10 = pneg %p8735_p5 }
 0x442   : > { %p8741_p1 = pnand %p8740_p3, %p8736_p10 }
 0x444   : > { %8744 = shalt.err (!%p8741_p1)
}
 0x445   : > { %s8833_s11 = smov 128   ;;  %s8834_s2 = smov 8  }
 0x446   : > { %8487 = dma.vmem_to_hbm [thread:$0]  (%p14032_p8), %s13038_s18, 2048, %s13044_s14, %s13049_s13, %s8833_s11, %s8833_s11, %s8834_s2  }
 0x447 PF: > { %p8511_p6 = scmp.ge.s32.totalorder %s8821_s22, 2  ;;  %s7240_s3 = sand.u32 1, %s8793_s15  }
 0x448   : > { %p14033_p7 = scmp.ne.s32.totalorder %s13398_s30, 0  ;;  %s7241_s21 = scalar_lea.sflag [#allocation6], %s7240_s3 }
 0x44a   : > { %p8500_p9 = pnand %p8511_p6, %p14033_p7 }
 0x44c   : > { %p8501_p11 = pneg %p8500_p9 }
 0x44e   : > { %8788 = dma.done.wait (%p8501_p11), %s7241_s21, 2048  }
 0x44f   : > { %8790 = vsyncadd (%p8501_p11), %s7241_s21, 4294965248  ;;  %s19_s22 = sadd.s32 1, %s8821_s22   ;;  %s14034_s18 = sld [smem:[#allocation21_spill]] }
 0x450   : > { %p16_p13 = scmp.ge.s32.totalorder %s19_s22, 6   ;;  %s14035_s19 = sld [smem:[#allocation22_spill]] }
 0x451   : > { %s14036_s20 = sld [smem:[#allocation23_spill]]  ;;  %s14038_s15 = smov %s8797_s16 }
 0x452   : > { %s14037_s21 = sld [smem:[#allocation24_spill]]  ;;  %s14039_s16 = smov %s8801_s17 }
 0x453   : > { %s14040_s17 = smov %s8939_s9  ;;  %18 = sbr.rel (!%p16_p13) target bundleno = 11 (0xb), region = 100 }
 0x458   :  { %7246 = vsyncpa [#allocation5], 1 }
 0x459   :  { %7248 = vsyncpa [#allocation5 + $0x1], 1 }
 0x45a   :  { %7249 = vsyncpa [#allocation8], 1 }
 0x45b   :  { %7250 = vsyncpa [#allocation6], 1 }
 0x45c   :  { %7252 = vsyncpa [#allocation6 + $0x1], 1 }
 0x45d   :  { %7253 = vsyncmov [#allocation3] }
 0x460   :  { %s7254_s29 = vpop.sfrf %7253 }
 0x461   :  { %p7543_p8 = scmp.ne.s32.totalorder %s7254_s29, 0 }
 0x463   :  { %7258 = shalt.err (%p7543_p8)  }
 0x464   :  { %7260 = vsyncmov [#allocation3 + $0x1] }
 0x467   :  { %s7261_s30 = vpop.sfrf %7260 }
 0x468   :  { %p7544_p2 = scmp.ne.s32.totalorder %s7261_s30, 0 }
 0x46a   :  { %7265 = shalt.err (%p7544_p2)  }

</bundles_post_ra>
